<compile_context>
chip_gen: v7x
topology: tpu7x:2x2x1
jax: 0.10.0
libtpu: 0.0.40
codegen_flags: <defaults>
</compile_context>

<pallas_src>
import functools

import jax
import jax.numpy as jnp
from jax.experimental import pallas as pl
from jax.experimental.pallas import tpu as pltpu

CPAD = 128  # lane width: every channel dimension is zero-padded to this


# ----------------------------------------------------------------------------
# Fused network kernel (runs once per batch element via the grid)
# ----------------------------------------------------------------------------
def _fused_net_kernel(*refs, num_layers, ksize, h0, w0, out_dim):
    # refs layout:
    #   inputs : x_ref (1, H, W, CPAD) bf16 (channels zero-padded),
    #            w_ref[0..L-1]   (9*CPAD, CPAD) bf16  (BN scale folded, zero pad rows/cols),
    #            shift_ref[0..L-1] (1, CPAD) f32      (zero pad lanes),
    #            lin_w_ref (CPAD, out_dim) f32 (1/(Ho*Wo) folded in), lin_b_ref (1, out_dim) f32
    #   outputs: o_ref (1, 1, out_dim) f32
    #   scratch: slab_ref (1, H-2, W, 9*CPAD) bf16  -- reused im2col slab
    #            act0/act1 (1, ·, W, CPAD) bf16     -- ping-pong activations
    L = num_layers
    x_ref = refs[0]
    w_refs = refs[1:1 + L]
    s_refs = refs[1 + L:1 + 2 * L]
    lw_ref = refs[1 + 2 * L]
    lb_ref = refs[2 + 2 * L]
    o_ref = refs[3 + 2 * L]
    slab_ref = refs[4 + 2 * L]
    act_refs = (refs[5 + 2 * L], refs[6 + 2 * L])

    # Cheap one-time zero of the slab: the tail columns of shifted taps are never written,
    # this guarantees they hold 0 (not stale VMEM) even though they only feed junk columns.
    slab_ref[...] = jnp.zeros(slab_ref.shape, slab_ref.dtype)

    src = x_ref          # activations are always read from a VMEM ref, never held live
    h_in = h0
    for li in range(L):
        ho = h_in - (ksize - 1)
        dst = act_refs[li % 2]
        # im2col into the reused slab.  Lane offset t*CPAD is 128-aligned (dense store);
        # the kw shift is a sublane-offset read, the store always starts at sublane 0.
        for kh in range(ksize):
            for kw in range(ksize):
                t = kh * ksize + kw
                ww = w0 - kw
                slab_ref[:, 0:ho, 0:ww, t * CPAD:(t + 1) * CPAD] = (
                    src[:, kh:kh + ho, kw:w0, :])
        # (1, ho, 16, 9*CPAD) -> (ho*16, 9*CPAD): free merge (W=16 is a multiple of 8).
        patches = slab_ref[:, 0:ho, :, :].reshape(ho * w0, ksize * ksize * CPAD)
        # One lane-dense bf16 MXU matmul per layer, f32 accumulation.
        y = jnp.dot(patches, w_refs[li][...], preferred_element_type=jnp.float32)
        y = y + s_refs[li][...]          # folded BatchNorm shift (f32 math)
        if li > 0:                       # first conv+BN block has no ReLU in the torch module
            y = jnp.maximum(y, 0.0)
        dst[:, 0:ho, :, :] = y.astype(jnp.bfloat16).reshape(1, ho, w0, CPAD)
        src = dst
        h_in = ho

    # Global average pool over the valid region (1/(Hf*Wf) folded into lin_w) + Linear head.
    hf = h_in
    wf = w0 - L * (ksize - 1)
    pooled = jnp.sum(src[:, 0:hf, 0:wf, :].astype(jnp.float32), axis=(1, 2))   # (1, CPAD)
    head = jnp.dot(pooled, lw_ref[...], preferred_element_type=jnp.float32) + lb_ref[...]
    o_ref[...] = head.reshape(1, 1, out_dim).astype(o_ref.dtype)


# ----------------------------------------------------------------------------
# Wrapper: one pallas_call, batch grid, whole forward pass fused
# ----------------------------------------------------------------------------
def custom_net_forward(x_nchw, params, *, ksize=3):
    x = jnp.transpose(x_nchw, (0, 2, 3, 1)).astype(jnp.bfloat16)    # NCHW -> NHWC
    N, H, W, cin0 = x.shape
    assert cin0 <= CPAD
    x = jnp.pad(x, ((0, 0), (0, 0), (0, 0), (0, CPAD - cin0)))      # zero-pad channels

    conv_w = params["conv_w"]          # list of (3,3,Cin,Cout) bf16, BN scale folded in
    conv_shift = params["conv_shift"]  # list of (1, Cout) f32
    L = len(conv_w)

    # Build lane-padded weights (9*CPAD, CPAD) / shifts (1, CPAD); pad rows & cols are zero.
    w_pad, s_pad = [], []
    for wi, si in zip(conv_w, conv_shift):
        kh, kw, cin, cout = wi.shape
        assert kh == ksize and kw == ksize and cin <= CPAD and cout <= CPAD
        wr = wi.reshape(ksize * ksize, cin, cout)
        wp = jnp.zeros((ksize * ksize * CPAD, CPAD), jnp.bfloat16)
        for t in range(ksize * ksize):
            wp = wp.at[t * CPAD:t * CPAD + cin, :cout].set(wr[t])
        w_pad.append(wp)
        s_pad.append(jnp.zeros((1, CPAD), jnp.float32).at[:, :cout].set(si))

    hf, wf = H - L * (ksize - 1), W - L * (ksize - 1)
    c_last = conv_w[-1].shape[-1]
    out_dim = params["lin_w"].shape[1]
    lin_w = jnp.zeros((CPAD, out_dim), jnp.float32).at[:c_last, :].set(
        params["lin_w"] / float(hf * wf))                            # pool factor folded in
    lin_b = params["lin_b"].astype(jnp.float32)

    kernel = functools.partial(_fused_net_kernel, num_layers=L, ksize=ksize,
                               h0=H, w0=W, out_dim=out_dim)
    vmem = pltpu.MemorySpace.VMEM
    n_resident = 2 * L + 2                # weights + shifts + linear (stay VMEM-resident)

    out = pl.pallas_call(
        kernel,
        out_shape=jax.ShapeDtypeStruct((N, 1, out_dim), jnp.float32),
        grid=(N,),
        in_specs=[pl.BlockSpec((1, H, W, CPAD), lambda n: (n, 0, 0, 0))]
                 + [pl.BlockSpec(memory_space=vmem)] * n_resident,
        out_specs=pl.BlockSpec((1, 1, out_dim), lambda n: (n, 0, 0)),
        scratch_shapes=[
            pltpu.VMEM((1, H - (ksize - 1), W, ksize * ksize * CPAD), jnp.bfloat16),  # slab
            pltpu.VMEM((1, H - (ksize - 1), W, CPAD), jnp.bfloat16),                  # act ping
            pltpu.VMEM((1, H - 2 * (ksize - 1), W, CPAD), jnp.bfloat16),              # act pong
        ],
        compiler_params=pltpu.CompilerParams(dimension_semantics=("parallel",)),
    )(x, *w_pad, *s_pad, lin_w, lin_b)
    return out[:, 0, :]


# ----------------------------------------------------------------------------
# Parameter construction (deterministic, matches CustomNet.__init__ shapes)
# ----------------------------------------------------------------------------
def make_params(key, in_dim, out_dim, hidden_dim, num_layers, ksize):
    eps = 1e-5
    conv_w, conv_shift = [], []
    cin, cout = in_dim, hidden_dim
    for _ in range(num_layers):
        key, kw_, kg, kb, km, kv = jax.random.split(key, 6)
        w = 0.1 * jax.random.normal(kw_, (ksize, ksize, cin, cout), jnp.float32)
        gamma = 1.0 + 0.1 * jax.random.normal(kg, (cout,), jnp.float32)
        beta = 0.1 * jax.random.normal(kb, (cout,), jnp.float32)
        mean = 0.1 * jax.random.normal(km, (cout,), jnp.float32)
        var = jnp.abs(jax.random.normal(kv, (cout,), jnp.float32)) + 0.5
        scale = gamma / jnp.sqrt(var + eps)
        shift = beta - mean * scale
        # Fold BN scale into the conv weight; quantize once to bf16 (shared with reference).
        conv_w.append((w * scale.reshape(1, 1, 1, cout)).astype(jnp.bfloat16))
        conv_shift.append(shift.reshape(1, cout).astype(jnp.float32))
        cin, cout = cout, 2 * cout
    key, kw_, kb_ = jax.random.split(key, 3)
    lin_w = 0.1 * jax.random.normal(kw_, (cin, out_dim), jnp.float32)
    lin_b = 0.1 * jax.random.normal(kb_, (1, out_dim), jnp.float32)
    return {"conv_w": conv_w, "conv_shift": conv_shift, "lin_w": lin_w, "lin_b": lin_b}


# Pure-JAX reference with the same quantization points as the kernel
# (bf16 weights, bf16 activations at layer boundaries, f32 accumulation / shift / ReLU).
def _reference_forward(x_nchw, params):
    x = jnp.transpose(x_nchw, (0, 2, 3, 1)).astype(jnp.bfloat16)
    for i, (w, shift) in enumerate(zip(params["conv_w"], params["conv_shift"])):
        y = jax.lax.conv_general_dilated(
            x, w, window_strides=(1, 1), padding="VALID",
            dimension_numbers=("NHWC", "HWIO", "NHWC"),
            preferred_element_type=jnp.float32)
        y = y + shift.reshape(1, 1, 1, -1)
        if i > 0:
            y = jnp.maximum(y, 0.0)
        x = y.astype(jnp.bfloat16)
    pooled = jnp.mean(x.astype(jnp.float32), axis=(1, 2))
    return pooled @ params["lin_w"] + params["lin_b"][0]


if __name__ == "__main__":
    # CustomNet defaults: num_layers=5, hidden_dim=8, kernel_size=3.
    in_dim, out_dim = 4, 10
    hidden_dim, num_layers, ksize = 8, 5, 3
    N, H, W = 2, 16, 16          # spatial 16 -> 6 after 5 valid 3x3 convs

    key = jax.random.PRNGKey(0)
    key, kx, kp = jax.random.split(key, 3)
    x = jax.random.normal(kx, (N, in_dim, H, W), jnp.float32)     # NCHW like PyTorch
    params = make_params(kp, in_dim, out_dim, hidden_dim, num_layers, ksize)

    y = jax.block_until_ready(custom_net_forward(x, params, ksize=ksize))
    assert y.shape == (N, out_dim), y.shape

    y_ref = jax.block_until_ready(_reference_forward(x, params))
    # Kernel and reference share identical bf16 quantization points; residual differences
    # come only from f32 accumulation order.
    assert jnp.allclose(y, y_ref, atol=5e-3, rtol=5e-3), (y, y_ref)

    print("KERNEL_OK")
</pallas_src>

<mosaic_0001>
module attributes {stable_mosaic.version = 11 : i64} {
  func.func @_fused_net_kernel(%arg0: i32, %arg1: memref<1x16x16x128xbf16, #tpu.memory_space<vmem>>, %arg2: memref<1152x128xbf16, #tpu.memory_space<vmem>>, %arg3: memref<1152x128xbf16, #tpu.memory_space<vmem>>, %arg4: memref<1152x128xbf16, #tpu.memory_space<vmem>>, %arg5: memref<1152x128xbf16, #tpu.memory_space<vmem>>, %arg6: memref<1152x128xbf16, #tpu.memory_space<vmem>>, %arg7: memref<1x128xf32, #tpu.memory_space<vmem>>, %arg8: memref<1x128xf32, #tpu.memory_space<vmem>>, %arg9: memref<1x128xf32, #tpu.memory_space<vmem>>, %arg10: memref<1x128xf32, #tpu.memory_space<vmem>>, %arg11: memref<1x128xf32, #tpu.memory_space<vmem>>, %arg12: memref<128x10xf32, #tpu.memory_space<vmem>>, %arg13: memref<1x10xf32, #tpu.memory_space<vmem>>, %arg14: memref<1x1x10xf32, #tpu.memory_space<vmem>>, %arg15: memref<1x14x16x1152xbf16, #tpu.memory_space<vmem>>, %arg16: memref<1x14x16x128xbf16, #tpu.memory_space<vmem>>, %arg17: memref<1x12x16x128xbf16, #tpu.memory_space<vmem>>) attributes {dimension_semantics = [#tpu.dimension_semantics<parallel>], iteration_bounds = array<i64: 2>, scalar_prefetch = 0 : i64, scratch_operands = 3 : i64, tpu.core_type = #tpu.core_type<tc>, window_params = [{transform_indices = @transform_0, window_bounds = array<i64: 1, 16, 16, 128>}, {pipeline_mode = #tpu.pipeline_mode<synchronous>, transform_indices = @transform_1, window_bounds = array<i64: 1152, 128>}, {pipeline_mode = #tpu.pipeline_mode<synchronous>, transform_indices = @transform_2, window_bounds = array<i64: 1152, 128>}, {pipeline_mode = #tpu.pipeline_mode<synchronous>, transform_indices = @transform_3, window_bounds = array<i64: 1152, 128>}, {pipeline_mode = #tpu.pipeline_mode<synchronous>, transform_indices = @transform_4, window_bounds = array<i64: 1152, 128>}, {pipeline_mode = #tpu.pipeline_mode<synchronous>, transform_indices = @transform_5, window_bounds = array<i64: 1152, 128>}, {pipeline_mode = #tpu.pipeline_mode<synchronous>, transform_indices = @transform_6, window_bounds = array<i64: 1, 128>}, {pipeline_mode = #tpu.pipeline_mode<synchronous>, transform_indices = @transform_7, window_bounds = array<i64: 1, 128>}, {pipeline_mode = #tpu.pipeline_mode<synchronous>, transform_indices = @transform_8, window_bounds = array<i64: 1, 128>}, {pipeline_mode = #tpu.pipeline_mode<synchronous>, transform_indices = @transform_9, window_bounds = array<i64: 1, 128>}, {pipeline_mode = #tpu.pipeline_mode<synchronous>, transform_indices = @transform_10, window_bounds = array<i64: 1, 128>}, {pipeline_mode = #tpu.pipeline_mode<synchronous>, transform_indices = @transform_11, window_bounds = array<i64: 128, 10>}, {pipeline_mode = #tpu.pipeline_mode<synchronous>, transform_indices = @transform_12, window_bounds = array<i64: 1, 10>}, {transform_indices = @transform_13, window_bounds = array<i64: 1, 1, 10>}]} {
    %cst = arith.constant 0.000000e+00 : bf16
    %0 = vector.broadcast %cst : bf16 to vector<1x14x16x1152xbf16>
    %c0 = arith.constant 0 : index
    %c0_0 = arith.constant 0 : index
    %c0_1 = arith.constant 0 : index
    %c0_2 = arith.constant 0 : index
    %1 = vector.load %arg15[%c0, %c0_0, %c0_1, %c0_2] : memref<1x14x16x1152xbf16, #tpu.memory_space<vmem>>, vector<1x14x16x1152xbf16>
    tpu.vector_store %arg15[%c0, %c0_0, %c0_1, %c0_2], %0 {strides = array<i32>} : memref<1x14x16x1152xbf16, #tpu.memory_space<vmem>>, vector<1x14x16x1152xbf16>,
    %c0_3 = arith.constant 0 : index
    %c0_4 = arith.constant 0 : index
    %c0_5 = arith.constant 0 : index
    %c0_6 = arith.constant 0 : index
    %2 = vector.load %arg1[%c0_3, %c0_4, %c0_5, %c0_6] : memref<1x16x16x128xbf16, #tpu.memory_space<vmem>>, vector<1x14x16x128xbf16>
    %c0_7 = arith.constant 0 : index
    %c0_8 = arith.constant 0 : index
    %c0_9 = arith.constant 0 : index
    %c0_10 = arith.constant 0 : index
    %3 = vector.load %arg15[%c0_7, %c0_8, %c0_9, %c0_10] : memref<1x14x16x1152xbf16, #tpu.memory_space<vmem>>, vector<1x14x16x128xbf16>
    tpu.vector_store %arg15[%c0_7, %c0_8, %c0_9, %c0_10], %2 {strides = array<i32>} : memref<1x14x16x1152xbf16, #tpu.memory_space<vmem>>, vector<1x14x16x128xbf16>,
    %c0_11 = arith.constant 0 : index
    %c0_12 = arith.constant 0 : index
    %c1 = arith.constant 1 : index
    %c0_13 = arith.constant 0 : index
    %4 = vector.load %arg1[%c0_11, %c0_12, %c1, %c0_13] : memref<1x16x16x128xbf16, #tpu.memory_space<vmem>>, vector<1x14x15x128xbf16>
    %c0_14 = arith.constant 0 : index
    %c0_15 = arith.constant 0 : index
    %c0_16 = arith.constant 0 : index
    %c128 = arith.constant 128 : index
    %5 = vector.load %arg15[%c0_14, %c0_15, %c0_16, %c128] : memref<1x14x16x1152xbf16, #tpu.memory_space<vmem>>, vector<1x14x15x128xbf16>
    tpu.vector_store %arg15[%c0_14, %c0_15, %c0_16, %c128], %4 {strides = array<i32>} : memref<1x14x16x1152xbf16, #tpu.memory_space<vmem>>, vector<1x14x15x128xbf16>,
    %c0_17 = arith.constant 0 : index
    %c0_18 = arith.constant 0 : index
    %c2 = arith.constant 2 : index
    %c0_19 = arith.constant 0 : index
    %6 = vector.load %arg1[%c0_17, %c0_18, %c2, %c0_19] : memref<1x16x16x128xbf16, #tpu.memory_space<vmem>>, vector<1x14x14x128xbf16>
    %c0_20 = arith.constant 0 : index
    %c0_21 = arith.constant 0 : index
    %c0_22 = arith.constant 0 : index
    %c256 = arith.constant 256 : index
    %7 = vector.load %arg15[%c0_20, %c0_21, %c0_22, %c256] : memref<1x14x16x1152xbf16, #tpu.memory_space<vmem>>, vector<1x14x14x128xbf16>
    tpu.vector_store %arg15[%c0_20, %c0_21, %c0_22, %c256], %6 {strides = array<i32>} : memref<1x14x16x1152xbf16, #tpu.memory_space<vmem>>, vector<1x14x14x128xbf16>,
    %c0_23 = arith.constant 0 : index
    %c1_24 = arith.constant 1 : index
    %c0_25 = arith.constant 0 : index
    %c0_26 = arith.constant 0 : index
    %8 = vector.load %arg1[%c0_23, %c1_24, %c0_25, %c0_26] : memref<1x16x16x128xbf16, #tpu.memory_space<vmem>>, vector<1x14x16x128xbf16>
    %c0_27 = arith.constant 0 : index
    %c0_28 = arith.constant 0 : index
    %c0_29 = arith.constant 0 : index
    %c384 = arith.constant 384 : index
    %9 = vector.load %arg15[%c0_27, %c0_28, %c0_29, %c384] : memref<1x14x16x1152xbf16, #tpu.memory_space<vmem>>, vector<1x14x16x128xbf16>
    tpu.vector_store %arg15[%c0_27, %c0_28, %c0_29, %c384], %8 {strides = array<i32>} : memref<1x14x16x1152xbf16, #tpu.memory_space<vmem>>, vector<1x14x16x128xbf16>,
    %c0_30 = arith.constant 0 : index
    %c1_31 = arith.constant 1 : index
    %c1_32 = arith.constant 1 : index
    %c0_33 = arith.constant 0 : index
    %10 = vector.load %arg1[%c0_30, %c1_31, %c1_32, %c0_33] : memref<1x16x16x128xbf16, #tpu.memory_space<vmem>>, vector<1x14x15x128xbf16>
    %c0_34 = arith.constant 0 : index
    %c0_35 = arith.constant 0 : index
    %c0_36 = arith.constant 0 : index
    %c512 = arith.constant 512 : index
    %11 = vector.load %arg15[%c0_34, %c0_35, %c0_36, %c512] : memref<1x14x16x1152xbf16, #tpu.memory_space<vmem>>, vector<1x14x15x128xbf16>
    tpu.vector_store %arg15[%c0_34, %c0_35, %c0_36, %c512], %10 {strides = array<i32>} : memref<1x14x16x1152xbf16, #tpu.memory_space<vmem>>, vector<1x14x15x128xbf16>,
    %c0_37 = arith.constant 0 : index
    %c1_38 = arith.constant 1 : index
    %c2_39 = arith.constant 2 : index
    %c0_40 = arith.constant 0 : index
    %12 = vector.load %arg1[%c0_37, %c1_38, %c2_39, %c0_40] : memref<1x16x16x128xbf16, #tpu.memory_space<vmem>>, vector<1x14x14x128xbf16>
    %c0_41 = arith.constant 0 : index
    %c0_42 = arith.constant 0 : index
    %c0_43 = arith.constant 0 : index
    %c640 = arith.constant 640 : index
    %13 = vector.load %arg15[%c0_41, %c0_42, %c0_43, %c640] : memref<1x14x16x1152xbf16, #tpu.memory_space<vmem>>, vector<1x14x14x128xbf16>
    tpu.vector_store %arg15[%c0_41, %c0_42, %c0_43, %c640], %12 {strides = array<i32>} : memref<1x14x16x1152xbf16, #tpu.memory_space<vmem>>, vector<1x14x14x128xbf16>,
    %c0_44 = arith.constant 0 : index
    %c2_45 = arith.constant 2 : index
    %c0_46 = arith.constant 0 : index
    %c0_47 = arith.constant 0 : index
    %14 = vector.load %arg1[%c0_44, %c2_45, %c0_46, %c0_47] : memref<1x16x16x128xbf16, #tpu.memory_space<vmem>>, vector<1x14x16x128xbf16>
    %c0_48 = arith.constant 0 : index
    %c0_49 = arith.constant 0 : index
    %c0_50 = arith.constant 0 : index
    %c768 = arith.constant 768 : index
    %15 = vector.load %arg15[%c0_48, %c0_49, %c0_50, %c768] : memref<1x14x16x1152xbf16, #tpu.memory_space<vmem>>, vector<1x14x16x128xbf16>
    tpu.vector_store %arg15[%c0_48, %c0_49, %c0_50, %c768], %14 {strides = array<i32>} : memref<1x14x16x1152xbf16, #tpu.memory_space<vmem>>, vector<1x14x16x128xbf16>,
    %c0_51 = arith.constant 0 : index
    %c2_52 = arith.constant 2 : index
    %c1_53 = arith.constant 1 : index
    %c0_54 = arith.constant 0 : index
    %16 = vector.load %arg1[%c0_51, %c2_52, %c1_53, %c0_54] : memref<1x16x16x128xbf16, #tpu.memory_space<vmem>>, vector<1x14x15x128xbf16>
    %c0_55 = arith.constant 0 : index
    %c0_56 = arith.constant 0 : index
    %c0_57 = arith.constant 0 : index
    %c896 = arith.constant 896 : index
    %17 = vector.load %arg15[%c0_55, %c0_56, %c0_57, %c896] : memref<1x14x16x1152xbf16, #tpu.memory_space<vmem>>, vector<1x14x15x128xbf16>
    tpu.vector_store %arg15[%c0_55, %c0_56, %c0_57, %c896], %16 {strides = array<i32>} : memref<1x14x16x1152xbf16, #tpu.memory_space<vmem>>, vector<1x14x15x128xbf16>,
    %c0_58 = arith.constant 0 : index
    %c2_59 = arith.constant 2 : index
    %c2_60 = arith.constant 2 : index
    %c0_61 = arith.constant 0 : index
    %18 = vector.load %arg1[%c0_58, %c2_59, %c2_60, %c0_61] : memref<1x16x16x128xbf16, #tpu.memory_space<vmem>>, vector<1x14x14x128xbf16>
    %c0_62 = arith.constant 0 : index
    %c0_63 = arith.constant 0 : index
    %c0_64 = arith.constant 0 : index
    %c1024 = arith.constant 1024 : index
    %19 = vector.load %arg15[%c0_62, %c0_63, %c0_64, %c1024] : memref<1x14x16x1152xbf16, #tpu.memory_space<vmem>>, vector<1x14x14x128xbf16>
    tpu.vector_store %arg15[%c0_62, %c0_63, %c0_64, %c1024], %18 {strides = array<i32>} : memref<1x14x16x1152xbf16, #tpu.memory_space<vmem>>, vector<1x14x14x128xbf16>,
    %c0_65 = arith.constant 0 : index
    %c0_66 = arith.constant 0 : index
    %c0_67 = arith.constant 0 : index
    %c0_68 = arith.constant 0 : index
    %20 = vector.load %arg15[%c0_65, %c0_66, %c0_67, %c0_68] : memref<1x14x16x1152xbf16, #tpu.memory_space<vmem>>, vector<1x14x16x1152xbf16>
    %21 = vector.shape_cast %20 : vector<1x14x16x1152xbf16> to vector<224x1152xbf16>
    %c0_69 = arith.constant 0 : index
    %c0_70 = arith.constant 0 : index
    %22 = vector.load %arg2[%c0_69, %c0_70] : memref<1152x128xbf16, #tpu.memory_space<vmem>>, vector<1152x128xbf16>
    %cst_71 = arith.constant dense<0.000000e+00> : vector<224x128xf32>
    %23 = tpu.matmul %21, %22, %cst_71 {dimension_numbers = #tpu.dot_dimension_numbers<[1], [0], [0], [1], [0, 0, 1, 1], [], []>} : vector<224x1152xbf16>, vector<1152x128xbf16>, vector<224x128xf32> -> vector<224x128xf32>
    %c0_72 = arith.constant 0 : index
    %c0_73 = arith.constant 0 : index
    %24 = vector.load %arg7[%c0_72, %c0_73] : memref<1x128xf32, #tpu.memory_space<vmem>>, vector<1x128xf32>
    %25 = vector.broadcast %24 : vector<1x128xf32> to vector<224x128xf32>
    %26 = arith.addf %23, %25 : vector<224x128xf32>
    %27 = arith.truncf %26 : vector<224x128xf32> to vector<224x128xbf16>
    %28 = vector.shape_cast %27 : vector<224x128xbf16> to vector<1x14x16x128xbf16>
    %c0_74 = arith.constant 0 : index
    %c0_75 = arith.constant 0 : index
    %c0_76 = arith.constant 0 : index
    %c0_77 = arith.constant 0 : index
    %29 = vector.load %arg16[%c0_74, %c0_75, %c0_76, %c0_77] : memref<1x14x16x128xbf16, #tpu.memory_space<vmem>>, vector<1x14x16x128xbf16>
    tpu.vector_store %arg16[%c0_74, %c0_75, %c0_76, %c0_77], %28 {strides = array<i32>} : memref<1x14x16x128xbf16, #tpu.memory_space<vmem>>, vector<1x14x16x128xbf16>,
    %c0_78 = arith.constant 0 : index
    %c0_79 = arith.constant 0 : index
    %c0_80 = arith.constant 0 : index
    %c0_81 = arith.constant 0 : index
    %30 = vector.load %arg16[%c0_78, %c0_79, %c0_80, %c0_81] : memref<1x14x16x128xbf16, #tpu.memory_space<vmem>>, vector<1x12x16x128xbf16>
    %c0_82 = arith.constant 0 : index
    %c0_83 = arith.constant 0 : index
    %c0_84 = arith.constant 0 : index
    %c0_85 = arith.constant 0 : index
    %31 = vector.load %arg15[%c0_82, %c0_83, %c0_84, %c0_85] : memref<1x14x16x1152xbf16, #tpu.memory_space<vmem>>, vector<1x12x16x128xbf16>
    tpu.vector_store %arg15[%c0_82, %c0_83, %c0_84, %c0_85], %30 {strides = array<i32>} : memref<1x14x16x1152xbf16, #tpu.memory_space<vmem>>, vector<1x12x16x128xbf16>,
    %c0_86 = arith.constant 0 : index
    %c0_87 = arith.constant 0 : index
    %c1_88 = arith.constant 1 : index
    %c0_89 = arith.constant 0 : index
    %32 = vector.load %arg16[%c0_86, %c0_87, %c1_88, %c0_89] : memref<1x14x16x128xbf16, #tpu.memory_space<vmem>>, vector<1x12x15x128xbf16>
    %c0_90 = arith.constant 0 : index
    %c0_91 = arith.constant 0 : index
    %c0_92 = arith.constant 0 : index
    %c128_93 = arith.constant 128 : index
    %33 = vector.load %arg15[%c0_90, %c0_91, %c0_92, %c128_93] : memref<1x14x16x1152xbf16, #tpu.memory_space<vmem>>, vector<1x12x15x128xbf16>
    tpu.vector_store %arg15[%c0_90, %c0_91, %c0_92, %c128_93], %32 {strides = array<i32>} : memref<1x14x16x1152xbf16, #tpu.memory_space<vmem>>, vector<1x12x15x128xbf16>,
    %c0_94 = arith.constant 0 : index
    %c0_95 = arith.constant 0 : index
    %c2_96 = arith.constant 2 : index
    %c0_97 = arith.constant 0 : index
    %34 = vector.load %arg16[%c0_94, %c0_95, %c2_96, %c0_97] : memref<1x14x16x128xbf16, #tpu.memory_space<vmem>>, vector<1x12x14x128xbf16>
    %c0_98 = arith.constant 0 : index
    %c0_99 = arith.constant 0 : index
    %c0_100 = arith.constant 0 : index
    %c256_101 = arith.constant 256 : index
    %35 = vector.load %arg15[%c0_98, %c0_99, %c0_100, %c256_101] : memref<1x14x16x1152xbf16, #tpu.memory_space<vmem>>, vector<1x12x14x128xbf16>
    tpu.vector_store %arg15[%c0_98, %c0_99, %c0_100, %c256_101], %34 {strides = array<i32>} : memref<1x14x16x1152xbf16, #tpu.memory_space<vmem>>, vector<1x12x14x128xbf16>,
    %c0_102 = arith.constant 0 : index
    %c1_103 = arith.constant 1 : index
    %c0_104 = arith.constant 0 : index
    %c0_105 = arith.constant 0 : index
    %36 = vector.load %arg16[%c0_102, %c1_103, %c0_104, %c0_105] : memref<1x14x16x128xbf16, #tpu.memory_space<vmem>>, vector<1x12x16x128xbf16>
    %c0_106 = arith.constant 0 : index
    %c0_107 = arith.constant 0 : index
    %c0_108 = arith.constant 0 : index
    %c384_109 = arith.constant 384 : index
    %37 = vector.load %arg15[%c0_106, %c0_107, %c0_108, %c384_109] : memref<1x14x16x1152xbf16, #tpu.memory_space<vmem>>, vector<1x12x16x128xbf16>
    tpu.vector_store %arg15[%c0_106, %c0_107, %c0_108, %c384_109], %36 {strides = array<i32>} : memref<1x14x16x1152xbf16, #tpu.memory_space<vmem>>, vector<1x12x16x128xbf16>,
    %c0_110 = arith.constant 0 : index
    %c1_111 = arith.constant 1 : index
    %c1_112 = arith.constant 1 : index
    %c0_113 = arith.constant 0 : index
    %38 = vector.load %arg16[%c0_110, %c1_111, %c1_112, %c0_113] : memref<1x14x16x128xbf16, #tpu.memory_space<vmem>>, vector<1x12x15x128xbf16>
    %c0_114 = arith.constant 0 : index
    %c0_115 = arith.constant 0 : index
    %c0_116 = arith.constant 0 : index
    %c512_117 = arith.constant 512 : index
    %39 = vector.load %arg15[%c0_114, %c0_115, %c0_116, %c512_117] : memref<1x14x16x1152xbf16, #tpu.memory_space<vmem>>, vector<1x12x15x128xbf16>
    tpu.vector_store %arg15[%c0_114, %c0_115, %c0_116, %c512_117], %38 {strides = array<i32>} : memref<1x14x16x1152xbf16, #tpu.memory_space<vmem>>, vector<1x12x15x128xbf16>,
    %c0_118 = arith.constant 0 : index
    %c1_119 = arith.constant 1 : index
    %c2_120 = arith.constant 2 : index
    %c0_121 = arith.constant 0 : index
    %40 = vector.load %arg16[%c0_118, %c1_119, %c2_120, %c0_121] : memref<1x14x16x128xbf16, #tpu.memory_space<vmem>>, vector<1x12x14x128xbf16>
    %c0_122 = arith.constant 0 : index
    %c0_123 = arith.constant 0 : index
    %c0_124 = arith.constant 0 : index
    %c640_125 = arith.constant 640 : index
    %41 = vector.load %arg15[%c0_122, %c0_123, %c0_124, %c640_125] : memref<1x14x16x1152xbf16, #tpu.memory_space<vmem>>, vector<1x12x14x128xbf16>
    tpu.vector_store %arg15[%c0_122, %c0_123, %c0_124, %c640_125], %40 {strides = array<i32>} : memref<1x14x16x1152xbf16, #tpu.memory_space<vmem>>, vector<1x12x14x128xbf16>,
    %c0_126 = arith.constant 0 : index
    %c2_127 = arith.constant 2 : index
    %c0_128 = arith.constant 0 : index
    %c0_129 = arith.constant 0 : index
    %42 = vector.load %arg16[%c0_126, %c2_127, %c0_128, %c0_129] : memref<1x14x16x128xbf16, #tpu.memory_space<vmem>>, vector<1x12x16x128xbf16>
    %c0_130 = arith.constant 0 : index
    %c0_131 = arith.constant 0 : index
    %c0_132 = arith.constant 0 : index
    %c768_133 = arith.constant 768 : index
    %43 = vector.load %arg15[%c0_130, %c0_131, %c0_132, %c768_133] : memref<1x14x16x1152xbf16, #tpu.memory_space<vmem>>, vector<1x12x16x128xbf16>
    tpu.vector_store %arg15[%c0_130, %c0_131, %c0_132, %c768_133], %42 {strides = array<i32>} : memref<1x14x16x1152xbf16, #tpu.memory_space<vmem>>, vector<1x12x16x128xbf16>,
    %c0_134 = arith.constant 0 : index
    %c2_135 = arith.constant 2 : index
    %c1_136 = arith.constant 1 : index
    %c0_137 = arith.constant 0 : index
    %44 = vector.load %arg16[%c0_134, %c2_135, %c1_136, %c0_137] : memref<1x14x16x128xbf16, #tpu.memory_space<vmem>>, vector<1x12x15x128xbf16>
    %c0_138 = arith.constant 0 : index
    %c0_139 = arith.constant 0 : index
    %c0_140 = arith.constant 0 : index
    %c896_141 = arith.constant 896 : index
    %45 = vector.load %arg15[%c0_138, %c0_139, %c0_140, %c896_141] : memref<1x14x16x1152xbf16, #tpu.memory_space<vmem>>, vector<1x12x15x128xbf16>
    tpu.vector_store %arg15[%c0_138, %c0_139, %c0_140, %c896_141], %44 {strides = array<i32>} : memref<1x14x16x1152xbf16, #tpu.memory_space<vmem>>, vector<1x12x15x128xbf16>,
    %c0_142 = arith.constant 0 : index
    %c2_143 = arith.constant 2 : index
    %c2_144 = arith.constant 2 : index
    %c0_145 = arith.constant 0 : index
    %46 = vector.load %arg16[%c0_142, %c2_143, %c2_144, %c0_145] : memref<1x14x16x128xbf16, #tpu.memory_space<vmem>>, vector<1x12x14x128xbf16>
    %c0_146 = arith.constant 0 : index
    %c0_147 = arith.constant 0 : index
    %c0_148 = arith.constant 0 : index
    %c1024_149 = arith.constant 1024 : index
    %47 = vector.load %arg15[%c0_146, %c0_147, %c0_148, %c1024_149] : memref<1x14x16x1152xbf16, #tpu.memory_space<vmem>>, vector<1x12x14x128xbf16>
    tpu.vector_store %arg15[%c0_146, %c0_147, %c0_148, %c1024_149], %46 {strides = array<i32>} : memref<1x14x16x1152xbf16, #tpu.memory_space<vmem>>, vector<1x12x14x128xbf16>,
    %c0_150 = arith.constant 0 : index
    %c0_151 = arith.constant 0 : index
    %c0_152 = arith.constant 0 : index
    %c0_153 = arith.constant 0 : index
    %48 = vector.load %arg15[%c0_150, %c0_151, %c0_152, %c0_153] : memref<1x14x16x1152xbf16, #tpu.memory_space<vmem>>, vector<1x12x16x1152xbf16>
    %49 = vector.shape_cast %48 : vector<1x12x16x1152xbf16> to vector<192x1152xbf16>
    %c0_154 = arith.constant 0 : index
    %c0_155 = arith.constant 0 : index
    %50 = vector.load %arg3[%c0_154, %c0_155] : memref<1152x128xbf16, #tpu.memory_space<vmem>>, vector<1152x128xbf16>
    %cst_156 = arith.constant dense<0.000000e+00> : vector<192x128xf32>
    %51 = tpu.matmul %49, %50, %cst_156 {dimension_numbers = #tpu.dot_dimension_numbers<[1], [0], [0], [1], [0, 0, 1, 1], [], []>} : vector<192x1152xbf16>, vector<1152x128xbf16>, vector<192x128xf32> -> vector<192x128xf32>
    %c0_157 = arith.constant 0 : index
    %c0_158 = arith.constant 0 : index
    %52 = vector.load %arg8[%c0_157, %c0_158] : memref<1x128xf32, #tpu.memory_space<vmem>>, vector<1x128xf32>
    %53 = vector.broadcast %52 : vector<1x128xf32> to vector<192x128xf32>
    %54 = arith.addf %51, %53 : vector<192x128xf32>
    %cst_159 = arith.constant 0.000000e+00 : f32
    %55 = vector.broadcast %cst_159 : f32 to vector<192x128xf32>
    %56 = arith.maximumf %54, %55 : vector<192x128xf32>
    %57 = arith.truncf %56 : vector<192x128xf32> to vector<192x128xbf16>
    %58 = vector.shape_cast %57 : vector<192x128xbf16> to vector<1x12x16x128xbf16>
    %c0_160 = arith.constant 0 : index
    %c0_161 = arith.constant 0 : index
    %c0_162 = arith.constant 0 : index
    %c0_163 = arith.constant 0 : index
    %59 = vector.load %arg17[%c0_160, %c0_161, %c0_162, %c0_163] : memref<1x12x16x128xbf16, #tpu.memory_space<vmem>>, vector<1x12x16x128xbf16>
    tpu.vector_store %arg17[%c0_160, %c0_161, %c0_162, %c0_163], %58 {strides = array<i32>} : memref<1x12x16x128xbf16, #tpu.memory_space<vmem>>, vector<1x12x16x128xbf16>,
    %c0_164 = arith.constant 0 : index
    %c0_165 = arith.constant 0 : index
    %c0_166 = arith.constant 0 : index
    %c0_167 = arith.constant 0 : index
    %60 = vector.load %arg17[%c0_164, %c0_165, %c0_166, %c0_167] : memref<1x12x16x128xbf16, #tpu.memory_space<vmem>>, vector<1x10x16x128xbf16>
    %c0_168 = arith.constant 0 : index
    %c0_169 = arith.constant 0 : index
    %c0_170 = arith.constant 0 : index
    %c0_171 = arith.constant 0 : index
    %61 = vector.load %arg15[%c0_168, %c0_169, %c0_170, %c0_171] : memref<1x14x16x1152xbf16, #tpu.memory_space<vmem>>, vector<1x10x16x128xbf16>
    tpu.vector_store %arg15[%c0_168, %c0_169, %c0_170, %c0_171], %60 {strides = array<i32>} : memref<1x14x16x1152xbf16, #tpu.memory_space<vmem>>, vector<1x10x16x128xbf16>,
    %c0_172 = arith.constant 0 : index
    %c0_173 = arith.constant 0 : index
    %c1_174 = arith.constant 1 : index
    %c0_175 = arith.constant 0 : index
    %62 = vector.load %arg17[%c0_172, %c0_173, %c1_174, %c0_175] : memref<1x12x16x128xbf16, #tpu.memory_space<vmem>>, vector<1x10x15x128xbf16>
    %c0_176 = arith.constant 0 : index
    %c0_177 = arith.constant 0 : index
    %c0_178 = arith.constant 0 : index
    %c128_179 = arith.constant 128 : index
    %63 = vector.load %arg15[%c0_176, %c0_177, %c0_178, %c128_179] : memref<1x14x16x1152xbf16, #tpu.memory_space<vmem>>, vector<1x10x15x128xbf16>
    tpu.vector_store %arg15[%c0_176, %c0_177, %c0_178, %c128_179], %62 {strides = array<i32>} : memref<1x14x16x1152xbf16, #tpu.memory_space<vmem>>, vector<1x10x15x128xbf16>,
    %c0_180 = arith.constant 0 : index
    %c0_181 = arith.constant 0 : index
    %c2_182 = arith.constant 2 : index
    %c0_183 = arith.constant 0 : index
    %64 = vector.load %arg17[%c0_180, %c0_181, %c2_182, %c0_183] : memref<1x12x16x128xbf16, #tpu.memory_space<vmem>>, vector<1x10x14x128xbf16>
    %c0_184 = arith.constant 0 : index
    %c0_185 = arith.constant 0 : index
    %c0_186 = arith.constant 0 : index
    %c256_187 = arith.constant 256 : index
    %65 = vector.load %arg15[%c0_184, %c0_185, %c0_186, %c256_187] : memref<1x14x16x1152xbf16, #tpu.memory_space<vmem>>, vector<1x10x14x128xbf16>
    tpu.vector_store %arg15[%c0_184, %c0_185, %c0_186, %c256_187], %64 {strides = array<i32>} : memref<1x14x16x1152xbf16, #tpu.memory_space<vmem>>, vector<1x10x14x128xbf16>,
    %c0_188 = arith.constant 0 : index
    %c1_189 = arith.constant 1 : index
    %c0_190 = arith.constant 0 : index
    %c0_191 = arith.constant 0 : index
    %66 = vector.load %arg17[%c0_188, %c1_189, %c0_190, %c0_191] : memref<1x12x16x128xbf16, #tpu.memory_space<vmem>>, vector<1x10x16x128xbf16>
    %c0_192 = arith.constant 0 : index
    %c0_193 = arith.constant 0 : index
    %c0_194 = arith.constant 0 : index
    %c384_195 = arith.constant 384 : index
    %67 = vector.load %arg15[%c0_192, %c0_193, %c0_194, %c384_195] : memref<1x14x16x1152xbf16, #tpu.memory_space<vmem>>, vector<1x10x16x128xbf16>
    tpu.vector_store %arg15[%c0_192, %c0_193, %c0_194, %c384_195], %66 {strides = array<i32>} : memref<1x14x16x1152xbf16, #tpu.memory_space<vmem>>, vector<1x10x16x128xbf16>,
    %c0_196 = arith.constant 0 : index
    %c1_197 = arith.constant 1 : index
    %c1_198 = arith.constant 1 : index
    %c0_199 = arith.constant 0 : index
    %68 = vector.load %arg17[%c0_196, %c1_197, %c1_198, %c0_199] : memref<1x12x16x128xbf16, #tpu.memory_space<vmem>>, vector<1x10x15x128xbf16>
    %c0_200 = arith.constant 0 : index
    %c0_201 = arith.constant 0 : index
    %c0_202 = arith.constant 0 : index
    %c512_203 = arith.constant 512 : index
    %69 = vector.load %arg15[%c0_200, %c0_201, %c0_202, %c512_203] : memref<1x14x16x1152xbf16, #tpu.memory_space<vmem>>, vector<1x10x15x128xbf16>
    tpu.vector_store %arg15[%c0_200, %c0_201, %c0_202, %c512_203], %68 {strides = array<i32>} : memref<1x14x16x1152xbf16, #tpu.memory_space<vmem>>, vector<1x10x15x128xbf16>,
    %c0_204 = arith.constant 0 : index
    %c1_205 = arith.constant 1 : index
    %c2_206 = arith.constant 2 : index
    %c0_207 = arith.constant 0 : index
    %70 = vector.load %arg17[%c0_204, %c1_205, %c2_206, %c0_207] : memref<1x12x16x128xbf16, #tpu.memory_space<vmem>>, vector<1x10x14x128xbf16>
    %c0_208 = arith.constant 0 : index
    %c0_209 = arith.constant 0 : index
    %c0_210 = arith.constant 0 : index
    %c640_211 = arith.constant 640 : index
    %71 = vector.load %arg15[%c0_208, %c0_209, %c0_210, %c640_211] : memref<1x14x16x1152xbf16, #tpu.memory_space<vmem>>, vector<1x10x14x128xbf16>
    tpu.vector_store %arg15[%c0_208, %c0_209, %c0_210, %c640_211], %70 {strides = array<i32>} : memref<1x14x16x1152xbf16, #tpu.memory_space<vmem>>, vector<1x10x14x128xbf16>,
    %c0_212 = arith.constant 0 : index
    %c2_213 = arith.constant 2 : index
    %c0_214 = arith.constant 0 : index
    %c0_215 = arith.constant 0 : index
    %72 = vector.load %arg17[%c0_212, %c2_213, %c0_214, %c0_215] : memref<1x12x16x128xbf16, #tpu.memory_space<vmem>>, vector<1x10x16x128xbf16>
    %c0_216 = arith.constant 0 : index
    %c0_217 = arith.constant 0 : index
    %c0_218 = arith.constant 0 : index
    %c768_219 = arith.constant 768 : index
    %73 = vector.load %arg15[%c0_216, %c0_217, %c0_218, %c768_219] : memref<1x14x16x1152xbf16, #tpu.memory_space<vmem>>, vector<1x10x16x128xbf16>
    tpu.vector_store %arg15[%c0_216, %c0_217, %c0_218, %c768_219], %72 {strides = array<i32>} : memref<1x14x16x1152xbf16, #tpu.memory_space<vmem>>, vector<1x10x16x128xbf16>,
    %c0_220 = arith.constant 0 : index
    %c2_221 = arith.constant 2 : index
    %c1_222 = arith.constant 1 : index
    %c0_223 = arith.constant 0 : index
    %74 = vector.load %arg17[%c0_220, %c2_221, %c1_222, %c0_223] : memref<1x12x16x128xbf16, #tpu.memory_space<vmem>>, vector<1x10x15x128xbf16>
    %c0_224 = arith.constant 0 : index
    %c0_225 = arith.constant 0 : index
    %c0_226 = arith.constant 0 : index
    %c896_227 = arith.constant 896 : index
    %75 = vector.load %arg15[%c0_224, %c0_225, %c0_226, %c896_227] : memref<1x14x16x1152xbf16, #tpu.memory_space<vmem>>, vector<1x10x15x128xbf16>
    tpu.vector_store %arg15[%c0_224, %c0_225, %c0_226, %c896_227], %74 {strides = array<i32>} : memref<1x14x16x1152xbf16, #tpu.memory_space<vmem>>, vector<1x10x15x128xbf16>,
    %c0_228 = arith.constant 0 : index
    %c2_229 = arith.constant 2 : index
    %c2_230 = arith.constant 2 : index
    %c0_231 = arith.constant 0 : index
    %76 = vector.load %arg17[%c0_228, %c2_229, %c2_230, %c0_231] : memref<1x12x16x128xbf16, #tpu.memory_space<vmem>>, vector<1x10x14x128xbf16>
    %c0_232 = arith.constant 0 : index
    %c0_233 = arith.constant 0 : index
    %c0_234 = arith.constant 0 : index
    %c1024_235 = arith.constant 1024 : index
    %77 = vector.load %arg15[%c0_232, %c0_233, %c0_234, %c1024_235] : memref<1x14x16x1152xbf16, #tpu.memory_space<vmem>>, vector<1x10x14x128xbf16>
    tpu.vector_store %arg15[%c0_232, %c0_233, %c0_234, %c1024_235], %76 {strides = array<i32>} : memref<1x14x16x1152xbf16, #tpu.memory_space<vmem>>, vector<1x10x14x128xbf16>,
    %c0_236 = arith.constant 0 : index
    %c0_237 = arith.constant 0 : index
    %c0_238 = arith.constant 0 : index
    %c0_239 = arith.constant 0 : index
    %78 = vector.load %arg15[%c0_236, %c0_237, %c0_238, %c0_239] : memref<1x14x16x1152xbf16, #tpu.memory_space<vmem>>, vector<1x10x16x1152xbf16>
    %79 = vector.shape_cast %78 : vector<1x10x16x1152xbf16> to vector<160x1152xbf16>
    %c0_240 = arith.constant 0 : index
    %c0_241 = arith.constant 0 : index
    %80 = vector.load %arg4[%c0_240, %c0_241] : memref<1152x128xbf16, #tpu.memory_space<vmem>>, vector<1152x128xbf16>
    %cst_242 = arith.constant dense<0.000000e+00> : vector<160x128xf32>
    %81 = tpu.matmul %79, %80, %cst_242 {dimension_numbers = #tpu.dot_dimension_numbers<[1], [0], [0], [1], [0, 0, 1, 1], [], []>} : vector<160x1152xbf16>, vector<1152x128xbf16>, vector<160x128xf32> -> vector<160x128xf32>
    %c0_243 = arith.constant 0 : index
    %c0_244 = arith.constant 0 : index
    %82 = vector.load %arg9[%c0_243, %c0_244] : memref<1x128xf32, #tpu.memory_space<vmem>>, vector<1x128xf32>
    %83 = vector.broadcast %82 : vector<1x128xf32> to vector<160x128xf32>
    %84 = arith.addf %81, %83 : vector<160x128xf32>
    %cst_245 = arith.constant 0.000000e+00 : f32
    %85 = vector.broadcast %cst_245 : f32 to vector<160x128xf32>
    %86 = arith.maximumf %84, %85 : vector<160x128xf32>
    %87 = arith.truncf %86 : vector<160x128xf32> to vector<160x128xbf16>
    %88 = vector.shape_cast %87 : vector<160x128xbf16> to vector<1x10x16x128xbf16>
    %c0_246 = arith.constant 0 : index
    %c0_247 = arith.constant 0 : index
    %c0_248 = arith.constant 0 : index
    %c0_249 = arith.constant 0 : index
    %89 = vector.load %arg16[%c0_246, %c0_247, %c0_248, %c0_249] : memref<1x14x16x128xbf16, #tpu.memory_space<vmem>>, vector<1x10x16x128xbf16>
    tpu.vector_store %arg16[%c0_246, %c0_247, %c0_248, %c0_249], %88 {strides = array<i32>} : memref<1x14x16x128xbf16, #tpu.memory_space<vmem>>, vector<1x10x16x128xbf16>,
    %c0_250 = arith.constant 0 : index
    %c0_251 = arith.constant 0 : index
    %c0_252 = arith.constant 0 : index
    %c0_253 = arith.constant 0 : index
    %90 = vector.load %arg16[%c0_250, %c0_251, %c0_252, %c0_253] : memref<1x14x16x128xbf16, #tpu.memory_space<vmem>>, vector<1x8x16x128xbf16>
    %c0_254 = arith.constant 0 : index
    %c0_255 = arith.constant 0 : index
    %c0_256 = arith.constant 0 : index
    %c0_257 = arith.constant 0 : index
    %91 = vector.load %arg15[%c0_254, %c0_255, %c0_256, %c0_257] : memref<1x14x16x1152xbf16, #tpu.memory_space<vmem>>, vector<1x8x16x128xbf16>
    tpu.vector_store %arg15[%c0_254, %c0_255, %c0_256, %c0_257], %90 {strides = array<i32>} : memref<1x14x16x1152xbf16, #tpu.memory_space<vmem>>, vector<1x8x16x128xbf16>,
    %c0_258 = arith.constant 0 : index
    %c0_259 = arith.constant 0 : index
    %c1_260 = arith.constant 1 : index
    %c0_261 = arith.constant 0 : index
    %92 = vector.load %arg16[%c0_258, %c0_259, %c1_260, %c0_261] : memref<1x14x16x128xbf16, #tpu.memory_space<vmem>>, vector<1x8x15x128xbf16>
    %c0_262 = arith.constant 0 : index
    %c0_263 = arith.constant 0 : index
    %c0_264 = arith.constant 0 : index
    %c128_265 = arith.constant 128 : index
    %93 = vector.load %arg15[%c0_262, %c0_263, %c0_264, %c128_265] : memref<1x14x16x1152xbf16, #tpu.memory_space<vmem>>, vector<1x8x15x128xbf16>
    tpu.vector_store %arg15[%c0_262, %c0_263, %c0_264, %c128_265], %92 {strides = array<i32>} : memref<1x14x16x1152xbf16, #tpu.memory_space<vmem>>, vector<1x8x15x128xbf16>,
    %c0_266 = arith.constant 0 : index
    %c0_267 = arith.constant 0 : index
    %c2_268 = arith.constant 2 : index
    %c0_269 = arith.constant 0 : index
    %94 = vector.load %arg16[%c0_266, %c0_267, %c2_268, %c0_269] : memref<1x14x16x128xbf16, #tpu.memory_space<vmem>>, vector<1x8x14x128xbf16>
    %c0_270 = arith.constant 0 : index
    %c0_271 = arith.constant 0 : index
    %c0_272 = arith.constant 0 : index
    %c256_273 = arith.constant 256 : index
    %95 = vector.load %arg15[%c0_270, %c0_271, %c0_272, %c256_273] : memref<1x14x16x1152xbf16, #tpu.memory_space<vmem>>, vector<1x8x14x128xbf16>
    tpu.vector_store %arg15[%c0_270, %c0_271, %c0_272, %c256_273], %94 {strides = array<i32>} : memref<1x14x16x1152xbf16, #tpu.memory_space<vmem>>, vector<1x8x14x128xbf16>,
    %c0_274 = arith.constant 0 : index
    %c1_275 = arith.constant 1 : index
    %c0_276 = arith.constant 0 : index
    %c0_277 = arith.constant 0 : index
    %96 = vector.load %arg16[%c0_274, %c1_275, %c0_276, %c0_277] : memref<1x14x16x128xbf16, #tpu.memory_space<vmem>>, vector<1x8x16x128xbf16>
    %c0_278 = arith.constant 0 : index
    %c0_279 = arith.constant 0 : index
    %c0_280 = arith.constant 0 : index
    %c384_281 = arith.constant 384 : index
    %97 = vector.load %arg15[%c0_278, %c0_279, %c0_280, %c384_281] : memref<1x14x16x1152xbf16, #tpu.memory_space<vmem>>, vector<1x8x16x128xbf16>
    tpu.vector_store %arg15[%c0_278, %c0_279, %c0_280, %c384_281], %96 {strides = array<i32>} : memref<1x14x16x1152xbf16, #tpu.memory_space<vmem>>, vector<1x8x16x128xbf16>,
    %c0_282 = arith.constant 0 : index
    %c1_283 = arith.constant 1 : index
    %c1_284 = arith.constant 1 : index
    %c0_285 = arith.constant 0 : index
    %98 = vector.load %arg16[%c0_282, %c1_283, %c1_284, %c0_285] : memref<1x14x16x128xbf16, #tpu.memory_space<vmem>>, vector<1x8x15x128xbf16>
    %c0_286 = arith.constant 0 : index
    %c0_287 = arith.constant 0 : index
    %c0_288 = arith.constant 0 : index
    %c512_289 = arith.constant 512 : index
    %99 = vector.load %arg15[%c0_286, %c0_287, %c0_288, %c512_289] : memref<1x14x16x1152xbf16, #tpu.memory_space<vmem>>, vector<1x8x15x128xbf16>
    tpu.vector_store %arg15[%c0_286, %c0_287, %c0_288, %c512_289], %98 {strides = array<i32>} : memref<1x14x16x1152xbf16, #tpu.memory_space<vmem>>, vector<1x8x15x128xbf16>,
    %c0_290 = arith.constant 0 : index
    %c1_291 = arith.constant 1 : index
    %c2_292 = arith.constant 2 : index
    %c0_293 = arith.constant 0 : index
    %100 = vector.load %arg16[%c0_290, %c1_291, %c2_292, %c0_293] : memref<1x14x16x128xbf16, #tpu.memory_space<vmem>>, vector<1x8x14x128xbf16>
    %c0_294 = arith.constant 0 : index
    %c0_295 = arith.constant 0 : index
    %c0_296 = arith.constant 0 : index
    %c640_297 = arith.constant 640 : index
    %101 = vector.load %arg15[%c0_294, %c0_295, %c0_296, %c640_297] : memref<1x14x16x1152xbf16, #tpu.memory_space<vmem>>, vector<1x8x14x128xbf16>
    tpu.vector_store %arg15[%c0_294, %c0_295, %c0_296, %c640_297], %100 {strides = array<i32>} : memref<1x14x16x1152xbf16, #tpu.memory_space<vmem>>, vector<1x8x14x128xbf16>,
    %c0_298 = arith.constant 0 : index
    %c2_299 = arith.constant 2 : index
    %c0_300 = arith.constant 0 : index
    %c0_301 = arith.constant 0 : index
    %102 = vector.load %arg16[%c0_298, %c2_299, %c0_300, %c0_301] : memref<1x14x16x128xbf16, #tpu.memory_space<vmem>>, vector<1x8x16x128xbf16>
    %c0_302 = arith.constant 0 : index
    %c0_303 = arith.constant 0 : index
    %c0_304 = arith.constant 0 : index
    %c768_305 = arith.constant 768 : index
    %103 = vector.load %arg15[%c0_302, %c0_303, %c0_304, %c768_305] : memref<1x14x16x1152xbf16, #tpu.memory_space<vmem>>, vector<1x8x16x128xbf16>
    tpu.vector_store %arg15[%c0_302, %c0_303, %c0_304, %c768_305], %102 {strides = array<i32>} : memref<1x14x16x1152xbf16, #tpu.memory_space<vmem>>, vector<1x8x16x128xbf16>,
    %c0_306 = arith.constant 0 : index
    %c2_307 = arith.constant 2 : index
    %c1_308 = arith.constant 1 : index
    %c0_309 = arith.constant 0 : index
    %104 = vector.load %arg16[%c0_306, %c2_307, %c1_308, %c0_309] : memref<1x14x16x128xbf16, #tpu.memory_space<vmem>>, vector<1x8x15x128xbf16>
    %c0_310 = arith.constant 0 : index
    %c0_311 = arith.constant 0 : index
    %c0_312 = arith.constant 0 : index
    %c896_313 = arith.constant 896 : index
    %105 = vector.load %arg15[%c0_310, %c0_311, %c0_312, %c896_313] : memref<1x14x16x1152xbf16, #tpu.memory_space<vmem>>, vector<1x8x15x128xbf16>
    tpu.vector_store %arg15[%c0_310, %c0_311, %c0_312, %c896_313], %104 {strides = array<i32>} : memref<1x14x16x1152xbf16, #tpu.memory_space<vmem>>, vector<1x8x15x128xbf16>,
    %c0_314 = arith.constant 0 : index
    %c2_315 = arith.constant 2 : index
    %c2_316 = arith.constant 2 : index
    %c0_317 = arith.constant 0 : index
    %106 = vector.load %arg16[%c0_314, %c2_315, %c2_316, %c0_317] : memref<1x14x16x128xbf16, #tpu.memory_space<vmem>>, vector<1x8x14x128xbf16>
    %c0_318 = arith.constant 0 : index
    %c0_319 = arith.constant 0 : index
    %c0_320 = arith.constant 0 : index
    %c1024_321 = arith.constant 1024 : index
    %107 = vector.load %arg15[%c0_318, %c0_319, %c0_320, %c1024_321] : memref<1x14x16x1152xbf16, #tpu.memory_space<vmem>>, vector<1x8x14x128xbf16>
    tpu.vector_store %arg15[%c0_318, %c0_319, %c0_320, %c1024_321], %106 {strides = array<i32>} : memref<1x14x16x1152xbf16, #tpu.memory_space<vmem>>, vector<1x8x14x128xbf16>,
    %c0_322 = arith.constant 0 : index
    %c0_323 = arith.constant 0 : index
    %c0_324 = arith.constant 0 : index
    %c0_325 = arith.constant 0 : index
    %108 = vector.load %arg15[%c0_322, %c0_323, %c0_324, %c0_325] : memref<1x14x16x1152xbf16, #tpu.memory_space<vmem>>, vector<1x8x16x1152xbf16>
    %109 = vector.shape_cast %108 : vector<1x8x16x1152xbf16> to vector<128x1152xbf16>
    %c0_326 = arith.constant 0 : index
    %c0_327 = arith.constant 0 : index
    %110 = vector.load %arg5[%c0_326, %c0_327] : memref<1152x128xbf16, #tpu.memory_space<vmem>>, vector<1152x128xbf16>
    %cst_328 = arith.constant dense<0.000000e+00> : vector<128x128xf32>
    %111 = tpu.matmul %109, %110, %cst_328 {dimension_numbers = #tpu.dot_dimension_numbers<[1], [0], [0], [1], [0, 0, 1, 1], [], []>} : vector<128x1152xbf16>, vector<1152x128xbf16>, vector<128x128xf32> -> vector<128x128xf32>
    %c0_329 = arith.constant 0 : index
    %c0_330 = arith.constant 0 : index
    %112 = vector.load %arg10[%c0_329, %c0_330] : memref<1x128xf32, #tpu.memory_space<vmem>>, vector<1x128xf32>
    %113 = vector.broadcast %112 : vector<1x128xf32> to vector<128x128xf32>
    %114 = arith.addf %111, %113 : vector<128x128xf32>
    %cst_331 = arith.constant 0.000000e+00 : f32
    %115 = vector.broadcast %cst_331 : f32 to vector<128x128xf32>
    %116 = arith.maximumf %114, %115 : vector<128x128xf32>
    %117 = arith.truncf %116 : vector<128x128xf32> to vector<128x128xbf16>
    %118 = vector.shape_cast %117 : vector<128x128xbf16> to vector<1x8x16x128xbf16>
    %c0_332 = arith.constant 0 : index
    %c0_333 = arith.constant 0 : index
    %c0_334 = arith.constant 0 : index
    %c0_335 = arith.constant 0 : index
    %119 = vector.load %arg17[%c0_332, %c0_333, %c0_334, %c0_335] : memref<1x12x16x128xbf16, #tpu.memory_space<vmem>>, vector<1x8x16x128xbf16>
    tpu.vector_store %arg17[%c0_332, %c0_333, %c0_334, %c0_335], %118 {strides = array<i32>} : memref<1x12x16x128xbf16, #tpu.memory_space<vmem>>, vector<1x8x16x128xbf16>,
    %c0_336 = arith.constant 0 : index
    %c0_337 = arith.constant 0 : index
    %c0_338 = arith.constant 0 : index
    %c0_339 = arith.constant 0 : index
    %120 = vector.load %arg17[%c0_336, %c0_337, %c0_338, %c0_339] : memref<1x12x16x128xbf16, #tpu.memory_space<vmem>>, vector<1x6x16x128xbf16>
    %c0_340 = arith.constant 0 : index
    %c0_341 = arith.constant 0 : index
    %c0_342 = arith.constant 0 : index
    %c0_343 = arith.constant 0 : index
    %121 = vector.load %arg15[%c0_340, %c0_341, %c0_342, %c0_343] : memref<1x14x16x1152xbf16, #tpu.memory_space<vmem>>, vector<1x6x16x128xbf16>
    tpu.vector_store %arg15[%c0_340, %c0_341, %c0_342, %c0_343], %120 {strides = array<i32>} : memref<1x14x16x1152xbf16, #tpu.memory_space<vmem>>, vector<1x6x16x128xbf16>,
    %c0_344 = arith.constant 0 : index
    %c0_345 = arith.constant 0 : index
    %c1_346 = arith.constant 1 : index
    %c0_347 = arith.constant 0 : index
    %122 = vector.load %arg17[%c0_344, %c0_345, %c1_346, %c0_347] : memref<1x12x16x128xbf16, #tpu.memory_space<vmem>>, vector<1x6x15x128xbf16>
    %c0_348 = arith.constant 0 : index
    %c0_349 = arith.constant 0 : index
    %c0_350 = arith.constant 0 : index
    %c128_351 = arith.constant 128 : index
    %123 = vector.load %arg15[%c0_348, %c0_349, %c0_350, %c128_351] : memref<1x14x16x1152xbf16, #tpu.memory_space<vmem>>, vector<1x6x15x128xbf16>
    tpu.vector_store %arg15[%c0_348, %c0_349, %c0_350, %c128_351], %122 {strides = array<i32>} : memref<1x14x16x1152xbf16, #tpu.memory_space<vmem>>, vector<1x6x15x128xbf16>,
    %c0_352 = arith.constant 0 : index
    %c0_353 = arith.constant 0 : index
    %c2_354 = arith.constant 2 : index
    %c0_355 = arith.constant 0 : index
    %124 = vector.load %arg17[%c0_352, %c0_353, %c2_354, %c0_355] : memref<1x12x16x128xbf16, #tpu.memory_space<vmem>>, vector<1x6x14x128xbf16>
    %c0_356 = arith.constant 0 : index
    %c0_357 = arith.constant 0 : index
    %c0_358 = arith.constant 0 : index
    %c256_359 = arith.constant 256 : index
    %125 = vector.load %arg15[%c0_356, %c0_357, %c0_358, %c256_359] : memref<1x14x16x1152xbf16, #tpu.memory_space<vmem>>, vector<1x6x14x128xbf16>
    tpu.vector_store %arg15[%c0_356, %c0_357, %c0_358, %c256_359], %124 {strides = array<i32>} : memref<1x14x16x1152xbf16, #tpu.memory_space<vmem>>, vector<1x6x14x128xbf16>,
    %c0_360 = arith.constant 0 : index
    %c1_361 = arith.constant 1 : index
    %c0_362 = arith.constant 0 : index
    %c0_363 = arith.constant 0 : index
    %126 = vector.load %arg17[%c0_360, %c1_361, %c0_362, %c0_363] : memref<1x12x16x128xbf16, #tpu.memory_space<vmem>>, vector<1x6x16x128xbf16>
    %c0_364 = arith.constant 0 : index
    %c0_365 = arith.constant 0 : index
    %c0_366 = arith.constant 0 : index
    %c384_367 = arith.constant 384 : index
    %127 = vector.load %arg15[%c0_364, %c0_365, %c0_366, %c384_367] : memref<1x14x16x1152xbf16, #tpu.memory_space<vmem>>, vector<1x6x16x128xbf16>
    tpu.vector_store %arg15[%c0_364, %c0_365, %c0_366, %c384_367], %126 {strides = array<i32>} : memref<1x14x16x1152xbf16, #tpu.memory_space<vmem>>, vector<1x6x16x128xbf16>,
    %c0_368 = arith.constant 0 : index
    %c1_369 = arith.constant 1 : index
    %c1_370 = arith.constant 1 : index
    %c0_371 = arith.constant 0 : index
    %128 = vector.load %arg17[%c0_368, %c1_369, %c1_370, %c0_371] : memref<1x12x16x128xbf16, #tpu.memory_space<vmem>>, vector<1x6x15x128xbf16>
    %c0_372 = arith.constant 0 : index
    %c0_373 = arith.constant 0 : index
    %c0_374 = arith.constant 0 : index
    %c512_375 = arith.constant 512 : index
    %129 = vector.load %arg15[%c0_372, %c0_373, %c0_374, %c512_375] : memref<1x14x16x1152xbf16, #tpu.memory_space<vmem>>, vector<1x6x15x128xbf16>
    tpu.vector_store %arg15[%c0_372, %c0_373, %c0_374, %c512_375], %128 {strides = array<i32>} : memref<1x14x16x1152xbf16, #tpu.memory_space<vmem>>, vector<1x6x15x128xbf16>,
    %c0_376 = arith.constant 0 : index
    %c1_377 = arith.constant 1 : index
    %c2_378 = arith.constant 2 : index
    %c0_379 = arith.constant 0 : index
    %130 = vector.load %arg17[%c0_376, %c1_377, %c2_378, %c0_379] : memref<1x12x16x128xbf16, #tpu.memory_space<vmem>>, vector<1x6x14x128xbf16>
    %c0_380 = arith.constant 0 : index
    %c0_381 = arith.constant 0 : index
    %c0_382 = arith.constant 0 : index
    %c640_383 = arith.constant 640 : index
    %131 = vector.load %arg15[%c0_380, %c0_381, %c0_382, %c640_383] : memref<1x14x16x1152xbf16, #tpu.memory_space<vmem>>, vector<1x6x14x128xbf16>
    tpu.vector_store %arg15[%c0_380, %c0_381, %c0_382, %c640_383], %130 {strides = array<i32>} : memref<1x14x16x1152xbf16, #tpu.memory_space<vmem>>, vector<1x6x14x128xbf16>,
    %c0_384 = arith.constant 0 : index
    %c2_385 = arith.constant 2 : index
    %c0_386 = arith.constant 0 : index
    %c0_387 = arith.constant 0 : index
    %132 = vector.load %arg17[%c0_384, %c2_385, %c0_386, %c0_387] : memref<1x12x16x128xbf16, #tpu.memory_space<vmem>>, vector<1x6x16x128xbf16>
    %c0_388 = arith.constant 0 : index
    %c0_389 = arith.constant 0 : index
    %c0_390 = arith.constant 0 : index
    %c768_391 = arith.constant 768 : index
    %133 = vector.load %arg15[%c0_388, %c0_389, %c0_390, %c768_391] : memref<1x14x16x1152xbf16, #tpu.memory_space<vmem>>, vector<1x6x16x128xbf16>
    tpu.vector_store %arg15[%c0_388, %c0_389, %c0_390, %c768_391], %132 {strides = array<i32>} : memref<1x14x16x1152xbf16, #tpu.memory_space<vmem>>, vector<1x6x16x128xbf16>,
    %c0_392 = arith.constant 0 : index
    %c2_393 = arith.constant 2 : index
    %c1_394 = arith.constant 1 : index
    %c0_395 = arith.constant 0 : index
    %134 = vector.load %arg17[%c0_392, %c2_393, %c1_394, %c0_395] : memref<1x12x16x128xbf16, #tpu.memory_space<vmem>>, vector<1x6x15x128xbf16>
    %c0_396 = arith.constant 0 : index
    %c0_397 = arith.constant 0 : index
    %c0_398 = arith.constant 0 : index
    %c896_399 = arith.constant 896 : index
    %135 = vector.load %arg15[%c0_396, %c0_397, %c0_398, %c896_399] : memref<1x14x16x1152xbf16, #tpu.memory_space<vmem>>, vector<1x6x15x128xbf16>
    tpu.vector_store %arg15[%c0_396, %c0_397, %c0_398, %c896_399], %134 {strides = array<i32>} : memref<1x14x16x1152xbf16, #tpu.memory_space<vmem>>, vector<1x6x15x128xbf16>,
    %c0_400 = arith.constant 0 : index
    %c2_401 = arith.constant 2 : index
    %c2_402 = arith.constant 2 : index
    %c0_403 = arith.constant 0 : index
    %136 = vector.load %arg17[%c0_400, %c2_401, %c2_402, %c0_403] : memref<1x12x16x128xbf16, #tpu.memory_space<vmem>>, vector<1x6x14x128xbf16>
    %c0_404 = arith.constant 0 : index
    %c0_405 = arith.constant 0 : index
    %c0_406 = arith.constant 0 : index
    %c1024_407 = arith.constant 1024 : index
    %137 = vector.load %arg15[%c0_404, %c0_405, %c0_406, %c1024_407] : memref<1x14x16x1152xbf16, #tpu.memory_space<vmem>>, vector<1x6x14x128xbf16>
    tpu.vector_store %arg15[%c0_404, %c0_405, %c0_406, %c1024_407], %136 {strides = array<i32>} : memref<1x14x16x1152xbf16, #tpu.memory_space<vmem>>, vector<1x6x14x128xbf16>,
    %c0_408 = arith.constant 0 : index
    %c0_409 = arith.constant 0 : index
    %c0_410 = arith.constant 0 : index
    %c0_411 = arith.constant 0 : index
    %138 = vector.load %arg15[%c0_408, %c0_409, %c0_410, %c0_411] : memref<1x14x16x1152xbf16, #tpu.memory_space<vmem>>, vector<1x6x16x1152xbf16>
    %139 = vector.shape_cast %138 : vector<1x6x16x1152xbf16> to vector<96x1152xbf16>
    %c0_412 = arith.constant 0 : index
    %c0_413 = arith.constant 0 : index
    %140 = vector.load %arg6[%c0_412, %c0_413] : memref<1152x128xbf16, #tpu.memory_space<vmem>>, vector<1152x128xbf16>
    %cst_414 = arith.constant dense<0.000000e+00> : vector<96x128xf32>
    %141 = tpu.matmul %139, %140, %cst_414 {dimension_numbers = #tpu.dot_dimension_numbers<[1], [0], [0], [1], [0, 0, 1, 1], [], []>} : vector<96x1152xbf16>, vector<1152x128xbf16>, vector<96x128xf32> -> vector<96x128xf32>
    %c0_415 = arith.constant 0 : index
    %c0_416 = arith.constant 0 : index
    %142 = vector.load %arg11[%c0_415, %c0_416] : memref<1x128xf32, #tpu.memory_space<vmem>>, vector<1x128xf32>
    %143 = vector.broadcast %142 : vector<1x128xf32> to vector<96x128xf32>
    %144 = arith.addf %141, %143 : vector<96x128xf32>
    %cst_417 = arith.constant 0.000000e+00 : f32
    %145 = vector.broadcast %cst_417 : f32 to vector<96x128xf32>
    %146 = arith.maximumf %144, %145 : vector<96x128xf32>
    %147 = arith.truncf %146 : vector<96x128xf32> to vector<96x128xbf16>
    %148 = vector.shape_cast %147 : vector<96x128xbf16> to vector<1x6x16x128xbf16>
    %c0_418 = arith.constant 0 : index
    %c0_419 = arith.constant 0 : index
    %c0_420 = arith.constant 0 : index
    %c0_421 = arith.constant 0 : index
    %149 = vector.load %arg16[%c0_418, %c0_419, %c0_420, %c0_421] : memref<1x14x16x128xbf16, #tpu.memory_space<vmem>>, vector<1x6x16x128xbf16>
    tpu.vector_store %arg16[%c0_418, %c0_419, %c0_420, %c0_421], %148 {strides = array<i32>} : memref<1x14x16x128xbf16, #tpu.memory_space<vmem>>, vector<1x6x16x128xbf16>,
    %c0_422 = arith.constant 0 : index
    %c0_423 = arith.constant 0 : index
    %c0_424 = arith.constant 0 : index
    %c0_425 = arith.constant 0 : index
    %150 = vector.load %arg16[%c0_422, %c0_423, %c0_424, %c0_425] : memref<1x14x16x128xbf16, #tpu.memory_space<vmem>>, vector<1x6x6x128xbf16>
    %151 = arith.extf %150 : vector<1x6x6x128xbf16> to vector<1x6x6x128xf32>
    %cst_426 = arith.constant dense<0.000000e+00> : vector<1x128xf32>
    %152 = vector.multi_reduction <add>, %151, %cst_426 [1, 2] : vector<1x6x6x128xf32> to vector<1x128xf32>
    %c0_427 = arith.constant 0 : index
    %c0_428 = arith.constant 0 : index
    %153 = vector.load %arg12[%c0_427, %c0_428] : memref<128x10xf32, #tpu.memory_space<vmem>>, vector<128x10xf32>
    %cst_429 = arith.constant dense<0.000000e+00> : vector<1x10xf32>
    %154 = tpu.matmul %152, %153, %cst_429 {dimension_numbers = #tpu.dot_dimension_numbers<[1], [0], [0], [1], [0, 0, 1, 1], [], []>} : vector<1x128xf32>, vector<128x10xf32>, vector<1x10xf32> -> vector<1x10xf32>
    %c0_430 = arith.constant 0 : index
    %c0_431 = arith.constant 0 : index
    %155 = vector.load %arg13[%c0_430, %c0_431] : memref<1x10xf32, #tpu.memory_space<vmem>>, vector<1x10xf32>
    %156 = arith.addf %154, %155 : vector<1x10xf32>
    %157 = vector.shape_cast %156 : vector<1x10xf32> to vector<1x1x10xf32>
    %c0_432 = arith.constant 0 : index
    %c0_433 = arith.constant 0 : index
    %c0_434 = arith.constant 0 : index
    %158 = vector.load %arg14[%c0_432, %c0_433, %c0_434] : memref<1x1x10xf32, #tpu.memory_space<vmem>>, vector<1x1x10xf32>
    tpu.vector_store %arg14[%c0_432, %c0_433, %c0_434], %157 {strides = array<i32>} : memref<1x1x10xf32, #tpu.memory_space<vmem>>, vector<1x1x10xf32>,
    return
  }
  func.func @transform_0(%arg0: i32) -> (i32, i32, i32, i32) {
    %c0_i32 = arith.constant 0 : i32
    %c0_i32_0 = arith.constant 0 : i32
    %c0_i32_1 = arith.constant 0 : i32
    %c0_i32_2 = arith.constant 0 : i32
    return %arg0, %c0_i32, %c0_i32_0, %c0_i32_1 : i32, i32, i32, i32
  }
  func.func @transform_1(%arg0: i32) -> (i32, i32) {
    %c0_i32 = arith.constant 0 : i32
    %c0_i32_0 = arith.constant 0 : i32
    %c0_i32_1 = arith.constant 0 : i32
    return %c0_i32, %c0_i32_0 : i32, i32
  }
  func.func @transform_2(%arg0: i32) -> (i32, i32) {
    %c0_i32 = arith.constant 0 : i32
    %c0_i32_0 = arith.constant 0 : i32
    %c0_i32_1 = arith.constant 0 : i32
    return %c0_i32, %c0_i32_0 : i32, i32
  }
  func.func @transform_3(%arg0: i32) -> (i32, i32) {
    %c0_i32 = arith.constant 0 : i32
    %c0_i32_0 = arith.constant 0 : i32
    %c0_i32_1 = arith.constant 0 : i32
    return %c0_i32, %c0_i32_0 : i32, i32
  }
  func.func @transform_4(%arg0: i32) -> (i32, i32) {
    %c0_i32 = arith.constant 0 : i32
    %c0_i32_0 = arith.constant 0 : i32
    %c0_i32_1 = arith.constant 0 : i32
    return %c0_i32, %c0_i32_0 : i32, i32
  }
  func.func @transform_5(%arg0: i32) -> (i32, i32) {
    %c0_i32 = arith.constant 0 : i32
    %c0_i32_0 = arith.constant 0 : i32
    %c0_i32_1 = arith.constant 0 : i32
    return %c0_i32, %c0_i32_0 : i32, i32
  }
  func.func @transform_6(%arg0: i32) -> (i32, i32) {
    %c0_i32 = arith.constant 0 : i32
    %c0_i32_0 = arith.constant 0 : i32
    %c0_i32_1 = arith.constant 0 : i32
    return %c0_i32, %c0_i32_0 : i32, i32
  }
  func.func @transform_7(%arg0: i32) -> (i32, i32) {
    %c0_i32 = arith.constant 0 : i32
    %c0_i32_0 = arith.constant 0 : i32
    %c0_i32_1 = arith.constant 0 : i32
    return %c0_i32, %c0_i32_0 : i32, i32
  }
  func.func @transform_8(%arg0: i32) -> (i32, i32) {
    %c0_i32 = arith.constant 0 : i32
    %c0_i32_0 = arith.constant 0 : i32
    %c0_i32_1 = arith.constant 0 : i32
    return %c0_i32, %c0_i32_0 : i32, i32
  }
  func.func @transform_9(%arg0: i32) -> (i32, i32) {
    %c0_i32 = arith.constant 0 : i32
    %c0_i32_0 = arith.constant 0 : i32
    %c0_i32_1 = arith.constant 0 : i32
    return %c0_i32, %c0_i32_0 : i32, i32
  }
  func.func @transform_10(%arg0: i32) -> (i32, i32) {
    %c0_i32 = arith.constant 0 : i32
    %c0_i32_0 = arith.constant 0 : i32
    %c0_i32_1 = arith.constant 0 : i32
    return %c0_i32, %c0_i32_0 : i32, i32
  }
  func.func @transform_11(%arg0: i32) -> (i32, i32) {
    %c0_i32 = arith.constant 0 : i32
    %c0_i32_0 = arith.constant 0 : i32
    %c0_i32_1 = arith.constant 0 : i32
    return %c0_i32, %c0_i32_0 : i32, i32
  }
  func.func @transform_12(%arg0: i32) -> (i32, i32) {
    %c0_i32 = arith.constant 0 : i32
    %c0_i32_0 = arith.constant 0 : i32
    %c0_i32_1 = arith.constant 0 : i32
    return %c0_i32, %c0_i32_0 : i32, i32
  }
  func.func @transform_13(%arg0: i32) -> (i32, i32, i32) {
    %c0_i32 = arith.constant 0 : i32
    %c0_i32_0 = arith.constant 0 : i32
    %c0_i32_1 = arith.constant 0 : i32
    return %arg0, %c0_i32, %c0_i32_0 : i32, i32, i32
  }
}

</mosaic_0001>

<bundles_post_ra>
// kernel: tpu_custom_call.1
= control target key start
LH: loop header
LB: loop body
LE: loop exit
PB: predicated region body
PF: predicated region fallthrough
CT: control target
= control target key end

     0   :  { %s16748_s0 = inlined_call_operand.hbm [shape: bf16[2,16,16,128], index: 0, kind: input, shape index: {}]   ;;  %s16749_s1 = inlined_call_operand.hbm [shape: bf16[1152,128], index: 1, kind: input, shape index: {}]   ;;  %s16750_s2 = inlined_call_operand.hbm [shape: bf16[1152,128], index: 2, kind: input, shape index: {}]   ;;  %s16751_s3 = inlined_call_operand.hbm [shape: bf16[1152,128], index: 3, kind: input, shape index: {}]   ;;  %s16752_s4 = inlined_call_operand.hbm [shape: bf16[1152,128], index: 4, kind: input, shape index: {}]   ;;  %s16753_s5 = inlined_call_operand.hbm [shape: bf16[1152,128], index: 5, kind: input, shape index: {}]   ;;  %s16754_s6 = inlined_call_operand.vmem [shape: f32[1,128], index: 6, kind: input, shape index: {}]   ;;  %s16755_s7 = inlined_call_operand.vmem [shape: f32[1,128], index: 7, kind: input, shape index: {}]   ;;  %s16756_s8 = inlined_call_operand.vmem [shape: f32[1,128], index: 8, kind: input, shape index: {}]   ;;  %s16757_s9 = inlined_call_operand.vmem [shape: f32[1,128], index: 9, kind: input, shape index: {}]   ;;  %s16758_s10 = inlined_call_operand.vmem [shape: f32[1,128], index: 10, kind: input, shape index: {}]   ;;  %s16759_s11 = inlined_call_operand.vmem [shape: f32[128,10], index: 11, kind: input, shape index: {}]   ;;  %s16760_s12 = inlined_call_operand.vmem [shape: f32[1,10], index: 12, kind: input, shape index: {}]   ;;  %s16761_s13 = inlined_call_operand.hbm [shape: f32[2,1,10], index: 13, kind: output, shape index: {}]  }
   0x1   :  { %16768 = sst [smem:[#allocation22_spill]] %s16749_s1 }
   0x2   :  { %16769 = sst [smem:[#allocation23_spill]] %s16757_s9 }
   0x3   :  { %16770 = sst [smem:[#allocation24_spill]] %s16758_s10 }
   0x4   :  { %16771 = sst [smem:[#allocation25_spill]] %s16759_s11 }
   0x5   :  { %16772 = sst [smem:[#allocation26_spill]] %s16760_s12 }
   0x6   :  { %16773 = sst [smem:[#allocation27_spill]] %s16761_s13 }
   0x7   :  { %18 = vsyncpa [#allocation6], 0 }
   0x8   :  { %20 = vsyncpa [#allocation6 + $0x1], 0 }
   0x9   :  { %21 = vsyncpa [#allocation9], 0 }
   0xa   :  { %22 = vsyncpa [#allocation12], 0 }
   0xb   :  { %23 = vsyncpa [#allocation15], 0 }
   0xc   :  { %24 = vsyncpa [#allocation7], 0 }
   0xd   :  { %26 = vsyncpa [#allocation7 + $0x1], 0  ;;  %s14353_s25 = smov 0   ;;  %s14355_s26 = smov 0  }
   0xe   :  { %s14357_s27 = smov 0   ;;  %s14359_s28 = smov 0  }
   0xf LB: > { %s14270_s29 = smov [#allocation8]   ;;  %s14374_s14 = sadd.s32 4294967295, %s14268_s28   ;;  %s14268_s28 = sphi %s14359_s28, %s16804_s28   ;;  %s14264_s27 = sphi %s14357_s27, %s16803_s27   ;;  %s14260_s26 = sphi %s14355_s26, %s16802_s26   ;;  %s14256_s25 = sphi %s14353_s25, %s16801_s25  }
  0x10   : > { %s353_s30 = sshll.u32 %s14270_s29, 4  ;;  %p10882_p0 = scmp.ge.s32.totalorder %s14268_s28, 1  ;;  %s14379_s30 = int_to_ptr.vmem [resolvable:$true] %s353_s30 }
  0x11   : > { %p16764_p1 = scmp.eq.s32.totalorder %s14374_s14, 0  ;;  %p341_p2 = scmp.lt.s32.totalorder %s14268_s28, 3 }
  0x12   : > { %s14271_s16 = smov [#allocation11]   ;;  %s14272_s19 = smov [#allocation10]  }
  0x13   : > { %p14381_p3 = pnand %p10882_p0, %p341_p2  ;;  %s379_s17 = sshll.u32 %s14271_s16, 4  ;;  %s14394_s17 = int_to_ptr.vmem [resolvable:$true] %s379_s17 }
  0x14   : > { %s366_s20 = sshll.u32 %s14272_s19, 4  ;;  %s16776_s1 = sld [smem:[#allocation22_spill]]  ;;  %s14396_s20 = int_to_ptr.vmem [resolvable:$true] %s366_s20 }
  0x15   : > { %s16774_s15 = scalar_select %p14381_p3, 1, 0 }
  0x16   : > { %p13452_p5 = pneg %p14381_p3 }
  0x18   : > { %p14390_p6 = pnand %p13452_p5, %p16764_p1 }
  0x1a   : > { %s14020_s23 = scalar_lea.hbm %s16776_s1, 9216  ;;  %p14406_p8 = pneg %p14390_p6 }
  0x1b   : > { %p14021_p7 = scmp.ne.s32.totalorder %s16776_s1, %s14020_s23  ;;  %p14027_p11 = scmp.lt.u32.totalorder %s14020_s23, %s16776_s1 }
  0x1d   : > { %p14023_p9 = pnand %p14406_p8, %p14021_p7 }
  0x1f   : > { %p14024_p10 = pneg %p14023_p9 }
  0x21   : > { %p14029_p12 = pnand %p14027_p11, %p14024_p10 }
  0x23   : > { %14032 = shalt.err (!%p14029_p12)
}
  0x24   : > { %s14033_s21 = scalar_lea.vmem %s14379_s30, 9216  ;;  %p14041_p5 = scmp.lt.s32.totalorder %s14379_s30, %s14379_s30 }
  0x25   : > { %p14034_p13 = scmp.ne.s32.totalorder %s14379_s30, %s14033_s21  ;;  %p14042_p4 = scmp.lt.s32.totalorder %s14033_s21, %s14033_s21 }
  0x27   : > { %p14036_p0 = pnand %p14034_p13, %p14406_p8  ;;  %p14043_p7 = por %p14042_p4, %p14041_p5 }
  0x29   : > { %p14037_p2 = pneg %p14036_p0 }
  0x2b   : > { %p14044_p9 = pnand %p14043_p7, %p14037_p2 }
  0x2d   : > { %14047 = shalt.err (!%p14044_p9)
}
  0x2e   : > { %s16766_s22 = smov 64   ;;  %s14274_s13 = smov 4  }
  0x2f   : > { %13455 = dma.hbm_to_vmem [thread:$0]  (!%p14390_p6), %s16776_s1, 9216, %s14379_s30, [#allocation9], %s16766_s22, %s16766_s22, %s14274_s13  }
  0x30   : > { %s14048_s21 = scalar_lea.hbm %s16751_s3, 9216 }
  0x31   : > { %p14049_p4 = scmp.ne.s32.totalorder %s16751_s3, %s14048_s21  ;;  %p14055_p12 = scmp.lt.u32.totalorder %s14048_s21, %s16751_s3 }
  0x33   : > { %p14051_p10 = pnand %p14049_p4, %p14406_p8 }
  0x35   : > { %p14052_p11 = pneg %p14051_p10 }
  0x37   : > { %p14057_p13 = pnand %p14055_p12, %p14052_p11 }
  0x39   : > { %14060 = shalt.err (!%p14057_p13)
}
  0x3a   : > { %s14061_s30 = scalar_lea.vmem %s14394_s17, 9216  ;;  %p14069_p7 = scmp.lt.s32.totalorder %s14394_s17, %s14394_s17 }
  0x3b   : > { %p14062_p0 = scmp.ne.s32.totalorder %s14394_s17, %s14061_s30  ;;  %p14070_p9 = scmp.lt.s32.totalorder %s14061_s30, %s14061_s30 }
  0x3d   : > { %p14064_p2 = pnand %p14062_p0, %p14406_p8  ;;  %p14071_p4 = por %p14070_p9, %p14069_p7 }
  0x3f   : > { %p14065_p5 = pneg %p14064_p2 }
  0x41   : > { %p14072_p10 = pnand %p14071_p4, %p14065_p5 }
  0x43   : > { %14075 = shalt.err (!%p14072_p10)
}
  0x44   : > { %13461 = dma.hbm_to_vmem [thread:$0]  (!%p14390_p6), %s16751_s3, 9216, %s14394_s17, [#allocation12], %s16766_s22, %s16766_s22, %s14274_s13  }
  0x45   : > { %s14076_s23 = scalar_lea.hbm %s16750_s2, 9216 }
  0x46   : > { %p14077_p11 = scmp.ne.s32.totalorder %s16750_s2, %s14076_s23  ;;  %p14083_p0 = scmp.lt.u32.totalorder %s14076_s23, %s16750_s2 }
  0x48   : > { %p14079_p12 = pnand %p14077_p11, %p14406_p8 }
  0x4a   : > { %p14080_p13 = pneg %p14079_p12 }
  0x4c   : > { %p14085_p2 = pnand %p14083_p0, %p14080_p13 }
  0x4e   : > { %14088 = shalt.err (!%p14085_p2)
}
  0x4f   : > { %s14089_s17 = scalar_lea.vmem %s14396_s20, 9216  ;;  %p14097_p4 = scmp.lt.s32.totalorder %s14396_s20, %s14396_s20 }
  0x50   : > { %p14090_p5 = scmp.ne.s32.totalorder %s14396_s20, %s14089_s17  ;;  %p14098_p10 = scmp.lt.s32.totalorder %s14089_s17, %s14089_s17 }
  0x52   : > { %p14092_p7 = pnand %p14090_p5, %p14406_p8  ;;  %p14099_p11 = por %p14098_p10, %p14097_p4 }
  0x54   : > { %p14093_p9 = pneg %p14092_p7 }
  0x56   : > { %p14100_p12 = pnand %p14099_p11, %p14093_p9 }
  0x58   : > { %14103 = shalt.err (!%p14100_p12)
}
  0x59   : > { %13458 = dma.hbm_to_vmem [thread:$0]  (!%p14390_p6), %s16750_s2, 9216, %s14396_s20, [#allocation9], %s16766_s22, %s16766_s22, %s14274_s13  }
  0x5a   : > { %s14275_s10 = smov [#allocation13]   ;;  %s14276_s12 = smov [#allocation14]  }
  0x5b   : > { %s392_s11 = sshll.u32 %s14275_s10, 4  ;;  %s405_s23 = sshll.u32 %s14276_s12, 4  ;;  %s393_s11 = int_to_ptr.vmem [resolvable:$true] %s392_s11  ;;  %s406_s23 = int_to_ptr.vmem [resolvable:$true] %s405_s23 }
  0x5c   : > { %s14104_s19 = scalar_lea.hbm %s16752_s4, 9216 }
  0x5d   : > { %p14105_p13 = scmp.ne.s32.totalorder %s16752_s4, %s14104_s19  ;;  %p14111_p5 = scmp.lt.u32.totalorder %s14104_s19, %s16752_s4 }
  0x5f   : > { %p14107_p0 = pnand %p14105_p13, %p14406_p8 }
  0x61   : > { %p14108_p2 = pneg %p14107_p0 }
  0x63   : > { %p14113_p7 = pnand %p14111_p5, %p14108_p2 }
  0x65   : > { %14116 = shalt.err (!%p14113_p7)
}
  0x66   : > { %s14117_s20 = scalar_lea.vmem %s393_s11, 9216  ;;  %p14125_p11 = scmp.lt.s32.totalorder %s393_s11, %s393_s11 }
  0x67   : > { %p14118_p9 = scmp.ne.s32.totalorder %s393_s11, %s14117_s20  ;;  %p14126_p12 = scmp.lt.s32.totalorder %s14117_s20, %s14117_s20 }
  0x69   : > { %p14120_p4 = pnand %p14118_p9, %p14406_p8  ;;  %p14127_p1 = por %p14126_p12, %p14125_p11 }
  0x6b   : > { %p14121_p10 = pneg %p14120_p4 }
  0x6d   : > { %p14128_p3 = pnand %p14127_p1, %p14121_p10 }
  0x6f   : > { %14131 = shalt.err (!%p14128_p3)
}
  0x70   : > { %13464 = dma.hbm_to_vmem [thread:$0]  (!%p14390_p6), %s16752_s4, 9216, %s393_s11, [#allocation12], %s16766_s22, %s16766_s22, %s14274_s13  }
  0x71   : > { %s14132_s24 = scalar_lea.hbm %s16753_s5, 9216 }
  0x72   : > { %p14133_p1 = scmp.ne.s32.totalorder %s16753_s5, %s14132_s24  ;;  %p14139_p0 = scmp.lt.u32.totalorder %s14132_s24, %s16753_s5 }
  0x74   : > { %p14135_p3 = pnand %p14133_p1, %p14406_p8 }
  0x76   : > { %p14136_p13 = pneg %p14135_p3 }
  0x78   : > { %p14141_p2 = pnand %p14139_p0, %p14136_p13 }
  0x7a   : > { %14144 = shalt.err (!%p14141_p2)
}
  0x7b   : > { %s14145_s30 = scalar_lea.vmem %s406_s23, 9216  ;;  %p14153_p4 = scmp.lt.s32.totalorder %s406_s23, %s406_s23 }
  0x7c   : > { %p14146_p5 = scmp.ne.s32.totalorder %s406_s23, %s14145_s30  ;;  %p14154_p10 = scmp.lt.s32.totalorder %s14145_s30, %s14145_s30 }
  0x7e   : > { %p14148_p7 = pnand %p14146_p5, %p14406_p8  ;;  %p14155_p11 = por %p14154_p10, %p14153_p4 }
  0x80   : > { %p14149_p9 = pneg %p14148_p7 }
  0x82   : > { %p14156_p12 = pnand %p14155_p11, %p14149_p9 }
  0x84   : > { %14159 = shalt.err (!%p14156_p12)
}
  0x85   : > { %13467 = dma.hbm_to_vmem [thread:$0]  (!%p14390_p6), %s16753_s5, 9216, %s406_s23, [#allocation15], %s16766_s22, %s16766_s22, %s14274_s13  }
  0x86   : > { %s10881_s18 = sadd.s32 4294967294, %s14268_s28   ;;  %s14526_s16 = sadd.s32 1, %s14268_s28  }
  0x87   : > { %s39_s1 = sadd.s32 1, %s14264_s27  ;;  %s36_s9 = ssub.s32 %s14268_s28, %s14526_s16 }
  0x88   : > { %p46_p8 = scmp.ne.s32.totalorder %s14264_s27, %s14260_s26  ;;  %p37_p1 = scmp.eq.s32.totalorder %s36_s9, 0 }
  0x89   : > { %p47_p3 = scmp.eq.s32.totalorder %s14268_s28, 0  ;;  %p52_p13 = scmp.ne.s32.totalorder %s14260_s26, %s14256_s25 }
  0x8a   : > { %p328_p0 = scmp.eq.s32.totalorder %s14374_s14, 1  ;;  %p16778_p5 = scmp.eq.s32.totalorder %s14374_s14, 0 }
  0x8b   : > { %s14538_s10 = scalar_select %p37_p1, %s14264_s27, %s39_s1  }
  0x8c   : > { %p48_p2 = por %p47_p3, %p46_p8  ;;  %p14542_p7 = por %p16778_p5, %p52_p13 }
  0x8d   : > { %p14546_p6 = por %p328_p0, %p46_p8  ;;  %p334_p9 = scmp.eq.s32.totalorder %s10881_s18, 1 }
  0x8e   : > { %p13481_p4 = scmp.lt.s32.totalorder %s14268_s28, 2  ;;  %s440_s24 = sand.u32 1, %s14264_s27  }
  0x8f   : > { %s16780_s23 = scalar_select %p14546_p6, 1, 0 }
  0x90   : > { %p14552_p10 = por %p334_p9, %p52_p13  ;;  %s10889_s19 = sshll.u32 %s440_s24, 7 }
  0x91   : > { %s11561_s21 = sshll.u32 %s14268_s28, 11  ;;  %s444_s20 = scalar_lea.vmem [#allocation5], %s10889_s19 }
  0x92   : > { %s16781_s29 = scalar_select %p14552_p10, 1, 0 }
  0x93   : > { %s14560_s11 = scalar_lea.hbm %s16748_s0, %s11561_s21  ;;  %s451_s1 = sshll.u32 %s444_s20, 4  ;;  %s14566_s1 = int_to_ptr.vmem [resolvable:$true] %s451_s1 }
  0x94   : > { %p14562_p11 = pnand %p13481_p4, %p48_p2  ;;  %s14568_s9 = scalar_lea.sflag [#allocation6], %s440_s24 }
  0x95   : > { %s14160_s22 = scalar_lea.hbm %s14560_s11, 2048  ;;  %s14165_s17 = scalar_lea.hbm %s16748_s0, 4096 }
  0x96   : > { %p14161_p12 = scmp.ne.s32.totalorder %s14560_s11, %s14160_s22  ;;  %p14162_p8 = pneg %p14562_p11 }
  0x97   : > { %p14166_p13 = scmp.lt.u32.totalorder %s14560_s11, %s16748_s0  ;;  %p14167_p0 = scmp.lt.u32.totalorder %s14165_s17, %s14160_s22 }
  0x98   : > { %p14163_p1 = pnand %p14162_p8, %p14161_p12  ;;  %p14169_p5 = scmp.lt.u32.totalorder %s14160_s22, %s14560_s11 }
  0x99   : > { %p14168_p2 = por %p14167_p0, %p14166_p13 }
  0x9a   : > { %p14164_p3 = pneg %p14163_p1 }
  0x9b   : > { %p14170_p9 = por %p14169_p5, %p14168_p2 }
  0x9d   : > { %p14171_p4 = pnand %p14170_p9, %p14164_p3 }
  0x9f   : > { %14174 = shalt.err (!%p14171_p4)
}
  0xa0   : > { %s14175_s24 = scalar_lea.vmem %s14566_s1, 2048  ;;  %s14277_s19 = smov [#allocation5]  }
  0xa1   : > { %p14176_p12 = scmp.ne.s32.totalorder %s14566_s1, %s14175_s24  ;;  %s14180_s21 = sshll.u32 %s14277_s19, 4  ;;  %s14181_s21 = int_to_ptr.vmem [resolvable:$false] %s14180_s21 }
  0xa2   : > { %s14182_s30 = scalar_lea.vmem %s14181_s21, 4096  ;;  %p14183_p6 = scmp.lt.s32.totalorder %s14566_s1, %s14181_s21 }
  0xa3   : > { %p14178_p1 = pnand %p14176_p12, %p14162_p8  ;;  %p14184_p13 = scmp.lt.s32.totalorder %s14182_s30, %s14175_s24 }
  0xa5   : > { %p14179_p10 = pneg %p14178_p1  ;;  %p14185_p0 = por %p14184_p13, %p14183_p6 }
  0xa7   : > { %p14186_p2 = pnand %p14185_p0, %p14179_p10 }
  0xa9   : > { %14189 = shalt.err (!%p14186_p2)
}
  0xaa   : > { %s16783_s22 = smov 64   ;;  %p16784_p8 = scmp.ne.s32.totalorder %s16774_s15, 0 }
  0xab   : > { %13471 = dma.hbm_to_vmem [thread:$0]  (!%p14562_p11), %s14560_s11, 2048, %s14566_s1, %s14568_s9, %s16783_s22, %s16783_s22, %s14274_s13  }
  0xac   : > { %463 = sbr.rel (%p16784_p8) target bundleno = 2438 (0x986), region = 72  ;;  %s14602_s17 = sand.u32 (!%p16784_p8), 1, %s14260_s26  }
  0xad   : > { %s10893_s20 = sshll.u32 (!%p16784_p8), %s14602_s17, 7  ;;  %s466_s24 = scalar_lea.sflag (!%p16784_p8), [#allocation6], %s14602_s17 }
  0xae   : > { %s14606_s19 = scalar_lea.vmem (!%p16784_p8), [#allocation5], %s10893_s20 }
  0xb3   : > { %14235 = dma.done.wait (%p14542_p7), %s466_s24, 2048  }
  0xb4   : > { %14237 = vsyncadd (%p14542_p7), %s466_s24, 4294965248  ;;  %p16785_p6 = scmp.eq.s32.totalorder %s14374_s14, 0 }
  0xb6   : > { %14239 = dma.done.wait (%p16785_p6), [#allocation9], 18432   ;;  %p16786_p10 = pmov %p16785_p6 }
  0xb7   : > { %p16787_p11 = pmov %p16785_p6 }
  0xb8   : > { %14241 = vsyncadd (%p16786_p10), [#allocation9], 4294948864 }
  0xb9   : > { %14243 = dma.done.wait (%p16787_p11), [#allocation12], 18432   ;;  %p16788_p3 = pmov %p16785_p6 }
  0xbb   : > { %14245 = vsyncadd (%p16788_p3), [#allocation12], 4294948864  ;;  %p16789_p5 = pmov %p16788_p3 }
  0xbc   : > { %p16790_p9 = pmov %p16788_p3 }
  0xbd   : > { %14247 = dma.done.wait (%p16789_p5), [#allocation15], 9216  }
  0xbe   : > { %14249 = vsyncadd (%p16790_p9), [#allocation15], 4294958080  ;;  %v14278_v0 = vmov 0   ;;  %v13531_v1 = vld [vmem:[#allocation8 + $0x40] sm:$0xff]   ;;  %v13535_v5 = vld [vmem:[#allocation8 + $0x48] sm:$0xff]   ;;  %vm994_vm1 = vcmask 1047552  }
  0xbf   : > { %534 = vst [vmem:[#allocation2 + $0x10] sm:$0xff] %v14278_v0  ;;  %537 = vst [vmem:[#allocation2 + $0x28] sm:$0xff] %v14278_v0  ;;  %v13532_v2 = vld [vmem:[#allocation8] sm:$0xff]   ;;  %11562 = vmatprep.subr.bf16.mxu0 %v13531_v1  ;;  %v13536_v6 = vld [vmem:[#allocation8 + $0x8] sm:$0xff]   ;;  %vm995_vm0 = vsmask.f32 7424 }
  0xc0   : > { %540 = vst [vmem:[#allocation2 + $0x40] sm:$0xff] %v14278_v0  ;;  %543 = vst [vmem:[#allocation2 + $0x58] sm:$0xff] %v14278_v0  ;;  %v13533_v3 = vld [vmem:[#allocation8 + $0xc0] sm:$0xff]   ;;  %11563 = vmatpush3.bf16.msra.mxu0 %v13532_v2  ;;  %v13537_v7 = vld [vmem:[#allocation8 + $0xc8] sm:$0xff]   ;;  %s16793_s20 = sld [smem:[#allocation23_spill]]  ;;  %s16794_s15 = sld [smem:[#allocation25_spill]] }
  0xc1   : > { %546 = vst [vmem:[#allocation2 + $0x70] sm:$0xff] %v14278_v0  ;;  %549 = vst [vmem:[#allocation2 + $0x88] sm:$0xff] %v14278_v0  ;;  %v13534_v4 = vld [vmem:[#allocation8 + $0x80] sm:$0xff]   ;;  %11662 = vmatprep.subr.bf16.mxu1 %v13533_v3  ;;  %11564 = vmatprep.subr.bf16.mxu0 %v13535_v5  ;;  %v13538_v8 = vld [vmem:[#allocation8 + $0x88] sm:$0xff]   ;;  %vm14280_vm3 = vmmov 0   ;;  %s16795_s18 = sld [smem:[#allocation24_spill]] }
  0xc2   : > { %552 = vst [vmem:[#allocation2 + $0xa0] sm:$0xff] %v14278_v0  ;;  %555 = vst [vmem:[#allocation2 + $0xb8] sm:$0xff] %v14278_v0  ;;  %11663 = vmatpush3.bf16.msra.mxu1 %v13534_v4  ;;  %v13539_v9 = vld [vmem:[#allocation8 + $0x50] sm:$0xff]   ;;  %v13543_v13 = vld [vmem:[#allocation8 + $0x58] sm:$0xff]   ;;  %vm10647_vm4 = vcmask 1045504   ;;  %s11558_s13 = sshll.u32 %s14374_s14, 4 }
  0xc3   : > { %558 = vst [vmem:[#allocation2 + $0xd0] sm:$0xff] %v14278_v0  ;;  %561 = vst [vmem:[#allocation2 + $0xe8] sm:$0xff] %v14278_v0  ;;  %11664 = vmatprep.subr.bf16.mxu1 %v13537_v7  ;;  %v13540_v10 = vld [vmem:[#allocation8 + $0x10] sm:$0xff]   ;;  %v13544_v14 = vld [vmem:[#allocation8 + $0x18] sm:$0xff]   ;;  %s530_s12 = scalar_lea.vmem [#allocation16], %s14602_s17  ;;  %vm10752_vm5 = vcmask 73728  }
  0xc4   : > { %564 = vst [vmem:[#allocation2 + $0x100] sm:$0xff] %v14278_v0  ;;  %567 = vst [vmem:[#allocation2 + $0x118] sm:$0xff] %v14278_v0  ;;  %11565 = vmatpush3.bf16.msra.mxu0 %v13536_v6  ;;  %v13541_v11 = vld [vmem:[#allocation8 + $0xd0] sm:$0xff]   ;;  %v13545_v15 = vld [vmem:[#allocation8 + $0xd8] sm:$0xff]   ;;  %s10767_s11 = sshll.u32 %s530_s12, 4  ;;  %s16797_s9 = sld [smem:[#allocation27_spill]]  ;;  %s16706_s11 = int_to_ptr.vmem [resolvable:$true] %s10767_s11 }
  0xc5   : > { %570 = vst [vmem:[#allocation2 + $0x130] sm:$0xff] %v14278_v0  ;;  %573 = vst [vmem:[#allocation2 + $0x148] sm:$0xff] %v14278_v0  ;;  %11566 = vmatprep.subr.bf16.mxu0 %v13539_v9  ;;  %v13542_v12 = vld [vmem:[#allocation8 + $0x90] sm:$0xff]   ;;  %v13546_v16 = vld [vmem:[#allocation8 + $0x98] sm:$0xff]   ;;  %s10755_s30 = scalar_lea.sflag [#allocation7], %s14602_s17  ;;  %s14190_s22 = scalar_lea.vmem %s16706_s11, 16 }
  0xc6   : > { %576 = vst [vmem:[#allocation2 + $0x160] sm:$0xff] %v14278_v0  ;;  %579 = vst [vmem:[#allocation2 + $0x178] sm:$0xff] %v14278_v0  ;;  %11665 = vmatpush3.bf16.msra.mxu1 %v13538_v8  ;;  %v13547_v17 = vld [vmem:[#allocation8 + $0x60] sm:$0xff]   ;;  %v13551_v21 = vld [vmem:[#allocation8 + $0x68] sm:$0xff]   ;;  %p14191_p7 = scmp.ne.s32.totalorder %s16706_s11, %s14190_s22  ;;  %p16798_p4 = scmp.ne.s32.totalorder %s16780_s23, 0 }
  0xc7   : > { %582 = vst [vmem:[#allocation2 + $0x190] sm:$0xff] %v14278_v0  ;;  %585 = vst [vmem:[#allocation2 + $0x1a8] sm:$0xff] %v14278_v0  ;;  %11666 = vmatprep.subr.bf16.mxu1 %v13541_v11  ;;  %v13548_v18 = vld [vmem:[#allocation8 + $0x20] sm:$0xff]   ;;  %v13552_v22 = vld [vmem:[#allocation8 + $0x28] sm:$0xff]   ;;  %s14282_s14 = smov [#allocation16]  }
  0xc8   : > { %588 = vst [vmem:[#allocation2 + $0x1c0] sm:$0xff] %v14278_v0  ;;  %591 = vst [vmem:[#allocation2 + $0x1d8] sm:$0xff] %v14278_v0  ;;  %11567 = vmatpush3.bf16.msra.mxu0 %v13540_v10  ;;  %v13549_v19 = vld [vmem:[#allocation8 + $0xe0] sm:$0xff]   ;;  %v13553_v23 = vld [vmem:[#allocation8 + $0xe8] sm:$0xff]   ;;  %p14192_p12 = pnand %p14191_p7, %p16798_p4 }
  0xc9   : > { %594 = vst [vmem:[#allocation2 + $0x1f0] sm:$0xff] %v14278_v0  ;;  %597 = vst [vmem:[#allocation2 + $0x208] sm:$0xff] %v14278_v0  ;;  %11568 = vmatprep.subr.bf16.mxu0 %v13543_v13  ;;  %v13550_v20 = vld [vmem:[#allocation8 + $0xa0] sm:$0xff]   ;;  %v13554_v24 = vld [vmem:[#allocation8 + $0xa8] sm:$0xff]  }
  0xca   : > { %600 = vst [vmem:[#allocation2 + $0x220] sm:$0xff] %v14278_v0  ;;  %603 = vst [vmem:[#allocation2 + $0x238] sm:$0xff] %v14278_v0  ;;  %11667 = vmatpush3.bf16.msra.mxu1 %v13542_v12  ;;  %v13555_v25 = vld [vmem:[#allocation8 + $0x70] sm:$0xff]   ;;  %v13559_v29 = vld [vmem:[#allocation8 + $0x78] sm:$0xff]   ;;  %s16704_s21 = scalar_lea.hbm %s16797_s9, %s11558_s13  ;;  %p14193_p1 = pneg %p14192_p12 }
  0xcb   : > { %606 = vst [vmem:[#allocation2 + $0x250] sm:$0xff] %v14278_v0  ;;  %609 = vst [vmem:[#allocation2 + $0x268] sm:$0xff] %v14278_v0  ;;  %11668 = vmatprep.subr.bf16.mxu1 %v13545_v15  ;;  %v13556_v26 = vld [vmem:[#allocation8 + $0x30] sm:$0xff]   ;;  %v13560_v30 = vld [vmem:[#allocation8 + $0x38] sm:$0xff]  }
  0xcc   : > { %612 = vst [vmem:[#allocation2 + $0x280] sm:$0xff] %v14278_v0  ;;  %615 = vst [vmem:[#allocation2 + $0x298] sm:$0xff] %v14278_v0  ;;  %11569 = vmatpush3.bf16.msra.mxu0 %v13544_v14  ;;  %v13557_v27 = vld [vmem:[#allocation8 + $0xf0] sm:$0xff]   ;;  %v13561_v31 = vld [vmem:[#allocation8 + $0xf8] sm:$0xff]  }
  0xcd   : > { %618 = vst [vmem:[#allocation2 + $0x2b0] sm:$0xff] %v14278_v0  ;;  %621 = vst [vmem:[#allocation2 + $0x2c8] sm:$0xff] %v14278_v0  ;;  %11570 = vmatprep.subr.bf16.mxu0 %v13547_v17  ;;  %v13558_v28 = vld [vmem:[#allocation8 + $0xb0] sm:$0xff]   ;;  %v13562_v32 = vld [vmem:[%s14606_s19] sm:$0xff]  }
  0xce   : > { %624 = vst [vmem:[#allocation2 + $0x2e0] sm:$0xff] %v14278_v0  ;;  %627 = vst [vmem:[#allocation2 + $0x2f8] sm:$0xff] %v14278_v0  ;;  %11669 = vmatpush3.bf16.msra.mxu1 %v13546_v16  ;;  %v13563_v33 = vld [vmem:[#allocation8 + $0xb8] sm:$0xff]   ;;  %v883_v34 = vshrl.u32 %v13562_v32, 16  ;;  %v885_v35 = vshll.u32 %v13562_v32, 16  ;;  %v13564_v38 = vld [vmem:[%s14606_s19] sm:$0xff]  }
  0xcf   : > { %630 = vst [vmem:[#allocation2 + $0x310] sm:$0xff] %v14278_v0  ;;  %633 = vst [vmem:[#allocation2 + $0x328] sm:$0xff] %v14278_v0  ;;  %11670 = vmatprep.subr.bf16.mxu1 %v13549_v19  ;;  %v13565_v39 = vld [vmem:[#allocation8 + $0x140] sm:$0xff]   ;;  %v13566_v40 = vld [vmem:[%s14606_s19 + $0x8] sm:$0xff]  }
  0xd0   : > { %636 = vst [vmem:[#allocation2 + $0x340] sm:$0xff] %v14278_v0  ;;  %639 = vst [vmem:[#allocation2 + $0x358] sm:$0xff] %v14278_v0  ;;  %11571 = vmatpush3.bf16.msra.mxu0 %v13548_v18  ;;  %v887_v37 = vrot.slane %v885_v35, 1  ;;  %v13567_v42 = vld [vmem:[#allocation8 + $0x100] sm:$0xff]   ;;  %3103 = vmatprep.mubr.bf16.mxu1 %v13566_v40  ;;  %v13569_v45 = vld [vmem:[%s14606_s19 + $0x8] sm:$0xff]  }
  0xd1   : > { %642 = vst [vmem:[#allocation2 + $0x370] sm:$0xff] %v14278_v0  ;;  %645 = vst [vmem:[#allocation2 + $0x388] sm:$0xff] %v14278_v0  ;;  %11572 = vmatprep.subr.bf16.mxu0 %v13551_v21  ;;  %v13568_v43 = vld [vmem:[%s14606_s19] sm:$0xfe]   ;;  %v890_v47 = vshrl.u32 %v13569_v45, 16  ;;  %v892_v48 = vshll.u32 %v13569_v45, 16 }
  0xd2   : > { %648 = vst [vmem:[#allocation2 + $0x3a0] sm:$0xff] %v14278_v0  ;;  %651 = vst [vmem:[#allocation2 + $0x3b8] sm:$0xff] %v14278_v0  ;;  %11671 = vmatpush3.bf16.msra.mxu1 %v13550_v20  ;;  %v888_v41 = vor.u32 %v887_v37, %v883_v34  ;;  %v1137_v46 = vrot.slane %v13568_v43, 1  ;;  %v13573_v49 = vld [vmem:[#allocation8 + $0x148] sm:$0xff]   ;;  %v13574_v53 = vld [vmem:[%s14606_s19 + $0x10] sm:$0xff]  }
  0xd3   : > { %654 = vst [vmem:[#allocation2 + $0x3d0] sm:$0xff] %v14278_v0  ;;  %657 = vst [vmem:[#allocation2 + $0x3e8] sm:$0xff] %v14278_v0  ;;  %11672 = vmatprep.subr.bf16.mxu1 %v13553_v23  ;;  %v13572_v50 = vld [vmem:[%s14606_s19 + $0x8] sm:$0xfe]   ;;  %v894_v51 = vrot.slane %v892_v48, 1  ;;  %v897_v57 = vshrl.u32 %v13574_v53, 16 }
  0xd4   : > { %11573 = vmatpush3.bf16.msra.mxu0 %v13552_v22  ;;  %vm14626_vm2 = vmand %vm994_vm1, %vm995_vm0  ;;  %1165 = vst [vmem:[#allocation2 + $0x10] sm:$0x7f] %v1137_v46  ;;  %v13570_v52 = vld [vmem:[%s14606_s19 + $0x8] sm:$0xff]   ;;  %v1138_v54 = vrot.slane %v13572_v50, 1  ;;  %v899_v58 = vshll.u32 %v13574_v53, 16  ;;  %v13571_v60 = vld [vmem:[%s14606_s19 + $0x10] sm:$0xff]  }
  0xd5   : > { %11574 = vmatprep.subr.bf16.mxu0 %v13555_v25  ;;  %v998_v44 = vsel %vm14626_vm2, %v888_v41, 0  ;;  %v13575_v55 = vld [vmem:[#allocation8 + $0x108] sm:$0xff]   ;;  %v895_v56 = vor.u32 %v894_v51, %v890_v47  ;;  %v13578_v62 = vld [vmem:[%s14606_s19 + $0x10] sm:$0xfe]   ;;  %v13579_v1 = vld [vmem:[%s14606_s19 + $0x18] sm:$0xff]  }
  0xd6   : > { %11673 = vmatpush3.bf16.msra.mxu1 %v13554_v24  ;;  %999 = vst [vmem:[#allocation2 + $0x8] sm:$0xff] %v998_v44  ;;  %2958 = vmatprep.mubr.bf16.mxu0 %v998_v44  ;;  %1166 = vst [vmem:[#allocation2 + $0x58] sm:$0x7f] %v1138_v54  ;;  %v901_v61 = vrot.slane %v899_v58, 1  ;;  %v1139_v2 = vrot.slane %v13578_v62, 1  ;;  %v904_v4 = vshrl.u32 %v13579_v1, 16 }
  0xd7   : > { %11674 = vmatprep.subr.bf16.mxu1 %v13557_v27  ;;  %v1001_v59 = vsel %vm14626_vm2, %v895_v56, 0  ;;  %v906_v5 = vshll.u32 %v13579_v1, 16  ;;  %v13576_v6 = vld [vmem:[%s14606_s19 + $0x10] sm:$0xff]   ;;  %v13577_v8 = vld [vmem:[%s14606_s19 + $0x18] sm:$0xff]   ;;  %v13585_v15 = vld [vmem:[%s14606_s19 + $0x20] sm:$0xff]  }
  0xd8   : > { %11575 = vmatpush3.bf16.msra.mxu0 %v13556_v26  ;;  %1002 = vst [vmem:[#allocation2 + $0x50] sm:$0xff] %v1001_v59  ;;  %v902_v0 = vor.u32 %v901_v61, %v897_v57  ;;  %1167 = vst [vmem:[#allocation2 + $0xa0] sm:$0x7f] %v1139_v2  ;;  %v13582_v10 = vld [vmem:[%s14606_s19 + $0x18] sm:$0xfe]   ;;  %v13583_v11 = vld [vmem:[#allocation8 + $0x150] sm:$0xff]  }
  0xd9   : > { %11576 = vmatprep.subr.bf16.mxu0 %v13559_v29  ;;  %v908_v9 = vrot.slane %v906_v5, 1  ;;  %v1140_v13 = vrot.slane %v13582_v10, 1  ;;  %v13584_v14 = vld [vmem:[#allocation8 + $0x110] sm:$0xff]   ;;  %v911_v17 = vshrl.u32 %v13585_v15, 16  ;;  %v913_v18 = vshll.u32 %v13585_v15, 16  ;;  %v13589_v19 = vld [vmem:[%s14606_s19 + $0x28] sm:$0xff]  }
  0xda   : > { %11675 = vmatpush3.bf16.msra.mxu1 %v13558_v28  ;;  %v1004_v3 = vsel %vm14626_vm2, %v902_v0, 0  ;;  %v13580_v20 = vld [vmem:[%s14606_s19 + $0x18] sm:$0xff]   ;;  %v13588_v22 = vld [vmem:[%s14606_s19 + $0x20] sm:$0xfe]   ;;  %v918_v24 = vshrl.u32 %v13589_v19, 16  ;;  %v920_v25 = vshll.u32 %v13589_v19, 16 }
  0xdb   : > { %11676 = vmatprep.subr.bf16.mxu1 %v13561_v31  ;;  %v2219_v63 = vld [vmem:[#allocation2 + $0x10] sm:$0xff]  ;;  %1005 = vst [vmem:[#allocation2 + $0x98] sm:$0xff] %v1004_v3  ;;  %v909_v12 = vor.u32 %v908_v9, %v904_v4  ;;  %1168 = vst [vmem:[#allocation2 + $0xe8] sm:$0x7f] %v1140_v13  ;;  %v915_v21 = vrot.slane %v913_v18, 1  ;;  %v13581_v23 = vld [vmem:[%s14606_s19 + $0x20] sm:$0xff]  }
  0xdc   : > { %11577 = vmatpush3.bf16.msra.mxu0 %v13560_v30  ;;  %v1141_v28 = vrot.slane %v13588_v22, 1  ;;  %v922_v29 = vrot.slane %v920_v25, 1  ;;  %v13593_v30 = vld [vmem:[#allocation8 + $0x158] sm:$0xff]   ;;  %v13592_v32 = vld [vmem:[%s14606_s19 + $0x28] sm:$0xfe]   ;;  %v13603_v56 = vld [vmem:[#allocation8 + $0x120] sm:$0xff]  }
  0xdd   : > { %11762 = vmatprep.subr.bf16.mxu0 %v13565_v39  ;;  %v2228_v7 = vld [vmem:[#allocation2 + $0x58] sm:$0xff]  ;;  %v1007_v16 = vsel %vm14626_vm2, %v909_v12, 0  ;;  %v916_v27 = vor.u32 %v915_v21, %v911_v17  ;;  %v1142_v34 = vrot.slane %v13592_v32, 1  ;;  %v13586_v39 = vld [vmem:[%s14606_s19 + $0x20] sm:$0xff]   ;;  %v13587_v40 = vld [vmem:[%s14606_s19 + $0x28] sm:$0xff]  }
  0xde   : > { %11677 = vmatpush3.bf16.msra.mxu1 %v13563_v33  ;;  %1008 = vst [vmem:[#allocation2 + $0xe0] sm:$0xff] %v1007_v16  ;;  %1169 = vst [vmem:[#allocation2 + $0x130] sm:$0x7f] %v1141_v28  ;;  %v923_v33 = vor.u32 %v922_v29, %v918_v24  ;;  %v13594_v35 = vld [vmem:[#allocation8 + $0x118] sm:$0xff]   ;;  %v13598_v44 = vld [vmem:[%s14606_s19 + $0x30] sm:$0xfe]  }
  0xdf   : > { %2959 = vmatmul.mubr.bf16.vlgmr.msra.gmra.mrb[0].mxu0 %v13564_v38  ;;  %v2237_v26 = vld [vmem:[#allocation2 + $0xa0] sm:$0xff]  ;;  %v1010_v31 = vsel %vm14626_vm2, %v916_v27, 0  ;;  %v13595_v38 = vld [vmem:[%s14606_s19 + $0x30] sm:$0xff]   ;;  %1170 = vst [vmem:[#allocation2 + $0x178] sm:$0x7f] %v1142_v34  ;;  %v13599_v43 = vld [vmem:[%s14606_s19 + $0x38] sm:$0xff]  }
  0xe0   : > { %11763 = vmatpush3.bf16.msra.mxu0 %v13567_v42  ;;  %2966 = vmatprep.mubr.bf16.mxu0 %v1001_v59  ;;  %1011 = vst [vmem:[#allocation2 + $0x128] sm:$0xff] %v1010_v31  ;;  %v1013_v37 = vsel %vm14626_vm2, %v923_v33, 0  ;;  %v925_v41 = vshrl.u32 %v13595_v38, 16  ;;  %v927_v42 = vshll.u32 %v13595_v38, 16  ;;  %v1143_v47 = vrot.slane %v13598_v44, 1  ;;  %v13590_v53 = vld [vmem:[%s14606_s19 + $0x28] sm:$0xff]  }
  0xe1   : > { %11764 = vmatprep.subr.bf16.mxu0 %v13573_v49  ;;  %3104 = vmatmul.mubr.bf16.vlgmr.msra.gmra.mrb[0].mxu1 %v2219_v63  ;;  %1014 = vst [vmem:[#allocation2 + $0x170] sm:$0xff] %v1013_v37  ;;  %v932_v48 = vshrl.u32 %v13599_v43, 16  ;;  %v934_v49 = vshll.u32 %v13599_v43, 16  ;;  %v13591_v57 = vld [vmem:[%s14606_s19 + $0x30] sm:$0xff]   ;;  %v13604_v58 = vld [vmem:[%s14606_s19 + $0x38] sm:$0xfe]  }
  0xe2   : > { %3111 = vmatprep.mubr.bf16.mxu1 %v13571_v60  ;;  %v2246_v45 = vld [vmem:[#allocation2 + $0xe8] sm:$0xff]  ;;  %v929_v46 = vrot.slane %v927_v42, 1  ;;  %1171 = vst [vmem:[#allocation2 + $0x1c0] sm:$0x7f] %v1143_v47  ;;  %v13605_v60 = vld [vmem:[%s14606_s19 + $0x40] sm:$0xff]   ;;  %v1144_v62 = vrot.slane %v13604_v58, 1 }
  0xe3   : > { %v936_v51 = vrot.slane %v934_v49, 1  ;;  %v939_v63 = vshrl.u32 %v13605_v60, 16  ;;  %v941_v0 = vshll.u32 %v13605_v60, 16  ;;  %v13609_v1 = vld [vmem:[#allocation8 + $0x168] sm:$0xff]   ;;  %v13596_v5 = vld [vmem:[%s14606_s19 + $0x30] sm:$0xff]   ;;  %v13620_v29 = vld [vmem:[#allocation8 + $0x180] sm:$0xff]  }
  0xe4   : > { %11765 = vmatpush3.bf16.msra.mxu0 %v13575_v55  ;;  %v930_v50 = vor.u32 %v929_v46, %v925_v41  ;;  %1172 = vst [vmem:[#allocation2 + $0x208] sm:$0x7f] %v1144_v62  ;;  %v13610_v4 = vld [vmem:[%s14606_s19 + $0x48] sm:$0xff]   ;;  %v13615_v17 = vld [vmem:[%s14606_s19 + $0x50] sm:$0xff]   ;;  %v13628_v44 = vld [vmem:[%s14606_s19 + $0x58] sm:$0xfe]  }
  0xe5   : > { %11766 = vmatprep.subr.bf16.mxu0 %v13583_v11  ;;  %v937_v55 = vor.u32 %v936_v51, %v932_v48  ;;  %v2255_v61 = vld [vmem:[#allocation2 + $0x130] sm:$0xff]  ;;  %v943_v2 = vrot.slane %v941_v0, 1  ;;  %v948_v9 = vshll.u32 %v13610_v4, 16  ;;  %v13611_v10 = vld [vmem:[#allocation8 + $0x128] sm:$0xff]   ;;  %v13597_v11 = vld [vmem:[%s14606_s19 + $0x38] sm:$0xff]   ;;  %v953_v21 = vshrl.u32 %v13615_v17, 16 }
  0xe6   : > { %v1016_v54 = vsel %vm14626_vm2, %v930_v50, 0  ;;  %v955_v22 = vshll.u32 %v13615_v17, 16  ;;  %v13618_v24 = vld [vmem:[%s14606_s19 + $0x50] sm:$0xfe]   ;;  %v13623_v34 = vld [vmem:[#allocation8 + $0x1c8] sm:$0xff]   ;;  %v1148_v47 = vrot.slane %v13628_v44, 1 }
  0xe7   : > { %2967 = vmatmul.mubr.bf16.gmra.mrb[4].mxu0 %v13570_v52  ;;  %v13601_v52 = vld [vmem:[#allocation8 + $0x160] sm:$0xff]   ;;  %1017 = vst [vmem:[#allocation2 + $0x1b8] sm:$0xff] %v1016_v54  ;;  %v1019_v59 = vsel %vm14626_vm2, %v937_v55, 0  ;;  %v950_v13 = vrot.slane %v948_v9, 1  ;;  %v1147_v28 = vrot.slane %v13618_v24, 1  ;;  %v13622_v32 = vld [vmem:[#allocation8 + $0x130] sm:$0xff]  }
  0xe8   : > { %2974 = vmatprep.mubr.bf16.mxu0 %v1004_v3  ;;  %11767 = vmatpush3.bf16.msra.mxu0 %v13584_v14  ;;  %1020 = vst [vmem:[#allocation2 + $0x200] sm:$0xff] %v1019_v59  ;;  %v13608_v3 = vld [vmem:[%s14606_s19 + $0x40] sm:$0xfe]   ;;  %v2264_v14 = vld [vmem:[#allocation2 + $0x178] sm:$0xff]  ;;  %v957_v27 = vrot.slane %v955_v22, 1  ;;  %v13607_v41 = vld [vmem:[%s14606_s19 + $0x48] sm:$0xff]  }
  0xe9   : > { %3112 = vmatmul.mubr.bf16.gmra.mrb[4].mxu1 %v2228_v7  ;;  %11768 = vmatprep.subr.bf16.mxu0 %v13593_v30  ;;  %v1145_v7 = vrot.slane %v13608_v3, 1  ;;  %v2273_v25 = vld [vmem:[#allocation2 + $0x1c0] sm:$0xff]  ;;  %1175 = vst [vmem:[#allocation2 + $0x2e0] sm:$0x7f] %v1147_v28  ;;  %v13629_v46 = vld [vmem:[#allocation8 + $0x1d0] sm:$0xff]   ;;  %v14693_v49 = vld [vmem:[#allocation2 + $0x28] sm:$0xff] }
  0xea   : > { %3119 = vmatprep.mubr.bf16.mxu1 %v13577_v8  ;;  %v946_v8 = vshrl.u32 %v13610_v4, 16  ;;  %v958_v30 = vor.u32 %v957_v27, %v953_v21  ;;  %v13630_v48 = vld [vmem:[#allocation8 + $0x190] sm:$0xff]   ;;  %v13631_v51 = vld [vmem:[#allocation8 + $0x1d8] sm:$0xff]   ;;  %1176 = vst [vmem:[#allocation2 + $0x328] sm:$0x7f] %v1148_v47  ;;  %v14705_v60 = vld [vmem:[%s14606_s19 + $0x68] sm:$0xff]  }
  0xeb   : > { %1173 = vst [vmem:[#allocation2 + $0x250] sm:$0x7f] %v1145_v7  ;;  %v2282_v43 = vld [vmem:[#allocation2 + $0x208] sm:$0xff]  ;;  %v13636_v62 = vld [vmem:[%s14606_s19 + $0x60] sm:$0xfe]   ;;  %v13639_v3 = vld [vmem:[#allocation8 + $0x138] sm:$0xff]  }
  0xec   : > { %11769 = vmatpush3.bf16.msra.mxu0 %v13594_v35  ;;  %v951_v15 = vor.u32 %v950_v13, %v946_v8  ;;  %v1028_v33 = vsel %vm14626_vm2, %v958_v30, 0  ;;  %v13624_v35 = vld [vmem:[%s14606_s19 + $0x58] sm:$0xff]   ;;  %v13616_v4 = vld [vmem:[%s14606_s19 + $0x50] sm:$0xff]   ;;  %v13641_v7 = vld [vmem:[#allocation8 + $0x1e8] sm:$0xff]  }
  0xed   : > { %11770 = vmatprep.subr.bf16.mxu0 %v13601_v52  ;;  %1029 = vst [vmem:[#allocation2 + $0x2d8] sm:$0xff] %v1028_v33  ;;  %v960_v38 = vshrl.u32 %v13624_v35, 16  ;;  %v13612_v52 = vld [vmem:[%s14606_s19 + $0x48] sm:$0xff]   ;;  %v13617_v9 = vld [vmem:[%s14606_s19 + $0x58] sm:$0xff]   ;;  %v13648_v22 = vld [vmem:[#allocation8 + $0x1b0] sm:$0xff]  }
  0xee   : > { %v1025_v18 = vsel %vm14626_vm2, %v951_v15, 0  ;;  %v13646_v17 = vld [vmem:[%s14606_s19 + $0x68] sm:$0xfe]   ;;  %v13627_v24 = vld [vmem:[%s14606_s19 + $0x60] sm:$0xff]   ;;  %v13651_v28 = vld [vmem:[#allocation8 + $0x1b8] sm:$0xff]  }
  0xef   : > { %2975 = vmatmul.mubr.bf16.gmra.mrb[8].mxu0 %v13576_v6  ;;  %v944_v6 = vor.u32 %v943_v2, %v939_v63  ;;  %1026 = vst [vmem:[#allocation2 + $0x290] sm:$0xff] %v1025_v18  ;;  %v13637_v63 = vld [vmem:[#allocation8 + $0x178] sm:$0xff]   ;;  %v13638_v2 = vld [vmem:[#allocation8 + $0x1e0] sm:$0xff]   ;;  %v1150_v21 = vrot.slane %v13646_v17, 1  ;;  %v13650_v27 = vld [vmem:[%s14606_s19 + $0x8] sm:$0xfe]  }
  0xf0   : > { %2982 = vmatprep.mubr.bf16.mxu0 %v1007_v16  ;;  %11771 = vmatpush3.bf16.msra.mxu0 %v13603_v56  ;;  %v13614_v16 = vld [vmem:[%s14606_s19 + $0x48] sm:$0xfe]   ;;  %v13613_v56 = vld [vmem:[%s14606_s19 + $0x50] sm:$0xff]   ;;  %v14008_v36 = vld [vmem:[#allocation14 + $0x138] sm:$0xff]  }
  0xf1   : > { %3120 = vmatmul.mubr.bf16.gmra.mrb[8].mxu1 %v2237_v26  ;;  %11772 = vmatprep.subr.bf16.mxu0 %v13609_v1  ;;  %v1022_v12 = vsel %vm14626_vm2, %v944_v6, 0  ;;  %v1146_v19 = vrot.slane %v13614_v16, 1  ;;  %v13602_v26 = vld [vmem:[%s14606_s19 + $0x40] sm:$0xff]   ;;  %v1149_v1 = vrot.slane %v13636_v62, 1  ;;  %v14718_v16 = vld [vmem:[%s14606_s19 + $0x70] sm:$0xff]   ;;  %v13652_v30 = vld [vmem:[%s14606_s19 + $0x8] sm:$0xff]  }
  0xf2   : > { %3127 = vmatprep.mubr.bf16.mxu1 %v13581_v23  ;;  %1023 = vst [vmem:[#allocation2 + $0x248] sm:$0xff] %v1022_v12  ;;  %v13619_v23 = vld [vmem:[#allocation8 + $0x1c0] sm:$0xff]   ;;  %v2291_v55 = vld [vmem:[#allocation2 + $0x250] sm:$0xff]  ;;  %1178 = vst [vmem:[#allocation2 + $0x3b8] sm:$0x7f] %v1150_v21 }
  0xf3   : > { %1174 = vst [vmem:[#allocation2 + $0x298] sm:$0x7f] %v1146_v19  ;;  %11862 = vmatprep.subr.bf16.mxu1 %v13619_v23  ;;  %1177 = vst [vmem:[#allocation2 + $0x370] sm:$0x7f] %v1149_v1  ;;  %v13640_v6 = vld [vmem:[#allocation8 + $0x1a0] sm:$0xff]  }
  0xf4   : > { %11773 = vmatpush3.bf16.msra.mxu0 %v13611_v10  ;;  %11863 = vmatpush3.bf16.msra.mxu1 %v13620_v29  ;;  %v13642_v10 = vld [vmem:[%s14606_s19 + $0x68] sm:$0xff]   ;;  %v2309_v23 = vld [vmem:[#allocation2 + $0x2e0] sm:$0xff]  ;;  %v1656_v29 = vrot.slane %v13650_v27, 1 }
  0xf5   : > { %11864 = vmatprep.subr.bf16.mxu1 %v13623_v34  ;;  %v976_v13 = vshll.u32 %v13642_v10, 16  ;;  %v13654_v34 = vld [vmem:[%s14606_s19 + $0x10] sm:$0xff]  }
  0xf6   : > { %1684 = vst [vmem:[#allocation2 + $0x28] sm:$0x7f] %v1656_v29  ;;  %v13671_v29 = vld [vmem:[%s14606_s19 + $0x28] sm:$0xff]  }
  0xf7   : > { %2983 = vmatmul.mubr.bf16.gmra.mrb[12].mxu0 %v13580_v20  ;;  %v13600_v20 = vld [vmem:[%s14606_s19 + $0x38] sm:$0xff]   ;;  %v978_v15 = vrot.slane %v976_v13, 1  ;;  %v13667_v13 = vld [vmem:[%s14606_s19 + $0x28] sm:$0xff]  }
  0xf8   : > { %2990 = vmatprep.mubr.bf16.mxu0 %v1010_v31  ;;  %v13621_v31 = vld [vmem:[#allocation8 + $0x170] sm:$0xff]  }
  0xf9   : > { %3128 = vmatmul.mubr.bf16.gmra.mrb[12].mxu1 %v2246_v45  ;;  %11774 = vmatprep.subr.bf16.mxu0 %v13621_v31  ;;  %v14728_v31 = vld [vmem:[#allocation8 + $0x200] sm:$0xff]   ;;  %v2336_v21 = vld [vmem:[#allocation2 + $0x3b8] sm:$0xff] }
  0xfa   : > { %3135 = vmatprep.mubr.bf16.mxu1 %v13587_v40  ;;  %11775 = vmatpush3.bf16.msra.mxu0 %v13622_v32  ;;  %v13625_v40 = vld [vmem:[#allocation8 + $0x188] sm:$0xff]   ;;  %v2300_v8 = vld [vmem:[#allocation2 + $0x298] sm:$0xff]  ;;  %v1405_v32 = vshrl.u32 %v13652_v30, 16 }
  0xfb   : > { %11865 = vmatpush3.bf16.msra.mxu1 %v13625_v40  ;;  %11776 = vmatprep.subr.bf16.mxu0 %v13637_v63  ;;  %v13656_v40 = vld [vmem:[%s14606_s19 + $0x10] sm:$0xfe]  }
  0xfc   : > { %11866 = vmatprep.subr.bf16.mxu1 %v13629_v46  ;;  %v2318_v46 = vld [vmem:[#allocation2 + $0x328] sm:$0xff]  ;;  %v1657_v47 = vrot.slane %v13656_v40, 1  ;;  %v13674_v40 = vld [vmem:[%s14606_s19 + $0x30] sm:$0xfe]  }
  0xfe   : > { %11777 = vmatpush3.bf16.msra.mxu0 %v13639_v3  ;;  %1685 = vst [vmem:[#allocation2 + $0x70] sm:$0x7f] %v1657_v47  ;;  %v13676_v47 = vld [vmem:[%s14606_s19 + $0x38] sm:$0xff]  }
  0xff   : > { %2991 = vmatmul.mubr.bf16.gmra.mrb[16].mxu0 %v13586_v39  ;;  %v962_v39 = vshll.u32 %v13624_v35, 16  ;;  %11867 = vmatpush3.bf16.msra.mxu1 %v13630_v48 }
 0x100   : > { %2998 = vmatprep.mubr.bf16.mxu0 %v1013_v37  ;;  %v13606_v37 = vld [vmem:[%s14606_s19 + $0x40] sm:$0xff]   ;;  %11868 = vmatprep.subr.bf16.mxu1 %v13631_v51 }
 0x101   : > { %3136 = vmatmul.mubr.bf16.gmra.mrb[16].mxu1 %v2255_v61  ;;  %v964_v42 = vrot.slane %v962_v39, 1  ;;  %13189 = vmatprep.subr.bf16.mxu0 %v14728_v31  ;;  %v13657_v39 = vld [vmem:[%s14606_s19 + $0x10] sm:$0xff]  }
 0x102   : > { %3143 = vmatprep.mubr.bf16.mxu1 %v13591_v57  ;;  %v1414_v44 = vshll.u32 %v13657_v39, 16 }
 0x103   : > { %v965_v45 = vor.u32 %v964_v42, %v960_v38  ;;  %v1926_v38 = vshll.u32 %v13654_v34, 16 }
 0x104   : > { %v1416_v51 = vrot.slane %v1414_v44, 1 }
 0x105   : > { %v1031_v50 = vsel %vm14626_vm2, %v965_v45, %v14693_v49  ;;  %v1928_v42 = vrot.slane %v1926_v38, 1  ;;  %v13658_v45 = vld [vmem:[%s14606_s19 + $0x18] sm:$0xff]  }
 0x106   : > { %1032 = vst [vmem:[#allocation2 + $0x320] sm:$0xff] %v1031_v50 }
 0x107   : > { %2999 = vmatmul.mubr.bf16.gmra.mrb[20].mxu0 %v13590_v53  ;;  %v13632_v53 = vld [vmem:[%s14606_s19 + $0x60] sm:$0xff]  }
 0x108   : > { %3006 = vmatprep.mubr.bf16.mxu0 %v1016_v54  ;;  %v13633_v54 = vld [vmem:[#allocation8 + $0x198] sm:$0xff]   ;;  %v967_v57 = vshrl.u32 %v13632_v53, 16  ;;  %v969_v58 = vshll.u32 %v13632_v53, 16  ;;  %v1933_v53 = vshll.u32 %v13658_v45, 16 }
 0x109   : > { %3144 = vmatmul.mubr.bf16.gmra.mrb[20].mxu1 %v2264_v14  ;;  %v14715_v14 = vld [vmem:[%s14606_s19 + $0x68] sm:$0xff]  }
 0x10a   : > { %3151 = vmatprep.mubr.bf16.mxu1 %v13597_v11  ;;  %v971_v61 = vrot.slane %v969_v58, 1  ;;  %11869 = vmatpush3.bf16.msra.mxu1 %v13633_v54  ;;  %v13643_v11 = vld [vmem:[#allocation8 + $0x1a8] sm:$0xff]   ;;  %v13662_v58 = vld [vmem:[%s14606_s19 + $0x18] sm:$0xff]  }
 0x10b   : > { %11870 = vmatprep.subr.bf16.mxu1 %v13638_v2  ;;  %v1421_v1 = vshll.u32 %v13662_v58, 16  ;;  %v2222_v2 = vld [vmem:[#allocation2 + $0x28] sm:$0xff] }
 0x10c   : > { %v972_v0 = vor.u32 %v971_v61, %v967_v57  ;;  %v13661_v57 = vld [vmem:[%s14606_s19 + $0x18] sm:$0xfe]   ;;  %v2327_v61 = vld [vmem:[#allocation2 + $0x370] sm:$0xff] }
 0x10d   : > { %v1658_v63 = vrot.slane %v13661_v57, 1 }
 0x10e   : > { %11871 = vmatpush3.bf16.msra.mxu1 %v13640_v6 }
 0x10f   : > { %3007 = vmatmul.mubr.bf16.gmra.mrb[24].mxu0 %v13596_v5  ;;  %v1034_v5 = vsel %vm14626_vm2, %v972_v0, %v14693_v49  ;;  %11872 = vmatprep.subr.bf16.mxu1 %v13641_v7  ;;  %v1419_v0 = vshrl.u32 %v13662_v58, 16  ;;  %1686 = vst [vmem:[#allocation2 + $0xb8] sm:$0x7f] %v1658_v63  ;;  %v13666_v7 = vld [vmem:[%s14606_s19 + $0x20] sm:$0xff]   ;;  %v13679_v63 = vld [vmem:[%s14606_s19 + $0x38] sm:$0xfe]  }
 0x110   : > { %3014 = vmatprep.mubr.bf16.mxu0 %v1019_v59  ;;  %v14702_v59 = vld [vmem:[%s14606_s19 + $0x60] sm:$0xff]  }
 0x111   : > { %3152 = vmatmul.mubr.bf16.gmra.mrb[24].mxu1 %v2273_v25 }
 0x112   : > { %3159 = vmatprep.mubr.bf16.mxu1 %v13602_v26  ;;  %11873 = vmatpush3.bf16.msra.mxu1 %v13643_v11  ;;  %v13649_v26 = vld [vmem:[#allocation8 + $0x1f8] sm:$0xff]   ;;  %v1426_v11 = vshrl.u32 %v13666_v7, 16 }
 0x117   : > { %3015 = vmatmul.mubr.bf16.gmra.mrb[28].mxu0 %v13600_v20  ;;  %v13647_v20 = vld [vmem:[#allocation8 + $0x1f0] sm:$0xff]  }
 0x118   : > { %3022 = vmatprep.mubr.bf16.mxu0 %v1022_v12  ;;  %v974_v12 = vshrl.u32 %v13642_v10, 16  ;;  %11874 = vmatprep.subr.bf16.mxu1 %v13647_v20  ;;  %v1947_v20 = vshll.u32 %v13667_v13, 16 }
 0x119   : > { %3160 = vmatmul.mubr.bf16.gmra.mrb[28].mxu1 %v2282_v43  ;;  %v1412_v43 = vshrl.u32 %v13657_v39, 16 }
 0x11a   : > { %3167 = vmatprep.mubr.bf16.mxu1 %v13607_v41  ;;  %v979_v19 = vor.u32 %v978_v15, %v974_v12  ;;  %11875 = vmatpush3.bf16.msra.mxu1 %v13648_v22  ;;  %v1428_v12 = vshll.u32 %v13666_v7, 16 }
 0x11b   : > { %11876 = vmatprep.subr.bf16.mxu1 %v13649_v26  ;;  %v1949_v26 = vrot.slane %v1947_v20, 1 }
 0x11c   : > { %v1037_v25 = vsel %vm14626_vm2, %v979_v19, %v14693_v49  ;;  %v1430_v19 = vrot.slane %v1428_v12, 1 }
 0x11e   : > { %11877 = vmatpush3.bf16.msra.mxu1 %v13651_v28 }
 0x11f   : > { %3023 = vmatmul.mubr.bf16.gmra.mrb[32].mxu0 %v13606_v37  ;;  %v1924_v37 = vshrl.u32 %v13654_v34, 16  ;;  %v1435_v34 = vshll.u32 %v13671_v29, 16 }
 0x120   : > { %3030 = vmatprep.mubr.bf16.mxu0 %v1025_v18  ;;  %v13626_v18 = vld [vmem:[%s14606_s19 + $0x58] sm:$0xff]  }
 0x121   : > { %3168 = vmatmul.mubr.bf16.gmra.mrb[32].mxu1 %v2291_v55  ;;  %v1417_v55 = vor.u32 %v1416_v51, %v1412_v43 }
 0x122   : > { %3175 = vmatprep.mubr.bf16.mxu1 %v13613_v56  ;;  %v1935_v56 = vrot.slane %v1933_v53, 1 }
 0x127   : > { %3031 = vmatmul.mubr.bf16.gmra.mrb[36].mxu0 %v13612_v52  ;;  %v1931_v52 = vshrl.u32 %v13658_v45, 16 }
 0x128   : > { %3038 = vmatprep.mubr.bf16.mxu0 %v1028_v33  ;;  %v1407_v33 = vshll.u32 %v13652_v30, 16 }
 0x129   : > { %3176 = vmatmul.mubr.bf16.gmra.mrb[36].mxu1 %v2300_v8  ;;  %v1936_v62 = vor.u32 %v1935_v56, %v1931_v52  ;;  %v13665_v8 = vld [vmem:[%s14606_s19 + $0x20] sm:$0xfe]   ;;  %v2240_v52 = vld [vmem:[#allocation2 + $0xb8] sm:$0xff] }
 0x12a   : > { %3183 = vmatprep.mubr.bf16.mxu1 %v13617_v9  ;;  %v1409_v35 = vrot.slane %v1407_v33, 1  ;;  %v1659_v15 = vrot.slane %v13665_v8, 1  ;;  %v1433_v33 = vshrl.u32 %v13671_v29, 16  ;;  %v13680_v56 = vld [vmem:[%s14606_s19 + $0x38] sm:$0xff]   ;;  %v13664_v29 = vld [vmem:[%s14606_s19 + $0x20] sm:$0xff]  }
 0x12b   : > { %v14761_v3 = vsel %vm14626_vm2, %v1936_v62, %v14693_v49 }
 0x12c   : > { %v1410_v41 = vor.u32 %v1409_v35, %v1405_v32  ;;  %2040 = vst [vmem:[#allocation2 + $0x80] sm:$0xff] %v14761_v3  ;;  %1687 = vst [vmem:[#allocation2 + $0x100] sm:$0x7f] %v1659_v15  ;;  %v13672_v32 = vld [vmem:[%s14606_s19 + $0x30] sm:$0xff]  }
 0x12d   : > { %v13675_v35 = vld [vmem:[%s14606_s19 + $0x30] sm:$0xff]   ;;  %v1952_v38 = vshrl.u32 %v13672_v32, 16  ;;  %v1954_v39 = vshll.u32 %v13672_v32, 16  ;;  %v13689_v32 = vld [vmem:[%s14606_s19 + $0x48] sm:$0xff]  }
 0x12e   : > { %v14738_v48 = vsel %vm14626_vm2, %v1410_v41, %v14693_v49  ;;  %v13669_v41 = vld [vmem:[#allocation8 + $0x210] sm:$0xff]   ;;  %v1440_v44 = vshrl.u32 %v13675_v35, 16  ;;  %v1442_v45 = vshll.u32 %v13675_v35, 16 }
 0x12f   : > { %3039 = vmatmul.mubr.bf16.gmra.mrb[40].mxu0 %v13616_v4  ;;  %1518 = vst [vmem:[#allocation2 + $0x20] sm:$0xff] %v14738_v48  ;;  %v1423_v4 = vrot.slane %v1421_v1, 1  ;;  %v1956_v43 = vrot.slane %v1954_v39, 1  ;;  %v13690_v35 = vld [vmem:[%s14606_s19 + $0x50] sm:$0xff]   ;;  %v1463_v39 = vshll.u32 %v13689_v32, 16 }
 0x130   : > { %3046 = vmatprep.mubr.bf16.mxu0 %v1031_v50  ;;  %v1929_v50 = vor.u32 %v1928_v42, %v1924_v37  ;;  %v1437_v42 = vrot.slane %v1435_v34, 1  ;;  %v1444_v51 = vrot.slane %v1442_v45, 1  ;;  %v13694_v45 = vld [vmem:[%s14606_s19 + $0x50] sm:$0xff]  }
 0x131   : > { %3184 = vmatmul.mubr.bf16.gmra.mrb[40].mxu1 %v2309_v23  ;;  %v1424_v9 = vor.u32 %v1423_v4, %v1419_v0  ;;  %v13670_v23 = vld [vmem:[%s14606_s19 + $0x28] sm:$0xfe]   ;;  %v1447_v0 = vshrl.u32 %v13680_v56, 16  ;;  %v1662_v4 = vrot.slane %v13679_v63, 1 }
 0x132   : > { %3191 = vmatprep.mubr.bf16.mxu1 %v13627_v24  ;;  %v14745_v54 = vsel %vm14626_vm2, %v1929_v50, %v14693_v49  ;;  %v2231_v24 = vld [vmem:[#allocation2 + $0x70] sm:$0xff]  ;;  %v1660_v28 = vrot.slane %v13670_v23, 1  ;;  %v1957_v50 = vor.u32 %v1956_v43, %v1952_v38  ;;  %v1445_v58 = vor.u32 %v1444_v51, %v1440_v44  ;;  %v13692_v43 = vld [vmem:[#allocation8 + $0x228] sm:$0xff]  }
 0x133   : > { %2037 = vst [vmem:[#allocation2 + $0x38] sm:$0xff] %v14745_v54  ;;  %v14772_v17 = vsel %vm14626_vm2, %v1424_v9, %v14693_v49  ;;  %v13684_v9 = vld [vmem:[%s14606_s19 + $0x40] sm:$0xff]   ;;  %1690 = vst [vmem:[#allocation2 + $0x1d8] sm:$0x7f] %v1662_v4  ;;  %v1461_v38 = vshrl.u32 %v13689_v32, 16  ;;  %v1465_v44 = vrot.slane %v1463_v39, 1 }
 0x134   : > { %1524 = vst [vmem:[#allocation2 + $0xb0] sm:$0xff] %v14772_v17  ;;  %1688 = vst [vmem:[#allocation2 + $0x148] sm:$0x7f] %v1660_v28  ;;  %v14813_v57 = vsel %vm14626_vm2, %v1957_v50, %v14693_v49  ;;  %v14821_v1 = vsel %vm14626_vm2, %v1445_v58, %v14693_v49  ;;  %v1454_v15 = vshrl.u32 %v13684_v9, 16  ;;  %v13688_v28 = vld [vmem:[%s14606_s19 + $0x48] sm:$0xfe]  }
 0x135   : > { %2049 = vst [vmem:[#allocation2 + $0x158] sm:$0xff] %v14813_v57  ;;  %1533 = vst [vmem:[#allocation2 + $0x188] sm:$0xff] %v14821_v1  ;;  %v1664_v34 = vrot.slane %v13688_v28, 1  ;;  %v1468_v50 = vshrl.u32 %v13694_v45, 16  ;;  %v1470_v51 = vshll.u32 %v13694_v45, 16  ;;  %v14929_v45 = vld [vmem:[%s14606_s19 + $0x70] sm:$0xff]  }
 0x137   : > { %3047 = vmatmul.mubr.bf16.gmra.mrb[44].mxu0 %v13626_v18  ;;  %1692 = vst [vmem:[#allocation2 + $0x268] sm:$0x7f] %v1664_v34  ;;  %v1472_v58 = vrot.slane %v1470_v51, 1  ;;  %v14932_v51 = vld [vmem:[#allocation2 + $0x40] sm:$0xff] }
 0x138   : > { %3054 = vmatprep.mubr.bf16.mxu0 %v1034_v5 }
 0x139   : > { %3192 = vmatmul.mubr.bf16.gmra.mrb[44].mxu1 %v2318_v46  ;;  %v1438_v46 = vor.u32 %v1437_v42, %v1433_v33  ;;  %v1982_v42 = vshll.u32 %v13690_v35, 16 }
 0x13a   : > { %3199 = vmatprep.mubr.bf16.mxu1 %v14705_v60  ;;  %v13663_v60 = vld [vmem:[%s14606_s19 + $0x20] sm:$0xff]  }
 0x13b   : > { %v1938_v5 = vshrl.u32 %v13663_v60, 16  ;;  %v1940_v6 = vshll.u32 %v13663_v60, 16  ;;  %v14806_v53 = vsel %vm14626_vm2, %v1438_v46, %v14693_v49  ;;  %v1449_v60 = vshll.u32 %v13680_v56, 16  ;;  %v13668_v56 = vld [vmem:[%s14606_s19 + $0x28] sm:$0xff]  }
 0x13c   : > { %1530 = vst [vmem:[#allocation2 + $0x140] sm:$0xff] %v14806_v53  ;;  %v1984_v46 = vrot.slane %v1982_v42, 1 }
 0x13d   : > { %v1942_v10 = vrot.slane %v1940_v6, 1  ;;  %v1451_v6 = vrot.slane %v1449_v60, 1  ;;  %v13697_v60 = vld [vmem:[%s14606_s19 + $0x58] sm:$0xfe]  }
 0x13f   : > { %3055 = vmatmul.mubr.bf16.gmra.mrb[48].mxu0 %v14702_v59  ;;  %v14754_v59 = vsel %vm14626_vm2, %v1417_v55, %v14693_v49  ;;  %v1943_v18 = vor.u32 %v1942_v10, %v1938_v5  ;;  %v1961_v55 = vshll.u32 %v13676_v47, 16  ;;  %v13659_v5 = vld [vmem:[%s14606_s19 + $0x18] sm:$0xff]   ;;  %v2249_v10 = vld [vmem:[#allocation2 + $0x100] sm:$0xff] }
 0x140   : > { %3062 = vmatprep.mubr.bf16.mxu0 %v1037_v25  ;;  %1521 = vst [vmem:[#allocation2 + $0x68] sm:$0xff] %v14754_v59  ;;  %v13660_v25 = vld [vmem:[#allocation8 + $0x208] sm:$0xff]  }
 0x141   : > { %3200 = vmatmul.mubr.bf16.gmra.mrb[48].mxu1 %v2327_v61  ;;  %v14778_v22 = vsel %vm14626_vm2, %v1943_v18, %v14693_v49  ;;  %v13678_v61 = vld [vmem:[#allocation8 + $0x218] sm:$0xff]   ;;  %v1963_v62 = vrot.slane %v1961_v55, 1  ;;  %v1456_v18 = vshll.u32 %v13684_v9, 16 }
 0x142   : > { %3207 = vmatprep.mubr.bf16.mxu1 %v14718_v16  ;;  %v1431_v16 = vor.u32 %v1430_v19, %v1426_v11  ;;  %2043 = vst [vmem:[#allocation2 + $0xc8] sm:$0xff] %v14778_v22  ;;  %v13685_v19 = vld [vmem:[#allocation8 + $0x220] sm:$0xff]   ;;  %v13695_v55 = vld [vmem:[%s14606_s19 + $0x58] sm:$0xff]  }
 0x143   : > { %v1458_v23 = vrot.slane %v1456_v18, 1  ;;  %v13673_v18 = vld [vmem:[%s14606_s19 + $0x30] sm:$0xff]  }
 0x144   : > { %v14785_v27 = vsel %vm14626_vm2, %v1431_v16, %v14693_v49  ;;  %v13686_v16 = vld [vmem:[%s14606_s19 + $0x48] sm:$0xff]  }
 0x145   : > { %1527 = vst [vmem:[#allocation2 + $0xf8] sm:$0xff] %v14785_v27 }
 0x147   : > { %3063 = vmatmul.mubr.bf16.gmra.mrb[52].mxu0 %v14715_v14  ;;  %v1945_v14 = vshrl.u32 %v13667_v13, 16  ;;  %v13683_v13 = vld [vmem:[%s14606_s19 + $0x40] sm:$0xfe]  }
 0x148   : > { %3248 = vmatprep.mubr.bf16.mxu0 %v2222_v2  ;;  %v13681_v2 = vld [vmem:[%s14606_s19 + $0x40] sm:$0xff]  }
 0x149   : > { %v1950_v30 = vor.u32 %v1949_v26, %v1945_v14  ;;  %3208 = vmatmul.mubr.bf16.gmra.mrb[52].mxu1 %v2336_v21  ;;  %v1966_v7 = vshrl.u32 %v13681_v2, 16  ;;  %v1968_v8 = vshll.u32 %v13681_v2, 16  ;;  %v1663_v21 = vrot.slane %v13683_v13, 1 }
 0x14a   : > { %3393 = vmatprep.mubr.bf16.mxu1 %v14745_v54  ;;  %v1959_v54 = vshrl.u32 %v13676_v47, 16  ;;  %v1975_v26 = vshll.u32 %v13686_v16, 16  ;;  %v13693_v47 = vld [vmem:[%s14606_s19 + $0x50] sm:$0xfe]  }
 0x14b   : > { %v14796_v37 = vsel %vm14626_vm2, %v1950_v30, %v14693_v49  ;;  %v1970_v12 = vrot.slane %v1968_v8, 1  ;;  %1691 = vst [vmem:[#allocation2 + $0x220] sm:$0x7f] %v1663_v21 }
 0x14c   : > { %2046 = vst [vmem:[#allocation2 + $0x110] sm:$0xff] %v14796_v37  ;;  %v1977_v30 = vrot.slane %v1975_v26, 1  ;;  %v13704_v26 = vld [vmem:[%s14606_s19 + $0x68] sm:$0xff]  }
 0x14d   : > { %v1971_v20 = vor.u32 %v1970_v12, %v1966_v7  ;;  %v2001_v32 = vshrl.u32 %v13704_v26, 16  ;;  %v2003_v34 = vshll.u32 %v13704_v26, 16  ;;  %v13720_v26 = vld [vmem:[%s14606_s19 + $0x38] sm:$0xfe]  }
 0x14f   : > { %3249 = vmatmul.mubr.bf16.vlgmr.msra.gmra.mrb[56].mxu0 %v14738_v48  ;;  %v13655_v48 = vld [vmem:[%s14606_s19 + $0x10] sm:$0xff]  }
 0x150   : > { %13190 = vmatpush3.bf16.msra.mxu0 %v14728_v31  ;;  %3256 = vmatprep.mubr.bf16.mxu0 %v2231_v24  ;;  %v1661_v31 = vrot.slane %v13674_v40, 1  ;;  %v14846_v24 = vsel %vm14626_vm2, %v1971_v20, %v14693_v49  ;;  %v2258_v40 = vld [vmem:[#allocation2 + $0x148] sm:$0xff]  ;;  %v13702_v20 = vld [vmem:[%s14606_s19 + $0x60] sm:$0xfe]  }
 0x151   : > { %13191 = vmatprep.subr.bf16.mxu0 %v13660_v25  ;;  %3394 = vmatmul.mubr.bf16.vlgmr.msra.gmra.mrb[56].mxu1 %v13655_v48  ;;  %2055 = vst [vmem:[#allocation2 + $0x1e8] sm:$0xff] %v14846_v24  ;;  %v1466_v48 = vor.u32 %v1465_v44, %v1461_v38  ;;  %v2005_v38 = vrot.slane %v2003_v34, 1  ;;  %v13687_v34 = vld [vmem:[%s14606_s19 + $0x48] sm:$0xff]  }
 0x152   : > { %1689 = vst [vmem:[#allocation2 + $0x190] sm:$0x7f] %v1661_v31  ;;  %3401 = vmatprep.mubr.bf16.mxu1 %v14761_v3  ;;  %v1452_v3 = vor.u32 %v1451_v6, %v1447_v0  ;;  %v1473_v0 = vor.u32 %v1472_v58, %v1468_v50  ;;  %v13699_v6 = vld [vmem:[%s14606_s19 + $0x60] sm:$0xff]   ;;  %v13710_v50 = vld [vmem:[#allocation8 + $0x238] sm:$0xff]  }
 0x153   : > { %v1996_v12 = vshll.u32 %v13699_v6, 16 }
 0x154   : > { %13192 = vmatpush3.bf16.msra.mxu0 %v13660_v25  ;;  %v14838_v14 = vsel %vm14626_vm2, %v1452_v3, %v14693_v49  ;;  %v1973_v25 = vshrl.u32 %v13686_v16, 16  ;;  %v14889_v4 = vsel %vm14626_vm2, %v1473_v0, %v14693_v49  ;;  %v1994_v3 = vshrl.u32 %v13699_v6, 16 }
 0x155   : > { %13193 = vmatprep.subr.bf16.mxu0 %v13669_v41  ;;  %1536 = vst [vmem:[#allocation2 + $0x1d0] sm:$0xff] %v14838_v14  ;;  %1545 = vst [vmem:[#allocation2 + $0x2a8] sm:$0xff] %v14889_v4 }
 0x157   : > { %3257 = vmatmul.mubr.bf16.gmra.mrb[60].mxu0 %v14754_v59  ;;  %v1964_v59 = vor.u32 %v1963_v62, %v1959_v54  ;;  %v1665_v54 = vrot.slane %v13693_v47, 1  ;;  %v1989_v62 = vshll.u32 %v13695_v55, 16 }
 0x158   : > { %3264 = vmatprep.mubr.bf16.mxu0 %v2240_v52  ;;  %13194 = vmatpush3.bf16.msra.mxu0 %v13669_v41  ;;  %v1980_v41 = vshrl.u32 %v13690_v35, 16  ;;  %v13706_v35 = vld [vmem:[%s14606_s19 + $0x68] sm:$0xfe]  }
 0x159   : > { %13195 = vmatprep.subr.bf16.mxu0 %v13678_v61  ;;  %v14831_v11 = vsel %vm14626_vm2, %v1964_v59, %v14693_v49  ;;  %3402 = vmatmul.mubr.bf16.gmra.mrb[60].mxu1 %v13659_v5  ;;  %1693 = vst [vmem:[#allocation2 + $0x2b0] sm:$0x7f] %v1665_v54  ;;  %v2267_v63 = vld [vmem:[#allocation2 + $0x190] sm:$0xff]  ;;  %v1991_v2 = vrot.slane %v1989_v62, 1  ;;  %v13698_v59 = vld [vmem:[%s14606_s19 + $0x58] sm:$0xff]   ;;  %v1666_v5 = vrot.slane %v13697_v60, 1 }
 0x15a   : > { %2052 = vst [vmem:[#allocation2 + $0x1a0] sm:$0xff] %v14831_v11  ;;  %3409 = vmatprep.mubr.bf16.mxu1 %v14778_v22  ;;  %v1978_v22 = vor.u32 %v1977_v30, %v1973_v25  ;;  %v1985_v52 = vor.u32 %v1984_v46, %v1980_v41  ;;  %v1475_v8 = vshrl.u32 %v13698_v59, 16  ;;  %v1477_v9 = vshll.u32 %v13698_v59, 16  ;;  %v13708_v41 = vld [vmem:[%s14606_s19 + $0x70] sm:$0xff]   ;;  %v13677_v46 = vld [vmem:[%s14606_s19 + $0x38] sm:$0xff]   ;;  %v2285_v54 = vld [vmem:[#allocation2 + $0x220] sm:$0xff] }
 0x15b   : > { %1694 = vst [vmem:[#allocation2 + $0x2f8] sm:$0x7f] %v1666_v5  ;;  %v1668_v39 = vrot.slane %v13706_v35, 1  ;;  %v2008_v47 = vshrl.u32 %v13708_v41, 16  ;;  %v13713_v60 = vld [vmem:[%s14606_s19 + $0x78] sm:$0xff]  }
 0x15c   : > { %13196 = vmatpush3.bf16.msra.mxu0 %v13678_v61  ;;  %v14863_v31 = vsel %vm14626_vm2, %v1978_v22, %v14693_v49  ;;  %v1987_v61 = vshrl.u32 %v13695_v55, 16  ;;  %v1479_v13 = vrot.slane %v1477_v9, 1  ;;  %v14953_v5 = vld [vmem:[%s14606_s19 + $0x78] sm:$0xff]   ;;  %v2015_v6 = vshrl.u32 %v13713_v60, 16  ;;  %v13715_v9 = vld [vmem:[%s14606_s19 + $0x10] sm:$0xfe]  }
 0x15d   : > { %13197 = vmatprep.subr.bf16.mxu0 %v13685_v19  ;;  %2058 = vst [vmem:[#allocation2 + $0x230] sm:$0xff] %v14863_v31  ;;  %1696 = vst [vmem:[#allocation2 + $0x388] sm:$0x7f] %v1668_v39 }
 0x15e   : > { %v1992_v7 = vor.u32 %v1991_v2, %v1987_v61  ;;  %v1480_v21 = vor.u32 %v1479_v13, %v1475_v8  ;;  %v2175_v13 = vrot.slane %v13715_v9, 1 }
 0x15f   : > { %3265 = vmatmul.mubr.bf16.gmra.mrb[64].mxu0 %v14772_v17  ;;  %v1459_v17 = vor.u32 %v1458_v23, %v1454_v15  ;;  %v13703_v15 = vld [vmem:[%s14606_s19 + $0x60] sm:$0xff]  }
 0x160   : > { %3272 = vmatprep.mubr.bf16.mxu0 %v2249_v10  ;;  %13198 = vmatpush3.bf16.msra.mxu0 %v13685_v19  ;;  %v13701_v10 = vld [vmem:[#allocation8 + $0x230] sm:$0xff]   ;;  %v1998_v19 = vrot.slane %v1996_v12, 1  ;;  %v1482_v16 = vshrl.u32 %v13703_v15, 16  ;;  %v1484_v23 = vshll.u32 %v13703_v15, 16  ;;  %v14908_v28 = vsel %vm14626_vm2, %v1480_v21, %v14693_v49  ;;  %v13682_v12 = vld [vmem:[%s14606_s19 + $0x40] sm:$0xff]  }
 0x161   : > { %v14856_v33 = vsel %vm14626_vm2, %v1459_v17, %v14693_v49  ;;  %13199 = vmatprep.subr.bf16.mxu0 %v13692_v43  ;;  %3410 = vmatmul.mubr.bf16.gmra.mrb[64].mxu1 %v13664_v29  ;;  %v2276_v17 = vld [vmem:[#allocation2 + $0x1d8] sm:$0xff]  ;;  %1548 = vst [vmem:[#allocation2 + $0x2f0] sm:$0xff] %v14908_v28  ;;  %v13717_v15 = vld [vmem:[%s14606_s19 + $0x20] sm:$0xfe]   ;;  %2203 = vst [vmem:[#allocation2 + $0x40] sm:$0x7f] %v2175_v13 }
 0x162   : > { %1539 = vst [vmem:[#allocation2 + $0x218] sm:$0xff] %v14856_v33  ;;  %3417 = vmatprep.mubr.bf16.mxu1 %v14796_v37  ;;  %v14881_v37 = vsel %vm14626_vm2, %v1985_v52, %v14693_v49  ;;  %v1999_v25 = vor.u32 %v1998_v19, %v1994_v3  ;;  %v1486_v29 = vrot.slane %v1484_v23, 1  ;;  %v13712_v52 = vld [vmem:[%s14606_s19 + $0x70] sm:$0xff]   ;;  %v13716_v3 = vld [vmem:[%s14606_s19 + $0x18] sm:$0xfe]   ;;  %v2177_v21 = vrot.slane %v13717_v15, 1 }
 0x163   : > { %2061 = vst [vmem:[#allocation2 + $0x278] sm:$0xff] %v14881_v37  ;;  %v1496_v61 = vshrl.u32 %v13712_v52, 16  ;;  %v1498_v62 = vshll.u32 %v13712_v52, 16 }
 0x164   : > { %13200 = vmatpush3.bf16.msra.mxu0 %v13692_v43  ;;  %v14914_v30 = vsel %vm14626_vm2, %v1999_v25, %v14693_v49  ;;  %v1487_v22 = vor.u32 %v1486_v29, %v1482_v16  ;;  %v13718_v16 = vld [vmem:[%s14606_s19 + $0x28] sm:$0xfe]   ;;  %v13719_v25 = vld [vmem:[%s14606_s19 + $0x30] sm:$0xfe]   ;;  %2205 = vst [vmem:[#allocation2 + $0xd0] sm:$0x7f] %v2177_v21 }
 0x165   : > { %13201 = vmatprep.subr.bf16.mxu0 %v13701_v10  ;;  %2067 = vst [vmem:[#allocation2 + $0x308] sm:$0xff] %v14914_v30  ;;  %v1500_v59 = vrot.slane %v1498_v62, 1  ;;  %v13721_v29 = vld [vmem:[%s14606_s19 + $0x40] sm:$0xfe]  }
 0x166   : > { %v14925_v42 = vsel %vm14626_vm2, %v1487_v22, %v14693_v49  ;;  %v2181_v35 = vrot.slane %v13721_v29, 1  ;;  %v13723_v22 = vld [vmem:[%s14606_s19 + $0x50] sm:$0xfe]  }
 0x167   : > { %3273 = vmatmul.mubr.bf16.gmra.mrb[68].mxu0 %v14785_v27  ;;  %v14875_v27 = vsel %vm14626_vm2, %v1466_v48, %v14693_v49  ;;  %1551 = vst [vmem:[#allocation2 + $0x338] sm:$0xff] %v14925_v42  ;;  %v2010_v48 = vshll.u32 %v13708_v41, 16  ;;  %v14960_v8 = vor.u32 %v1500_v59, %v1496_v61  ;;  %v13724_v41 = vld [vmem:[%s14606_s19 + $0x58] sm:$0xfe]  }
 0x168   : > { %3280 = vmatprep.mubr.bf16.mxu0 %v2258_v40  ;;  %1542 = vst [vmem:[#allocation2 + $0x260] sm:$0xff] %v14875_v27  ;;  %13202 = vmatpush3.bf16.msra.mxu0 %v13701_v10  ;;  %v13707_v40 = vld [vmem:[%s14606_s19 + $0x68] sm:$0xff]   ;;  %2209 = vst [vmem:[#allocation2 + $0x1f0] sm:$0x7f] %v2181_v35  ;;  %v2225_v62 = vld [vmem:[#allocation2 + $0x40] sm:$0xff] }
 0x169   : > { %3418 = vmatmul.mubr.bf16.gmra.mrb[68].mxu1 %v13668_v56  ;;  %v1489_v43 = vshrl.u32 %v13707_v40, 16  ;;  %v1491_v44 = vshll.u32 %v13707_v40, 16  ;;  %v2012_v55 = vrot.slane %v2010_v48, 1  ;;  %13203 = vmatprep.subr.bf16.mxu0 %v13710_v50  ;;  %v13711_v56 = vld [vmem:[%s14606_s19 + $0x70] sm:$0xfe]   ;;  %v2183_v40 = vrot.slane %v13723_v22, 1 }
 0x16a   : > { %3425 = vmatprep.mubr.bf16.mxu1 %v14813_v57  ;;  %v1667_v57 = vrot.slane %v13702_v20, 1  ;;  %v1669_v0 = vrot.slane %v13711_v56, 1  ;;  %v2176_v20 = vrot.slane %v13716_v3, 1  ;;  %v13691_v48 = vld [vmem:[%s14606_s19 + $0x50] sm:$0xff]   ;;  %v2330_v56 = vld [vmem:[#allocation2 + $0x388] sm:$0xff] }
 0x16b   : > { %2211 = vst [vmem:[#allocation2 + $0x280] sm:$0x7f] %v2183_v40  ;;  %v13730_v40 = vld [vmem:[#allocation10] sm:$0xff]  }
 0x16c   : > { %1695 = vst [vmem:[#allocation2 + $0x340] sm:$0x7f] %v1667_v57  ;;  %13204 = vmatpush3.bf16.msra.mxu0 %v13710_v50  ;;  %1697 = vst [vmem:[#allocation2 + $0x3d0] sm:$0x7f] %v1669_v0  ;;  %v2178_v57 = vrot.slane %v13718_v16, 1 }
 0x16d   : > { %2204 = vst [vmem:[#allocation2 + $0x88] sm:$0x7f] %v2176_v20  ;;  %v15015_v0 = vld [vmem:[%s16754_s6] ss:$0 sm:$0xff] }
 0x16e   : > { %2206 = vst [vmem:[#allocation2 + $0x118] sm:$0x7f] %v2178_v57 }
 0x16f   : > { %3281 = vmatmul.mubr.bf16.gmra.mrb[72].mxu0 %v14806_v53  ;;  %v14898_v53 = vsel %vm14626_vm2, %v1992_v7, %v14693_v49  ;;  %v2017_v7 = vshll.u32 %v13713_v60, 16 }
 0x170   : > { %3288 = vmatprep.mubr.bf16.mxu0 %v2267_v63  ;;  %2064 = vst [vmem:[#allocation2 + $0x2c0] sm:$0xff] %v14898_v53  ;;  %v14945_v63 = vor.u32 %v2012_v55, %v2008_v47  ;;  %v13700_v55 = vld [vmem:[%s14606_s19 + $0x60] sm:$0xff]  }
 0x171   : > { %3426 = vmatmul.mubr.bf16.gmra.mrb[72].mxu1 %v13673_v18  ;;  %v2019_v10 = vrot.slane %v2017_v7, 1  ;;  %v2294_v18 = vld [vmem:[#allocation2 + $0x268] sm:$0xff] }
 0x172   : > { %3433 = vmatprep.mubr.bf16.mxu1 %v14831_v11  ;;  %v1493_v11 = vrot.slane %v1491_v44, 1  ;;  %v13726_v44 = vld [vmem:[%s14606_s19 + $0x68] sm:$0xfe]  }
 0x173   : > { %v14970_v19 = vor.u32 %v2019_v10, %v2015_v6  ;;  %v2186_v47 = vrot.slane %v13726_v44, 1  ;;  %v2339_v61 = vld [vmem:[#allocation2 + $0x3d0] sm:$0xff] }
 0x174   : > { %v14942_v58 = vor.u32 %v1493_v11, %v1489_v43  ;;  %v13728_v11 = vld [vmem:[%s14606_s19 + $0x78] sm:$0xfe]   ;;  %v2234_v60 = vld [vmem:[#allocation2 + $0x88] sm:$0xff]  ;;  %v2243_v6 = vld [vmem:[#allocation2 + $0xd0] sm:$0xff] }
 0x175   : > { %v2075_v23 = vsel %vm14626_vm2, %v14970_v19, %v14932_v51  ;;  %2214 = vst [vmem:[#allocation2 + $0x358] sm:$0x7f] %v2186_v47  ;;  %v2188_v52 = vrot.slane %v13728_v11, 1  ;;  %v2252_v20 = vld [vmem:[#allocation2 + $0x118] sm:$0xff]  ;;  %v2279_v47 = vld [vmem:[#allocation2 + $0x1f0] sm:$0xff] }
 0x176   : > { %v1553_v2 = vsel %vm14626_vm2, %v14942_v58, %v14932_v51 }
 0x177   : > { %3289 = vmatmul.mubr.bf16.gmra.mrb[76].mxu0 %v14821_v1  ;;  %v2006_v1 = vor.u32 %v2005_v38, %v2001_v32  ;;  %v13722_v32 = vld [vmem:[%s14606_s19 + $0x48] sm:$0xfe]   ;;  %v2303_v38 = vld [vmem:[#allocation2 + $0x2b0] sm:$0xff]  ;;  %2216 = vst [vmem:[#allocation2 + $0x3e8] sm:$0x7f] %v2188_v52 }
 0x178   : > { %3296 = vmatprep.mubr.bf16.mxu0 %v2276_v17  ;;  %v2179_v17 = vrot.slane %v13719_v25, 1  ;;  %v2182_v39 = vrot.slane %v13722_v32, 1 }
 0x179   : > { %v14937_v49 = vsel %vm14626_vm2, %v2006_v1, %v14932_v51  ;;  %3434 = vmatmul.mubr.bf16.gmra.mrb[76].mxu1 %v13677_v46  ;;  %v2184_v1 = vrot.slane %v13724_v41, 1  ;;  %v13727_v46 = vld [vmem:[%s14606_s19 + $0x70] sm:$0xfe]  }
 0x17a   : > { %2070 = vst [vmem:[#allocation2 + $0x350] sm:$0xff] %v14937_v49  ;;  %3441 = vmatprep.mubr.bf16.mxu1 %v14846_v24  ;;  %v1556_v24 = vsel %vm14626_vm2, %v14960_v8, %v14932_v51  ;;  %2207 = vst [vmem:[#allocation2 + $0x160] sm:$0x7f] %v2179_v17  ;;  %v2187_v50 = vrot.slane %v13727_v46, 1 }
 0x17b   : > { %2210 = vst [vmem:[#allocation2 + $0x238] sm:$0x7f] %v2182_v39  ;;  %2212 = vst [vmem:[#allocation2 + $0x2c8] sm:$0x7f] %v2184_v1  ;;  %v13729_v39 = vld [vmem:[#allocation10 + $0x40] sm:$0xff]  }
 0x17c   : > { %2215 = vst [vmem:[#allocation2 + $0x3a0] sm:$0x7f] %v2187_v50  ;;  %11984 = vmatprep.subr.bf16.mxu1 %v13729_v39 }
 0x17d   : > { %11985 = vmatpush3.bf16.msra.mxu1 %v13730_v40  ;;  %v2324_v40 = vld [vmem:[#allocation2 + $0x358] sm:$0xff] }
 0x17f   : > { %3297 = vmatmul.mubr.bf16.gmra.mrb[80].mxu0 %v14838_v14  ;;  %v2072_v14 = vsel %vm14626_vm2, %v14945_v63, %v14932_v51 }
 0x180   : > { %3304 = vmatprep.mubr.bf16.mxu0 %v2285_v54  ;;  %v2321_v54 = vld [vmem:[#allocation2 + $0x340] sm:$0xff] }
 0x181   : > { %3442 = vmatmul.mubr.bf16.gmra.mrb[80].mxu1 %v13682_v12  ;;  %v2261_v25 = vld [vmem:[#allocation2 + $0x160] sm:$0xff] }
 0x182   : > { %3449 = vmatprep.mubr.bf16.mxu1 %v14863_v31  ;;  %v13725_v31 = vld [vmem:[%s14606_s19 + $0x60] sm:$0xfe]  }
 0x183   : > { %v2185_v43 = vrot.slane %v13725_v31, 1 }
 0x185   : > { %2213 = vst [vmem:[#allocation2 + $0x310] sm:$0x7f] %v2185_v43 }
 0x187   : > { %3305 = vmatmul.mubr.bf16.gmra.mrb[84].mxu0 %v14856_v33  ;;  %v2180_v33 = vrot.slane %v13720_v26, 1 }
 0x188   : > { %3312 = vmatprep.mubr.bf16.mxu0 %v2294_v18 }
 0x189   : > { %2208 = vst [vmem:[#allocation2 + $0x1a8] sm:$0x7f] %v2180_v33  ;;  %3450 = vmatmul.mubr.bf16.gmra.mrb[84].mxu1 %v13687_v34 }
 0x18a   : > { %3457 = vmatprep.mubr.bf16.mxu1 %v14881_v37  ;;  %v13696_v37 = vld [vmem:[%s14606_s19 + $0x58] sm:$0xff]  }
 0x18f   : > { %3313 = vmatmul.mubr.bf16.gmra.mrb[88].mxu0 %v14875_v27  ;;  %v2312_v27 = vld [vmem:[#allocation2 + $0x2f8] sm:$0xff] }
 0x190   : > { %3320 = vmatprep.mubr.bf16.mxu0 %v2303_v38  ;;  %v2270_v1 = vld [vmem:[#allocation2 + $0x1a8] sm:$0xff] }
 0x191   : > { %3458 = vmatmul.mubr.bf16.gmra.mrb[88].mxu1 %v13691_v48 }
 0x192   : > { %3465 = vmatprep.mubr.bf16.mxu1 %v14898_v53 }
 0x197   : > { %3321 = vmatmul.mubr.bf16.gmra.mrb[92].mxu0 %v14889_v4  ;;  %v13705_v4 = vld [vmem:[%s14606_s19 + $0x68] sm:$0xff]   ;;  %s16796_s19 = sld [smem:[#allocation26_spill]] }
 0x198   : > { %3328 = vmatprep.mubr.bf16.mxu0 %v2312_v27 }
 0x199   : > { %3466 = vmatmul.mubr.bf16.gmra.mrb[92].mxu1 %v13696_v37 }
 0x19a   : > { %3473 = vmatprep.mubr.bf16.mxu1 %v14914_v30 }
 0x19f   : > { %3329 = vmatmul.mubr.bf16.gmra.mrb[96].mxu0 %v14908_v28 }
 0x1a0   : > { %3336 = vmatprep.mubr.bf16.mxu0 %v2321_v54 }
 0x1a1   : > { %3474 = vmatmul.mubr.bf16.gmra.mrb[96].mxu1 %v13700_v55 }
 0x1a2   : > { %3481 = vmatprep.mubr.bf16.mxu1 %v14937_v49 }
 0x1a7   : > { %3337 = vmatmul.mubr.bf16.gmra.mrb[100].mxu0 %v14925_v42 }
 0x1a8   : > { %3344 = vmatprep.mubr.bf16.mxu0 %v2330_v56 }
 0x1a9   : > { %3482 = vmatmul.mubr.bf16.gmra.mrb[100].mxu1 %v13705_v4 }
 0x1aa   : > { %3489 = vmatprep.mubr.bf16.mxu1 %v2072_v14 }
 0x1af   : > { %3345 = vmatmul.mubr.bf16.gmra.mrb[104].mxu0 %v1553_v2 }
 0x1b0   : > { %3352 = vmatprep.mubr.bf16.mxu0 %v2339_v61 }
 0x1b1   : > { %3490 = vmatmul.mubr.bf16.gmra.mrb[104].mxu1 %v14929_v45 }
 0x1b2   : > { %v11578_v53 = vpop.f32.mrb[0].mxu0  ;;  %3497 = vmatprep.mubr.bf16.mxu1 %v2075_v23 }
 0x1b3   : > { %v11579_v28 = vpop.f32.mrb[1].mxu0 }
 0x1b4   : > { %v11580_v30 = vadd.f32 %v11579_v28, %v11578_v53  ;;  %v11581_v42 = vpop.f32.mrb[2].mxu0  ;;  %v11678_v59 = vpop.f32.mrb[0].mxu1 }
 0x1b5   : > { %v11582_v49 = vpop.f32.mrb[3].mxu0  ;;  %v11679_v7 = vpop.f32.mrb[1].mxu1 }
 0x1b6   : > { %v11583_v58 = vadd.f32 %v11582_v49, %v11581_v42  ;;  %v2961_v2 = vadd.f32 %v11580_v30, %v15015_v0  ;;  %v11680_v45 = vadd.f32 %v11679_v7, %v11678_v59  ;;  %v11681_v3 = vpop.f32.mrb[2].mxu1  ;;  %v2288_v30 = vld [vmem:[#allocation2 + $0x238] sm:$0xff] }
 0x1b7   : > { %3353 = vmatmul.mubr.bf16.gmra.mrb[108].mxu0 %v1556_v24  ;;  %v11682_v24 = vpop.f32.mrb[3].mxu1 }
 0x1b8   : > { %13205 = vmatprep.mubr.bf16.mxu0 %v2225_v62  ;;  %v2964_v10 = vadd.f32 %v11583_v58, %v15015_v0  ;;  %v15030_v15 = vadd.f32 %v11680_v45, %v2961_v2  ;;  %v11683_v51 = vadd.f32 %v11682_v24, %v11681_v3  ;;  %v2297_v58 = vld [vmem:[#allocation2 + $0x280] sm:$0xff]  ;;  %v13731_v3 = vld [vmem:[#allocation10 + $0x48] sm:$0xff]  }
 0x1b9   : > { %3498 = vmatmul.mubr.bf16.gmra.mrb[108].mxu1 %v14953_v5  ;;  %11986 = vmatprep.subr.bf16.mxu1 %v13731_v3 }
 0x1ba   : > { %v11584_v63 = vpop.f32.mrb[4].mxu0  ;;  %v15033_v18 = vadd.f32 %v11683_v51, %v2964_v10  ;;  %v2306_v51 = vld [vmem:[#allocation2 + $0x2c8] sm:$0xff] }
 0x1bb   : > { %v11585_v14 = vpop.f32.mrb[5].mxu0 }
 0x1bc   : > { %v11586_v9 = vadd.f32 %v11585_v14, %v11584_v63  ;;  %v11587_v8 = vpop.f32.mrb[6].mxu0  ;;  %v11684_v16 = vpop.f32.mrb[4].mxu1 }
 0x1bd   : > { %v11588_v12 = vpop.f32.mrb[7].mxu0  ;;  %v11685_v57 = vpop.f32.mrb[5].mxu1 }
 0x1be   : > { %v11589_v13 = vadd.f32 %v11588_v12, %v11587_v8  ;;  %v2969_v21 = vadd.f32 %v11586_v9, %v15015_v0  ;;  %v11686_v29 = vadd.f32 %v11685_v57, %v11684_v16  ;;  %v11687_v32 = vpop.f32.mrb[6].mxu1  ;;  %v13732_v12 = vld [vmem:[#allocation10 + $0x8] sm:$0xff]   ;;  %v2315_v16 = vld [vmem:[#allocation2 + $0x310] sm:$0xff] }
 0x1bf   : > { %13206 = vmatmul.mubr.bf16.vlgmr.msra.gmra.mrb[112].mxu0 %v2234_v60  ;;  %v11688_v35 = vpop.f32.mrb[7].mxu1  ;;  %11987 = vmatpush3.bf16.msra.mxu1 %v13732_v12 }
 0x1c0   : > { %13209 = vmatprep.mubr.bf16.mxu0 %v2243_v6  ;;  %v2972_v33 = vadd.f32 %v11589_v13, %v15015_v0  ;;  %v15037_v22 = vadd.f32 %v11686_v29, %v2969_v21  ;;  %v11689_v38 = vadd.f32 %v11688_v35, %v11687_v32 }
 0x1c2   : > { %v11590_v19 = vpop.f32.mrb[8].mxu0  ;;  %v15039_v41 = vadd.f32 %v11689_v38, %v2972_v33 }
 0x1c3   : > { %v11591_v23 = vpop.f32.mrb[9].mxu0 }
 0x1c4   : > { %v11592_v26 = vadd.f32 %v11591_v23, %v11590_v19  ;;  %v11593_v17 = vpop.f32.mrb[10].mxu0  ;;  %v11690_v44 = vpop.f32.mrb[8].mxu1 }
 0x1c5   : > { %v11594_v34 = vpop.f32.mrb[11].mxu0  ;;  %v11691_v48 = vpop.f32.mrb[9].mxu1 }
 0x1c6   : > { %v11595_v5 = vadd.f32 %v11594_v34, %v11593_v17  ;;  %v2977_v43 = vadd.f32 %v11592_v26, %v15015_v0  ;;  %v11692_v52 = vadd.f32 %v11691_v48, %v11690_v44  ;;  %v11693_v37 = vpop.f32.mrb[10].mxu1 }
 0x1c7   : > { %13210 = vmatmul.mubr.bf16.gmra.mrb[116].mxu0 %v2252_v20  ;;  %v11694_v55 = vpop.f32.mrb[11].mxu1 }
 0x1c8   : > { %13213 = vmatprep.mubr.bf16.mxu0 %v2261_v25  ;;  %v2980_v27 = vadd.f32 %v11595_v5, %v15015_v0  ;;  %v15043_v4 = vadd.f32 %v11692_v52, %v2977_v43  ;;  %v11695_v61 = vadd.f32 %v11694_v55, %v11693_v37  ;;  %v2333_v52 = vld [vmem:[#allocation2 + $0x3a0] sm:$0xff]  ;;  %v13733_v37 = vld [vmem:[#allocation10 + $0x50] sm:$0xff]  }
 0x1c9   : > { %11988 = vmatprep.subr.bf16.mxu1 %v13733_v37 }
 0x1ca   : > { %v11596_v31 = vpop.f32.mrb[12].mxu0  ;;  %v15045_v53 = vadd.f32 %v11695_v61, %v2980_v27 }
 0x1cb   : > { %v11597_v46 = vpop.f32.mrb[13].mxu0 }
 0x1cc   : > { %v11598_v50 = vadd.f32 %v11597_v46, %v11596_v31  ;;  %v11599_v11 = vpop.f32.mrb[14].mxu0  ;;  %v11696_v49 = vpop.f32.mrb[12].mxu1 }
 0x1cd   : > { %v11600_v54 = vpop.f32.mrb[15].mxu0  ;;  %v11697_v63 = vpop.f32.mrb[13].mxu1 }
 0x1ce   : > { %v11601_v56 = vadd.f32 %v11600_v54, %v11599_v11  ;;  %v2985_v42 = vadd.f32 %v11598_v50, %v15015_v0  ;;  %v11698_v14 = vadd.f32 %v11697_v63, %v11696_v49  ;;  %v11699_v6 = vpop.f32.mrb[14].mxu1  ;;  %v2342_v49 = vld [vmem:[#allocation2 + $0x3e8] sm:$0xff] }
 0x1cf   : > { %13214 = vmatmul.mubr.bf16.gmra.mrb[120].mxu0 %v2270_v1  ;;  %v11700_v9 = vpop.f32.mrb[15].mxu1 }
 0x1d0   : > { %13217 = vmatprep.mubr.bf16.mxu0 %v2279_v47  ;;  %v2988_v59 = vadd.f32 %v11601_v56, %v15015_v0  ;;  %v15049_v10 = vadd.f32 %v11698_v14, %v2985_v42  ;;  %v11701_v45 = vadd.f32 %v11700_v9, %v11699_v6 }
 0x1d2   : > { %v11602_v28 = vpop.f32.mrb[16].mxu0  ;;  %v15051_v24 = vadd.f32 %v11701_v45, %v2988_v59 }
 0x1d3   : > { %v11603_v62 = vpop.f32.mrb[17].mxu0 }
 0x1d4   : > { %v11604_v60 = vadd.f32 %v11603_v62, %v11602_v28  ;;  %v11605_v2 = vpop.f32.mrb[18].mxu0  ;;  %v11702_v20 = vpop.f32.mrb[16].mxu1  ;;  %v13734_v28 = vld [vmem:[#allocation10 + $0x10] sm:$0xff]  }
 0x1d5   : > { %v11606_v7 = vpop.f32.mrb[19].mxu0  ;;  %v11703_v23 = vpop.f32.mrb[17].mxu1  ;;  %11989 = vmatpush3.bf16.msra.mxu1 %v13734_v28 }
 0x1d6   : > { %v11607_v8 = vadd.f32 %v11606_v7, %v11605_v2  ;;  %v2993_v19 = vadd.f32 %v11604_v60, %v15015_v0  ;;  %v11704_v17 = vadd.f32 %v11703_v23, %v11702_v20  ;;  %v11705_v33 = vpop.f32.mrb[18].mxu1 }
 0x1d7   : > { %13218 = vmatmul.mubr.bf16.gmra.mrb[124].mxu0 %v2288_v30  ;;  %v11706_v32 = vpop.f32.mrb[19].mxu1 }
 0x1d8   : > { %13221 = vmatprep.mubr.bf16.mxu0 %v2297_v58  ;;  %v2996_v26 = vadd.f32 %v11607_v8, %v15015_v0  ;;  %v15055_v35 = vadd.f32 %v11704_v17, %v2993_v19  ;;  %v11707_v5 = vadd.f32 %v11706_v32, %v11705_v33  ;;  %v13736_v32 = vld [vmem:[#allocation10 + $0x18] sm:$0xff]  }
 0x1da   : > { %v11608_v13 = vpop.f32.mrb[20].mxu0  ;;  %v15057_v38 = vadd.f32 %v11707_v5, %v2996_v26 }
 0x1db   : > { %v11609_v21 = vpop.f32.mrb[21].mxu0 }
 0x1dc   : > { %v11610_v25 = vadd.f32 %v11609_v21, %v11608_v13  ;;  %v11611_v57 = vpop.f32.mrb[22].mxu0  ;;  %v11708_v1 = vpop.f32.mrb[20].mxu1 }
 0x1dd   : > { %v11612_v29 = vpop.f32.mrb[23].mxu0  ;;  %v11709_v44 = vpop.f32.mrb[21].mxu1 }
 0x1de   : > { %v11613_v34 = vadd.f32 %v11612_v29, %v11611_v57  ;;  %v3001_v31 = vadd.f32 %v11610_v25, %v15015_v0  ;;  %v11710_v50 = vadd.f32 %v11709_v44, %v11708_v1  ;;  %v11711_v11 = vpop.f32.mrb[22].mxu1 }
 0x1df   : > { %13222 = vmatmul.mubr.bf16.gmra.mrb[128].mxu0 %v2306_v51  ;;  %v11712_v54 = vpop.f32.mrb[23].mxu1 }
 0x1e0   : > { %13225 = vmatprep.mubr.bf16.mxu0 %v2315_v16  ;;  %v3004_v48 = vadd.f32 %v11613_v34, %v15015_v0  ;;  %v15061_v56 = vadd.f32 %v11710_v50, %v3001_v31  ;;  %v11713_v61 = vadd.f32 %v11712_v54, %v11711_v11  ;;  %v13735_v16 = vld [vmem:[#allocation10 + $0x58] sm:$0xff]  }
 0x1e1   : > { %11990 = vmatprep.subr.bf16.mxu1 %v13735_v16 }
 0x1e2   : > { %v11614_v39 = vpop.f32.mrb[24].mxu0  ;;  %v15063_v30 = vadd.f32 %v11713_v61, %v3004_v48  ;;  %11991 = vmatpush3.bf16.msra.mxu1 %v13736_v32 }
 0x1e3   : > { %v11615_v43 = vpop.f32.mrb[25].mxu0 }
 0x1e4   : > { %v11616_v46 = vadd.f32 %v11615_v43, %v11614_v39  ;;  %v11617_v47 = vpop.f32.mrb[26].mxu0  ;;  %v11714_v58 = vpop.f32.mrb[24].mxu1 }
 0x1e5   : > { %v11618_v27 = vpop.f32.mrb[27].mxu0  ;;  %v11715_v60 = vpop.f32.mrb[25].mxu1 }
 0x1e6   : > { %v11619_v55 = vadd.f32 %v11618_v27, %v11617_v47  ;;  %v3009_v62 = vadd.f32 %v11616_v46, %v15015_v0  ;;  %v11716_v6 = vadd.f32 %v11715_v60, %v11714_v58  ;;  %v11717_v7 = vpop.f32.mrb[26].mxu1 }
 0x1e7   : > { %13226 = vmatmul.mubr.bf16.gmra.mrb[132].mxu0 %v2324_v40  ;;  %v11718_v8 = vpop.f32.mrb[27].mxu1 }
 0x1e8   : > { %13229 = vmatprep.mubr.bf16.mxu0 %v2333_v52  ;;  %v3012_v14 = vadd.f32 %v11619_v55, %v15015_v0  ;;  %v15067_v3 = vadd.f32 %v11716_v6, %v3009_v62  ;;  %v11719_v12 = vadd.f32 %v11718_v8, %v11717_v7 }
 0x1ea   : > { %v11620_v42 = vpop.f32.mrb[28].mxu0  ;;  %v15069_v13 = vadd.f32 %v11719_v12, %v3012_v14 }
 0x1eb   : > { %v11621_v63 = vpop.f32.mrb[29].mxu0 }
 0x1ec   : > { %v11622_v2 = vadd.f32 %v11621_v63, %v11620_v42  ;;  %v11623_v59 = vpop.f32.mrb[30].mxu0  ;;  %v11720_v20 = vpop.f32.mrb[28].mxu1  ;;  %v13737_v42 = vld [vmem:[#allocation10 + $0x60] sm:$0xff]  }
 0x1ed   : > { %v11624_v9 = vpop.f32.mrb[31].mxu0  ;;  %v11721_v23 = vpop.f32.mrb[29].mxu1  ;;  %11992 = vmatprep.subr.bf16.mxu1 %v13737_v42 }
 0x1ee   : > { %v11625_v45 = vadd.f32 %v11624_v9, %v11623_v59  ;;  %v3017_v19 = vadd.f32 %v11622_v2, %v15015_v0  ;;  %v11722_v17 = vadd.f32 %v11721_v23, %v11720_v20  ;;  %v11723_v33 = vpop.f32.mrb[30].mxu1 }
 0x1ef   : > { %13230 = vmatmul.mubr.bf16.gmra.mrb[136].mxu0 %v2342_v49  ;;  %v11724_v34 = vpop.f32.mrb[31].mxu1  ;;  %v13738_v49 = vld [vmem:[#allocation10 + $0x20] sm:$0xff]  }
 0x1f0   : > { %v3020_v26 = vadd.f32 %v11625_v45, %v15015_v0  ;;  %v15073_v39 = vadd.f32 %v11722_v17, %v3017_v19  ;;  %v11725_v40 = vadd.f32 %v11724_v34, %v11723_v33  ;;  %11993 = vmatpush3.bf16.msra.mxu1 %v13738_v49 }
 0x1f2   : > { %v11626_v51 = vpop.f32.mrb[32].mxu0  ;;  %v15075_v31 = vadd.f32 %v11725_v40, %v3020_v26 }
 0x1f3   : > { %v11627_v21 = vpop.f32.mrb[33].mxu0 }
 0x1f4   : > { %v11628_v25 = vadd.f32 %v11627_v21, %v11626_v51  ;;  %v11629_v57 = vpop.f32.mrb[34].mxu0  ;;  %v11726_v44 = vpop.f32.mrb[32].mxu1 }
 0x1f5   : > { %v11630_v29 = vpop.f32.mrb[35].mxu0  ;;  %v11727_v47 = vpop.f32.mrb[33].mxu1 }
 0x1f6   : > { %v11631_v5 = vadd.f32 %v11630_v29, %v11629_v57  ;;  %v3025_v43 = vadd.f32 %v11628_v25, %v15015_v0  ;;  %v11728_v27 = vadd.f32 %v11727_v47, %v11726_v44  ;;  %v11729_v52 = vpop.f32.mrb[34].mxu1  ;;  %v13740_v47 = vld [vmem:[#allocation10 + $0x28] sm:$0xff]  }
 0x1f7   : > { %v11730_v54 = vpop.f32.mrb[35].mxu1 }
 0x1f8   : > { %v3028_v11 = vadd.f32 %v11631_v5, %v15015_v0  ;;  %v15079_v61 = vadd.f32 %v11728_v27, %v3025_v43  ;;  %v11731_v28 = vadd.f32 %v11730_v54, %v11729_v52  ;;  %v13742_v27 = vld [vmem:[#allocation10 + $0x80] sm:$0xff]  }
 0x1fa   : > { %v11632_v1 = vpop.f32.mrb[36].mxu0  ;;  %v15081_v62 = vadd.f32 %v11731_v28, %v3028_v11 }
 0x1fb   : > { %v11633_v46 = vpop.f32.mrb[37].mxu0 }
 0x1fc   : > { %v11634_v48 = vadd.f32 %v11633_v46, %v11632_v1  ;;  %v11635_v50 = vpop.f32.mrb[38].mxu0  ;;  %v11732_v60 = vpop.f32.mrb[36].mxu1  ;;  %v13739_v46 = vld [vmem:[#allocation10 + $0x68] sm:$0xff]  }
 0x1fd   : > { %v11636_v37 = vpop.f32.mrb[39].mxu0  ;;  %v11733_v59 = vpop.f32.mrb[37].mxu1  ;;  %11994 = vmatprep.subr.bf16.mxu1 %v13739_v46 }
 0x1fe   : > { %v11637_v55 = vadd.f32 %v11636_v37, %v11635_v50  ;;  %v3033_v63 = vadd.f32 %v11634_v48, %v15015_v0  ;;  %v11734_v9 = vadd.f32 %v11733_v59, %v11732_v60  ;;  %v11735_v8 = vpop.f32.mrb[38].mxu1  ;;  %v13741_v50 = vld [vmem:[#allocation10 + $0xc0] sm:$0xff]   ;;  %11995 = vmatpush3.bf16.msra.mxu1 %v13740_v47  ;;  %v13747_v47 = vld [vmem:[#allocation10 + $0x70] sm:$0xff]  }
 0x1ff   : > { %v11736_v12 = vpop.f32.mrb[39].mxu1  ;;  %12072 = vmatprep.subr.bf16.mxu0 %v13741_v50  ;;  %v13748_v50 = vld [vmem:[#allocation10 + $0x30] sm:$0xff]   ;;  %11996 = vmatprep.subr.bf16.mxu1 %v13747_v47  ;;  %v13759_v47 = vld [vmem:[#allocation10 + $0xf8] sm:$0xff]  }
 0x200   : > { %v3036_v7 = vadd.f32 %v11637_v55, %v15015_v0  ;;  %v15085_v19 = vadd.f32 %v11734_v9, %v3033_v63  ;;  %v11737_v20 = vadd.f32 %v11736_v12, %v11735_v8  ;;  %12073 = vmatpush3.bf16.msra.mxu0 %v13742_v27  ;;  %v13751_v27 = vld [vmem:[#allocation10 + $0xe0] sm:$0xff]  }
 0x202   : > { %v11638_v58 = vpop.f32.mrb[40].mxu0  ;;  %v15087_v21 = vadd.f32 %v11737_v20, %v3036_v7  ;;  %11997 = vmatpush3.bf16.msra.mxu1 %v13748_v50 }
 0x203   : > { %v11639_v2 = vpop.f32.mrb[41].mxu0 }
 0x204   : > { %v11640_v14 = vadd.f32 %v11639_v2, %v11638_v58  ;;  %v11641_v6 = vpop.f32.mrb[42].mxu0  ;;  %v11738_v25 = vpop.f32.mrb[40].mxu1  ;;  %v13743_v2 = vld [vmem:[#allocation10 + $0xc8] sm:$0xff]  }
 0x205   : > { %v11642_v45 = vpop.f32.mrb[43].mxu0  ;;  %v11739_v26 = vpop.f32.mrb[41].mxu1  ;;  %12074 = vmatprep.subr.bf16.mxu0 %v13743_v2 }
 0x206   : > { %v11643_v51 = vadd.f32 %v11642_v45, %v11641_v6  ;;  %v3041_v23 = vadd.f32 %v11640_v14, %v15015_v0  ;;  %v11740_v32 = vadd.f32 %v11739_v26, %v11738_v25  ;;  %v11741_v34 = vpop.f32.mrb[42].mxu1  ;;  %v13744_v6 = vld [vmem:[#allocation10 + $0x88] sm:$0xff]   ;;  %v13745_v45 = vld [vmem:[#allocation10 + $0xd0] sm:$0xff]  }
 0x207   : > { %v11742_v40 = vpop.f32.mrb[43].mxu1  ;;  %12075 = vmatpush3.bf16.msra.mxu0 %v13744_v6 }
 0x208   : > { %v3044_v29 = vadd.f32 %v11643_v51, %v15015_v0  ;;  %v15091_v43 = vadd.f32 %v11740_v32, %v3041_v23  ;;  %v11743_v44 = vadd.f32 %v11742_v40, %v11741_v34  ;;  %v13746_v51 = vld [vmem:[#allocation10 + $0x90] sm:$0xff]   ;;  %12076 = vmatprep.subr.bf16.mxu0 %v13745_v45  ;;  %v13749_v34 = vld [vmem:[#allocation10 + $0xd8] sm:$0xff]  }
 0x20a   : > { %v11644_v16 = vpop.f32.mrb[44].mxu0  ;;  %v15093_v48 = vadd.f32 %v11743_v44, %v3044_v29 }
 0x20b   : > { %v11645_v57 = vpop.f32.mrb[45].mxu0  ;;  %12077 = vmatpush3.bf16.msra.mxu0 %v13746_v51 }
 0x20c   : > { %v11646_v17 = vadd.f32 %v11645_v57, %v11644_v16  ;;  %v11647_v33 = vpop.f32.mrb[46].mxu0  ;;  %v11744_v37 = vpop.f32.mrb[44].mxu1  ;;  %12078 = vmatprep.subr.bf16.mxu0 %v13749_v34 }
 0x20d   : > { %v11648_v5 = vpop.f32.mrb[47].mxu0  ;;  %v11745_v55 = vpop.f32.mrb[45].mxu1 }
 0x20e   : > { %v11649_v1 = vadd.f32 %v11648_v5, %v11647_v33  ;;  %v3049_v52 = vadd.f32 %v11646_v17, %v15015_v0  ;;  %v11746_v58 = vadd.f32 %v11745_v55, %v11744_v37  ;;  %v11747_v63 = vpop.f32.mrb[46].mxu1  ;;  %v14019_v37 = vld [vmem:[%s16754_s6] ss:$0 sm:$0xff] }
 0x20f   : > { %v11748_v59 = vpop.f32.mrb[47].mxu1 }
 0x210   : > { %v3052_v49 = vadd.f32 %v11649_v1, %v15015_v0  ;;  %v15097_v7 = vadd.f32 %v11746_v58, %v3049_v52  ;;  %v11749_v9 = vadd.f32 %v11748_v59, %v11747_v63  ;;  %v13750_v1 = vld [vmem:[#allocation10 + $0x98] sm:$0xff]  }
 0x211   : > { %12079 = vmatpush3.bf16.msra.mxu0 %v13750_v1 }
 0x212   : > { %v11650_v11 = vpop.f32.mrb[48].mxu0  ;;  %v15099_v8 = vadd.f32 %v11749_v9, %v3052_v49  ;;  %12080 = vmatprep.subr.bf16.mxu0 %v13751_v27  ;;  %v13753_v9 = vld [vmem:[#allocation10 + $0xe8] sm:$0xff]  }
 0x213   : > { %v11651_v54 = vpop.f32.mrb[49].mxu0 }
 0x214   : > { %v11652_v28 = vadd.f32 %v11651_v54, %v11650_v11  ;;  %v11653_v42 = vpop.f32.mrb[50].mxu0  ;;  %v11750_v16 = vpop.f32.mrb[48].mxu1 }
 0x215   : > { %v11654_v60 = vpop.f32.mrb[51].mxu0  ;;  %v11751_v25 = vpop.f32.mrb[49].mxu1 }
 0x216   : > { %v11655_v14 = vadd.f32 %v11654_v60, %v11653_v42  ;;  %v3057_v20 = vadd.f32 %v11652_v28, %v15015_v0  ;;  %v11752_v33 = vadd.f32 %v11751_v25, %v11750_v16  ;;  %v11753_v29 = vpop.f32.mrb[50].mxu1  ;;  %v13755_v42 = vld [vmem:[#allocation10 + $0x78] sm:$0xff]  }
 0x217   : > { %v11754_v5 = vpop.f32.mrb[51].mxu1  ;;  %v13757_v60 = vld [vmem:[#allocation10 + $0x38] sm:$0xff]   ;;  %11998 = vmatprep.subr.bf16.mxu1 %v13755_v42 }
 0x218   : > { %v3060_v17 = vadd.f32 %v11655_v14, %v15015_v0  ;;  %v15103_v44 = vadd.f32 %v11752_v33, %v3057_v20  ;;  %v11755_v46 = vadd.f32 %v11754_v5, %v11753_v29  ;;  %v13752_v0 = vld [vmem:[#allocation10 + $0xa0] sm:$0xff]   ;;  %v13754_v20 = vld [vmem:[#allocation10 + $0xa8] sm:$0xff]   ;;  %11999 = vmatpush3.bf16.msra.mxu1 %v13757_v60  ;;  %v13758_v33 = vld [vmem:[#allocation10 + $0xb0] sm:$0xff]  }
 0x219   : > { %12081 = vmatpush3.bf16.msra.mxu0 %v13752_v0 }
 0x21a   : > { %v11656_v12 = vpop.f32.mrb[52].mxu0  ;;  %v15105_v11 = vadd.f32 %v11755_v46, %v3060_v17  ;;  %12082 = vmatprep.subr.bf16.mxu0 %v13753_v9 }
 0x21b   : > { %v11657_v23 = vpop.f32.mrb[53].mxu0 }
 0x21c   : > { %v11658_v57 = vadd.f32 %v11657_v23, %v11656_v12  ;;  %v11659_v26 = vpop.f32.mrb[54].mxu0  ;;  %v11756_v55 = vpop.f32.mrb[52].mxu1 }
 0x21d   : > { %v11660_v32 = vpop.f32.mrb[55].mxu0  ;;  %v11757_v49 = vpop.f32.mrb[53].mxu1  ;;  %12083 = vmatpush3.bf16.msra.mxu0 %v13754_v20 }
 0x21e   : > { %v11661_v40 = vadd.f32 %v11660_v32, %v11659_v26  ;;  %v3065_v54 = vadd.f32 %v14019_v37, %v11658_v57  ;;  %v11758_v59 = vadd.f32 %v11757_v49, %v11756_v55  ;;  %v11759_v14 = vpop.f32.mrb[54].mxu1  ;;  %v13756_v26 = vld [vmem:[#allocation10 + $0xf0] sm:$0xff]  }
 0x21f   : > { %v11760_v45 = vpop.f32.mrb[55].mxu1  ;;  %12084 = vmatprep.subr.bf16.mxu0 %v13756_v26 }
 0x220   : > { %v3068_v2 = vadd.f32 %v14019_v37, %v11661_v40  ;;  %v15111_v16 = vadd.f32 %v11758_v59, %v3065_v54  ;;  %v11761_v23 = vadd.f32 %v11760_v45, %v11759_v14 }
 0x221   : > { %12085 = vmatpush3.bf16.msra.mxu0 %v13758_v33 }
 0x222   : > { %v11778_v52 = vpop.f32.mrb[56].mxu0  ;;  %v15114_v57 = vadd.f32 %v11761_v23, %v3068_v2  ;;  %12086 = vmatprep.subr.bf16.mxu0 %v13759_v47 }
 0x223   : > { %v11779_v28 = vpop.f32.mrb[57].mxu0 }
 0x224   : > { %v11780_v58 = vadd.f32 %v11779_v28, %v11778_v52  ;;  %v11781_v63 = vpop.f32.mrb[58].mxu0  ;;  %v11878_v29 = vpop.f32.mrb[56].mxu1  ;;  %v13760_v52 = vld [vmem:[#allocation10 + $0xb8] sm:$0xff]  }
 0x225   : > { %v11782_v6 = vpop.f32.mrb[59].mxu0  ;;  %v11879_v34 = vpop.f32.mrb[57].mxu1  ;;  %12087 = vmatpush3.bf16.msra.mxu0 %v13760_v52 }
 0x226   : > { %v3251_v12 = vadd.f32 %v11780_v58, %v15030_v15  ;;  %v11783_v51 = vadd.f32 %v11782_v6, %v11781_v63  ;;  %v11880_v40 = vadd.f32 %v11879_v34, %v11878_v29  ;;  %v11881_v1 = vpop.f32.mrb[58].mxu1 }
 0x227   : > { %v11882_v50 = vpop.f32.mrb[59].mxu1 }
 0x228   : > { %v3254_v25 = vadd.f32 %v11783_v51, %v15033_v18  ;;  %v11883_v0 = vadd.f32 %v11882_v50, %v11881_v1  ;;  %v15117_v37 = vadd.f32 %v11880_v40, %v3251_v12  ;;  %v13761_v40 = vld [vmem:[#allocation10 + $0x140] sm:$0xff]  }
 0x229   : > { %12160 = vmatprep.subr.bf16.mxu1 %v13761_v40 }
 0x22a   : > { %v11784_v17 = vpop.f32.mrb[60].mxu0  ;;  %v15120_v55 = vadd.f32 %v11883_v0, %v3254_v25 }
 0x22b   : > { %v11785_v32 = vpop.f32.mrb[61].mxu0 }
 0x22c   : > { %v11786_v15 = vadd.f32 %v11785_v32, %v11784_v17  ;;  %v11787_v5 = vpop.f32.mrb[62].mxu0  ;;  %v11884_v42 = vpop.f32.mrb[60].mxu1 }
 0x22d   : > { %v11788_v46 = vpop.f32.mrb[63].mxu0  ;;  %v11885_v58 = vpop.f32.mrb[61].mxu1 }
 0x22e   : > { %v3259_v18 = vadd.f32 %v11786_v15, %v15037_v22  ;;  %v11789_v27 = vadd.f32 %v11788_v46, %v11787_v5  ;;  %v11886_v2 = vadd.f32 %v11885_v58, %v11884_v42  ;;  %v11887_v59 = vpop.f32.mrb[62].mxu1 }
 0x22f   : > { %v11888_v14 = vpop.f32.mrb[63].mxu1 }
 0x230   : > { %v3262_v54 = vadd.f32 %v11789_v27, %v15039_v41  ;;  %v11889_v45 = vadd.f32 %v11888_v14, %v11887_v59  ;;  %v15123_v12 = vadd.f32 %v11886_v2, %v3259_v18 }
 0x232   : > { %v11790_v28 = vpop.f32.mrb[64].mxu0  ;;  %v15126_v51 = vadd.f32 %v11889_v45, %v3262_v54 }
 0x233   : > { %v11791_v49 = vpop.f32.mrb[65].mxu0 }
 0x234   : > { %v11792_v63 = vadd.f32 %v11791_v49, %v11790_v28  ;;  %v11793_v60 = vpop.f32.mrb[66].mxu0  ;;  %v11890_v23 = vpop.f32.mrb[64].mxu1 }
 0x235   : > { %v11794_v22 = vpop.f32.mrb[67].mxu0  ;;  %v11891_v26 = vpop.f32.mrb[65].mxu1 }
 0x236   : > { %v3267_v6 = vadd.f32 %v11792_v63, %v15043_v4  ;;  %v11795_v9 = vadd.f32 %v11794_v22, %v11793_v60  ;;  %v11892_v29 = vadd.f32 %v11891_v26, %v11890_v23  ;;  %v11893_v32 = vpop.f32.mrb[66].mxu1 }
 0x237   : > { %v11894_v15 = vpop.f32.mrb[67].mxu1 }
 0x238   : > { %v3270_v41 = vadd.f32 %v11795_v9, %v15045_v53  ;;  %v11895_v1 = vadd.f32 %v11894_v15, %v11893_v32  ;;  %v15129_v46 = vadd.f32 %v11892_v29, %v3267_v6 }
 0x23a   : > { %v11796_v20 = vpop.f32.mrb[68].mxu0  ;;  %v15132_v47 = vadd.f32 %v11895_v1, %v3270_v41 }
 0x23b   : > { %v11797_v25 = vpop.f32.mrb[69].mxu0 }
 0x23c   : > { %v11798_v17 = vadd.f32 %v11797_v25, %v11796_v20  ;;  %v11799_v33 = vpop.f32.mrb[70].mxu0  ;;  %v11896_v18 = vpop.f32.mrb[68].mxu1 }
 0x23d   : > { %v11800_v34 = vpop.f32.mrb[71].mxu0  ;;  %v11897_v52 = vpop.f32.mrb[69].mxu1 }
 0x23e   : > { %v3275_v4 = vadd.f32 %v11798_v17, %v15049_v10  ;;  %v11801_v5 = vadd.f32 %v11800_v34, %v11799_v33  ;;  %v11898_v28 = vadd.f32 %v11897_v52, %v11896_v18  ;;  %v11899_v42 = vpop.f32.mrb[70].mxu1 }
 0x23f   : > { %v11900_v10 = vpop.f32.mrb[71].mxu1 }
 0x240   : > { %v3278_v53 = vadd.f32 %v11801_v5, %v15051_v24  ;;  %v11901_v60 = vadd.f32 %v11900_v10, %v11899_v42  ;;  %v15135_v2 = vadd.f32 %v11898_v28, %v3275_v4 }
 0x242   : > { %v11802_v50 = vpop.f32.mrb[72].mxu0  ;;  %v15138_v59 = vadd.f32 %v11901_v60, %v3278_v53 }
 0x243   : > { %v11803_v27 = vpop.f32.mrb[73].mxu0 }
 0x244   : > { %v11804_v0 = vadd.f32 %v11803_v27, %v11802_v50  ;;  %v11805_v54 = vpop.f32.mrb[74].mxu0  ;;  %v11902_v14 = vpop.f32.mrb[72].mxu1 }
 0x245   : > { %v11806_v49 = vpop.f32.mrb[75].mxu0  ;;  %v11903_v9 = vpop.f32.mrb[73].mxu1 }
 0x246   : > { %v3283_v58 = vadd.f32 %v11804_v0, %v15055_v35  ;;  %v11807_v63 = vadd.f32 %v11806_v49, %v11805_v54  ;;  %v11904_v20 = vadd.f32 %v11903_v9, %v11902_v14  ;;  %v11905_v23 = vpop.f32.mrb[74].mxu1 }
 0x247   : > { %v11906_v26 = vpop.f32.mrb[75].mxu1 }
 0x248   : > { %v3286_v24 = vadd.f32 %v11807_v63, %v15057_v38  ;;  %v11907_v33 = vadd.f32 %v11906_v26, %v11905_v23  ;;  %v15141_v29 = vadd.f32 %v11904_v20, %v3283_v58 }
 0x24a   : > { %v11808_v22 = vpop.f32.mrb[76].mxu0  ;;  %v15144_v32 = vadd.f32 %v11907_v33, %v3286_v24 }
 0x24b   : > { %v11809_v6 = vpop.f32.mrb[77].mxu0 }
 0x24c   : > { %v11810_v45 = vadd.f32 %v11809_v6, %v11808_v22  ;;  %v11811_v41 = vpop.f32.mrb[78].mxu0  ;;  %v11908_v15 = vpop.f32.mrb[76].mxu1 }
 0x24d   : > { %v11812_v25 = vpop.f32.mrb[79].mxu0  ;;  %v11909_v5 = vpop.f32.mrb[77].mxu1 }
 0x24e   : > { %v3291_v35 = vadd.f32 %v11810_v45, %v15061_v56  ;;  %v11813_v17 = vadd.f32 %v11812_v25, %v11811_v41  ;;  %v11910_v53 = vadd.f32 %v11909_v5, %v11908_v15  ;;  %v11911_v50 = vpop.f32.mrb[78].mxu1 }
 0x24f   : > { %v11912_v27 = vpop.f32.mrb[79].mxu1 }
 0x250   : > { %v3294_v38 = vadd.f32 %v11813_v17, %v15063_v30  ;;  %v11913_v0 = vadd.f32 %v11912_v27, %v11911_v50  ;;  %v15147_v54 = vadd.f32 %v11910_v53, %v3291_v35 }
 0x252   : > { %v11814_v34 = vpop.f32.mrb[80].mxu0  ;;  %v15150_v28 = vadd.f32 %v11913_v0, %v3294_v38 }
 0x253   : > { %v11815_v4 = vpop.f32.mrb[81].mxu0 }
 0x254   : > { %v11816_v40 = vadd.f32 %v11815_v4, %v11814_v34  ;;  %v11817_v1 = vpop.f32.mrb[82].mxu0  ;;  %v11914_v49 = vpop.f32.mrb[80].mxu1 }
 0x255   : > { %v11818_v18 = vpop.f32.mrb[83].mxu0  ;;  %v11915_v58 = vpop.f32.mrb[81].mxu1 }
 0x256   : > { %v3299_v56 = vadd.f32 %v11816_v40, %v15067_v3  ;;  %v11819_v52 = vadd.f32 %v11818_v18, %v11817_v1  ;;  %v11916_v24 = vadd.f32 %v11915_v58, %v11914_v49  ;;  %v11917_v22 = vpop.f32.mrb[82].mxu1 }
 0x257   : > { %v11918_v6 = vpop.f32.mrb[83].mxu1 }
 0x258   : > { %v3302_v30 = vadd.f32 %v11819_v52, %v15069_v13  ;;  %v11919_v45 = vadd.f32 %v11918_v6, %v11917_v22  ;;  %v15153_v41 = vadd.f32 %v11916_v24, %v3299_v56 }
 0x25a   : > { %v11820_v42 = vpop.f32.mrb[84].mxu0  ;;  %v15156_v20 = vadd.f32 %v11919_v45, %v3302_v30  ;;  %v13771_v30 = vld [vmem:[#allocation10 + $0x1c0] sm:$0xff]  }
 0x25b   : > { %v11821_v10 = vpop.f32.mrb[85].mxu0  ;;  %12248 = vmatprep.subr.bf16.mxu0 %v13771_v30 }
 0x25c   : > { %v11822_v63 = vadd.f32 %v11821_v10, %v11820_v42  ;;  %v11823_v60 = vpop.f32.mrb[86].mxu0  ;;  %v11920_v25 = vpop.f32.mrb[84].mxu1 }
 0x25d   : > { %v11824_v14 = vpop.f32.mrb[87].mxu0  ;;  %v11921_v35 = vpop.f32.mrb[85].mxu1 }
 0x25e   : > { %v3307_v3 = vadd.f32 %v11822_v63, %v15073_v39  ;;  %v11825_v9 = vadd.f32 %v11824_v14, %v11823_v60  ;;  %v11922_v38 = vadd.f32 %v11921_v35, %v11920_v25  ;;  %v11923_v34 = vpop.f32.mrb[86].mxu1 }
 0x25f   : > { %v11924_v4 = vpop.f32.mrb[87].mxu1 }
 0x260   : > { %v3310_v13 = vadd.f32 %v11825_v9, %v15075_v31  ;;  %v11925_v40 = vadd.f32 %v11924_v4, %v11923_v34  ;;  %v15159_v1 = vadd.f32 %v11922_v38, %v3307_v3 }
 0x262   : > { %v11826_v23 = vpop.f32.mrb[88].mxu0  ;;  %v15162_v53 = vadd.f32 %v11925_v40, %v3310_v13 }
 0x263   : > { %v11827_v26 = vpop.f32.mrb[89].mxu0 }
 0x264   : > { %v11828_v17 = vadd.f32 %v11827_v26, %v11826_v23  ;;  %v11829_v33 = vpop.f32.mrb[90].mxu0  ;;  %v11926_v18 = vpop.f32.mrb[88].mxu1 }
 0x265   : > { %v11830_v15 = vpop.f32.mrb[91].mxu0  ;;  %v11927_v56 = vpop.f32.mrb[89].mxu1 }
 0x266   : > { %v3315_v39 = vadd.f32 %v11828_v17, %v15079_v61  ;;  %v11831_v5 = vadd.f32 %v11830_v15, %v11829_v33  ;;  %v11928_v42 = vadd.f32 %v11927_v56, %v11926_v18  ;;  %v11929_v49 = vpop.f32.mrb[90].mxu1 }
 0x267   : > { %v11930_v58 = vpop.f32.mrb[91].mxu1 }
 0x268   : > { %v3318_v31 = vadd.f32 %v11831_v5, %v15081_v62  ;;  %v11931_v60 = vadd.f32 %v11930_v58, %v11929_v49  ;;  %v15165_v24 = vadd.f32 %v11928_v42, %v3315_v39 }
 0x26a   : > { %v11832_v50 = vpop.f32.mrb[92].mxu0  ;;  %v15168_v22 = vadd.f32 %v11931_v60, %v3318_v31 }
 0x26b   : > { %v11833_v27 = vpop.f32.mrb[93].mxu0 }
 0x26c   : > { %v11834_v52 = vadd.f32 %v11833_v27, %v11832_v50  ;;  %v11835_v0 = vpop.f32.mrb[94].mxu0  ;;  %v11932_v6 = vpop.f32.mrb[92].mxu1 }
 0x26d   : > { %v11836_v10 = vpop.f32.mrb[95].mxu0  ;;  %v11933_v9 = vpop.f32.mrb[93].mxu1 }
 0x26e   : > { %v3323_v61 = vadd.f32 %v11834_v52, %v15085_v19  ;;  %v11837_v63 = vadd.f32 %v11836_v10, %v11835_v0  ;;  %v11934_v23 = vadd.f32 %v11933_v9, %v11932_v6  ;;  %v11935_v25 = vpop.f32.mrb[94].mxu1 }
 0x26f   : > { %v11936_v35 = vpop.f32.mrb[95].mxu1 }
 0x270   : > { %v3326_v62 = vadd.f32 %v11837_v63, %v15087_v21  ;;  %v11937_v33 = vadd.f32 %v11936_v35, %v11935_v25  ;;  %v15171_v38 = vadd.f32 %v11934_v23, %v3323_v61 }
 0x272   : > { %v11838_v14 = vpop.f32.mrb[96].mxu0  ;;  %v15174_v34 = vadd.f32 %v11937_v33, %v3326_v62 }
 0x273   : > { %v11839_v3 = vpop.f32.mrb[97].mxu0 }
 0x274   : > { %v11840_v45 = vadd.f32 %v11839_v3, %v11838_v14  ;;  %v11841_v13 = vpop.f32.mrb[98].mxu0  ;;  %v11938_v4 = vpop.f32.mrb[96].mxu1 }
 0x275   : > { %v11842_v26 = vpop.f32.mrb[99].mxu0  ;;  %v11939_v5 = vpop.f32.mrb[97].mxu1 }
 0x276   : > { %v3331_v19 = vadd.f32 %v11840_v45, %v15091_v43  ;;  %v11843_v17 = vadd.f32 %v11842_v26, %v11841_v13  ;;  %v11940_v50 = vadd.f32 %v11939_v5, %v11938_v4  ;;  %v11941_v18 = vpop.f32.mrb[98].mxu1 }
 0x277   : > { %v11942_v56 = vpop.f32.mrb[99].mxu1 }
 0x278   : > { %v3334_v21 = vadd.f32 %v11843_v17, %v15093_v48  ;;  %v11943_v0 = vadd.f32 %v11942_v56, %v11941_v18  ;;  %v15177_v30 = vadd.f32 %v11940_v50, %v3331_v19 }
 0x27a   : > { %v11844_v15 = vpop.f32.mrb[100].mxu0  ;;  %v15180_v42 = vadd.f32 %v11943_v0, %v3334_v21 }
 0x27b   : > { %v11845_v39 = vpop.f32.mrb[101].mxu0 }
 0x27c   : > { %v11846_v40 = vadd.f32 %v11845_v39, %v11844_v15  ;;  %v11847_v31 = vpop.f32.mrb[102].mxu0  ;;  %v11944_v10 = vpop.f32.mrb[100].mxu1 }
 0x27d   : > { %v11848_v27 = vpop.f32.mrb[103].mxu0  ;;  %v11945_v61 = vpop.f32.mrb[101].mxu1 }
 0x27e   : > { %v3339_v43 = vadd.f32 %v11846_v40, %v15097_v7  ;;  %v11849_v52 = vadd.f32 %v11848_v27, %v11847_v31  ;;  %v11946_v62 = vadd.f32 %v11945_v61, %v11944_v10  ;;  %v11947_v14 = vpop.f32.mrb[102].mxu1 }
 0x27f   : > { %v11948_v3 = vpop.f32.mrb[103].mxu1 }
 0x280   : > { %v3342_v48 = vadd.f32 %v11849_v52, %v15099_v8  ;;  %v11949_v45 = vadd.f32 %v11948_v3, %v11947_v14  ;;  %v15183_v13 = vadd.f32 %v11946_v62, %v3339_v43 }
 0x282   : > { %v11850_v49 = vpop.f32.mrb[104].mxu0  ;;  %v15186_v23 = vadd.f32 %v11949_v45, %v3342_v48 }
 0x283   : > { %v11851_v58 = vpop.f32.mrb[105].mxu0 }
 0x284   : > { %v11852_v63 = vadd.f32 %v11851_v58, %v11850_v49  ;;  %v11853_v60 = vpop.f32.mrb[106].mxu0  ;;  %v11950_v26 = vpop.f32.mrb[104].mxu1 }
 0x285   : > { %v11854_v6 = vpop.f32.mrb[107].mxu0  ;;  %v11951_v19 = vpop.f32.mrb[105].mxu1 }
 0x286   : > { %v3347_v7 = vadd.f32 %v11852_v63, %v15103_v44  ;;  %v11855_v9 = vadd.f32 %v11854_v6, %v11853_v60  ;;  %v11952_v21 = vadd.f32 %v11951_v19, %v11950_v26  ;;  %v11953_v15 = vpop.f32.mrb[106].mxu1  ;;  %v3811_v26 = vld [vmem:[#allocation2 + $0x8] sm:$0xff] }
 0x287   : > { %v11954_v39 = vpop.f32.mrb[107].mxu1 }
 0x288   : > { %v3350_v8 = vadd.f32 %v11855_v9, %v15105_v11  ;;  %v11955_v40 = vadd.f32 %v11954_v39, %v11953_v15  ;;  %v15189_v31 = vadd.f32 %v11952_v21, %v3347_v7  ;;  %v3814_v7 = vld [vmem:[#allocation2 + $0x50] sm:$0xff]  ;;  %v4040_v9 = vld [vmem:[#allocation2 + $0x20] sm:$0xff] }
 0x28a   : > { %v11856_v25 = vpop.f32.mrb[108].mxu0  ;;  %v15192_v50 = vadd.f32 %v11955_v40, %v3350_v8 }
 0x28b   : > { %v11857_v35 = vpop.f32.mrb[109].mxu0 }
 0x28c   : > { %v11858_v17 = vadd.f32 %v11857_v35, %v11856_v25  ;;  %v11859_v33 = vpop.f32.mrb[110].mxu0  ;;  %v11956_v27 = vpop.f32.mrb[108].mxu1 }
 0x28d   : > { %v11860_v4 = vpop.f32.mrb[111].mxu0  ;;  %v11957_v52 = vpop.f32.mrb[109].mxu1 }
 0x28e   : > { %v3355_v44 = vadd.f32 %v11858_v17, %v15111_v16  ;;  %v11861_v5 = vadd.f32 %v11860_v4, %v11859_v33  ;;  %v11958_v49 = vadd.f32 %v11957_v52, %v11956_v27  ;;  %v11959_v10 = vpop.f32.mrb[110].mxu1  ;;  %v13762_v4 = vld [vmem:[#allocation10 + $0x100] sm:$0xff]  }
 0x28f   : > { %v11960_v61 = vpop.f32.mrb[111].mxu1 }
 0x290   : > { %v3358_v11 = vadd.f32 %v11861_v5, %v15114_v57  ;;  %v11961_v57 = vadd.f32 %v11960_v61, %v11959_v10  ;;  %v15200_v62 = vadd.f32 %v11958_v49, %v3355_v44  ;;  %v13763_v5 = vld [vmem:[#allocation10 + $0x148] sm:$0xff]   ;;  %v4272_v61 = vld [vmem:[#allocation2 + $0x80] sm:$0xff] }
 0x292   : > { %v13207_v18 = vpop.f32.mrb[112].mxu0 }
 0x293   : > { %v3549_v56 = vadd.f32 %v13207_v18, %v15123_v12  ;;  %v3540_v43 = vpop.f32.mrb[113].mxu0 }
 0x294   : > { %v3541_v0 = vadd.f32 %v3540_v43, %v15117_v37  ;;  %v13208_v48 = vpop.f32.mrb[114].mxu0  ;;  %v15205_v37 = vadd.f32 %v11961_v57, %v3358_v11 }
 0x295   : > { %v3552_v16 = vadd.f32 %v13208_v48, %v15126_v51  ;;  %v3543_v58 = vpop.f32.mrb[115].mxu0 }
 0x296   : > { %v3544_v63 = vadd.f32 %v3543_v58, %v15120_v55  ;;  %v3820_v58 = vld [vmem:[#allocation2 + $0xe0] sm:$0xff] }
 0x297   : > { %v15198_v60 = vpack.c.bf16 %v3552_v16, %v3549_v56 }
 0x298   : > { %v3651_v14 = vpack.c.bf16 %v3544_v63, %v3541_v0  ;;  %v13764_v0 = vld [vmem:[#allocation10 + $0x108] sm:$0xff]   ;;  %v4046_v63 = vld [vmem:[#allocation2 + $0xb0] sm:$0xff] }
 0x299   : > { %3666 = vst [vmem:[#allocation3 + $0x8] sm:$0xff] %v15198_v60  ;;  %v3725_v12 = vshll.u32 %v15198_v60, 16  ;;  %5217 = vmatprep.mubr.bf16.mxu0 %v15198_v60  ;;  %v3723_v51 = vshrl.u32 %v15198_v60, 16 }
 0x29a   : > { %3665 = vst [vmem:[#allocation3] sm:$0xff] %v3651_v14  ;;  %v3716_v6 = vshrl.u32 %v3651_v14, 16  ;;  %v3718_v3 = vshll.u32 %v3651_v14, 16  ;;  %v13211_v55 = vpop.f32.mrb[116].mxu0 }
 0x29b   : > { %v3727_v45 = vrot.slane %v3725_v12, 1  ;;  %v3565_v8 = vadd.f32 %v13211_v55, %v15135_v2  ;;  %v3556_v25 = vpop.f32.mrb[117].mxu0 }
 0x29c   : > { %v3720_v35 = vrot.slane %v3718_v3, 1  ;;  %v3557_v19 = vadd.f32 %v3556_v25, %v15129_v46  ;;  %v13212_v17 = vpop.f32.mrb[118].mxu0  ;;  %v3817_v25 = vld [vmem:[#allocation2 + $0x98] sm:$0xff] }
 0x29d   : > { %v3728_v33 = vor.u32 %v3727_v45, %v3723_v51  ;;  %v3568_v21 = vadd.f32 %v13212_v17, %v15138_v59  ;;  %v3559_v15 = vpop.f32.mrb[119].mxu0 }
 0x29e   : > { %v3721_v39 = vor.u32 %v3720_v35, %v3716_v6  ;;  %v3560_v44 = vadd.f32 %v3559_v15, %v15132_v47  ;;  %v4043_v35 = vld [vmem:[#allocation2 + $0x68] sm:$0xff]  ;;  %v13772_v15 = vld [vmem:[#allocation10 + $0x180] sm:$0xff]  }
 0x29f   : > { %v15212_v40 = vpack.c.bf16 %v3568_v21, %v3565_v8  ;;  %v3815_v2 = vsel %vm14626_vm2, %v3728_v33, %v3814_v7  ;;  %v15218_v11 = vsel %vm14626_vm2, %v3728_v33, %v4040_v9  ;;  %v13767_v21 = vld [vmem:[#allocation10 + $0x158] sm:$0xff]  }
 0x2a0   : > { %v3848_v46 = vld [vmem:[#allocation3 + $0x8] sm:$0xfe]  ;;  %v15220_v27 = vpack.c.bf16 %v3560_v44, %v3557_v19  ;;  %v3812_v59 = vsel %vm14626_vm2, %v3721_v39, %v3811_v26  ;;  %3816 = vst [vmem:[#allocation2 + $0x50] sm:$0xff] %v3815_v2  ;;  %4042 = vst [vmem:[#allocation2 + $0x20] sm:$0xff] %v15218_v11 }
 0x2a1   : > { %v4076_v18 = vld [vmem:[#allocation3 + $0x8] sm:$0xfe]  ;;  %v3872_v47 = vrot.slane %v3848_v46, 1  ;;  %v3847_v43 = vld [vmem:[#allocation3] sm:$0xfe]  ;;  %3668 = vst [vmem:[#allocation3 + $0x18] sm:$0xff] %v15212_v40  ;;  %5088 = vmatprep.mubr.bf16.mxu1 %v3812_v59 }
 0x2a2   : > { %v4100_v56 = vrot.slane %v4076_v18, 1  ;;  %v3739_v52 = vshll.u32 %v15212_v40, 16  ;;  %3813 = vst [vmem:[#allocation2 + $0x8] sm:$0xff] %v3812_v59  ;;  %v3871_v48 = vrot.slane %v3847_v43, 1  ;;  %v3737_v49 = vshrl.u32 %v15212_v40, 16  ;;  %3667 = vst [vmem:[#allocation3 + $0x10] sm:$0xff] %v15220_v27  ;;  %5089 = vmatmul.mubr.bf16.vlgmr.msra.gmra.mrb[112].mxu1 %v3651_v14 }
 0x2a3   : > { %v3732_v10 = vshll.u32 %v15220_v27, 16  ;;  %4149 = vst [vmem:[#allocation2 + $0x30] sm:$0xff] %v15220_v27  ;;  %v13215_v16 = vpop.f32.mrb[120].mxu0  ;;  %3896 = vst [vmem:[#allocation2 + $0x58] sm:$0x7f] %v3872_v47  ;;  %5096 = vmatprep.mubr.bf16.mxu1 %v3815_v2  ;;  %12161 = vmatpush3.bf16.msra.mxu1 %v13762_v4  ;;  %v3730_v6 = vshrl.u32 %v15220_v27, 16 }
 0x2a4   : > { %4124 = vst [vmem:[#allocation2 + $0x28] sm:$0x7f] %v4100_v56  ;;  %v3741_v57 = vrot.slane %v3739_v52, 1  ;;  %v3581_v12 = vadd.f32 %v13215_v16, %v15147_v54  ;;  %v3572_v51 = vpop.f32.mrb[121].mxu0  ;;  %3895 = vst [vmem:[#allocation2 + $0x10] sm:$0x7f] %v3871_v48  ;;  %12162 = vmatprep.subr.bf16.mxu1 %v13763_v5 }
 0x2a5   : > { %v3734_v3 = vrot.slane %v3732_v10, 1  ;;  %v3573_v55 = vadd.f32 %v3572_v51, %v15141_v29  ;;  %v13216_v7 = vpop.f32.mrb[122].mxu0  ;;  %v13765_v14 = vld [vmem:[#allocation10 + $0x150] sm:$0xff]   ;;  %v4269_v26 = vld [vmem:[#allocation2 + $0x38] sm:$0xff]  ;;  %v13775_v52 = vld [vmem:[#allocation10 + $0x1c8] sm:$0xff]  }
 0x2a6   : > { %v3742_v9 = vor.u32 %v3741_v57, %v3737_v49  ;;  %v3584_v45 = vadd.f32 %v13216_v7, %v15150_v28  ;;  %v3575_v8 = vpop.f32.mrb[123].mxu0  ;;  %v13766_v29 = vld [vmem:[#allocation10 + $0x110] sm:$0xff]   ;;  %v13769_v7 = vld [vmem:[#allocation10 + $0x160] sm:$0xff]  }
 0x2a7   : > { %v3735_v54 = vor.u32 %v3734_v3, %v3730_v6  ;;  %v3576_v19 = vadd.f32 %v3575_v8, %v15144_v32  ;;  %12163 = vmatpush3.bf16.msra.mxu1 %v13764_v0 }
 0x2a8   : > { %v15236_v17 = vpack.c.bf16 %v3584_v45, %v3581_v12  ;;  %v15240_v33 = vsel %vm14626_vm2, %v3742_v9, %v3820_v58  ;;  %v15244_v28 = vsel %vm14626_vm2, %v3742_v9, %v4272_v61  ;;  %v15248_v4 = vsel %vm14626_vm2, %v3742_v9, %v4046_v63  ;;  %v3850_v39 = vld [vmem:[#allocation3 + $0x18] sm:$0xfe]  ;;  %12164 = vmatprep.subr.bf16.mxu1 %v13765_v14  ;;  %v13768_v12 = vld [vmem:[#allocation10 + $0x118] sm:$0xff]  }
 0x2a9   : > { %v4078_v32 = vld [vmem:[#allocation3 + $0x18] sm:$0xfe]  ;;  %v15250_v5 = vpack.c.bf16 %v3576_v19, %v3573_v55  ;;  %v3818_v2 = vsel %vm14626_vm2, %v3735_v54, %v3817_v25  ;;  %3822 = vst [vmem:[#allocation2 + $0xe0] sm:$0xff] %v15240_v33  ;;  %v15257_v46 = vsel %vm14626_vm2, %v3735_v54, %v4269_v26  ;;  %4274 = vst [vmem:[#allocation2 + $0x80] sm:$0xff] %v15244_v28  ;;  %v3874_v59 = vrot.slane %v3850_v39, 1  ;;  %v4278_v26 = vld [vmem:[#allocation2 + $0x110] sm:$0xff] }
 0x2aa   : > { %v4306_v44 = vld [vmem:[#allocation3 + $0x18] sm:$0xfe]  ;;  %v15262_v18 = vsel %vm14626_vm2, %v3735_v54, %v4043_v35  ;;  %4048 = vst [vmem:[#allocation2 + $0xb0] sm:$0xff] %v15248_v4  ;;  %v4102_v47 = vrot.slane %v4078_v32, 1  ;;  %v3849_v43 = vld [vmem:[#allocation3 + $0x10] sm:$0xfe]  ;;  %5097 = vmatmul.mubr.bf16.gmra.mrb[116].mxu1 %v15198_v60 }
 0x2ab   : > { %v4330_v56 = vrot.slane %v4306_v44, 1  ;;  %3670 = vst [vmem:[#allocation3 + $0x28] sm:$0xff] %v15236_v17  ;;  %3819 = vst [vmem:[#allocation2 + $0x98] sm:$0xff] %v3818_v2  ;;  %v3873_v0 = vrot.slane %v3849_v43, 1  ;;  %v4077_v48 = vld [vmem:[#allocation3 + $0x10] sm:$0xfe]  ;;  %5104 = vmatprep.mubr.bf16.mxu1 %v3818_v2  ;;  %12165 = vmatpush3.bf16.msra.mxu1 %v13766_v29 }
 0x2ac   : > { %4271 = vst [vmem:[#allocation2 + $0x38] sm:$0xff] %v15257_v46  ;;  %4045 = vst [vmem:[#allocation2 + $0x68] sm:$0xff] %v15262_v18  ;;  %v4305_v49 = vld [vmem:[#allocation3 + $0x10] sm:$0xfe]  ;;  %v3753_v10 = vshll.u32 %v15236_v17, 16  ;;  %v4101_v16 = vrot.slane %v4077_v48, 1  ;;  %12166 = vmatprep.subr.bf16.mxu1 %v13767_v21 }
 0x2ad   : > { %3669 = vst [vmem:[#allocation3 + $0x20] sm:$0xff] %v15250_v5  ;;  %3898 = vst [vmem:[#allocation2 + $0xe8] sm:$0x7f] %v3874_v59  ;;  %v4329_v58 = vrot.slane %v4305_v49, 1  ;;  %v3746_v61 = vshll.u32 %v15250_v5, 16  ;;  %v13219_v63 = vpop.f32.mrb[124].mxu0 }
 0x2ae   : > { %4126 = vst [vmem:[#allocation2 + $0xb8] sm:$0x7f] %v4102_v47  ;;  %4354 = vst [vmem:[#allocation2 + $0x88] sm:$0x7f] %v4330_v56  ;;  %v4367_v57 = vld [vmem:[#allocation2 + $0x10] sm:$0xff]  ;;  %v3751_v51 = vshrl.u32 %v15236_v17, 16  ;;  %v3597_v3 = vadd.f32 %v13219_v63, %v15159_v1 }
 0x2af   : > { %3897 = vst [vmem:[#allocation2 + $0xa0] sm:$0x7f] %v3873_v0  ;;  %v3755_v6 = vrot.slane %v3753_v10, 1  ;;  %v3588_v55 = vpop.f32.mrb[125].mxu0  ;;  %5218 = vmatmul.mubr.bf16.vlgmr.msra.gmra.mrb[140].mxu0 %v4367_v57  ;;  %v3826_v60 = vld [vmem:[#allocation2 + $0x170] sm:$0xff]  ;;  %v3744_v14 = vshrl.u32 %v15250_v5, 16  ;;  %12167 = vmatpush3.bf16.msra.mxu1 %v13768_v12 }
 0x2b0   : > { %4125 = vst [vmem:[#allocation2 + $0x70] sm:$0x7f] %v4101_v16  ;;  %4353 = vst [vmem:[#allocation2 + $0x40] sm:$0x7f] %v4329_v58  ;;  %v3748_v9 = vrot.slane %v3746_v61, 1  ;;  %v3589_v45 = vadd.f32 %v3588_v55, %v15153_v41  ;;  %v13220_v8 = vpop.f32.mrb[126].mxu0  ;;  %5225 = vmatprep.mubr.bf16.mxu0 %v15220_v27  ;;  %12249 = vmatpush3.bf16.msra.mxu0 %v13772_v15 }
 0x2b1   : > { %v13776_v25 = vld [vmem:[#allocation10 + $0x188] sm:$0xff]   ;;  %v4052_v35 = vld [vmem:[#allocation2 + $0x140] sm:$0xff]  ;;  %v3756_v1 = vor.u32 %v3755_v6, %v3751_v51  ;;  %v3600_v54 = vadd.f32 %v13220_v8, %v15162_v53  ;;  %v3591_v19 = vpop.f32.mrb[127].mxu0  ;;  %12250 = vmatprep.subr.bf16.mxu0 %v13775_v52  ;;  %v13777_v21 = vld [vmem:[#allocation10 + $0x1d0] sm:$0xff]   ;;  %12168 = vmatprep.subr.bf16.mxu1 %v13769_v7 }
 0x2b2   : > { %v3823_v29 = vld [vmem:[#allocation2 + $0x128] sm:$0xff]  ;;  %v3749_v32 = vor.u32 %v3748_v9, %v3744_v14  ;;  %v3592_v44 = vadd.f32 %v3591_v19, %v15156_v20  ;;  %v13770_v41 = vld [vmem:[#allocation10 + $0x120] sm:$0xff]   ;;  %v4049_v59 = vld [vmem:[#allocation2 + $0xf8] sm:$0xff]  ;;  %5105 = vmatmul.mubr.bf16.gmra.mrb[120].mxu1 %v15220_v27  ;;  %v13223_v27 = vpop.f32.mrb[128].mxu0 }
 0x2b3   : > { %v4275_v39 = vld [vmem:[#allocation2 + $0xc8] sm:$0xff]  ;;  %v3852_v47 = vld [vmem:[#allocation3 + $0x28] sm:$0xfe]  ;;  %v15279_v43 = vpack.c.bf16 %v3600_v54, %v3597_v3  ;;  %v15283_v53 = vsel %vm14626_vm2, %v3756_v1, %v3826_v60  ;;  %v15287_v52 = vsel %vm14626_vm2, %v3756_v1, %v4278_v26  ;;  %v15291_v20 = vsel %vm14626_vm2, %v3756_v1, %v4052_v35  ;;  %v13778_v58 = vld [vmem:[#allocation10 + $0x190] sm:$0xff]   ;;  %5112 = vmatprep.mubr.bf16.mxu1 %v15240_v33  ;;  %v3604_v8 = vpop.f32.mrb[129].mxu0 }
 0x2b4   : > { %v13773_v2 = vld [vmem:[#allocation10 + $0x168] sm:$0xff]   ;;  %v4080_v15 = vld [vmem:[#allocation3 + $0x28] sm:$0xfe]  ;;  %v3876_v0 = vrot.slane %v3852_v47, 1  ;;  %v3851_v10 = vld [vmem:[#allocation3 + $0x20] sm:$0xfe]  ;;  %v15293_v16 = vpack.c.bf16 %v3592_v44, %v3589_v45  ;;  %12251 = vmatpush3.bf16.msra.mxu0 %v13776_v25  ;;  %v15302_v12 = vsel %vm14626_vm2, %v3749_v32, %v3823_v29  ;;  %v15306_v6 = vsel %vm14626_vm2, %v3749_v32, %v4275_v39  ;;  %12169 = vmatpush3.bf16.msra.mxu1 %v13770_v41 }
 0x2b5   : > { %v4308_v56 = vld [vmem:[#allocation3 + $0x28] sm:$0xfe]  ;;  %v4104_v48 = vrot.slane %v4080_v15, 1  ;;  %3828 = vst [vmem:[#allocation2 + $0x170] sm:$0xff] %v15283_v53  ;;  %4280 = vst [vmem:[#allocation2 + $0x110] sm:$0xff] %v15287_v52  ;;  %v3875_v61 = vrot.slane %v3851_v10, 1  ;;  %12252 = vmatprep.subr.bf16.mxu0 %v13777_v21  ;;  %v3613_v45 = vadd.f32 %v13223_v27, %v15171_v38  ;;  %12170 = vmatprep.subr.bf16.mxu1 %v13773_v2 }
 0x2b6   : > { %v4332_v49 = vrot.slane %v4308_v56, 1  ;;  %4054 = vst [vmem:[#allocation2 + $0x140] sm:$0xff] %v15291_v20  ;;  %v4079_v63 = vld [vmem:[#allocation3 + $0x20] sm:$0xfe]  ;;  %3672 = vst [vmem:[#allocation3 + $0x38] sm:$0xff] %v15279_v43  ;;  %v13779_v51 = vld [vmem:[#allocation10 + $0x1d8] sm:$0xff]   ;;  %v15317_v26 = vsel %vm14626_vm2, %v3749_v32, %v4049_v59  ;;  %v3605_v1 = vadd.f32 %v3604_v8, %v15165_v24 }
 0x2b7   : > { %v4307_v57 = vld [vmem:[#allocation3 + $0x20] sm:$0xfe]  ;;  %3900 = vst [vmem:[#allocation2 + $0x178] sm:$0x7f] %v3876_v0  ;;  %4128 = vst [vmem:[#allocation2 + $0x148] sm:$0x7f] %v4104_v48 }
 0x2b8   : > { %4356 = vst [vmem:[#allocation2 + $0x118] sm:$0x7f] %v4332_v49  ;;  %v4103_v3 = vrot.slane %v4079_v63, 1  ;;  %v4331_v55 = vrot.slane %v4307_v57, 1  ;;  %v3767_v60 = vshll.u32 %v15279_v43, 16  ;;  %3671 = vst [vmem:[#allocation3 + $0x30] sm:$0xff] %v15293_v16  ;;  %12253 = vmatpush3.bf16.msra.mxu0 %v13778_v58 }
 0x2b9   : > { %v4376_v7 = vld [vmem:[#allocation2 + $0x58] sm:$0xff]  ;;  %3825 = vst [vmem:[#allocation2 + $0x128] sm:$0xff] %v15302_v12  ;;  %v13774_v14 = vld [vmem:[#allocation10 + $0x128] sm:$0xff]   ;;  %4277 = vst [vmem:[#allocation2 + $0xc8] sm:$0xff] %v15306_v6  ;;  %v3760_v9 = vshll.u32 %v15293_v16, 16  ;;  %v3765_v33 = vshrl.u32 %v15279_v43, 16  ;;  %12254 = vmatprep.subr.bf16.mxu0 %v13779_v51 }
 0x2ba   : > { %3899 = vst [vmem:[#allocation2 + $0x130] sm:$0x7f] %v3875_v61  ;;  %5226 = vmatmul.mubr.bf16.gmra.mrb[144].mxu0 %v4376_v7  ;;  %v13781_v25 = vld [vmem:[#allocation10 + $0x170] sm:$0xff]   ;;  %4127 = vst [vmem:[#allocation2 + $0x100] sm:$0x7f] %v4103_v3  ;;  %v3769_v35 = vrot.slane %v3767_v60, 1  ;;  %12171 = vmatpush3.bf16.msra.mxu1 %v13774_v14 }
 0x2bb   : > { %4355 = vst [vmem:[#allocation2 + $0xd0] sm:$0x7f] %v4331_v55  ;;  %v13224_v54 = vpop.f32.mrb[130].mxu0  ;;  %5233 = vmatprep.mubr.bf16.mxu0 %v15212_v40  ;;  %v3832_v19 = vld [vmem:[#allocation2 + $0x200] sm:$0xff]  ;;  %v13780_v38 = vld [vmem:[#allocation10 + $0x198] sm:$0xff]   ;;  %4051 = vst [vmem:[#allocation2 + $0xf8] sm:$0xff] %v15317_v26  ;;  %12172 = vmatprep.subr.bf16.mxu1 %v13781_v25 }
 0x2bc   : > { %v3758_v29 = vshrl.u32 %v15293_v16, 16  ;;  %v3762_v21 = vrot.slane %v3760_v9, 1  ;;  %v3616_v39 = vadd.f32 %v13224_v54, %v15174_v34  ;;  %v3607_v32 = vpop.f32.mrb[131].mxu0  ;;  %v13783_v44 = vld [vmem:[#allocation10 + $0x1e0] sm:$0xff]   ;;  %v4058_v2 = vld [vmem:[#allocation2 + $0x1d0] sm:$0xff]  ;;  %v3770_v59 = vor.u32 %v3769_v35, %v3765_v33  ;;  %v3829_v47 = vld [vmem:[#allocation2 + $0x1b8] sm:$0xff]  ;;  %12255 = vmatpush3.bf16.msra.mxu0 %v13780_v38  ;;  %5113 = vmatmul.mubr.bf16.gmra.mrb[124].mxu1 %v15212_v40 }
 0x2bd   : > { %v4284_v41 = vld [vmem:[#allocation2 + $0x1a0] sm:$0xff]  ;;  %v3608_v24 = vadd.f32 %v3607_v32, %v15168_v22  ;;  %v13782_v15 = vld [vmem:[#allocation10 + $0x130] sm:$0xff]   ;;  %v4281_v56 = vld [vmem:[#allocation2 + $0x158] sm:$0xff]  ;;  %12256 = vmatprep.subr.bf16.mxu0 %v13783_v44  ;;  %5120 = vmatprep.mubr.bf16.mxu1 %v15302_v12 }
 0x2be   : > { %v3763_v0 = vor.u32 %v3762_v21, %v3758_v29  ;;  %v15326_v48 = vpack.c.bf16 %v3616_v39, %v3613_v45  ;;  %v13784_v49 = vld [vmem:[#allocation10 + $0x1a0] sm:$0xff]   ;;  %v13785_v10 = vld [vmem:[#allocation10 + $0x1e8] sm:$0xff]   ;;  %v13789_v58 = vld [vmem:[#allocation10 + $0x178] sm:$0xff]   ;;  %v15332_v22 = vsel %vm14626_vm2, %v3770_v59, %v3832_v19  ;;  %v15336_v55 = vsel %vm14626_vm2, %v3770_v59, %v4284_v41  ;;  %12173 = vmatpush3.bf16.msra.mxu1 %v13782_v15  ;;  %v13227_v29 = vpop.f32.mrb[132].mxu0 }
 0x2bf   : > { %v4055_v34 = vld [vmem:[#allocation2 + $0x188] sm:$0xff]  ;;  %v15328_v51 = vpack.c.bf16 %v3608_v24, %v3605_v1  ;;  %v13790_v3 = vld [vmem:[#allocation10 + $0x138] sm:$0xff]   ;;  %v15340_v60 = vsel %vm14626_vm2, %v3770_v59, %v4058_v2  ;;  %v3853_v9 = vld [vmem:[#allocation3 + $0x30] sm:$0xfe]  ;;  %3834 = vst [vmem:[#allocation2 + $0x200] sm:$0xff] %v15332_v22  ;;  %12174 = vmatprep.subr.bf16.mxu1 %v13789_v58  ;;  %v3629_v32 = vadd.f32 %v13227_v29, %v15183_v13  ;;  %v3620_v44 = vpop.f32.mrb[133].mxu0 }
 0x2c0   : > { %v3854_v61 = vld [vmem:[#allocation3 + $0x38] sm:$0xfe]  ;;  %3674 = vst [vmem:[#allocation3 + $0x48] sm:$0xff] %v15326_v48  ;;  %v4385_v45 = vld [vmem:[#allocation2 + $0xa0] sm:$0xff]  ;;  %4286 = vst [vmem:[#allocation2 + $0x1a0] sm:$0xff] %v15336_v55  ;;  %v3877_v8 = vrot.slane %v3853_v9, 1  ;;  %v15352_v1 = vsel %vm14626_vm2, %v3763_v0, %v3829_v47  ;;  %v15356_v40 = vsel %vm14626_vm2, %v3763_v0, %v4281_v56  ;;  %12257 = vmatpush3.bf16.msra.mxu0 %v13784_v49 }
 0x2c1   : > { %v4082_v63 = vld [vmem:[#allocation3 + $0x38] sm:$0xfe]  ;;  %v3878_v27 = vrot.slane %v3854_v61, 1  ;;  %4060 = vst [vmem:[#allocation2 + $0x1d0] sm:$0xff] %v15340_v60  ;;  %v4081_v25 = vld [vmem:[#allocation3 + $0x30] sm:$0xfe]  ;;  %v15368_v59 = vsel %vm14626_vm2, %v3763_v0, %v4055_v34  ;;  %v3621_v15 = vadd.f32 %v3620_v44, %v15177_v30  ;;  %12258 = vmatprep.subr.bf16.mxu0 %v13785_v10 }
 0x2c2   : > { %v4310_v57 = vld [vmem:[#allocation3 + $0x38] sm:$0xfe]  ;;  %v4106_v7 = vrot.slane %v4082_v63, 1  ;;  %v4309_v33 = vld [vmem:[#allocation3 + $0x30] sm:$0xfe]  ;;  %v3781_v35 = vshll.u32 %v15326_v48, 16  ;;  %5234 = vmatmul.mubr.bf16.gmra.mrb[148].mxu0 %v4385_v45  ;;  %12175 = vmatpush3.bf16.msra.mxu1 %v13790_v3 }
 0x2c3   : > { %v4334_v14 = vrot.slane %v4310_v57, 1  ;;  %3673 = vst [vmem:[#allocation3 + $0x40] sm:$0xff] %v15328_v51  ;;  %3902 = vst [vmem:[#allocation2 + $0x208] sm:$0x7f] %v3878_v27  ;;  %v4105_v54 = vrot.slane %v4081_v25, 1  ;;  %v4333_v19 = vrot.slane %v4309_v33, 1  ;;  %5241 = vmatprep.mubr.bf16.mxu0 %v15250_v5 }
 0x2c4   : > { %4130 = vst [vmem:[#allocation2 + $0x1d8] sm:$0x7f] %v4106_v7  ;;  %v3774_v38 = vshll.u32 %v15328_v51, 16  ;;  %3831 = vst [vmem:[#allocation2 + $0x1b8] sm:$0xff] %v15352_v1  ;;  %v15360_v12 = vld [vmem:[#allocation10 + $0x200] sm:$0xff]   ;;  %v3779_v21 = vshrl.u32 %v15326_v48, 16  ;;  %5121 = vmatmul.mubr.bf16.gmra.mrb[128].mxu1 %v15250_v5 }
 0x2c5   : > { %4358 = vst [vmem:[#allocation2 + $0x1a8] sm:$0x7f] %v4334_v14  ;;  %4283 = vst [vmem:[#allocation2 + $0x158] sm:$0xff] %v15356_v40  ;;  %v3783_v39 = vrot.slane %v3781_v35, 1  ;;  %v3838_v41 = vld [vmem:[#allocation2 + $0x290] sm:$0xff]  ;;  %v13786_v2 = vld [vmem:[#allocation10 + $0x1a8] sm:$0xff]   ;;  %13233 = vmatprep.subr.bf16.mxu1 %v15360_v12  ;;  %5128 = vmatprep.mubr.bf16.mxu1 %v15283_v53 }
 0x2c6   : > { %3901 = vst [vmem:[#allocation2 + $0x1c0] sm:$0x7f] %v3877_v8  ;;  %4129 = vst [vmem:[#allocation2 + $0x190] sm:$0x7f] %v4105_v54  ;;  %v3772_v24 = vshrl.u32 %v15328_v51, 16  ;;  %v3776_v47 = vrot.slane %v3774_v38, 1  ;;  %12259 = vmatpush3.bf16.msra.mxu0 %v13786_v2 }
 0x2c7   : > { %4357 = vst [vmem:[#allocation2 + $0x160] sm:$0x7f] %v4333_v19  ;;  %v13228_v56 = vpop.f32.mrb[134].mxu0  ;;  %v13787_v13 = vld [vmem:[#allocation10 + $0x1f0] sm:$0xff]   ;;  %4057 = vst [vmem:[#allocation2 + $0x188] sm:$0xff] %v15368_v59  ;;  %v4064_v61 = vld [vmem:[#allocation2 + $0x260] sm:$0xff]  ;;  %v3784_v49 = vor.u32 %v3783_v39, %v3779_v21 }
 0x2c8   : > { %v4290_v58 = vld [vmem:[#allocation2 + $0x230] sm:$0xff]  ;;  %v3632_v63 = vadd.f32 %v13228_v56, %v15186_v23  ;;  %v3623_v57 = vpop.f32.mrb[135].mxu0  ;;  %v3835_v0 = vld [vmem:[#allocation2 + $0x248] sm:$0xff]  ;;  %v3777_v34 = vor.u32 %v3776_v47, %v3772_v24  ;;  %v13791_v14 = vld [vmem:[#allocation10 + $0x1f8] sm:$0xff]   ;;  %12260 = vmatprep.subr.bf16.mxu0 %v13787_v13 }
 0x2c9   : > { %v3624_v27 = vadd.f32 %v3623_v57, %v15180_v42  ;;  %v13788_v7 = vld [vmem:[#allocation10 + $0x1b0] sm:$0xff]   ;;  %v4287_v30 = vld [vmem:[#allocation2 + $0x1e8] sm:$0xff]  ;;  %v4061_v10 = vld [vmem:[#allocation2 + $0x218] sm:$0xff]  ;;  %v15380_v23 = vsel %vm14626_vm2, %v3784_v49, %v3838_v41  ;;  %v15384_v3 = vsel %vm14626_vm2, %v3784_v49, %v4290_v58  ;;  %v15388_v42 = vsel %vm14626_vm2, %v3784_v49, %v4064_v61  ;;  %v13231_v29 = vpop.f32.mrb[136].mxu0 }
 0x2ca   : > { %v3856_v9 = vld [vmem:[#allocation3 + $0x48] sm:$0xfe]  ;;  %v15376_v25 = vpack.c.bf16 %v3632_v63, %v3629_v32  ;;  %v3855_v19 = vld [vmem:[#allocation3 + $0x40] sm:$0xfe]  ;;  %3840 = vst [vmem:[#allocation2 + $0x290] sm:$0xff] %v15380_v23  ;;  %4292 = vst [vmem:[#allocation2 + $0x230] sm:$0xff] %v15384_v3  ;;  %v3645_v44 = vadd.f32 %v13231_v29, %v15200_v62  ;;  %v15401_v5 = vsel %vm14626_vm2, %v3777_v34, %v3835_v0  ;;  %12261 = vmatpush3.bf16.msra.mxu0 %v13788_v7 }
 0x2cb   : > { %v4084_v45 = vld [vmem:[#allocation3 + $0x48] sm:$0xfe]  ;;  %v3880_v33 = vrot.slane %v3856_v9, 1  ;;  %v15390_v38 = vpack.c.bf16 %v3624_v27, %v3621_v15  ;;  %4066 = vst [vmem:[#allocation2 + $0x260] sm:$0xff] %v15388_v42  ;;  %v3879_v21 = vrot.slane %v3855_v19, 1  ;;  %v4394_v41 = vld [vmem:[#allocation2 + $0xe8] sm:$0xff]  ;;  %v15411_v58 = vsel %vm14626_vm2, %v3777_v34, %v4287_v30  ;;  %12262 = vmatprep.subr.bf16.mxu0 %v13791_v14 }
 0x2cc   : > { %v4312_v8 = vld [vmem:[#allocation3 + $0x48] sm:$0xfe]  ;;  %v4108_v35 = vrot.slane %v4084_v45, 1  ;;  %v4083_v39 = vld [vmem:[#allocation3 + $0x40] sm:$0xfe]  ;;  %3676 = vst [vmem:[#allocation3 + $0x58] sm:$0xff] %v15376_v25  ;;  %5242 = vmatmul.mubr.bf16.gmra.mrb[152].mxu0 %v4394_v41  ;;  %v15415_v61 = vsel %vm14626_vm2, %v3777_v34, %v4061_v10  ;;  %5129 = vmatmul.mubr.bf16.gmra.mrb[132].mxu1 %v15236_v17 }
 0x2cd   : > { %v4336_v54 = vrot.slane %v4312_v8, 1  ;;  %v4311_v32 = vld [vmem:[#allocation3 + $0x40] sm:$0xfe]  ;;  %3904 = vst [vmem:[#allocation2 + $0x298] sm:$0x7f] %v3880_v33  ;;  %v4107_v2 = vrot.slane %v4083_v39, 1  ;;  %5249 = vmatprep.mubr.bf16.mxu0 %v15236_v17  ;;  %5136 = vmatprep.mubr.bf16.mxu1 %v15352_v1 }
 0x2ce   : > { %4132 = vst [vmem:[#allocation2 + $0x268] sm:$0x7f] %v4108_v35  ;;  %v4335_v24 = vrot.slane %v4311_v32, 1  ;;  %v3795_v47 = vshll.u32 %v15376_v25, 16  ;;  %3675 = vst [vmem:[#allocation3 + $0x50] sm:$0xff] %v15390_v38  ;;  %v3636_v15 = vpop.f32.mrb[137].mxu0 }
 0x2cf   : > { %4360 = vst [vmem:[#allocation2 + $0x238] sm:$0x7f] %v4336_v54  ;;  %3837 = vst [vmem:[#allocation2 + $0x248] sm:$0xff] %v15401_v5  ;;  %v3788_v62 = vshll.u32 %v15390_v38, 16  ;;  %v3637_v53 = vadd.f32 %v3636_v15, %v15189_v31  ;;  %v13232_v56 = vpop.f32.mrb[138].mxu0  ;;  %v13792_v13 = vld [vmem:[#allocation10 + $0x1b8] sm:$0xff]  }
 0x2d0   : > { %3903 = vst [vmem:[#allocation2 + $0x250] sm:$0x7f] %v3879_v21  ;;  %4131 = vst [vmem:[#allocation2 + $0x220] sm:$0x7f] %v4107_v2  ;;  %v3793_v49 = vshrl.u32 %v15376_v25, 16  ;;  %v3797_v63 = vrot.slane %v3795_v47, 1  ;;  %v3648_v31 = vadd.f32 %v13232_v56, %v15205_v37  ;;  %12263 = vmatpush3.bf16.msra.mxu0 %v13792_v13 }
 0x2d1   : > { %4359 = vst [vmem:[#allocation2 + $0x1f0] sm:$0x7f] %v4335_v24  ;;  %v3639_v57 = vpop.f32.mrb[139].mxu0  ;;  %4289 = vst [vmem:[#allocation2 + $0x1e8] sm:$0xff] %v15411_v58  ;;  %v3786_v0 = vshrl.u32 %v15390_v38, 16  ;;  %v3790_v27 = vrot.slane %v3788_v62, 1 }
 0x2d2   : > { %4063 = vst [vmem:[#allocation2 + $0x218] sm:$0xff] %v15415_v61  ;;  %v3640_v7 = vadd.f32 %v3639_v57, %v15192_v50  ;;  %v3844_v34 = vld [vmem:[#allocation2 + $0x320] sm:$0xff]  ;;  %v4070_v10 = vld [vmem:[#allocation2 + $0x2f0] sm:$0xff]  ;;  %v3798_v9 = vor.u32 %v3797_v63, %v3793_v49  ;;  %v15423_v45 = vpack.c.bf16 %v3648_v31, %v3645_v44  ;;  %v3841_v37 = vld [vmem:[#allocation2 + $0x2d8] sm:$0xff] }
 0x2d3   : > { %v4296_v30 = vld [vmem:[#allocation2 + $0x2c0] sm:$0xff]  ;;  %v3791_v8 = vor.u32 %v3790_v27, %v3786_v0  ;;  %v4293_v14 = vld [vmem:[#allocation2 + $0x278] sm:$0xff]  ;;  %v4067_v35 = vld [vmem:[#allocation2 + $0x2a8] sm:$0xff] }
 0x2d4   : > { %v15425_v33 = vpack.c.bf16 %v3640_v7, %v3637_v53  ;;  %v3858_v54 = vld [vmem:[#allocation3 + $0x58] sm:$0xfe]  ;;  %3678 = vst [vmem:[#allocation3 + $0x68] sm:$0xff] %v15423_v45  ;;  %v15431_v50 = vsel %vm14626_vm2, %v3798_v9, %v3844_v34  ;;  %v15435_v21 = vsel %vm14626_vm2, %v3798_v9, %v4296_v30  ;;  %v15439_v39 = vsel %vm14626_vm2, %v3798_v9, %v4070_v10  ;;  %v4403_v24 = vld [vmem:[#allocation2 + $0x130] sm:$0xff]  ;;  %v4073_v10 = vld [vmem:[#allocation2 + $0x338] sm:$0xff] }
 0x2d5   : > { %v4086_v19 = vld [vmem:[#allocation3 + $0x58] sm:$0xfe]  ;;  %v3882_v32 = vrot.slane %v3858_v54, 1  ;;  %v3857_v2 = vld [vmem:[#allocation3 + $0x50] sm:$0xfe]  ;;  %3846 = vst [vmem:[#allocation2 + $0x320] sm:$0xff] %v15431_v50  ;;  %5250 = vmatmul.mubr.bf16.gmra.mrb[156].mxu0 %v4403_v24  ;;  %v3842_v53 = vsel %vm14626_vm2, %v3791_v8, %v3841_v37  ;;  %v15451_v56 = vsel %vm14626_vm2, %v3791_v8, %v4293_v14  ;;  %v15459_v57 = vsel %vm14626_vm2, %v3791_v8, %v4067_v35 }
 0x2d6   : > { %v4314_v29 = vld [vmem:[#allocation3 + $0x58] sm:$0xfe]  ;;  %v4110_v44 = vrot.slane %v4086_v19, 1  ;;  %3677 = vst [vmem:[#allocation3 + $0x60] sm:$0xff] %v15425_v33  ;;  %4298 = vst [vmem:[#allocation2 + $0x2c0] sm:$0xff] %v15435_v21  ;;  %v3881_v17 = vrot.slane %v3857_v2, 1  ;;  %5257 = vmatprep.mubr.bf16.mxu0 %v15293_v16  ;;  %5137 = vmatmul.mubr.bf16.gmra.mrb[136].mxu1 %v15293_v16 }
 0x2d7   : > { %v4338_v41 = vrot.slane %v4314_v29, 1  ;;  %4072 = vst [vmem:[#allocation2 + $0x2f0] sm:$0xff] %v15439_v39  ;;  %v4085_v47 = vld [vmem:[#allocation3 + $0x50] sm:$0xfe]  ;;  %v4253_v62 = vshll.u32 %v15423_v45, 16  ;;  %v4024_v49 = vshll.u32 %v15425_v33, 16  ;;  %5144 = vmatprep.mubr.bf16.mxu1 %v15332_v22 }
 0x2d8   : > { %v4313_v15 = vld [vmem:[#allocation3 + $0x50] sm:$0xfe]  ;;  %3906 = vst [vmem:[#allocation2 + $0x328] sm:$0x7f] %v3882_v32  ;;  %4134 = vst [vmem:[#allocation2 + $0x2f8] sm:$0x7f] %v4110_v44 }
 0x2d9   : > { %4362 = vst [vmem:[#allocation2 + $0x2c8] sm:$0x7f] %v4338_v41  ;;  %v4109_v1 = vrot.slane %v4085_v47, 1  ;;  %v4337_v13 = vrot.slane %v4313_v15, 1  ;;  %3843 = vst [vmem:[#allocation2 + $0x2d8] sm:$0xff] %v3842_v53  ;;  %v4251_v63 = vshrl.u32 %v15423_v45, 16 }
 0x2da   : > { %4295 = vst [vmem:[#allocation2 + $0x278] sm:$0xff] %v15451_v56  ;;  %3905 = vst [vmem:[#allocation2 + $0x2e0] sm:$0x7f] %v3881_v17  ;;  %v4255_v31 = vrot.slane %v4253_v62, 1  ;;  %v4022_v0 = vshrl.u32 %v15425_v33, 16  ;;  %v4026_v27 = vrot.slane %v4024_v49, 1 }
 0x2db   : > { %4133 = vst [vmem:[#allocation2 + $0x2b0] sm:$0x7f] %v4109_v1  ;;  %4361 = vst [vmem:[#allocation2 + $0x280] sm:$0x7f] %v4337_v13  ;;  %v4302_v7 = vld [vmem:[#allocation2 + $0x350] sm:$0xff]  ;;  %v4299_v30 = vld [vmem:[#allocation2 + $0x308] sm:$0xff] }
 0x2dc   : > { %4069 = vst [vmem:[#allocation2 + $0x2a8] sm:$0xff] %v15459_v57  ;;  %v4256_v34 = vor.u32 %v4255_v31, %v4251_v63  ;;  %v4316_v9 = vld [vmem:[#allocation3 + $0x68] sm:$0xfe]  ;;  %v4027_v37 = vor.u32 %v4026_v27, %v4022_v0  ;;  %v4421_v16 = vld [vmem:[#allocation2 + $0x1c0] sm:$0xff]  ;;  %v4430_v22 = vld [vmem:[#allocation2 + $0x208] sm:$0xff] }
 0x2dd   : > { %v4340_v14 = vrot.slane %v4316_v9, 1  ;;  %v4087_v54 = vld [vmem:[#allocation3 + $0x60] sm:$0xfe]  ;;  %v4412_v32 = vld [vmem:[#allocation2 + $0x178] sm:$0xff]  ;;  %v4138_v15 = vld [vmem:[#allocation3 + $0x18] sm:$0xff] }
 0x2de   : > { %v4315_v19 = vld [vmem:[#allocation3 + $0x60] sm:$0xfe]  ;;  %v15466_v8 = vsel %vm14626_vm2, %v4256_v34, %v4302_v7  ;;  %v4111_v35 = vrot.slane %v4087_v54, 1  ;;  %v15471_v44 = vsel %vm14626_vm2, %v4027_v37, %v4299_v30  ;;  %v15476_v41 = vsel %vm14626_vm2, %v4027_v37, %v4073_v10  ;;  %5258 = vmatmul.mubr.bf16.gmra.mrb[160].mxu0 %v4412_v32  ;;  %5145 = vmatmul.mubr.bf16.gmra.mrb[140].mxu1 %v15279_v43  ;;  %v4388_v17 = vld [vmem:[#allocation2 + $0xb8] sm:$0xff]  ;;  %v4142_v13 = vld [vmem:[#allocation3 + $0x38] sm:$0xff] }
 0x2df   : > { %v4339_v29 = vrot.slane %v4315_v19, 1  ;;  %4304 = vst [vmem:[#allocation2 + $0x350] sm:$0xff] %v15466_v8  ;;  %4364 = vst [vmem:[#allocation2 + $0x358] sm:$0x7f] %v4340_v14  ;;  %5265 = vmatprep.mubr.bf16.mxu0 %v15279_v43  ;;  %5152 = vmatprep.mubr.bf16.mxu1 %v15401_v5  ;;  %v4439_v2 = vld [vmem:[#allocation2 + $0x250] sm:$0xff]  ;;  %v4448_v43 = vld [vmem:[#allocation2 + $0x298] sm:$0xff] }
 0x2e0   : > { %4301 = vst [vmem:[#allocation2 + $0x308] sm:$0xff] %v15471_v44  ;;  %4075 = vst [vmem:[#allocation2 + $0x338] sm:$0xff] %v15476_v41  ;;  %v4379_v5 = vld [vmem:[#allocation2 + $0x70] sm:$0xff]  ;;  %v4466_v24 = vld [vmem:[#allocation2 + $0x328] sm:$0xff] }
 0x2e1   : > { %4135 = vst [vmem:[#allocation2 + $0x340] sm:$0x7f] %v4111_v35  ;;  %4363 = vst [vmem:[#allocation2 + $0x310] sm:$0x7f] %v4339_v29  ;;  %v4371_v47 = vld [vmem:[#allocation2 + $0x30] sm:$0xff]  ;;  %v13800_v62 = vld [vmem:[#allocation10 + $0x238] sm:$0xff]  }
 0x2e2   : > { %v4140_v1 = vld [vmem:[#allocation3 + $0x28] sm:$0xff]  ;;  %v4427_v49 = vld [vmem:[#allocation2 + $0x1f0] sm:$0xff]  ;;  %v4445_v34 = vld [vmem:[#allocation2 + $0x280] sm:$0xff] }
 0x2e3   : > { %v4436_v7 = vld [vmem:[#allocation2 + $0x238] sm:$0xff] }
 0x2e6   : > { %5266 = vmatmul.mubr.bf16.gmra.mrb[164].mxu0 %v4421_v16  ;;  %5153 = vmatmul.mubr.bf16.gmra.mrb[144].mxu1 %v15328_v51 }
 0x2e7   : > { %5273 = vmatprep.mubr.bf16.mxu0 %v15328_v51  ;;  %5160 = vmatprep.mubr.bf16.mxu1 %v15380_v23  ;;  %v4370_v51 = vld [vmem:[#allocation2 + $0x28] sm:$0xff]  ;;  %v4457_v23 = vld [vmem:[#allocation2 + $0x2e0] sm:$0xff] }
 0x2e8   : > { %v4463_v16 = vld [vmem:[#allocation2 + $0x310] sm:$0xff] }
 0x2ee   : > { %5274 = vmatmul.mubr.bf16.gmra.mrb[168].mxu0 %v4430_v22  ;;  %5161 = vmatmul.mubr.bf16.gmra.mrb[148].mxu1 %v15326_v48 }
 0x2ef   : > { %5281 = vmatprep.mubr.bf16.mxu0 %v15326_v48  ;;  %5168 = vmatprep.mubr.bf16.mxu1 %v3842_v53  ;;  %v13794_v48 = vld [vmem:[#allocation10 + $0x208] sm:$0xff]   ;;  %v4139_v53 = vld [vmem:[#allocation3 + $0x20] sm:$0xff] }
 0x2f6   : > { %5282 = vmatmul.mubr.bf16.gmra.mrb[172].mxu0 %v4439_v2  ;;  %5169 = vmatmul.mubr.bf16.gmra.mrb[152].mxu1 %v15390_v38 }
 0x2f7   : > { %5289 = vmatprep.mubr.bf16.mxu0 %v15390_v38  ;;  %5176 = vmatprep.mubr.bf16.mxu1 %v15431_v50  ;;  %v13795_v50 = vld [vmem:[#allocation10 + $0x210] sm:$0xff]  }
 0x2fe   : > { %5290 = vmatmul.mubr.bf16.gmra.mrb[176].mxu0 %v4448_v43  ;;  %5177 = vmatmul.mubr.bf16.gmra.mrb[156].mxu1 %v15376_v25 }
 0x2ff   : > { %5297 = vmatprep.mubr.bf16.mxu0 %v15376_v25  ;;  %5346 = vmatprep.mubr.bf16.mxu1 %v4370_v51  ;;  %v13796_v25 = vld [vmem:[#allocation10 + $0x218] sm:$0xff]  }
 0x306   : > { %5298 = vmatmul.mubr.bf16.gmra.mrb[180].mxu0 %v4457_v23  ;;  %5347 = vmatmul.mubr.bf16.vlgmr.msra.gmra.mrb[160].mxu1 %v15218_v11  ;;  %v13797_v11 = vld [vmem:[#allocation10 + $0x220] sm:$0xff]  }
 0x307   : > { %5305 = vmatprep.mubr.bf16.mxu0 %v15425_v33  ;;  %5354 = vmatprep.mubr.bf16.mxu1 %v4379_v5 }
 0x308   : > { %13234 = vmatpush3.bf16.msra.mxu1 %v15360_v12  ;;  %v13798_v12 = vld [vmem:[#allocation10 + $0x228] sm:$0xff]  }
 0x309   : > { %13235 = vmatprep.subr.bf16.mxu1 %v13794_v48 }
 0x30c   : > { %13236 = vmatpush3.bf16.msra.mxu1 %v13794_v48 }
 0x30d   : > { %13237 = vmatprep.subr.bf16.mxu1 %v13795_v50 }
 0x30e   : > { %5306 = vmatmul.mubr.bf16.gmra.mrb[184].mxu0 %v4466_v24  ;;  %5355 = vmatmul.mubr.bf16.gmra.mrb[164].mxu1 %v15262_v18  ;;  %v13799_v18 = vld [vmem:[#allocation10 + $0x230] sm:$0xff]  }
 0x30f   : > { %5475 = vmatprep.mubr.bf16.mxu0 %v15257_v46  ;;  %5362 = vmatprep.mubr.bf16.mxu1 %v4388_v17  ;;  %v4397_v46 = vld [vmem:[#allocation2 + $0x100] sm:$0xff] }
 0x310   : > { %13238 = vmatpush3.bf16.msra.mxu1 %v13795_v50 }
 0x311   : > { %13239 = vmatprep.subr.bf16.mxu1 %v13796_v25 }
 0x314   : > { %13240 = vmatpush3.bf16.msra.mxu1 %v13796_v25 }
 0x315   : > { %13241 = vmatprep.subr.bf16.mxu1 %v13797_v11 }
 0x316   : > { %5476 = vmatmul.mubr.bf16.vlgmr.msra.gmra.mrb[188].mxu0 %v4371_v47  ;;  %5363 = vmatmul.mubr.bf16.gmra.mrb[168].mxu1 %v15248_v4  ;;  %v4415_v4 = vld [vmem:[#allocation2 + $0x190] sm:$0xff] }
 0x317   : > { %5483 = vmatprep.mubr.bf16.mxu0 %v15244_v28  ;;  %5370 = vmatprep.mubr.bf16.mxu1 %v4397_v46  ;;  %v4406_v28 = vld [vmem:[#allocation2 + $0x148] sm:$0xff] }
 0x318   : > { %13242 = vmatpush3.bf16.msra.mxu1 %v13797_v11 }
 0x319   : > { %13243 = vmatprep.subr.bf16.mxu1 %v13798_v12 }
 0x31c   : > { %13244 = vmatpush3.bf16.msra.mxu1 %v13798_v12 }
 0x31d   : > { %13245 = vmatprep.subr.bf16.mxu1 %v13799_v18 }
 0x31e   : > { %5484 = vmatmul.mubr.bf16.gmra.mrb[192].mxu0 %v4138_v15  ;;  %5371 = vmatmul.mubr.bf16.gmra.mrb[172].mxu1 %v15317_v26  ;;  %v4141_v26 = vld [vmem:[#allocation3 + $0x30] sm:$0xff]  ;;  %v4472_v15 = vld [vmem:[#allocation2 + $0x358] sm:$0xff] }
 0x31f   : > { %5491 = vmatprep.mubr.bf16.mxu0 %v15306_v6  ;;  %5378 = vmatprep.mubr.bf16.mxu1 %v4406_v28  ;;  %v4424_v6 = vld [vmem:[#allocation2 + $0x1d8] sm:$0xff] }
 0x320   : > { %13246 = vmatpush3.bf16.msra.mxu1 %v13799_v18 }
 0x321   : > { %13247 = vmatprep.subr.bf16.mxu1 %v13800_v62 }
 0x324   : > { %13248 = vmatpush3.bf16.msra.mxu1 %v13800_v62 }
 0x326   : > { %5492 = vmatmul.mubr.bf16.gmra.mrb[196].mxu0 %v4139_v53  ;;  %5379 = vmatmul.mubr.bf16.gmra.mrb[176].mxu1 %v15291_v20  ;;  %v4442_v20 = vld [vmem:[#allocation2 + $0x268] sm:$0xff] }
 0x327   : > { %5499 = vmatprep.mubr.bf16.mxu0 %v15287_v52  ;;  %5386 = vmatprep.mubr.bf16.mxu1 %v4415_v4  ;;  %v4433_v52 = vld [vmem:[#allocation2 + $0x220] sm:$0xff] }
 0x32e   : > { %5500 = vmatmul.mubr.bf16.gmra.mrb[200].mxu0 %v4140_v1  ;;  %5387 = vmatmul.mubr.bf16.gmra.mrb[180].mxu1 %v15368_v59  ;;  %v4451_v59 = vld [vmem:[#allocation2 + $0x2b0] sm:$0xff] }
 0x32f   : > { %5507 = vmatprep.mubr.bf16.mxu0 %v15356_v40  ;;  %5394 = vmatprep.mubr.bf16.mxu1 %v4424_v6  ;;  %v4143_v40 = vld [vmem:[#allocation3 + $0x40] sm:$0xff] }
 0x336   : > { %5508 = vmatmul.mubr.bf16.gmra.mrb[204].mxu0 %v4141_v26  ;;  %5395 = vmatmul.mubr.bf16.gmra.mrb[184].mxu1 %v15340_v60  ;;  %v4460_v60 = vld [vmem:[#allocation2 + $0x2f8] sm:$0xff] }
 0x337   : > { %5515 = vmatprep.mubr.bf16.mxu0 %v15336_v55  ;;  %5402 = vmatprep.mubr.bf16.mxu1 %v4433_v52  ;;  %v4144_v55 = vld [vmem:[#allocation3 + $0x48] sm:$0xff] }
 0x33e   : > { %5516 = vmatmul.mubr.bf16.gmra.mrb[208].mxu0 %v4142_v13  ;;  %5403 = vmatmul.mubr.bf16.gmra.mrb[188].mxu1 %v15415_v61  ;;  %v4382_v61 = vld [vmem:[#allocation2 + $0x88] sm:$0xff] }
 0x33f   : > { %5523 = vmatprep.mubr.bf16.mxu0 %v15411_v58  ;;  %5410 = vmatprep.mubr.bf16.mxu1 %v4442_v20  ;;  %v4469_v58 = vld [vmem:[#allocation2 + $0x340] sm:$0xff] }
 0x346   : > { %5524 = vmatmul.mubr.bf16.gmra.mrb[212].mxu0 %v4143_v40  ;;  %5411 = vmatmul.mubr.bf16.gmra.mrb[192].mxu1 %v15388_v42  ;;  %v4373_v42 = vld [vmem:[#allocation2 + $0x40] sm:$0xff] }
 0x347   : > { %5531 = vmatprep.mubr.bf16.mxu0 %v15384_v3  ;;  %5418 = vmatprep.mubr.bf16.mxu1 %v4451_v59  ;;  %v4146_v3 = vld [vmem:[#allocation3 + $0x58] sm:$0xff] }
 0x34e   : > { %5532 = vmatmul.mubr.bf16.gmra.mrb[216].mxu0 %v4144_v55  ;;  %5419 = vmatmul.mubr.bf16.gmra.mrb[196].mxu1 %v15459_v57 }
 0x34f   : > { %5539 = vmatprep.mubr.bf16.mxu0 %v15451_v56  ;;  %5426 = vmatprep.mubr.bf16.mxu1 %v4460_v60  ;;  %v4418_v56 = vld [vmem:[#allocation2 + $0x1a8] sm:$0xff] }
 0x356   : > { %5540 = vmatmul.mubr.bf16.gmra.mrb[220].mxu0 %v15390_v38  ;;  %5427 = vmatmul.mubr.bf16.gmra.mrb[200].mxu1 %v15439_v39  ;;  %v4391_v38 = vld [vmem:[#allocation2 + $0xd0] sm:$0xff]  ;;  %v4409_v39 = vld [vmem:[#allocation2 + $0x160] sm:$0xff] }
 0x357   : > { %5547 = vmatprep.mubr.bf16.mxu0 %v15435_v21  ;;  %5434 = vmatprep.mubr.bf16.mxu1 %v4469_v58  ;;  %v4400_v21 = vld [vmem:[#allocation2 + $0x118] sm:$0xff] }
 0x35e   : > { %5548 = vmatmul.mubr.bf16.gmra.mrb[224].mxu0 %v4146_v3  ;;  %5435 = vmatmul.mubr.bf16.gmra.mrb[204].mxu1 %v15476_v41 }
 0x35f   : > { %5555 = vmatprep.mubr.bf16.mxu0 %v15471_v44  ;;  %13249 = vmatprep.mubr.bf16.mxu1 %v4373_v42  ;;  %v4454_v44 = vld [vmem:[#allocation2 + $0x2c8] sm:$0xff] }
 0x366   : > { %5556 = vmatmul.mubr.bf16.gmra.mrb[228].mxu0 %v15425_v33  ;;  %13250 = vmatmul.mubr.bf16.vlgmr.msra.gmra.mrb[208].mxu1 %v4382_v61 }
 0x367   : > { %5563 = vmatprep.mubr.bf16.mxu0 %v15466_v8  ;;  %13253 = vmatprep.mubr.bf16.mxu1 %v4391_v38 }
 0x36e   : > { %5564 = vmatmul.mubr.bf16.gmra.mrb[232].mxu0 %v15423_v45  ;;  %13254 = vmatmul.mubr.bf16.gmra.mrb[212].mxu1 %v4400_v21  ;;  %v15525_v45 = vld [vmem:[%s16755_s7] ss:$0 sm:$0xff] }
 0x36f   : > { %13257 = vmatprep.mubr.bf16.mxu1 %v4409_v39 }
 0x375   : > { %v12000_v63 = vpop.f32.mrb[112].mxu1 }
 0x376   : > { %13258 = vmatmul.mubr.bf16.gmra.mrb[216].mxu1 %v4418_v56  ;;  %v12001_v31 = vpop.f32.mrb[113].mxu1 }
 0x377   : > { %13261 = vmatprep.mubr.bf16.mxu1 %v4427_v49  ;;  %v12002_v57 = vadd.f32 %v12001_v31, %v12000_v63  ;;  %v12003_v33 = vpop.f32.mrb[114].mxu1 }
 0x378   : > { %v12004_v0 = vpop.f32.mrb[115].mxu1 }
 0x379   : > { %v12005_v27 = vadd.f32 %v12004_v0, %v12003_v33  ;;  %v5091_v29 = vadd.f32 %v12002_v57, %v15525_v45 }
 0x37b   : > { %v5094_v2 = vadd.f32 %v12005_v27, %v15525_v45 }
 0x37d   : > { %v12006_v30 = vpop.f32.mrb[116].mxu1 }
 0x37e   : > { %13262 = vmatmul.mubr.bf16.gmra.mrb[220].mxu1 %v4436_v7  ;;  %v12007_v10 = vpop.f32.mrb[117].mxu1 }
 0x37f   : > { %13265 = vmatprep.mubr.bf16.mxu1 %v4445_v34  ;;  %v12008_v37 = vadd.f32 %v12007_v10, %v12006_v30  ;;  %v12009_v14 = vpop.f32.mrb[118].mxu1 }
 0x380   : > { %v12010_v19 = vpop.f32.mrb[119].mxu1 }
 0x381   : > { %v12011_v32 = vadd.f32 %v12010_v19, %v12009_v14  ;;  %v5099_v12 = vadd.f32 %v12008_v37, %v15525_v45 }
 0x382   : > { %v12088_v9 = vpop.f32.mrb[140].mxu0 }
 0x383   : > { %v12089_v54 = vpop.f32.mrb[141].mxu0  ;;  %v5102_v28 = vadd.f32 %v12011_v32, %v15525_v45 }
 0x384   : > { %v12090_v8 = vadd.f32 %v12089_v54, %v12088_v9  ;;  %v12091_v35 = vpop.f32.mrb[142].mxu0 }
 0x385   : > { %v12092_v41 = vpop.f32.mrb[143].mxu0  ;;  %v12012_v51 = vpop.f32.mrb[120].mxu1 }
 0x386   : > { %13266 = vmatmul.mubr.bf16.gmra.mrb[224].mxu1 %v4454_v44  ;;  %v12093_v22 = vadd.f32 %v12092_v41, %v12091_v35  ;;  %v15529_v43 = vadd.f32 %v12090_v8, %v5091_v29  ;;  %v12013_v48 = vpop.f32.mrb[121].mxu1 }
 0x387   : > { %13269 = vmatprep.mubr.bf16.mxu1 %v4463_v16  ;;  %v12014_v24 = vadd.f32 %v12013_v48, %v12012_v51  ;;  %v12015_v50 = vpop.f32.mrb[122].mxu1 }
 0x388   : > { %v15531_v23 = vadd.f32 %v12093_v22, %v5094_v2  ;;  %v12016_v17 = vpop.f32.mrb[123].mxu1 }
 0x389   : > { %v12017_v46 = vadd.f32 %v12016_v17, %v12015_v50  ;;  %v5107_v60 = vadd.f32 %v12014_v24, %v15525_v45 }
 0x38b   : > { %v5110_v61 = vadd.f32 %v12017_v46, %v15525_v45 }
 0x38d   : > { %v12094_v5 = vpop.f32.mrb[144].mxu0 }
 0x38e   : > { %v12095_v25 = vpop.f32.mrb[145].mxu0  ;;  %13270 = vmatmul.mubr.bf16.gmra.mrb[228].mxu1 %v4472_v15 }
 0x38f   : > { %v12096_v47 = vadd.f32 %v12095_v25, %v12094_v5  ;;  %v12097_v11 = vpop.f32.mrb[146].mxu0  ;;  %v12018_v4 = vpop.f32.mrb[124].mxu1 }
 0x390   : > { %v12098_v18 = vpop.f32.mrb[147].mxu0  ;;  %v12019_v6 = vpop.f32.mrb[125].mxu1 }
 0x391   : > { %v12099_v62 = vadd.f32 %v12098_v18, %v12097_v11  ;;  %v15535_v53 = vadd.f32 %v12096_v47, %v5099_v12  ;;  %v12020_v52 = vadd.f32 %v12019_v6, %v12018_v4  ;;  %v12021_v13 = vpop.f32.mrb[126].mxu1 }
 0x392   : > { %v12022_v40 = vpop.f32.mrb[127].mxu1 }
 0x393   : > { %v15537_v1 = vadd.f32 %v12099_v62, %v5102_v28  ;;  %v12023_v58 = vadd.f32 %v12022_v40, %v12021_v13  ;;  %v5115_v7 = vadd.f32 %v12020_v52, %v15525_v45 }
 0x395   : > { %v12100_v26 = vpop.f32.mrb[148].mxu0  ;;  %v5118_v9 = vadd.f32 %v12023_v58, %v15525_v45 }
 0x396   : > { %v12101_v20 = vpop.f32.mrb[149].mxu0 }
 0x397   : > { %v12102_v59 = vadd.f32 %v12101_v20, %v12100_v26  ;;  %v12103_v55 = vpop.f32.mrb[150].mxu0  ;;  %v12024_v21 = vpop.f32.mrb[128].mxu1  ;;  %v13801_v20 = vld [vmem:[#allocation11 + $0x40] sm:$0xff]  }
 0x398   : > { %v12104_v3 = vpop.f32.mrb[151].mxu0  ;;  %v12025_v56 = vpop.f32.mrb[129].mxu1  ;;  %12356 = vmatprep.subr.bf16.mxu1 %v13801_v20 }
 0x399   : > { %v12105_v42 = vadd.f32 %v12104_v3, %v12103_v55  ;;  %v15541_v38 = vadd.f32 %v12102_v59, %v5107_v60  ;;  %v12026_v63 = vadd.f32 %v12025_v56, %v12024_v21  ;;  %v12027_v31 = vpop.f32.mrb[130].mxu1  ;;  %v13802_v59 = vld [vmem:[#allocation11] sm:$0xff]   ;;  %v13803_v56 = vld [vmem:[#allocation11 + $0x48] sm:$0xff]  }
 0x39a   : > { %v12028_v33 = vpop.f32.mrb[131].mxu1  ;;  %12357 = vmatpush3.bf16.msra.mxu1 %v13802_v59  ;;  %v13814_v59 = vld [vmem:[#allocation11 + $0x90] sm:$0xff]  }
 0x39b   : > { %v15543_v39 = vadd.f32 %v12105_v42, %v5110_v61  ;;  %v12029_v34 = vadd.f32 %v12028_v33, %v12027_v31  ;;  %v5123_v22 = vadd.f32 %v12026_v63, %v15525_v45  ;;  %v13804_v33 = vld [vmem:[#allocation11 + $0x8] sm:$0xff]   ;;  %12358 = vmatprep.subr.bf16.mxu1 %v13803_v56 }
 0x39d   : > { %v5126_v5 = vadd.f32 %v12029_v34, %v15525_v45 }
 0x39e   : > { %12359 = vmatpush3.bf16.msra.mxu1 %v13804_v33 }
 0x39f   : > { %v12106_v49 = vpop.f32.mrb[152].mxu0  ;;  %v12030_v14 = vpop.f32.mrb[132].mxu1 }
 0x3a0   : > { %v12107_v57 = vpop.f32.mrb[153].mxu0  ;;  %v12031_v19 = vpop.f32.mrb[133].mxu1 }
 0x3a1   : > { %v12108_v0 = vadd.f32 %v12107_v57, %v12106_v49  ;;  %v12109_v27 = vpop.f32.mrb[154].mxu0  ;;  %v12032_v35 = vadd.f32 %v12031_v19, %v12030_v14  ;;  %v12033_v29 = vpop.f32.mrb[134].mxu1 }
 0x3a2   : > { %v12110_v30 = vpop.f32.mrb[155].mxu0  ;;  %v12034_v44 = vpop.f32.mrb[135].mxu1 }
 0x3a3   : > { %v12111_v10 = vadd.f32 %v12110_v30, %v12109_v27  ;;  %v15547_v37 = vadd.f32 %v12108_v0, %v5115_v7  ;;  %v12035_v2 = vadd.f32 %v12034_v44, %v12033_v29  ;;  %v5131_v28 = vadd.f32 %v12032_v35, %v15525_v45  ;;  %v13807_v30 = vld [vmem:[#allocation11 + $0x50] sm:$0xff]   ;;  %v13806_v44 = vld [vmem:[#allocation11 + $0x80] sm:$0xff]  }
 0x3a4   : > { %12360 = vmatprep.subr.bf16.mxu1 %v13807_v30 }
 0x3a5   : > { %v15549_v54 = vadd.f32 %v12111_v10, %v5118_v9  ;;  %v5134_v52 = vadd.f32 %v12035_v2, %v15525_v45  ;;  %v13808_v9 = vld [vmem:[#allocation11 + $0x10] sm:$0xff]  }
 0x3a6   : > { %12361 = vmatpush3.bf16.msra.mxu1 %v13808_v9  ;;  %v13828_v9 = vld [vmem:[#allocation11 + $0x30] sm:$0xff]  }
 0x3a8   : > { %v12112_v8 = vpop.f32.mrb[156].mxu0 }
 0x3a9   : > { %v12113_v32 = vpop.f32.mrb[157].mxu0  ;;  %v12036_v50 = vpop.f32.mrb[136].mxu1 }
 0x3aa   : > { %v12114_v41 = vadd.f32 %v12113_v32, %v12112_v8  ;;  %v12115_v16 = vpop.f32.mrb[158].mxu0  ;;  %v12037_v17 = vpop.f32.mrb[137].mxu1  ;;  %v13805_v8 = vld [vmem:[#allocation11 + $0xc0] sm:$0xff]  }
 0x3ab   : > { %v12116_v51 = vpop.f32.mrb[159].mxu0  ;;  %v12038_v11 = vadd.f32 %v12037_v17, %v12036_v50  ;;  %v12039_v12 = vpop.f32.mrb[138].mxu1  ;;  %12432 = vmatprep.subr.bf16.mxu0 %v13805_v8  ;;  %v13813_v50 = vld [vmem:[#allocation11 + $0x18] sm:$0xff]   ;;  %v13819_v8 = vld [vmem:[#allocation11 + $0xe0] sm:$0xff]  }
 0x3ac   : > { %v12117_v48 = vadd.f32 %v12116_v51, %v12115_v16  ;;  %v15553_v24 = vadd.f32 %v12114_v41, %v5123_v22  ;;  %v12040_v15 = vpop.f32.mrb[139].mxu1  ;;  %v13811_v22 = vld [vmem:[#allocation11 + $0x58] sm:$0xff]   ;;  %12433 = vmatpush3.bf16.msra.mxu0 %v13806_v44  ;;  %v13820_v44 = vld [vmem:[#allocation11 + $0xa0] sm:$0xff]  }
 0x3ad   : > { %v12041_v4 = vadd.f32 %v12040_v15, %v12039_v12  ;;  %v5139_v31 = vadd.f32 %v12038_v11, %v15525_v45  ;;  %12362 = vmatprep.subr.bf16.mxu1 %v13811_v22 }
 0x3ae   : > { %v15555_v25 = vadd.f32 %v12117_v48, %v5126_v5  ;;  %12363 = vmatpush3.bf16.msra.mxu1 %v13813_v50 }
 0x3af   : > { %v5142_v7 = vadd.f32 %v12041_v4, %v15525_v45  ;;  %v13818_v4 = vld [vmem:[#allocation11 + $0x20] sm:$0xff]  }
 0x3b1   : > { %v12118_v47 = vpop.f32.mrb[160].mxu0  ;;  %v12042_v40 = vpop.f32.mrb[140].mxu1 }
 0x3b2   : > { %v12119_v46 = vpop.f32.mrb[161].mxu0  ;;  %v12043_v60 = vpop.f32.mrb[141].mxu1 }
 0x3b3   : > { %v12120_v18 = vadd.f32 %v12119_v46, %v12118_v47  ;;  %v12121_v62 = vpop.f32.mrb[162].mxu0  ;;  %v12044_v3 = vadd.f32 %v12043_v60, %v12042_v40  ;;  %v12045_v42 = vpop.f32.mrb[142].mxu1  ;;  %v13809_v47 = vld [vmem:[#allocation11 + $0xc8] sm:$0xff]  }
 0x3b4   : > { %v12122_v6 = vpop.f32.mrb[163].mxu0  ;;  %v12046_v21 = vpop.f32.mrb[143].mxu1  ;;  %v13810_v46 = vld [vmem:[#allocation11 + $0x88] sm:$0xff]   ;;  %12434 = vmatprep.subr.bf16.mxu0 %v13809_v47  ;;  %v13832_v47 = vld [vmem:[#allocation11 + $0x38] sm:$0xff]  }
 0x3b5   : > { %v12123_v26 = vadd.f32 %v12122_v6, %v12121_v62  ;;  %v15559_v13 = vadd.f32 %v12120_v18, %v5131_v28  ;;  %v12047_v57 = vadd.f32 %v12046_v21, %v12045_v42  ;;  %v5147_v48 = vadd.f32 %v12044_v3, %v15525_v45  ;;  %v13817_v18 = vld [vmem:[#allocation11 + $0x60] sm:$0xff]   ;;  %12435 = vmatpush3.bf16.msra.mxu0 %v13810_v46  ;;  %v13821_v3 = vld [vmem:[#allocation11 + $0x68] sm:$0xff]  }
 0x3b6   : > { %12364 = vmatprep.subr.bf16.mxu1 %v13817_v18  ;;  %v13824_v18 = vld [vmem:[#allocation11 + $0xa8] sm:$0xff]  }
 0x3b7   : > { %v15561_v55 = vadd.f32 %v12123_v26, %v5134_v52  ;;  %v5150_v12 = vadd.f32 %v12047_v57, %v15525_v45  ;;  %v13812_v26 = vld [vmem:[#allocation11 + $0xd0] sm:$0xff]   ;;  %12365 = vmatpush3.bf16.msra.mxu1 %v13818_v4 }
 0x3b8   : > { %12436 = vmatprep.subr.bf16.mxu0 %v13812_v26  ;;  %12366 = vmatprep.subr.bf16.mxu1 %v13821_v3  ;;  %v13825_v26 = vld [vmem:[#allocation11 + $0xf0] sm:$0xff]  }
 0x3b9   : > { %v12124_v58 = vpop.f32.mrb[164].mxu0  ;;  %v12048_v10 = vpop.f32.mrb[144].mxu1  ;;  %12437 = vmatpush3.bf16.msra.mxu0 %v13814_v59  ;;  %v13826_v59 = vld [vmem:[#allocation11 + $0xb0] sm:$0xff]  }
 0x3ba   : > { %v12125_v61 = vpop.f32.mrb[165].mxu0  ;;  %v12049_v19 = vpop.f32.mrb[145].mxu1 }
 0x3bb   : > { %v12126_v49 = vadd.f32 %v12125_v61, %v12124_v58  ;;  %v12127_v63 = vpop.f32.mrb[166].mxu0  ;;  %v12050_v29 = vadd.f32 %v12049_v19, %v12048_v10  ;;  %v12051_v32 = vpop.f32.mrb[146].mxu1 }
 0x3bc   : > { %v12128_v0 = vpop.f32.mrb[167].mxu0  ;;  %v12052_v16 = vpop.f32.mrb[147].mxu1 }
 0x3bd   : > { %v12129_v27 = vadd.f32 %v12128_v0, %v12127_v63  ;;  %v15565_v34 = vadd.f32 %v12126_v49, %v5139_v31  ;;  %v12053_v5 = vadd.f32 %v12052_v16, %v12051_v32  ;;  %v5155_v21 = vadd.f32 %v12050_v29, %v15525_v45  ;;  %v13823_v49 = vld [vmem:[#allocation11 + $0x28] sm:$0xff]   ;;  %v13815_v31 = vld [vmem:[#allocation11 + $0xd8] sm:$0xff]  }
 0x3be   : > { %12367 = vmatpush3.bf16.msra.mxu1 %v13823_v49  ;;  %12438 = vmatprep.subr.bf16.mxu0 %v13815_v31  ;;  %v13829_v49 = vld [vmem:[#allocation11 + $0xf8] sm:$0xff]  }
 0x3bf   : > { %v15567_v14 = vadd.f32 %v12129_v27, %v5142_v7  ;;  %v5158_v33 = vadd.f32 %v12053_v5, %v15525_v45  ;;  %v13816_v27 = vld [vmem:[#allocation11 + $0x98] sm:$0xff]   ;;  %v13827_v7 = vld [vmem:[#allocation11 + $0x70] sm:$0xff]  }
 0x3c0   : > { %12439 = vmatpush3.bf16.msra.mxu0 %v13816_v27  ;;  %12368 = vmatprep.subr.bf16.mxu1 %v13827_v7  ;;  %v13831_v5 = vld [vmem:[#allocation11 + $0x78] sm:$0xff]  }
 0x3c1   : > { %v12130_v35 = vpop.f32.mrb[168].mxu0  ;;  %v12054_v62 = vpop.f32.mrb[148].mxu1  ;;  %12440 = vmatprep.subr.bf16.mxu0 %v13819_v8 }
 0x3c2   : > { %v12131_v41 = vpop.f32.mrb[169].mxu0  ;;  %v12055_v6 = vpop.f32.mrb[149].mxu1  ;;  %12369 = vmatpush3.bf16.msra.mxu1 %v13828_v9 }
 0x3c3   : > { %v12132_v2 = vadd.f32 %v12131_v41, %v12130_v35  ;;  %v12133_v51 = vpop.f32.mrb[170].mxu0  ;;  %v12056_v20 = vadd.f32 %v12055_v6, %v12054_v62  ;;  %v12057_v40 = vpop.f32.mrb[150].mxu1  ;;  %12370 = vmatprep.subr.bf16.mxu1 %v13831_v5 }
 0x3c4   : > { %v12134_v17 = vpop.f32.mrb[171].mxu0  ;;  %v12058_v58 = vpop.f32.mrb[151].mxu1  ;;  %12441 = vmatpush3.bf16.msra.mxu0 %v13820_v44 }
 0x3c5   : > { %v12135_v11 = vadd.f32 %v12134_v17, %v12133_v51  ;;  %v15571_v15 = vadd.f32 %v12132_v2, %v5147_v48  ;;  %v12059_v56 = vadd.f32 %v12058_v58, %v12057_v40  ;;  %v5163_v51 = vadd.f32 %v12056_v20, %v15525_v45  ;;  %v13822_v17 = vld [vmem:[#allocation11 + $0xe8] sm:$0xff]  }
 0x3c6   : > { %12442 = vmatprep.subr.bf16.mxu0 %v13822_v17  ;;  %12371 = vmatpush3.bf16.msra.mxu1 %v13832_v47 }
 0x3c7   : > { %v15573_v28 = vadd.f32 %v12135_v11, %v5150_v12  ;;  %v5166_v12 = vadd.f32 %v12059_v56, %v15525_v45 }
 0x3c8   : > { %12443 = vmatpush3.bf16.msra.mxu0 %v13824_v18 }
 0x3c9   : > { %v12136_v52 = vpop.f32.mrb[172].mxu0  ;;  %v12060_v30 = vpop.f32.mrb[152].mxu1  ;;  %12444 = vmatprep.subr.bf16.mxu0 %v13825_v26 }
 0x3ca   : > { %v12137_v60 = vpop.f32.mrb[173].mxu0  ;;  %v12061_v19 = vpop.f32.mrb[153].mxu1 }
 0x3cb   : > { %v12138_v42 = vadd.f32 %v12137_v60, %v12136_v52  ;;  %v12139_v61 = vpop.f32.mrb[174].mxu0  ;;  %v12062_v29 = vadd.f32 %v12061_v19, %v12060_v30  ;;  %v12063_v32 = vpop.f32.mrb[154].mxu1 }
 0x3cc   : > { %v12140_v63 = vpop.f32.mrb[175].mxu0  ;;  %v12064_v16 = vpop.f32.mrb[155].mxu1  ;;  %12445 = vmatpush3.bf16.msra.mxu0 %v13826_v59 }
 0x3cd   : > { %v12141_v57 = vadd.f32 %v12140_v63, %v12139_v61  ;;  %v15577_v0 = vadd.f32 %v12138_v42, %v5155_v21  ;;  %v12065_v48 = vadd.f32 %v12064_v16, %v12063_v32  ;;  %v5171_v61 = vadd.f32 %v12062_v29, %v15525_v45  ;;  %12446 = vmatprep.subr.bf16.mxu0 %v13829_v49 }
 0x3cf   : > { %v15579_v10 = vadd.f32 %v12141_v57, %v5158_v33  ;;  %v5174_v31 = vadd.f32 %v12065_v48, %v15525_v45  ;;  %v13830_v33 = vld [vmem:[#allocation11 + $0xb8] sm:$0xff]  }
 0x3d0   : > { %12447 = vmatpush3.bf16.msra.mxu0 %v13830_v33 }
 0x3d1   : > { %v12142_v35 = vpop.f32.mrb[176].mxu0  ;;  %v12066_v62 = vpop.f32.mrb[156].mxu1 }
 0x3d2   : > { %v12143_v41 = vpop.f32.mrb[177].mxu0  ;;  %v12067_v6 = vpop.f32.mrb[157].mxu1 }
 0x3d3   : > { %v12144_v22 = vadd.f32 %v12143_v41, %v12142_v35  ;;  %v12145_v2 = vpop.f32.mrb[178].mxu0  ;;  %v12068_v20 = vadd.f32 %v12067_v6, %v12066_v62  ;;  %v12069_v40 = vpop.f32.mrb[158].mxu1 }
 0x3d4   : > { %v12146_v50 = vpop.f32.mrb[179].mxu0  ;;  %v12070_v58 = vpop.f32.mrb[159].mxu1 }
 0x3d5   : > { %v12147_v11 = vadd.f32 %v12146_v50, %v12145_v2  ;;  %v15583_v46 = vadd.f32 %v12144_v22, %v5163_v51  ;;  %v12071_v21 = vadd.f32 %v12070_v58, %v12069_v40  ;;  %v5179_v41 = vadd.f32 %v12068_v20, %v15525_v45 }
 0x3d7   : > { %v15585_v4 = vadd.f32 %v12147_v11, %v5166_v12  ;;  %v5182_v48 = vadd.f32 %v12071_v21, %v15525_v45 }
 0x3d9   : > { %v12148_v52 = vpop.f32.mrb[180].mxu0  ;;  %v12176_v27 = vpop.f32.mrb[160].mxu1 }
 0x3da   : > { %v12149_v60 = vpop.f32.mrb[181].mxu0  ;;  %v12177_v30 = vpop.f32.mrb[161].mxu1 }
 0x3db   : > { %v12150_v3 = vadd.f32 %v12149_v60, %v12148_v52  ;;  %v12151_v42 = vpop.f32.mrb[182].mxu0  ;;  %v12178_v19 = vadd.f32 %v12177_v30, %v12176_v27  ;;  %v12179_v8 = vpop.f32.mrb[162].mxu1 }
 0x3dc   : > { %v12152_v56 = vpop.f32.mrb[183].mxu0  ;;  %v12180_v29 = vpop.f32.mrb[163].mxu1 }
 0x3dd   : > { %v12153_v63 = vadd.f32 %v12152_v56, %v12151_v42  ;;  %v15589_v57 = vadd.f32 %v12150_v3, %v5171_v61  ;;  %v12181_v16 = vadd.f32 %v12180_v29, %v12179_v8  ;;  %v5349_v22 = vadd.f32 %v12178_v19, %v15529_v43 }
 0x3df   : > { %v15591_v7 = vadd.f32 %v12153_v63, %v5174_v31  ;;  %v5352_v50 = vadd.f32 %v12181_v16, %v15531_v23 }
 0x3e1   : > { %v12154_v9 = vpop.f32.mrb[184].mxu0  ;;  %v12182_v17 = vpop.f32.mrb[164].mxu1 }
 0x3e2   : > { %v12155_v35 = vpop.f32.mrb[185].mxu0  ;;  %v12183_v11 = vpop.f32.mrb[165].mxu1 }
 0x3e3   : > { %v12156_v32 = vadd.f32 %v12155_v35, %v12154_v9  ;;  %v12157_v44 = vpop.f32.mrb[186].mxu0  ;;  %v12184_v18 = vadd.f32 %v12183_v11, %v12182_v17  ;;  %v12185_v62 = vpop.f32.mrb[166].mxu1  ;;  %v13833_v9 = vld [vmem:[#allocation11 + $0x140] sm:$0xff]  }
 0x3e4   : > { %v12158_v2 = vpop.f32.mrb[187].mxu0  ;;  %v12186_v26 = vpop.f32.mrb[167].mxu1  ;;  %12508 = vmatprep.subr.bf16.mxu1 %v13833_v9 }
 0x3e5   : > { %v12159_v51 = vadd.f32 %v12158_v2, %v12157_v44  ;;  %v15596_v5 = vadd.f32 %v12156_v32, %v5179_v41  ;;  %v12187_v43 = vadd.f32 %v12186_v26, %v12185_v62  ;;  %v5357_v40 = vadd.f32 %v12184_v18, %v15535_v53 }
 0x3e7   : > { %v15599_v47 = vadd.f32 %v12159_v51, %v5182_v48  ;;  %v5360_v23 = vadd.f32 %v12187_v43, %v15537_v1 }
 0x3e9   : > { %v12264_v12 = vpop.f32.mrb[188].mxu0  ;;  %v12188_v58 = vpop.f32.mrb[168].mxu1 }
 0x3ea   : > { %v12265_v6 = vpop.f32.mrb[189].mxu0  ;;  %v12189_v42 = vpop.f32.mrb[169].mxu1 }
 0x3eb   : > { %v12266_v52 = vadd.f32 %v12265_v6, %v12264_v12  ;;  %v12267_v20 = vpop.f32.mrb[190].mxu0  ;;  %v12190_v21 = vadd.f32 %v12189_v42, %v12188_v58  ;;  %v12191_v56 = vpop.f32.mrb[170].mxu1 }
 0x3ec   : > { %v12268_v59 = vpop.f32.mrb[191].mxu0  ;;  %v12192_v63 = vpop.f32.mrb[171].mxu1 }
 0x3ed   : > { %v12269_v45 = vadd.f32 %v12268_v59, %v12267_v20  ;;  %v15602_v60 = vadd.f32 %v12266_v52, %v5349_v22  ;;  %v12193_v27 = vadd.f32 %v12192_v63, %v12191_v56  ;;  %v5365_v53 = vadd.f32 %v12190_v21, %v15541_v38 }
 0x3ef   : > { %v15605_v3 = vadd.f32 %v12269_v45, %v5352_v50  ;;  %v5368_v1 = vadd.f32 %v12193_v27, %v15543_v39 }
 0x3f1   : > { %v12270_v61 = vpop.f32.mrb[192].mxu0  ;;  %v12194_v35 = vpop.f32.mrb[172].mxu1 }
 0x3f2   : > { %v12271_v49 = vpop.f32.mrb[193].mxu0  ;;  %v12195_v32 = vpop.f32.mrb[173].mxu1 }
 0x3f3   : > { %v12272_v31 = vadd.f32 %v12271_v49, %v12270_v61  ;;  %v12273_v33 = vpop.f32.mrb[194].mxu0  ;;  %v12196_v41 = vadd.f32 %v12195_v32, %v12194_v35  ;;  %v12197_v16 = vpop.f32.mrb[174].mxu1 }
 0x3f4   : > { %v12274_v30 = vpop.f32.mrb[195].mxu0  ;;  %v12198_v2 = vpop.f32.mrb[175].mxu1 }
 0x3f5   : > { %v12275_v19 = vadd.f32 %v12274_v30, %v12273_v33  ;;  %v15608_v8 = vadd.f32 %v12272_v31, %v5357_v40  ;;  %v12199_v38 = vadd.f32 %v12198_v2, %v12197_v16  ;;  %v5373_v50 = vadd.f32 %v12196_v41, %v15547_v37 }
 0x3f7   : > { %v15611_v29 = vadd.f32 %v12275_v19, %v5360_v23  ;;  %v5376_v39 = vadd.f32 %v12199_v38, %v15549_v54 }
 0x3f9   : > { %v12276_v44 = vpop.f32.mrb[196].mxu0  ;;  %v12200_v18 = vpop.f32.mrb[176].mxu1 }
 0x3fa   : > { %v12277_v22 = vpop.f32.mrb[197].mxu0  ;;  %v12201_v6 = vpop.f32.mrb[177].mxu1 }
 0x3fb   : > { %v12278_v51 = vadd.f32 %v12277_v22, %v12276_v44  ;;  %v12279_v48 = vpop.f32.mrb[198].mxu0  ;;  %v12202_v52 = vadd.f32 %v12201_v6, %v12200_v18  ;;  %v12203_v20 = vpop.f32.mrb[178].mxu1 }
 0x3fc   : > { %v12280_v17 = vpop.f32.mrb[199].mxu0  ;;  %v12204_v40 = vpop.f32.mrb[179].mxu1 }
 0x3fd   : > { %v12281_v11 = vadd.f32 %v12280_v17, %v12279_v48  ;;  %v15614_v12 = vadd.f32 %v12278_v51, %v5365_v53  ;;  %v12205_v23 = vadd.f32 %v12204_v40, %v12203_v20  ;;  %v5381_v37 = vadd.f32 %v12202_v52, %v15553_v24 }
 0x3ff   : > { %v15617_v62 = vadd.f32 %v12281_v11, %v5368_v1  ;;  %v5384_v54 = vadd.f32 %v12205_v23, %v15555_v25  ;;  %v13843_v1 = vld [vmem:[#allocation11 + $0x1c0] sm:$0xff]  }
 0x400   : > { %12584 = vmatprep.subr.bf16.mxu0 %v13843_v1 }
 0x401   : > { %v12282_v26 = vpop.f32.mrb[200].mxu0  ;;  %v12206_v21 = vpop.f32.mrb[180].mxu1 }
 0x402   : > { %v12283_v43 = vpop.f32.mrb[201].mxu0  ;;  %v12207_v49 = vpop.f32.mrb[181].mxu1 }
 0x403   : > { %v12284_v59 = vadd.f32 %v12283_v43, %v12282_v26  ;;  %v12285_v45 = vpop.f32.mrb[202].mxu0  ;;  %v12208_v31 = vadd.f32 %v12207_v49, %v12206_v21  ;;  %v12209_v33 = vpop.f32.mrb[182].mxu1 }
 0x404   : > { %v12286_v58 = vpop.f32.mrb[203].mxu0  ;;  %v12210_v53 = vpop.f32.mrb[183].mxu1 }
 0x405   : > { %v12287_v42 = vadd.f32 %v12286_v58, %v12285_v45  ;;  %v15620_v61 = vadd.f32 %v12284_v59, %v5373_v50  ;;  %v12211_v19 = vadd.f32 %v12210_v53, %v12209_v33  ;;  %v5389_v24 = vadd.f32 %v12208_v31, %v15559_v13 }
 0x407   : > { %v15623_v56 = vadd.f32 %v12287_v42, %v5376_v39  ;;  %v5392_v25 = vadd.f32 %v12211_v19, %v15561_v55 }
 0x409   : > { %v12288_v63 = vpop.f32.mrb[204].mxu0  ;;  %v12212_v41 = vpop.f32.mrb[184].mxu1 }
 0x40a   : > { %v12289_v27 = vpop.f32.mrb[205].mxu0  ;;  %v12213_v22 = vpop.f32.mrb[185].mxu1 }
 0x40b   : > { %v12290_v30 = vadd.f32 %v12289_v27, %v12288_v63  ;;  %v12291_v9 = vpop.f32.mrb[206].mxu0  ;;  %v12214_v51 = vadd.f32 %v12213_v22, %v12212_v41  ;;  %v12215_v48 = vpop.f32.mrb[186].mxu1 }
 0x40c   : > { %v12292_v35 = vpop.f32.mrb[207].mxu0  ;;  %v12216_v50 = vpop.f32.mrb[187].mxu1 }
 0x40d   : > { %v12293_v32 = vadd.f32 %v12292_v35, %v12291_v9  ;;  %v15626_v44 = vadd.f32 %v12290_v30, %v5381_v37  ;;  %v12217_v13 = vadd.f32 %v12216_v50, %v12215_v48  ;;  %v5397_v39 = vadd.f32 %v12214_v51, %v15565_v34 }
 0x40f   : > { %v15629_v16 = vadd.f32 %v12293_v32, %v5384_v54  ;;  %v5400_v55 = vadd.f32 %v12217_v13, %v15567_v14 }
 0x411   : > { %v12294_v2 = vpop.f32.mrb[208].mxu0  ;;  %v12218_v52 = vpop.f32.mrb[188].mxu1 }
 0x412   : > { %v12295_v38 = vpop.f32.mrb[209].mxu0  ;;  %v12219_v43 = vpop.f32.mrb[189].mxu1 }
 0x413   : > { %v12296_v17 = vadd.f32 %v12295_v38, %v12294_v2  ;;  %v12297_v11 = vpop.f32.mrb[210].mxu0  ;;  %v12220_v59 = vadd.f32 %v12219_v43, %v12218_v52  ;;  %v12221_v45 = vpop.f32.mrb[190].mxu1 }
 0x414   : > { %v12298_v18 = vpop.f32.mrb[211].mxu0  ;;  %v12222_v37 = vpop.f32.mrb[191].mxu1 }
 0x415   : > { %v12299_v6 = vadd.f32 %v12298_v18, %v12297_v11  ;;  %v15632_v26 = vadd.f32 %v12296_v17, %v5389_v24  ;;  %v12223_v54 = vadd.f32 %v12222_v37, %v12221_v45  ;;  %v5405_v34 = vadd.f32 %v12220_v59, %v15571_v15 }
 0x417   : > { %v15635_v20 = vadd.f32 %v12299_v6, %v5392_v25  ;;  %v5408_v63 = vadd.f32 %v12223_v54, %v15573_v28 }
 0x419   : > { %v12300_v40 = vpop.f32.mrb[212].mxu0  ;;  %v12224_v14 = vpop.f32.mrb[192].mxu1 }
 0x41a   : > { %v12301_v23 = vpop.f32.mrb[213].mxu0  ;;  %v12225_v27 = vpop.f32.mrb[193].mxu1 }
 0x41b   : > { %v12302_v58 = vadd.f32 %v12301_v23, %v12300_v40  ;;  %v12303_v42 = vpop.f32.mrb[214].mxu0  ;;  %v12226_v30 = vadd.f32 %v12225_v27, %v12224_v14  ;;  %v12227_v9 = vpop.f32.mrb[194].mxu1 }
 0x41c   : > { %v12304_v21 = vpop.f32.mrb[215].mxu0  ;;  %v12228_v24 = vpop.f32.mrb[195].mxu1 }
 0x41d   : > { %v12305_v49 = vadd.f32 %v12304_v21, %v12303_v42  ;;  %v15639_v31 = vadd.f32 %v12302_v58, %v5397_v39  ;;  %v5413_v32 = vadd.f32 %v12226_v30, %v15577_v0  ;;  %v12229_v15 = vadd.f32 %v12228_v24, %v12227_v9 }
 0x41f   : > { %v15641_v33 = vadd.f32 %v12305_v49, %v5400_v55  ;;  %v5416_v28 = vadd.f32 %v12229_v15, %v15579_v10 }
 0x421   : > { %v12306_v53 = vpop.f32.mrb[216].mxu0  ;;  %v12230_v2 = vpop.f32.mrb[196].mxu1 }
 0x422   : > { %v12307_v19 = vpop.f32.mrb[217].mxu0  ;;  %v12231_v48 = vpop.f32.mrb[197].mxu1 }
 0x423   : > { %v12308_v1 = vadd.f32 %v12307_v19, %v12306_v53  ;;  %v12309_v35 = vpop.f32.mrb[218].mxu0  ;;  %v12232_v50 = vadd.f32 %v12231_v48, %v12230_v2  ;;  %v12233_v17 = vpop.f32.mrb[198].mxu1 }
 0x424   : > { %v12310_v25 = vpop.f32.mrb[219].mxu0  ;;  %v12234_v13 = vpop.f32.mrb[199].mxu1 }
 0x425   : > { %v12311_v41 = vadd.f32 %v12310_v25, %v12309_v35  ;;  %v15645_v22 = vadd.f32 %v12308_v1, %v5405_v34  ;;  %v5421_v0 = vadd.f32 %v12232_v50, %v15583_v46  ;;  %v12235_v6 = vadd.f32 %v12234_v13, %v12233_v17 }
 0x427   : > { %v15647_v51 = vadd.f32 %v12311_v41, %v5408_v63  ;;  %v5424_v10 = vadd.f32 %v12235_v6, %v15585_v4 }
 0x429   : > { %v12312_v38 = vpop.f32.mrb[220].mxu0  ;;  %v12236_v40 = vpop.f32.mrb[200].mxu1 }
 0x42a   : > { %v12313_v11 = vpop.f32.mrb[221].mxu0  ;;  %v12237_v45 = vpop.f32.mrb[201].mxu1 }
 0x42b   : > { %v12314_v39 = vadd.f32 %v12313_v11, %v12312_v38  ;;  %v12315_v18 = vpop.f32.mrb[222].mxu0  ;;  %v12238_v37 = vadd.f32 %v12237_v45, %v12236_v40  ;;  %v12239_v58 = vpop.f32.mrb[202].mxu1 }
 0x42c   : > { %v12316_v55 = vpop.f32.mrb[223].mxu0  ;;  %v12240_v54 = vpop.f32.mrb[203].mxu1 }
 0x42d   : > { %v12317_v52 = vadd.f32 %v12316_v55, %v12315_v18  ;;  %v15651_v43 = vadd.f32 %v12314_v39, %v5413_v32  ;;  %v5429_v46 = vadd.f32 %v12238_v37, %v15589_v57  ;;  %v12241_v49 = vadd.f32 %v12240_v54, %v12239_v58 }
 0x42f   : > { %v15653_v59 = vadd.f32 %v12317_v52, %v5416_v28  ;;  %v5432_v4 = vadd.f32 %v12241_v49, %v15591_v7 }
 0x431   : > { %v12318_v23 = vpop.f32.mrb[224].mxu0  ;;  %v12242_v53 = vpop.f32.mrb[204].mxu1 }
 0x432   : > { %v12319_v42 = vpop.f32.mrb[225].mxu0  ;;  %v12243_v9 = vpop.f32.mrb[205].mxu1 }
 0x433   : > { %v12320_v34 = vadd.f32 %v12319_v42, %v12318_v23  ;;  %v12321_v21 = vpop.f32.mrb[226].mxu0  ;;  %v12244_v24 = vadd.f32 %v12243_v9, %v12242_v53  ;;  %v12245_v1 = vpop.f32.mrb[206].mxu1 }
 0x434   : > { %v12322_v63 = vpop.f32.mrb[227].mxu0  ;;  %v12246_v32 = vpop.f32.mrb[207].mxu1 }
 0x435   : > { %v12323_v14 = vadd.f32 %v12322_v63, %v12321_v21  ;;  %v15657_v27 = vadd.f32 %v12320_v34, %v5421_v0  ;;  %v5437_v57 = vadd.f32 %v12244_v24, %v15596_v5  ;;  %v12247_v41 = vadd.f32 %v12246_v32, %v12245_v1 }
 0x437   : > { %v15659_v30 = vadd.f32 %v12323_v14, %v5424_v10  ;;  %v5440_v7 = vadd.f32 %v12247_v41, %v15599_v47 }
 0x439   : > { %v12324_v19 = vpop.f32.mrb[228].mxu0  ;;  %v13251_v38 = vpop.f32.mrb[208].mxu1 }
 0x43a   : > { %v12325_v35 = vpop.f32.mrb[229].mxu0  ;;  %v5615_v17 = vadd.f32 %v13251_v38, %v15608_v8  ;;  %v5606_v11 = vpop.f32.mrb[209].mxu1  ;;  %v13834_v38 = vld [vmem:[#allocation11 + $0x100] sm:$0xff]  }
 0x43b   : > { %v12326_v15 = vadd.f32 %v12325_v35, %v12324_v19  ;;  %v12327_v25 = vpop.f32.mrb[230].mxu0  ;;  %v5607_v39 = vadd.f32 %v5606_v11, %v15602_v60  ;;  %v13252_v18 = vpop.f32.mrb[210].mxu1 }
 0x43c   : > { %v12328_v28 = vpop.f32.mrb[231].mxu0  ;;  %v5618_v5 = vadd.f32 %v13252_v18, %v15611_v29  ;;  %v5609_v6 = vpop.f32.mrb[211].mxu1  ;;  %v5703_v40 = vmax.f32 %v5615_v17, 0.0  ;;  %v13835_v18 = vld [vmem:[#allocation11 + $0x148] sm:$0xff]  }
 0x43d   : > { %v12329_v2 = vadd.f32 %v12328_v28, %v12327_v25  ;;  %v15663_v48 = vadd.f32 %v12326_v15, %v5429_v46  ;;  %v5610_v47 = vadd.f32 %v5609_v6, %v15605_v3  ;;  %v5701_v37 = vmax.f32 %v5607_v39, 0.0  ;;  %v5862_v28 = vld [vmem:[#allocation2 + $0x50] sm:$0xff] }
 0x43e   : > { %v5704_v45 = vmax.f32 %v5618_v5, 0.0 }
 0x43f   : > { %v15665_v50 = vadd.f32 %v12329_v2, %v5432_v4  ;;  %v5702_v58 = vmax.f32 %v5610_v47, 0.0 }
 0x440   : > { %v5726_v42 = vpack.c.bf16 %v5704_v45, %v5703_v40 }
 0x441   : > { %v12330_v13 = vpop.f32.mrb[232].mxu0  ;;  %v5725_v54 = vpack.c.bf16 %v5702_v58, %v5701_v37  ;;  %v13255_v60 = vpop.f32.mrb[212].mxu1 }
 0x442   : > { %v12331_v0 = vpop.f32.mrb[233].mxu0  ;;  %5738 = vst [vmem:[#allocation4 + $0x8] sm:$0xff] %v5726_v42  ;;  %v5789_v29 = vshll.u32 %v5726_v42, 16  ;;  %5760 = vst [vmem:[#allocation2 + $0x48] sm:$0xff] %v5726_v42  ;;  %v5631_v21 = vadd.f32 %v13255_v60, %v15620_v61  ;;  %v5622_v46 = vpop.f32.mrb[213].mxu1  ;;  %7139 = vmatprep.mubr.bf16.mxu0 %v5726_v42  ;;  %v5787_v14 = vshrl.u32 %v5726_v42, 16 }
 0x443   : > { %v12332_v55 = vadd.f32 %v12331_v0, %v12330_v13  ;;  %v12333_v52 = vpop.f32.mrb[234].mxu0  ;;  %5737 = vst [vmem:[#allocation4] sm:$0xff] %v5725_v54  ;;  %v5782_v3 = vshll.u32 %v5725_v54, 16  ;;  %v5623_v49 = vadd.f32 %v5622_v46, %v15614_v12  ;;  %v13256_v63 = vpop.f32.mrb[214].mxu1  ;;  %v5780_v19 = vshrl.u32 %v5725_v54, 16  ;;  %v6050_v61 = vld [vmem:[#allocation2 + $0x20] sm:$0xff] }
 0x444   : > { %v12334_v10 = vpop.f32.mrb[235].mxu0  ;;  %v5791_v4 = vrot.slane %v5789_v29, 1  ;;  %v5634_v53 = vadd.f32 %v13256_v63, %v15623_v56  ;;  %v5625_v9 = vpop.f32.mrb[215].mxu1  ;;  %v5707_v32 = vmax.f32 %v5631_v21, 0.0  ;;  %v13836_v42 = vld [vmem:[#allocation11 + $0x108] sm:$0xff]   ;;  %v6056_v60 = vld [vmem:[#allocation2 + $0xb0] sm:$0xff] }
 0x445   : > { %v12335_v23 = vadd.f32 %v12334_v10, %v12333_v52  ;;  %v15671_v8 = vadd.f32 %v12332_v55, %v5437_v57  ;;  %v5784_v24 = vrot.slane %v5782_v3, 1  ;;  %v5626_v1 = vadd.f32 %v5625_v9, %v15617_v62 }
 0x446   : > { %v5792_v35 = vor.u32 %v5791_v4, %v5787_v14  ;;  %v5708_v15 = vmax.f32 %v5634_v53, 0.0  ;;  %v5705_v57 = vmax.f32 %v5623_v49, 0.0  ;;  %v6053_v49 = vld [vmem:[#allocation2 + $0x68] sm:$0xff]  ;;  %v5868_v14 = vld [vmem:[#allocation2 + $0xe0] sm:$0xff] }
 0x447   : > { %v15673_v34 = vadd.f32 %v12335_v23, %v5440_v7  ;;  %v5785_v25 = vor.u32 %v5784_v24, %v5780_v19  ;;  %v5706_v41 = vmax.f32 %v5626_v1, 0.0  ;;  %v5859_v7 = vld [vmem:[#allocation2 + $0x8] sm:$0xff]  ;;  %v5865_v24 = vld [vmem:[#allocation2 + $0x98] sm:$0xff]  ;;  %v13838_v1 = vld [vmem:[#allocation11 + $0x110] sm:$0xff]  }
 0x448   : > { %v6051_v12 = vsel %vm14626_vm2, %v5792_v35, %v6050_v61  ;;  %v15681_v2 = vpack.c.bf16 %v5708_v15, %v5707_v32  ;;  %v5863_v56 = vsel %vm14626_vm2, %v5792_v35, %v5862_v28  ;;  %v6241_v35 = vld [vmem:[#allocation2 + $0x38] sm:$0xff] }
 0x449   : > { %v5890_v17 = vld [vmem:[#allocation4 + $0x8] sm:$0xfe]  ;;  %6052 = vst [vmem:[#allocation2 + $0x20] sm:$0xff] %v6051_v12  ;;  %v15685_v11 = vpack.c.bf16 %v5706_v41, %v5705_v57  ;;  %v13259_v13 = vpop.f32.mrb[216].mxu1  ;;  %v5860_v39 = vsel %vm14626_vm2, %v5785_v25, %v5859_v7  ;;  %5864 = vst [vmem:[#allocation2 + $0x50] sm:$0xff] %v5863_v56  ;;  %v13844_v25 = vld [vmem:[#allocation11 + $0x180] sm:$0xff]  }
 0x44a   : > { %v6080_v62 = vld [vmem:[#allocation4 + $0x8] sm:$0xfe]  ;;  %v5910_v0 = vrot.slane %v5890_v17, 1  ;;  %v5889_v6 = vld [vmem:[#allocation4] sm:$0xfe]  ;;  %5740 = vst [vmem:[#allocation4 + $0x18] sm:$0xff] %v15681_v2  ;;  %7026 = vmatprep.mubr.bf16.mxu1 %v5860_v39  ;;  %v5647_v10 = vadd.f32 %v13259_v13, %v15632_v26 }
 0x44b   : > { %v6100_v5 = vrot.slane %v6080_v62, 1  ;;  %v5803_v55 = vshll.u32 %v15681_v2, 16  ;;  %6142 = vst [vmem:[#allocation2 + $0x78] sm:$0xff] %v15681_v2  ;;  %5861 = vst [vmem:[#allocation2 + $0x8] sm:$0xff] %v5860_v39  ;;  %v5909_v52 = vrot.slane %v5889_v6, 1  ;;  %v5796_v47 = vshll.u32 %v15685_v11, 16  ;;  %7027 = vmatmul.mubr.bf16.vlgmr.msra.gmra.mrb[232].mxu1 %v5725_v54 }
 0x44c   : > { %5739 = vst [vmem:[#allocation4 + $0x10] sm:$0xff] %v15685_v11  ;;  %6141 = vst [vmem:[#allocation2 + $0x30] sm:$0xff] %v15685_v11  ;;  %v5638_v40 = vpop.f32.mrb[217].mxu1  ;;  %v5801_v45 = vshrl.u32 %v15681_v2, 16  ;;  %7034 = vmatprep.mubr.bf16.mxu1 %v5863_v56  ;;  %12509 = vmatpush3.bf16.msra.mxu1 %v13834_v38  ;;  %v5794_v29 = vshrl.u32 %v15685_v11, 16  ;;  %v13837_v54 = vld [vmem:[#allocation11 + $0x150] sm:$0xff]  }
 0x44d   : > { %5930 = vst [vmem:[#allocation2 + $0x58] sm:$0x7f] %v5910_v0  ;;  %6120 = vst [vmem:[#allocation2 + $0x28] sm:$0x7f] %v6100_v5  ;;  %v5805_v23 = vrot.slane %v5803_v55, 1  ;;  %v5639_v37 = vadd.f32 %v5638_v40, %v15626_v44  ;;  %v13260_v58 = vpop.f32.mrb[218].mxu1  ;;  %12510 = vmatprep.subr.bf16.mxu1 %v13835_v18 }
 0x44e   : > { %5929 = vst [vmem:[#allocation2 + $0x10] sm:$0x7f] %v5909_v52  ;;  %v5798_v21 = vrot.slane %v5796_v47, 1  ;;  %v5650_v26 = vadd.f32 %v13260_v58, %v15635_v20  ;;  %v5641_v46 = vpop.f32.mrb[219].mxu1  ;;  %v6244_v44 = vld [vmem:[#allocation2 + $0x80] sm:$0xff]  ;;  %v5711_v53 = vmax.f32 %v5647_v10, 0.0 }
 0x44f   : > { %v5806_v3 = vor.u32 %v5805_v23, %v5801_v45  ;;  %v5642_v63 = vadd.f32 %v5641_v46, %v15629_v16  ;;  %v5709_v9 = vmax.f32 %v5639_v37, 0.0  ;;  %v6330_v15 = vld [vmem:[#allocation2 + $0x48] sm:$0xff]  ;;  %v13839_v16 = vld [vmem:[#allocation11 + $0x158] sm:$0xff]  }
 0x450   : > { %v5799_v4 = vor.u32 %v5798_v21, %v5794_v29  ;;  %v5712_v19 = vmax.f32 %v5650_v26, 0.0  ;;  %12511 = vmatpush3.bf16.msra.mxu1 %v13836_v42  ;;  %v13845_v10 = vld [vmem:[#allocation11 + $0x1c8] sm:$0xff]   ;;  %v13840_v42 = vld [vmem:[#allocation11 + $0x118] sm:$0xff]   ;;  %v13841_v21 = vld [vmem:[#allocation11 + $0x160] sm:$0xff]  }
 0x451   : > { %v6057_v32 = vsel %vm14626_vm2, %v5806_v3, %v6056_v60  ;;  %v5710_v20 = vmax.f32 %v5642_v63, 0.0  ;;  %v15705_v61 = vsel %vm14626_vm2, %v5806_v3, %v5868_v14  ;;  %v15709_v57 = vsel %vm14626_vm2, %v5806_v3, %v6244_v44  ;;  %v5892_v41 = vld [vmem:[#allocation4 + $0x18] sm:$0xfe]  ;;  %12512 = vmatprep.subr.bf16.mxu1 %v13837_v54  ;;  %v13263_v5 = vpop.f32.mrb[220].mxu1  ;;  %v6062_v63 = vld [vmem:[#allocation2 + $0x140] sm:$0xff] }
 0x452   : > { %v6082_v28 = vld [vmem:[#allocation4 + $0x18] sm:$0xfe]  ;;  %6058 = vst [vmem:[#allocation2 + $0xb0] sm:$0xff] %v6057_v32  ;;  %v6054_v7 = vsel %vm14626_vm2, %v5799_v4, %v6053_v49  ;;  %v15713_v56 = vpack.c.bf16 %v5712_v19, %v5711_v53  ;;  %v5866_v38 = vsel %vm14626_vm2, %v5799_v4, %v5865_v24  ;;  %5870 = vst [vmem:[#allocation2 + $0xe0] sm:$0xff] %v15705_v61  ;;  %v5912_v62 = vrot.slane %v5892_v41, 1  ;;  %v5654_v37 = vpop.f32.mrb[221].mxu1 }
 0x453   : > { %v6272_v12 = vld [vmem:[#allocation4 + $0x18] sm:$0xfe]  ;;  %v15720_v17 = vsel %vm14626_vm2, %v5799_v4, %v6241_v35  ;;  %6246 = vst [vmem:[#allocation2 + $0x80] sm:$0xff] %v15709_v57  ;;  %v6102_v13 = vrot.slane %v6082_v28, 1  ;;  %v5891_v18 = vld [vmem:[#allocation4 + $0x10] sm:$0xfe]  ;;  %v15723_v0 = vpack.c.bf16 %v5710_v20, %v5709_v9  ;;  %v5663_v47 = vadd.f32 %v13263_v5, %v15645_v22  ;;  %7035 = vmatmul.mubr.bf16.gmra.mrb[236].mxu1 %v6330_v15 }
 0x454   : > { %v6292_v39 = vrot.slane %v6272_v12, 1  ;;  %6055 = vst [vmem:[#allocation2 + $0x68] sm:$0xff] %v6054_v7  ;;  %5867 = vst [vmem:[#allocation2 + $0x98] sm:$0xff] %v5866_v38  ;;  %v5911_v6 = vrot.slane %v5891_v18, 1  ;;  %v6081_v55 = vld [vmem:[#allocation4 + $0x10] sm:$0xfe]  ;;  %7042 = vmatprep.mubr.bf16.mxu1 %v5866_v38  ;;  %12513 = vmatpush3.bf16.msra.mxu1 %v13838_v1  ;;  %v5655_v60 = vadd.f32 %v5654_v37, %v15639_v31 }
 0x455   : > { %6243 = vst [vmem:[#allocation2 + $0x38] sm:$0xff] %v15720_v17  ;;  %v6271_v52 = vld [vmem:[#allocation4 + $0x10] sm:$0xfe]  ;;  %5742 = vst [vmem:[#allocation4 + $0x28] sm:$0xff] %v15713_v56  ;;  %v6101_v40 = vrot.slane %v6081_v55, 1  ;;  %v5817_v23 = vshll.u32 %v15713_v56, 16  ;;  %12514 = vmatprep.subr.bf16.mxu1 %v13839_v16 }
 0x456   : > { %6144 = vst [vmem:[#allocation2 + $0x108] sm:$0xff] %v15713_v56  ;;  %6312 = vst [vmem:[#allocation2 + $0x88] sm:$0x7f] %v6292_v39  ;;  %v6291_v45 = vrot.slane %v6271_v52, 1  ;;  %v6323_v58 = vld [vmem:[#allocation2 + $0x10] sm:$0xff]  ;;  %v5810_v22 = vshll.u32 %v15723_v0, 16 }
 0x457   : > { %5932 = vst [vmem:[#allocation2 + $0xe8] sm:$0x7f] %v5912_v62  ;;  %6122 = vst [vmem:[#allocation2 + $0xb8] sm:$0x7f] %v6102_v13  ;;  %v13264_v29 = vpop.f32.mrb[222].mxu1  ;;  %7140 = vmatmul.mubr.bf16.vlgmr.msra.gmra.mrb[236].mxu0 %v6323_v58  ;;  %v5815_v26 = vshrl.u32 %v15713_v56, 16 }
 0x458   : > { %5741 = vst [vmem:[#allocation4 + $0x20] sm:$0xff] %v15723_v0  ;;  %6143 = vst [vmem:[#allocation2 + $0xc0] sm:$0xff] %v15723_v0  ;;  %v5819_v46 = vrot.slane %v5817_v23, 1  ;;  %v5666_v54 = vadd.f32 %v13264_v29, %v15647_v51  ;;  %v5657_v3 = vpop.f32.mrb[223].mxu1  ;;  %7147 = vmatprep.mubr.bf16.mxu0 %v15685_v11  ;;  %12585 = vmatpush3.bf16.msra.mxu0 %v13844_v25  ;;  %v13846_v49 = vld [vmem:[#allocation11 + $0x188] sm:$0xff]   ;;  %v5808_v14 = vshrl.u32 %v15723_v0, 16 }
 0x459   : > { %5931 = vst [vmem:[#allocation2 + $0xa0] sm:$0x7f] %v5911_v6  ;;  %6121 = vst [vmem:[#allocation2 + $0x70] sm:$0x7f] %v6101_v40  ;;  %v5812_v31 = vrot.slane %v5810_v22, 1  ;;  %v5658_v44 = vadd.f32 %v5657_v3, %v15641_v33  ;;  %12586 = vmatprep.subr.bf16.mxu0 %v13845_v10  ;;  %v13848_v4 = vld [vmem:[#allocation11 + $0x1d0] sm:$0xff]   ;;  %12515 = vmatpush3.bf16.msra.mxu1 %v13840_v42 }
 0x45a   : > { %6311 = vst [vmem:[#allocation2 + $0x40] sm:$0x7f] %v6291_v45  ;;  %v15739_v53 = vor.u32 %v5819_v46, %v5815_v26  ;;  %v6059_v9 = vld [vmem:[#allocation2 + $0xf8] sm:$0xff]  ;;  %v5715_v19 = vmax.f32 %v5663_v47, 0.0  ;;  %v5716_v24 = vmax.f32 %v5666_v54, 0.0  ;;  %v5874_v51 = vld [vmem:[#allocation2 + $0x170] sm:$0xff]  ;;  %12516 = vmatprep.subr.bf16.mxu1 %v13841_v21 }
 0x45b   : > { %v13842_v1 = vld [vmem:[#allocation11 + $0x120] sm:$0xff]   ;;  %v15741_v35 = vor.u32 %v5812_v31, %v5808_v14  ;;  %v5713_v32 = vmax.f32 %v5655_v60, 0.0  ;;  %v5714_v20 = vmax.f32 %v5658_v44, 0.0  ;;  %v13267_v15 = vpop.f32.mrb[224].mxu1  ;;  %v13847_v16 = vld [vmem:[#allocation11 + $0x168] sm:$0xff]   ;;  %v13850_v25 = vld [vmem:[#allocation11 + $0x190] sm:$0xff]   ;;  %7043 = vmatmul.mubr.bf16.gmra.mrb[240].mxu1 %v15685_v11 }
 0x45c   : > { %v13851_v41 = vld [vmem:[#allocation11 + $0x1d8] sm:$0xff]   ;;  %v5894_v33 = vld [vmem:[#allocation4 + $0x28] sm:$0xfe]  ;;  %v6063_v28 = vsel %vm14626_vm2, %v15739_v53, %v6062_v63  ;;  %v15746_v38 = vpack.c.bf16 %v5716_v24, %v5715_v19  ;;  %v15749_v62 = vadd.f32 %v13267_v15, %v15657_v27  ;;  %v15754_v13 = vsel %vm14626_vm2, %v15739_v53, %v5874_v51  ;;  %12587 = vmatpush3.bf16.msra.mxu0 %v13846_v49  ;;  %v5670_v47 = vpop.f32.mrb[225].mxu1  ;;  %v13855_v29 = vld [vmem:[#allocation11 + $0x170] sm:$0xff]  }
 0x45d   : > { %v6084_v12 = vld [vmem:[#allocation4 + $0x28] sm:$0xfe]  ;;  %v5914_v18 = vrot.slane %v5894_v33, 1  ;;  %6064 = vst [vmem:[#allocation2 + $0x140] sm:$0xff] %v6063_v28  ;;  %v6060_v52 = vsel %vm14626_vm2, %v15741_v35, %v6059_v9  ;;  %5876 = vst [vmem:[#allocation2 + $0x170] sm:$0xff] %v15754_v13  ;;  %12588 = vmatprep.subr.bf16.mxu0 %v13848_v4  ;;  %v15763_v45 = vpack.c.bf16 %v5714_v20, %v5713_v32  ;;  %v6332_v37 = vld [vmem:[#allocation2 + $0x58] sm:$0xff]  ;;  %7050 = vmatprep.mubr.bf16.mxu1 %v15705_v61 }
 0x45e   : > { %v6274_v7 = vld [vmem:[#allocation4 + $0x28] sm:$0xfe]  ;;  %v6104_v5 = vrot.slane %v6084_v12, 1  ;;  %6061 = vst [vmem:[#allocation2 + $0xf8] sm:$0xff] %v6060_v52  ;;  %5744 = vst [vmem:[#allocation4 + $0x38] sm:$0xff] %v15746_v38  ;;  %v15766_v23 = vadd.f32 %v5670_v47, %v15651_v43  ;;  %12517 = vmatpush3.bf16.msra.mxu1 %v13842_v1  ;;  %v5831_v42 = vshll.u32 %v15746_v38, 16 }
 0x45f   : > { %v13849_v39 = vld [vmem:[#allocation11 + $0x128] sm:$0xff]   ;;  %v6294_v6 = vrot.slane %v6274_v7, 1  ;;  %v5893_v55 = vld [vmem:[#allocation4 + $0x20] sm:$0xfe]  ;;  %6146 = vst [vmem:[#allocation2 + $0x198] sm:$0xff] %v15746_v38  ;;  %v13268_v22 = vpop.f32.mrb[226].mxu1  ;;  %7148 = vmatmul.mubr.bf16.gmra.mrb[240].mxu0 %v6332_v37  ;;  %12518 = vmatprep.subr.bf16.mxu1 %v13847_v16 }
 0x460   : > { %v5913_v27 = vrot.slane %v5893_v55, 1  ;;  %v6083_v10 = vld [vmem:[#allocation4 + $0x20] sm:$0xfe]  ;;  %5934 = vst [vmem:[#allocation2 + $0x178] sm:$0x7f] %v5914_v18  ;;  %v5871_v60 = vld [vmem:[#allocation2 + $0x128] sm:$0xff]  ;;  %v5682_v26 = vadd.f32 %v13268_v22, %v15659_v30  ;;  %7155 = vmatprep.mubr.bf16.mxu0 %v15681_v2  ;;  %12589 = vmatpush3.bf16.msra.mxu0 %v13850_v25 }
 0x461   : > { %v6273_v40 = vld [vmem:[#allocation4 + $0x20] sm:$0xfe]  ;;  %6124 = vst [vmem:[#allocation2 + $0x148] sm:$0x7f] %v6104_v5  ;;  %6314 = vst [vmem:[#allocation2 + $0x118] sm:$0x7f] %v6294_v6  ;;  %v5872_v14 = vsel %vm14626_vm2, %v15741_v35, %v5871_v60  ;;  %12590 = vmatprep.subr.bf16.mxu0 %v13851_v41 }
 0x462   : > { %v6103_v11 = vrot.slane %v6083_v10, 1  ;;  %v6293_v58 = vrot.slane %v6273_v40, 1  ;;  %5933 = vst [vmem:[#allocation2 + $0x130] sm:$0x7f] %v5913_v27  ;;  %v5829_v43 = vshrl.u32 %v15746_v38, 16  ;;  %5743 = vst [vmem:[#allocation4 + $0x30] sm:$0xff] %v15763_v45  ;;  %12519 = vmatpush3.bf16.msra.mxu1 %v13849_v39 }
 0x463   : > { %v5824_v61 = vshll.u32 %v15763_v45, 16  ;;  %v5719_v21 = vmax.f32 %v15749_v62, 0.0  ;;  %v5673_v46 = vpop.f32.mrb[227].mxu1  ;;  %v13852_v54 = vld [vmem:[#allocation11 + $0x198] sm:$0xff]   ;;  %v6247_v3 = vld [vmem:[#allocation2 + $0xc8] sm:$0xff]  ;;  %v5833_v49 = vrot.slane %v5831_v42, 1  ;;  %12520 = vmatprep.subr.bf16.mxu1 %v13855_v29  ;;  %7051 = vmatmul.mubr.bf16.gmra.mrb[244].mxu1 %v15681_v2 }
 0x464   : > { %6123 = vst [vmem:[#allocation2 + $0x100] sm:$0x7f] %v6103_v11  ;;  %6313 = vst [vmem:[#allocation2 + $0xd0] sm:$0x7f] %v6293_v58  ;;  %v5674_v63 = vadd.f32 %v5673_v46, %v15653_v59  ;;  %v15783_v30 = vsel %vm14626_vm2, %v15741_v35, %v6247_v3  ;;  %v6250_v31 = vld [vmem:[#allocation2 + $0x110] sm:$0xff]  ;;  %v5822_v4 = vshrl.u32 %v15763_v45, 16  ;;  %12591 = vmatpush3.bf16.msra.mxu0 %v13852_v54  ;;  %7058 = vmatprep.mubr.bf16.mxu1 %v5872_v14 }
 0x465   : > { %v6068_v44 = vld [vmem:[#allocation2 + $0x1d0] sm:$0xff]  ;;  %v5826_v9 = vrot.slane %v5824_v61, 1  ;;  %v5720_v19 = vmax.f32 %v5682_v26, 0.0  ;;  %5873 = vst [vmem:[#allocation2 + $0x128] sm:$0xff] %v5872_v14  ;;  %v13853_v24 = vld [vmem:[#allocation11 + $0x1e0] sm:$0xff]   ;;  %6249 = vst [vmem:[#allocation2 + $0xc8] sm:$0xff] %v15783_v30  ;;  %v15790_v59 = vsel %vm14626_vm2, %v15739_v53, %v6250_v31  ;;  %v15792_v51 = vor.u32 %v5833_v49, %v5829_v43 }
 0x466   : > { %v6065_v1 = vld [vmem:[#allocation2 + $0x188] sm:$0xff]  ;;  %v5717_v35 = vmax.f32 %v15766_v23, 0.0  ;;  %v5718_v32 = vmax.f32 %v5674_v63, 0.0  ;;  %v13271_v20 = vpop.f32.mrb[228].mxu1  ;;  %v5880_v15 = vld [vmem:[#allocation2 + $0x200] sm:$0xff]  ;;  %v13856_v16 = vld [vmem:[#allocation11 + $0x130] sm:$0xff]   ;;  %12592 = vmatprep.subr.bf16.mxu0 %v13853_v24 }
 0x467   : > { %6252 = vst [vmem:[#allocation2 + $0x110] sm:$0xff] %v15790_v59  ;;  %v5827_v25 = vor.u32 %v5826_v9, %v5822_v4  ;;  %v15796_v41 = vpack.c.bf16 %v5720_v19, %v5719_v21  ;;  %v15799_v33 = vadd.f32 %v13271_v20, %v15671_v8  ;;  %v5686_v53 = vpop.f32.mrb[229].mxu1  ;;  %v5877_v28 = vld [vmem:[#allocation2 + $0x1b8] sm:$0xff]  ;;  %v13854_v12 = vld [vmem:[#allocation11 + $0x1a0] sm:$0xff]   ;;  %v13857_v7 = vld [vmem:[#allocation11 + $0x1e8] sm:$0xff]   ;;  %v6069_v5 = vsel %vm14626_vm2, %v15792_v51, %v6068_v44 }
 0x468   : > { %v13861_v62 = vld [vmem:[#allocation11 + $0x178] sm:$0xff]   ;;  %v15804_v52 = vpack.c.bf16 %v5718_v32, %v5717_v35  ;;  %v15807_v47 = vadd.f32 %v5686_v53, %v15663_v48  ;;  %v15813_v8 = vsel %vm14626_vm2, %v15792_v51, %v5880_v15  ;;  %6070 = vst [vmem:[#allocation2 + $0x1d0] sm:$0xff] %v6069_v5  ;;  %v13272_v37 = vpop.f32.mrb[230].mxu1  ;;  %v6341_v48 = vld [vmem:[#allocation2 + $0xa0] sm:$0xff]  ;;  %12521 = vmatpush3.bf16.msra.mxu1 %v13856_v16  ;;  %v13859_v49 = vld [vmem:[#allocation11 + $0x1f0] sm:$0xff]  }
 0x469   : > { %v6253_v39 = vld [vmem:[#allocation2 + $0x158] sm:$0xff]  ;;  %v15817_v23 = vsel %vm14626_vm2, %v5827_v25, %v6065_v1  ;;  %5746 = vst [vmem:[#allocation4 + $0x48] sm:$0xff] %v15796_v41  ;;  %5882 = vst [vmem:[#allocation2 + $0x200] sm:$0xff] %v15813_v8  ;;  %v5895_v11 = vld [vmem:[#allocation4 + $0x30] sm:$0xfe]  ;;  %v5698_v22 = vadd.f32 %v13272_v37, %v15673_v34  ;;  %7156 = vmatmul.mubr.bf16.gmra.mrb[244].mxu0 %v6341_v48  ;;  %v15826_v60 = vsel %vm14626_vm2, %v5827_v25, %v5877_v28  ;;  %v5689_v26 = vpop.f32.mrb[231].mxu1 }
 0x46a   : > { %v5896_v18 = vld [vmem:[#allocation4 + $0x38] sm:$0xfe]  ;;  %v6085_v58 = vld [vmem:[#allocation4 + $0x30] sm:$0xfe]  ;;  %6067 = vst [vmem:[#allocation2 + $0x188] sm:$0xff] %v15817_v23  ;;  %5745 = vst [vmem:[#allocation4 + $0x40] sm:$0xff] %v15804_v52  ;;  %v15830_v29 = vsel %vm14626_vm2, %v5827_v25, %v6253_v39  ;;  %7163 = vmatprep.mubr.bf16.mxu0 %v15723_v0  ;;  %12593 = vmatpush3.bf16.msra.mxu0 %v13854_v12  ;;  %v5690_v44 = vadd.f32 %v5689_v26, %v15665_v50 }
 0x46b   : > { %v6086_v6 = vld [vmem:[#allocation4 + $0x38] sm:$0xfe]  ;;  %v5916_v27 = vrot.slane %v5896_v18, 1  ;;  %v6275_v42 = vld [vmem:[#allocation4 + $0x30] sm:$0xfe]  ;;  %v5915_v43 = vrot.slane %v5895_v11, 1  ;;  %12594 = vmatprep.subr.bf16.mxu0 %v13857_v7  ;;  %12522 = vmatprep.subr.bf16.mxu1 %v13861_v62 }
 0x46c   : > { %v6276_v55 = vld [vmem:[#allocation4 + $0x38] sm:$0xfe]  ;;  %v6106_v10 = vrot.slane %v6086_v6, 1  ;;  %v6105_v61 = vrot.slane %v6085_v58, 1  ;;  %v6295_v21 = vrot.slane %v6275_v42, 1  ;;  %5879 = vst [vmem:[#allocation2 + $0x1b8] sm:$0xff] %v15826_v60  ;;  %7059 = vmatmul.mubr.bf16.gmra.mrb[248].mxu1 %v15723_v0 }
 0x46d   : > { %v6296_v40 = vrot.slane %v6276_v55, 1  ;;  %v13863_v2 = vld [vmem:[#allocation11 + $0x138] sm:$0xff]   ;;  %5936 = vst [vmem:[#allocation2 + $0x208] sm:$0x7f] %v5916_v27  ;;  %v13858_v34 = vld [vmem:[#allocation11 + $0x1a8] sm:$0xff]   ;;  %v15834_v46 = vld [vmem:[#allocation11 + $0x200] sm:$0xff]   ;;  %7066 = vmatprep.mubr.bf16.mxu1 %v15754_v13 }
 0x46e   : > { %6126 = vst [vmem:[#allocation2 + $0x1d8] sm:$0x7f] %v6106_v10  ;;  %6255 = vst [vmem:[#allocation2 + $0x158] sm:$0xff] %v15830_v29  ;;  %v5845_v54 = vshll.u32 %v15796_v41, 16  ;;  %v5838_v3 = vshll.u32 %v15804_v52, 16  ;;  %v6256_v63 = vld [vmem:[#allocation2 + $0x1a0] sm:$0xff]  ;;  %12523 = vmatpush3.bf16.msra.mxu1 %v13863_v2  ;;  %12595 = vmatpush3.bf16.msra.mxu0 %v13858_v34 }
 0x46f   : > { %6316 = vst [vmem:[#allocation2 + $0x1a8] sm:$0x7f] %v6296_v40  ;;  %5935 = vst [vmem:[#allocation2 + $0x1c0] sm:$0x7f] %v5915_v43  ;;  %v5723_v14 = vmax.f32 %v15799_v33, 0.0  ;;  %v5724_v31 = vmax.f32 %v5698_v22, 0.0  ;;  %v15844_v4 = vsel %vm14626_vm2, %v15792_v51, %v6256_v63  ;;  %13273 = vmatprep.subr.bf16.mxu1 %v15834_v46  ;;  %12596 = vmatprep.subr.bf16.mxu0 %v13859_v49 }
 0x470   : > { %6125 = vst [vmem:[#allocation2 + $0x190] sm:$0x7f] %v6105_v61  ;;  %6315 = vst [vmem:[#allocation2 + $0x160] sm:$0x7f] %v6295_v21  ;;  %v5843_v9 = vshrl.u32 %v15796_v41, 16  ;;  %v5847_v19 = vrot.slane %v5845_v54, 1 }
 0x471   : > { %v5836_v24 = vshrl.u32 %v15804_v52, 16  ;;  %v5840_v1 = vrot.slane %v5838_v3, 1  ;;  %6258 = vst [vmem:[#allocation2 + $0x1a0] sm:$0xff] %v15844_v4  ;;  %v6074_v35 = vld [vmem:[#allocation2 + $0x260] sm:$0xff]  ;;  %v6071_v32 = vld [vmem:[#allocation2 + $0x218] sm:$0xff]  ;;  %v5721_v20 = vmax.f32 %v15807_v47, 0.0  ;;  %v15850_v15 = vpack.c.bf16 %v5724_v31, %v5723_v14 }
 0x472   : > { %v5722_v50 = vmax.f32 %v5690_v44, 0.0  ;;  %v6350_v16 = vld [vmem:[#allocation2 + $0xe8] sm:$0xff]  ;;  %v13860_v51 = vld [vmem:[#allocation11 + $0x1b0] sm:$0xff]   ;;  %v13862_v25 = vld [vmem:[#allocation11 + $0x1f8] sm:$0xff]   ;;  %v5848_v33 = vor.u32 %v5847_v19, %v5843_v9 }
 0x473   : > { %v5898_v53 = vld [vmem:[#allocation4 + $0x48] sm:$0xfe]  ;;  %v5841_v7 = vor.u32 %v5840_v1, %v5836_v24  ;;  %v5897_v6 = vld [vmem:[#allocation4 + $0x40] sm:$0xfe]  ;;  %5748 = vst [vmem:[#allocation4 + $0x58] sm:$0xff] %v15850_v15  ;;  %v6225_v55 = vshrl.u32 %v15850_v15, 16  ;;  %7164 = vmatmul.mubr.bf16.gmra.mrb[248].mxu0 %v6350_v16 }
 0x474   : > { %v6088_v28 = vld [vmem:[#allocation4 + $0x48] sm:$0xfe]  ;;  %v5918_v39 = vrot.slane %v5898_v53, 1  ;;  %v5886_v47 = vld [vmem:[#allocation2 + $0x290] sm:$0xff]  ;;  %v15859_v27 = vsel %vm14626_vm2, %v5848_v33, %v6074_v35  ;;  %v5917_v10 = vrot.slane %v5897_v6, 1  ;;  %v6227_v48 = vshll.u32 %v15850_v15, 16  ;;  %7171 = vmatprep.mubr.bf16.mxu0 %v15713_v56  ;;  %12597 = vmatpush3.bf16.msra.mxu0 %v13860_v51 }
 0x475   : > { %v6278_v12 = vld [vmem:[#allocation4 + $0x48] sm:$0xfe]  ;;  %v6108_v18 = vrot.slane %v6088_v28, 1  ;;  %v15863_v0 = vsel %vm14626_vm2, %v5841_v7, %v6071_v32  ;;  %v6087_v40 = vld [vmem:[#allocation4 + $0x40] sm:$0xfe]  ;;  %6076 = vst [vmem:[#allocation2 + $0x260] sm:$0xff] %v15859_v27  ;;  %v15868_v11 = vpack.c.bf16 %v5722_v50, %v5721_v20  ;;  %v5887_v21 = vsel %vm14626_vm2, %v5848_v33, %v5886_v47  ;;  %12598 = vmatprep.subr.bf16.mxu0 %v13862_v25 }
 0x476   : > { %v5883_v62 = vld [vmem:[#allocation2 + $0x248] sm:$0xff]  ;;  %v6298_v5 = vrot.slane %v6278_v12, 1  ;;  %v6277_v37 = vld [vmem:[#allocation4 + $0x40] sm:$0xfe]  ;;  %5938 = vst [vmem:[#allocation2 + $0x298] sm:$0x7f] %v5918_v39  ;;  %7067 = vmatmul.mubr.bf16.gmra.mrb[252].mxu1 %v15713_v56 }
 0x477   : > { %6128 = vst [vmem:[#allocation2 + $0x268] sm:$0x7f] %v6108_v18  ;;  %v6107_v13 = vrot.slane %v6087_v40, 1  ;;  %v6297_v2 = vrot.slane %v6277_v37, 1  ;;  %6073 = vst [vmem:[#allocation2 + $0x218] sm:$0xff] %v15863_v0  ;;  %v5884_v58 = vsel %vm14626_vm2, %v5841_v7, %v5883_v62  ;;  %v13864_v42 = vld [vmem:[#allocation11 + $0x1b8] sm:$0xff]   ;;  %7074 = vmatprep.mubr.bf16.mxu1 %v15826_v60 }
 0x478   : > { %6318 = vst [vmem:[#allocation2 + $0x238] sm:$0x7f] %v6298_v5  ;;  %v6259_v22 = vld [vmem:[#allocation2 + $0x1e8] sm:$0xff]  ;;  %v6262_v43 = vld [vmem:[#allocation2 + $0x230] sm:$0xff]  ;;  %5937 = vst [vmem:[#allocation2 + $0x250] sm:$0x7f] %v5917_v10  ;;  %12599 = vmatpush3.bf16.msra.mxu0 %v13864_v42 }
 0x479   : > { %v6229_v61 = vrot.slane %v6227_v48, 1  ;;  %5885 = vst [vmem:[#allocation2 + $0x248] sm:$0xff] %v5884_v58  ;;  %v15877_v26 = vsel %vm14626_vm2, %v5841_v7, %v6259_v22  ;;  %v15881_v34 = vsel %vm14626_vm2, %v5848_v33, %v6262_v43  ;;  %6127 = vst [vmem:[#allocation2 + $0x220] sm:$0x7f] %v6107_v13  ;;  %v6036_v54 = vshll.u32 %v15868_v11, 16  ;;  %v6268_v14 = vld [vmem:[#allocation2 + $0x2c0] sm:$0xff] }
 0x47a   : > { %6317 = vst [vmem:[#allocation2 + $0x1f0] sm:$0x7f] %v6297_v2  ;;  %5747 = vst [vmem:[#allocation4 + $0x50] sm:$0xff] %v15868_v11  ;;  %v6034_v49 = vshrl.u32 %v15868_v11, 16  ;;  %v6280_v31 = vld [vmem:[#allocation4 + $0x58] sm:$0xfe] }
 0x47b   : > { %5888 = vst [vmem:[#allocation2 + $0x290] sm:$0xff] %v5887_v21  ;;  %6261 = vst [vmem:[#allocation2 + $0x1e8] sm:$0xff] %v15877_v26  ;;  %v6230_v3 = vor.u32 %v6229_v61, %v6225_v55  ;;  %v6038_v63 = vrot.slane %v6036_v54, 1  ;;  %v6300_v9 = vrot.slane %v6280_v31, 1  ;;  %v6359_v24 = vld [vmem:[#allocation2 + $0x130] sm:$0xff]  ;;  %v6077_v1 = vld [vmem:[#allocation2 + $0x2a8] sm:$0xff] }
 0x47c   : > { %6264 = vst [vmem:[#allocation2 + $0x230] sm:$0xff] %v15881_v34  ;;  %7172 = vmatmul.mubr.bf16.gmra.mrb[252].mxu0 %v6359_v24  ;;  %v6265_v35 = vld [vmem:[#allocation2 + $0x278] sm:$0xff]  ;;  %v6377_v25 = vld [vmem:[#allocation2 + $0x1c0] sm:$0xff]  ;;  %v6386_v33 = vld [vmem:[#allocation2 + $0x208] sm:$0xff] }
 0x47d   : > { %v15891_v44 = vsel %vm14626_vm2, %v6230_v3, %v6268_v14  ;;  %v6039_v19 = vor.u32 %v6038_v63, %v6034_v49  ;;  %6320 = vst [vmem:[#allocation2 + $0x2c8] sm:$0x7f] %v6300_v9  ;;  %7179 = vmatprep.mubr.bf16.mxu0 %v15763_v45  ;;  %v6368_v51 = vld [vmem:[#allocation2 + $0x178] sm:$0xff]  ;;  %v6325_v28 = vld [vmem:[#allocation2 + $0x20] sm:$0xff]  ;;  %v6335_v12 = vld [vmem:[#allocation2 + $0x70] sm:$0xff] }
 0x47e   : > { %6270 = vst [vmem:[#allocation2 + $0x2c0] sm:$0xff] %v15891_v44  ;;  %7075 = vmatmul.mubr.bf16.gmra.mrb[0].mxu1 %v15763_v45  ;;  %v6404_v7 = vld [vmem:[#allocation2 + $0x298] sm:$0xff]  ;;  %v13867_v62 = vld [vmem:[#allocation11 + $0x210] sm:$0xff]   ;;  %v6334_v18 = vld [vmem:[#allocation2 + $0x68] sm:$0xff] }
 0x47f   : > { %v15897_v32 = vsel %vm14626_vm2, %v6039_v19, %v6077_v1  ;;  %v15902_v56 = vsel %vm14626_vm2, %v6039_v19, %v6265_v35  ;;  %7082 = vmatprep.mubr.bf16.mxu1 %v15813_v8  ;;  %v6326_v8 = vld [vmem:[#allocation2 + $0x28] sm:$0xff]  ;;  %v6395_v53 = vld [vmem:[#allocation2 + $0x250] sm:$0xff]  ;;  %v13868_v39 = vld [vmem:[#allocation11 + $0x218] sm:$0xff]  }
 0x480   : > { %6079 = vst [vmem:[#allocation2 + $0x2a8] sm:$0xff] %v15897_v32  ;;  %6267 = vst [vmem:[#allocation2 + $0x278] sm:$0xff] %v15902_v56  ;;  %v6344_v5 = vld [vmem:[#allocation2 + $0xb8] sm:$0xff]  ;;  %v6327_v6 = vld [vmem:[#allocation2 + $0x30] sm:$0xff] }
 0x481   : > { %v6089_v20 = vld [vmem:[#allocation4 + $0x50] sm:$0xfe]  ;;  %v13869_v55 = vld [vmem:[#allocation11 + $0x220] sm:$0xff]   ;;  %v6336_v10 = vld [vmem:[#allocation2 + $0x78] sm:$0xff] }
 0x482   : > { %v6279_v50 = vld [vmem:[#allocation4 + $0x50] sm:$0xfe]  ;;  %v6109_v60 = vrot.slane %v6089_v20, 1  ;;  %v13872_v37 = vld [vmem:[#allocation11 + $0x238] sm:$0xff]   ;;  %v6345_v13 = vld [vmem:[#allocation2 + $0xc0] sm:$0xff] }
 0x483   : > { %v6299_v16 = vrot.slane %v6279_v50, 1  ;;  %v6343_v47 = vld [vmem:[#allocation2 + $0xb0] sm:$0xff]  ;;  %v6352_v48 = vld [vmem:[#allocation2 + $0xf8] sm:$0xff]  ;;  %v6361_v2 = vld [vmem:[#allocation2 + $0x140] sm:$0xff] }
 0x484   : > { %6129 = vst [vmem:[#allocation2 + $0x2b0] sm:$0x7f] %v6109_v60  ;;  %7180 = vmatmul.mubr.bf16.gmra.mrb[0].mxu0 %v6368_v51  ;;  %v13871_v40 = vld [vmem:[#allocation11 + $0x230] sm:$0xff]   ;;  %v6354_v42 = vld [vmem:[#allocation2 + $0x108] sm:$0xff]  ;;  %v6372_v43 = vld [vmem:[#allocation2 + $0x198] sm:$0xff] }
 0x485   : > { %6319 = vst [vmem:[#allocation2 + $0x280] sm:$0x7f] %v6299_v16  ;;  %7187 = vmatprep.mubr.bf16.mxu0 %v15746_v38  ;;  %v6379_v22 = vld [vmem:[#allocation2 + $0x1d0] sm:$0xff]  ;;  %v6398_v61 = vld [vmem:[#allocation2 + $0x268] sm:$0xff]  ;;  %v13873_v63 = vld [vmem:[#allocation13 + $0x40] sm:$0xff]  }
 0x486   : > { %7083 = vmatmul.mubr.bf16.gmra.mrb[4].mxu1 %v15746_v38  ;;  %v13866_v38 = vld [vmem:[#allocation11 + $0x208] sm:$0xff]   ;;  %12678 = vmatprep.subr.bf16.mxu0 %v13873_v63  ;;  %v13874_v31 = vld [vmem:[#allocation13] sm:$0xff]  }
 0x487   : > { %7090 = vmatprep.mubr.bf16.mxu1 %v5884_v58  ;;  %v6371_v58 = vld [vmem:[#allocation2 + $0x190] sm:$0xff]  ;;  %v15938_v9 = vld [vmem:[%s16756_s8] ss:$0 sm:$0xff]  ;;  %v13875_v51 = vld [vmem:[#allocation13 + $0x48] sm:$0xff]  }
 0x48c   : > { %7188 = vmatmul.mubr.bf16.gmra.mrb[4].mxu0 %v6377_v25 }
 0x48d   : > { %7195 = vmatprep.mubr.bf16.mxu0 %v15804_v52 }
 0x48e   : > { %7091 = vmatmul.mubr.bf16.gmra.mrb[8].mxu1 %v15804_v52 }
 0x48f   : > { %7098 = vmatprep.mubr.bf16.mxu1 %v5887_v21  ;;  %v6392_v21 = vld [vmem:[#allocation2 + $0x238] sm:$0xff] }
 0x494   : > { %7196 = vmatmul.mubr.bf16.gmra.mrb[8].mxu0 %v6386_v33 }
 0x495   : > { %7203 = vmatprep.mubr.bf16.mxu0 %v15796_v41 }
 0x496   : > { %7099 = vmatmul.mubr.bf16.gmra.mrb[12].mxu1 %v15796_v41 }
 0x497   : > { %7252 = vmatprep.mubr.bf16.mxu1 %v6326_v8 }
 0x49c   : > { %7204 = vmatmul.mubr.bf16.gmra.mrb[12].mxu0 %v6395_v53 }
 0x49d   : > { %7211 = vmatprep.mubr.bf16.mxu0 %v15868_v11 }
 0x49e   : > { %7253 = vmatmul.mubr.bf16.vlgmr.msra.gmra.mrb[16].mxu1 %v6325_v28 }
 0x49f   : > { %7260 = vmatprep.mubr.bf16.mxu1 %v6335_v12  ;;  %13274 = vmatpush3.bf16.msra.mxu1 %v15834_v46  ;;  %v13870_v46 = vld [vmem:[#allocation11 + $0x228] sm:$0xff]  }
 0x4a0   : > { %13275 = vmatprep.subr.bf16.mxu1 %v13866_v38 }
 0x4a3   : > { %13276 = vmatpush3.bf16.msra.mxu1 %v13866_v38  ;;  %v13876_v38 = vld [vmem:[#allocation13 + $0x8] sm:$0xff]  }
 0x4a4   : > { %7212 = vmatmul.mubr.bf16.gmra.mrb[16].mxu0 %v6404_v7  ;;  %13277 = vmatprep.subr.bf16.mxu1 %v13867_v62 }
 0x4a5   : > { %7365 = vmatprep.mubr.bf16.mxu0 %v15720_v17  ;;  %v6353_v17 = vld [vmem:[#allocation2 + $0x100] sm:$0xff] }
 0x4a6   : > { %7261 = vmatmul.mubr.bf16.gmra.mrb[20].mxu1 %v6334_v18 }
 0x4a7   : > { %7268 = vmatprep.mubr.bf16.mxu1 %v6344_v5  ;;  %13278 = vmatpush3.bf16.msra.mxu1 %v13867_v62 }
 0x4a8   : > { %13279 = vmatprep.subr.bf16.mxu1 %v13868_v39 }
 0x4ab   : > { %13280 = vmatpush3.bf16.msra.mxu1 %v13868_v39 }
 0x4ac   : > { %7366 = vmatmul.mubr.bf16.vlgmr.msra.gmra.mrb[20].mxu0 %v6327_v6  ;;  %13281 = vmatprep.subr.bf16.mxu1 %v13869_v55 }
 0x4ad   : > { %7373 = vmatprep.mubr.bf16.mxu0 %v15709_v57  ;;  %v6362_v57 = vld [vmem:[#allocation2 + $0x148] sm:$0xff]  ;;  %12679 = vmatpush3.bf16.msra.mxu0 %v13874_v31 }
 0x4ae   : > { %7269 = vmatmul.mubr.bf16.gmra.mrb[24].mxu1 %v6343_v47  ;;  %12680 = vmatprep.subr.bf16.mxu0 %v13875_v51  ;;  %v13885_v51 = vld [vmem:[#allocation13 + $0xc8] sm:$0xff]  }
 0x4af   : > { %7276 = vmatprep.mubr.bf16.mxu1 %v6353_v17  ;;  %13282 = vmatpush3.bf16.msra.mxu1 %v13869_v55 }
 0x4b0   : > { %13283 = vmatprep.subr.bf16.mxu1 %v13870_v46 }
 0x4b1   : > { %12681 = vmatpush3.bf16.msra.mxu0 %v13876_v38 }
 0x4b3   : > { %13284 = vmatpush3.bf16.msra.mxu1 %v13870_v46 }
 0x4b4   : > { %7374 = vmatmul.mubr.bf16.gmra.mrb[24].mxu0 %v6336_v10  ;;  %13285 = vmatprep.subr.bf16.mxu1 %v13871_v40 }
 0x4b5   : > { %7381 = vmatprep.mubr.bf16.mxu0 %v15783_v30  ;;  %v6380_v30 = vld [vmem:[#allocation2 + $0x1d8] sm:$0xff] }
 0x4b6   : > { %7277 = vmatmul.mubr.bf16.gmra.mrb[28].mxu1 %v6352_v48 }
 0x4b7   : > { %7284 = vmatprep.mubr.bf16.mxu1 %v6362_v57  ;;  %13286 = vmatpush3.bf16.msra.mxu1 %v13871_v40  ;;  %v13877_v57 = vld [vmem:[#allocation13 + $0x50] sm:$0xff]  }
 0x4b8   : > { %13287 = vmatprep.subr.bf16.mxu1 %v13872_v37  ;;  %12682 = vmatprep.subr.bf16.mxu0 %v13877_v57 }
 0x4bb   : > { %13288 = vmatpush3.bf16.msra.mxu1 %v13872_v37 }
 0x4bc   : > { %7382 = vmatmul.mubr.bf16.gmra.mrb[28].mxu0 %v6345_v13  ;;  %v13878_v13 = vld [vmem:[#allocation13 + $0x10] sm:$0xff]  }
 0x4bd   : > { %7389 = vmatprep.mubr.bf16.mxu0 %v15790_v59  ;;  %v6389_v59 = vld [vmem:[#allocation2 + $0x220] sm:$0xff]  ;;  %12683 = vmatpush3.bf16.msra.mxu0 %v13878_v13  ;;  %v13887_v13 = vld [vmem:[#allocation13 + $0x68] sm:$0xff]  }
 0x4be   : > { %7285 = vmatmul.mubr.bf16.gmra.mrb[32].mxu1 %v6361_v2 }
 0x4bf   : > { %7292 = vmatprep.mubr.bf16.mxu1 %v6371_v58 }
 0x4c4   : > { %7390 = vmatmul.mubr.bf16.gmra.mrb[32].mxu0 %v6354_v42 }
 0x4c5   : > { %7397 = vmatprep.mubr.bf16.mxu0 %v15830_v29  ;;  %v6338_v29 = vld [vmem:[#allocation2 + $0x88] sm:$0xff] }
 0x4c6   : > { %7293 = vmatmul.mubr.bf16.gmra.mrb[36].mxu1 %v15817_v23  ;;  %v6329_v23 = vld [vmem:[#allocation2 + $0x40] sm:$0xff] }
 0x4c7   : > { %7300 = vmatprep.mubr.bf16.mxu1 %v6380_v30 }
 0x4cc   : > { %7398 = vmatmul.mubr.bf16.gmra.mrb[36].mxu0 %v15763_v45  ;;  %v6407_v45 = vld [vmem:[#allocation2 + $0x2b0] sm:$0xff] }
 0x4cd   : > { %7405 = vmatprep.mubr.bf16.mxu0 %v15844_v4  ;;  %v6356_v4 = vld [vmem:[#allocation2 + $0x118] sm:$0xff] }
 0x4ce   : > { %7301 = vmatmul.mubr.bf16.gmra.mrb[40].mxu1 %v6379_v22 }
 0x4cf   : > { %7308 = vmatprep.mubr.bf16.mxu1 %v6389_v59 }
 0x4d4   : > { %7406 = vmatmul.mubr.bf16.gmra.mrb[40].mxu0 %v6372_v43 }
 0x4d5   : > { %7413 = vmatprep.mubr.bf16.mxu0 %v15877_v26  ;;  %v6401_v26 = vld [vmem:[#allocation2 + $0x280] sm:$0xff] }
 0x4d6   : > { %7309 = vmatmul.mubr.bf16.gmra.mrb[44].mxu1 %v15863_v0  ;;  %v6383_v0 = vld [vmem:[#allocation2 + $0x1f0] sm:$0xff] }
 0x4d7   : > { %7316 = vmatprep.mubr.bf16.mxu1 %v6398_v61 }
 0x4dc   : > { %7414 = vmatmul.mubr.bf16.gmra.mrb[44].mxu0 %v15804_v52  ;;  %v6347_v52 = vld [vmem:[#allocation2 + $0xd0] sm:$0xff] }
 0x4dd   : > { %7421 = vmatprep.mubr.bf16.mxu0 %v15881_v34 }
 0x4de   : > { %7317 = vmatmul.mubr.bf16.gmra.mrb[48].mxu1 %v15859_v27  ;;  %v6365_v27 = vld [vmem:[#allocation2 + $0x160] sm:$0xff] }
 0x4df   : > { %7324 = vmatprep.mubr.bf16.mxu1 %v6407_v45 }
 0x4e4   : > { %7422 = vmatmul.mubr.bf16.gmra.mrb[48].mxu0 %v15796_v41  ;;  %v6374_v41 = vld [vmem:[#allocation2 + $0x1a8] sm:$0xff] }
 0x4e5   : > { %7429 = vmatprep.mubr.bf16.mxu0 %v15902_v56 }
 0x4e6   : > { %7325 = vmatmul.mubr.bf16.gmra.mrb[52].mxu1 %v15897_v32 }
 0x4e7   : > { %13289 = vmatprep.mubr.bf16.mxu1 %v6329_v23 }
 0x4ec   : > { %7430 = vmatmul.mubr.bf16.gmra.mrb[52].mxu0 %v15868_v11  ;;  %v6410_v11 = vld [vmem:[#allocation2 + $0x2c8] sm:$0xff] }
 0x4ed   : > { %7437 = vmatprep.mubr.bf16.mxu0 %v15891_v44 }
 0x4ee   : > { %13290 = vmatmul.mubr.bf16.vlgmr.msra.gmra.mrb[56].mxu1 %v6338_v29 }
 0x4ef   : > { %13293 = vmatprep.mubr.bf16.mxu1 %v6347_v52 }
 0x4f4   : > { %7438 = vmatmul.mubr.bf16.gmra.mrb[56].mxu0 %v15850_v15 }
 0x4f6   : > { %13294 = vmatmul.mubr.bf16.gmra.mrb[60].mxu1 %v6356_v4 }
 0x4f7   : > { %13297 = vmatprep.mubr.bf16.mxu1 %v6365_v27 }
 0x4fe   : > { %13298 = vmatmul.mubr.bf16.gmra.mrb[64].mxu1 %v6374_v41 }
 0x4ff   : > { %13301 = vmatprep.mubr.bf16.mxu1 %v6383_v0 }
 0x506   : > { %13302 = vmatmul.mubr.bf16.gmra.mrb[68].mxu1 %v6392_v21  ;;  %v13879_v21 = vld [vmem:[#allocation13 + $0x58] sm:$0xff]  }
 0x507   : > { %13305 = vmatprep.mubr.bf16.mxu1 %v6401_v26  ;;  %v13880_v26 = vld [vmem:[#allocation13 + $0x18] sm:$0xff]   ;;  %12684 = vmatprep.subr.bf16.mxu0 %v13879_v21 }
 0x508   : > { %12685 = vmatpush3.bf16.msra.mxu0 %v13880_v26 }
 0x50e   : > { %13306 = vmatmul.mubr.bf16.gmra.mrb[72].mxu1 %v6410_v11 }
 0x51e   : > { %v12372_v34 = vpop.f32.mrb[232].mxu1 }
 0x51f   : > { %v12373_v54 = vpop.f32.mrb[233].mxu1 }
 0x520   : > { %v12374_v3 = vadd.f32 %v12373_v54, %v12372_v34  ;;  %v12375_v49 = vpop.f32.mrb[234].mxu1 }
 0x521   : > { %v12376_v15 = vpop.f32.mrb[235].mxu1 }
 0x522   : > { %v12377_v14 = vadd.f32 %v12376_v15, %v12375_v49  ;;  %v7029_v60 = vadd.f32 %v12374_v3, %v15938_v9 }
 0x524   : > { %v7032_v8 = vadd.f32 %v12377_v14, %v15938_v9 }
 0x526   : > { %v12378_v44 = vpop.f32.mrb[236].mxu1 }
 0x527   : > { %v12379_v19 = vpop.f32.mrb[237].mxu1 }
 0x528   : > { %v12380_v1 = vadd.f32 %v12379_v19, %v12378_v44  ;;  %v12381_v35 = vpop.f32.mrb[238].mxu1 }
 0x529   : > { %v12382_v56 = vpop.f32.mrb[239].mxu1 }
 0x52a   : > { %v12448_v24 = vpop.f32.mrb[236].mxu0  ;;  %v12383_v16 = vadd.f32 %v12382_v56, %v12381_v35  ;;  %v7037_v47 = vadd.f32 %v12380_v1, %v15938_v9  ;;  %v13883_v1 = vld [vmem:[#allocation13 + $0xc0] sm:$0xff]  }
 0x52b   : > { %v12449_v32 = vpop.f32.mrb[237].mxu0  ;;  %12742 = vmatprep.subr.bf16.mxu1 %v13883_v1 }
 0x52c   : > { %v12450_v20 = vadd.f32 %v12449_v32, %v12448_v24  ;;  %v12451_v50 = vpop.f32.mrb[238].mxu0  ;;  %v7040_v37 = vadd.f32 %v12383_v16, %v15938_v9  ;;  %v13884_v32 = vld [vmem:[#allocation13 + $0x80] sm:$0xff]  }
 0x52d   : > { %v12452_v25 = vpop.f32.mrb[239].mxu0  ;;  %v13882_v16 = vld [vmem:[#allocation13 + $0x20] sm:$0xff]   ;;  %12743 = vmatpush3.bf16.msra.mxu1 %v13884_v32 }
 0x52e   : > { %v12453_v33 = vadd.f32 %v12452_v25, %v12451_v50  ;;  %v15942_v53 = vadd.f32 %v12450_v20, %v7029_v60  ;;  %v12384_v28 = vpop.f32.mrb[240].mxu1  ;;  %v13881_v60 = vld [vmem:[#allocation13 + $0x60] sm:$0xff]   ;;  %v13886_v25 = vld [vmem:[#allocation13 + $0x88] sm:$0xff]   ;;  %12744 = vmatprep.subr.bf16.mxu1 %v13885_v51 }
 0x52f   : > { %v12385_v7 = vpop.f32.mrb[241].mxu1  ;;  %12686 = vmatprep.subr.bf16.mxu0 %v13881_v60 }
 0x530   : > { %v15944_v12 = vadd.f32 %v12453_v33, %v7032_v8  ;;  %v12386_v39 = vadd.f32 %v12385_v7, %v12384_v28  ;;  %v12387_v18 = vpop.f32.mrb[242].mxu1  ;;  %12687 = vmatpush3.bf16.msra.mxu0 %v13882_v16  ;;  %v13899_v16 = vld [vmem:[#allocation13 + $0xf0] sm:$0xff]  }
 0x531   : > { %v12388_v6 = vpop.f32.mrb[243].mxu1  ;;  %12745 = vmatpush3.bf16.msra.mxu1 %v13886_v25  ;;  %12688 = vmatprep.subr.bf16.mxu0 %v13887_v13 }
 0x532   : > { %v12454_v62 = vpop.f32.mrb[240].mxu0  ;;  %v12389_v17 = vadd.f32 %v12388_v6, %v12387_v18  ;;  %v7045_v29 = vadd.f32 %v12386_v39, %v15938_v9 }
 0x533   : > { %v12455_v5 = vpop.f32.mrb[241].mxu0 }
 0x534   : > { %v12456_v55 = vadd.f32 %v12455_v5, %v12454_v62  ;;  %v12457_v46 = vpop.f32.mrb[242].mxu0  ;;  %v7048_v41 = vadd.f32 %v12389_v17, %v15938_v9 }
 0x535   : > { %v12458_v10 = vpop.f32.mrb[243].mxu0 }
 0x536   : > { %v12459_v40 = vadd.f32 %v12458_v10, %v12457_v46  ;;  %v15948_v48 = vadd.f32 %v12456_v55, %v7037_v47  ;;  %v12390_v2 = vpop.f32.mrb[244].mxu1  ;;  %v13888_v47 = vld [vmem:[#allocation13 + $0xd0] sm:$0xff]  }
 0x537   : > { %v12391_v42 = vpop.f32.mrb[245].mxu1  ;;  %v13890_v10 = vld [vmem:[#allocation13 + $0x90] sm:$0xff]   ;;  %12746 = vmatprep.subr.bf16.mxu1 %v13888_v47 }
 0x538   : > { %v15950_v58 = vadd.f32 %v12459_v40, %v7040_v37  ;;  %v12392_v22 = vadd.f32 %v12391_v42, %v12390_v2  ;;  %v12393_v59 = vpop.f32.mrb[246].mxu1  ;;  %v13889_v2 = vld [vmem:[#allocation13 + $0x28] sm:$0xff]   ;;  %12747 = vmatpush3.bf16.msra.mxu1 %v13890_v10 }
 0x539   : > { %v12394_v61 = vpop.f32.mrb[247].mxu1  ;;  %12689 = vmatpush3.bf16.msra.mxu0 %v13889_v2 }
 0x53a   : > { %v12395_v52 = vadd.f32 %v12394_v61, %v12393_v59  ;;  %v7053_v19 = vadd.f32 %v12392_v22, %v15938_v9  ;;  %v13891_v22 = vld [vmem:[#allocation13 + $0xd8] sm:$0xff]  }
 0x53b   : > { %12748 = vmatprep.subr.bf16.mxu1 %v13891_v22 }
 0x53c   : > { %v12460_v30 = vpop.f32.mrb[244].mxu0  ;;  %v7056_v20 = vadd.f32 %v12395_v52, %v15938_v9 }
 0x53d   : > { %v12461_v43 = vpop.f32.mrb[245].mxu0 }
 0x53e   : > { %v12462_v45 = vadd.f32 %v12461_v43, %v12460_v30  ;;  %v12463_v23 = vpop.f32.mrb[246].mxu0  ;;  %v13892_v43 = vld [vmem:[#allocation13 + $0x98] sm:$0xff]  }
 0x53f   : > { %v12464_v4 = vpop.f32.mrb[247].mxu0  ;;  %v12396_v11 = vpop.f32.mrb[248].mxu1  ;;  %12749 = vmatpush3.bf16.msra.mxu1 %v13892_v43 }
 0x540   : > { %v12465_v27 = vadd.f32 %v12464_v4, %v12463_v23  ;;  %v15954_v0 = vadd.f32 %v12462_v45, %v7045_v29  ;;  %v12397_v54 = vpop.f32.mrb[249].mxu1  ;;  %v13895_v29 = vld [vmem:[#allocation13 + $0x70] sm:$0xff]  }
 0x541   : > { %v12398_v49 = vadd.f32 %v12397_v54, %v12396_v11  ;;  %v12399_v63 = vpop.f32.mrb[250].mxu1  ;;  %v13893_v54 = vld [vmem:[#allocation13 + $0xe0] sm:$0xff]   ;;  %12690 = vmatprep.subr.bf16.mxu0 %v13895_v29 }
 0x542   : > { %v15956_v34 = vadd.f32 %v12465_v27, %v7048_v41  ;;  %v12400_v14 = vpop.f32.mrb[251].mxu1  ;;  %v13896_v27 = vld [vmem:[#allocation13 + $0x30] sm:$0xff]   ;;  %12750 = vmatprep.subr.bf16.mxu1 %v13893_v54 }
 0x543   : > { %v12401_v24 = vadd.f32 %v12400_v14, %v12399_v63  ;;  %v7061_v55 = vadd.f32 %v12398_v49, %v15938_v9  ;;  %v13897_v49 = vld [vmem:[#allocation13 + $0xe8] sm:$0xff]   ;;  %12691 = vmatpush3.bf16.msra.mxu0 %v13896_v27 }
 0x545   : > { %v7064_v37 = vadd.f32 %v12401_v24, %v15938_v9  ;;  %v13903_v24 = vld [vmem:[#allocation13 + $0x38] sm:$0xff]  }
 0x546   : > { %v12466_v3 = vpop.f32.mrb[248].mxu0 }
 0x547   : > { %v12467_v15 = vpop.f32.mrb[249].mxu0 }
 0x548   : > { %v12468_v31 = vadd.f32 %v12467_v15, %v12466_v3  ;;  %v12469_v44 = vpop.f32.mrb[250].mxu0  ;;  %v13894_v3 = vld [vmem:[#allocation13 + $0xa0] sm:$0xff]  }
 0x549   : > { %v12470_v35 = vpop.f32.mrb[251].mxu0  ;;  %v12402_v33 = vpop.f32.mrb[252].mxu1  ;;  %12751 = vmatpush3.bf16.msra.mxu1 %v13894_v3 }
 0x54a   : > { %v12471_v56 = vadd.f32 %v12470_v35, %v12469_v44  ;;  %v15960_v50 = vadd.f32 %v12468_v31, %v7053_v19  ;;  %v12403_v38 = vpop.f32.mrb[253].mxu1  ;;  %v13901_v44 = vld [vmem:[#allocation13 + $0x78] sm:$0xff]   ;;  %v13898_v19 = vld [vmem:[#allocation13 + $0xa8] sm:$0xff]   ;;  %12752 = vmatprep.subr.bf16.mxu1 %v13897_v49 }
 0x54b   : > { %v12404_v7 = vadd.f32 %v12403_v38, %v12402_v33  ;;  %v12405_v62 = vpop.f32.mrb[254].mxu1  ;;  %12692 = vmatprep.subr.bf16.mxu0 %v13901_v44  ;;  %v13900_v33 = vld [vmem:[#allocation13 + $0xb0] sm:$0xff]  }
 0x54c   : > { %v15962_v8 = vadd.f32 %v12471_v56, %v7056_v20  ;;  %v12406_v18 = vpop.f32.mrb[255].mxu1  ;;  %12693 = vmatpush3.bf16.msra.mxu0 %v13903_v24 }
 0x54d   : > { %v12407_v46 = vadd.f32 %v12406_v18, %v12405_v62  ;;  %v7069_v26 = vadd.f32 %v12404_v7, %v15938_v9  ;;  %12753 = vmatpush3.bf16.msra.mxu1 %v13898_v19 }
 0x54e   : > { %12754 = vmatprep.subr.bf16.mxu1 %v13899_v16 }
 0x54f   : > { %v12472_v28 = vpop.f32.mrb[252].mxu0  ;;  %v7072_v14 = vadd.f32 %v12407_v46, %v15938_v9  ;;  %v13904_v46 = vld [vmem:[#allocation13 + $0xb8] sm:$0xff]  }
 0x550   : > { %v12473_v39 = vpop.f32.mrb[253].mxu0 }
 0x551   : > { %v12474_v5 = vadd.f32 %v12473_v39, %v12472_v28  ;;  %v12475_v6 = vpop.f32.mrb[254].mxu0  ;;  %v12408_v42 = vpop.f32.mrb[0].mxu1  ;;  %v13902_v39 = vld [vmem:[#allocation13 + $0xf8] sm:$0xff]   ;;  %12755 = vmatpush3.bf16.msra.mxu1 %v13900_v33 }
 0x552   : > { %v12476_v17 = vpop.f32.mrb[255].mxu0  ;;  %v12409_v59 = vpop.f32.mrb[1].mxu1  ;;  %12756 = vmatprep.subr.bf16.mxu1 %v13902_v39 }
 0x553   : > { %v12477_v40 = vadd.f32 %v12476_v17, %v12475_v6  ;;  %v15966_v57 = vadd.f32 %v12474_v5, %v7061_v55  ;;  %v12410_v45 = vadd.f32 %v12409_v59, %v12408_v42  ;;  %v12411_v23 = vpop.f32.mrb[2].mxu1 }
 0x554   : > { %v12412_v4 = vpop.f32.mrb[3].mxu1 }
 0x555   : > { %v15968_v30 = vadd.f32 %v12477_v40, %v7064_v37  ;;  %v12413_v11 = vadd.f32 %v12412_v4, %v12411_v23  ;;  %v7077_v7 = vadd.f32 %v12410_v45, %v15938_v9  ;;  %12757 = vmatpush3.bf16.msra.mxu1 %v13904_v46 }
 0x557   : > { %v12478_v61 = vpop.f32.mrb[0].mxu0  ;;  %v7080_v6 = vadd.f32 %v12413_v11, %v15938_v9 }
 0x558   : > { %v12479_v52 = vpop.f32.mrb[1].mxu0 }
 0x559   : > { %v12480_v41 = vadd.f32 %v12479_v52, %v12478_v61  ;;  %v12481_v21 = vpop.f32.mrb[2].mxu0  ;;  %v12414_v1 = vpop.f32.mrb[4].mxu1 }
 0x55a   : > { %v12482_v63 = vpop.f32.mrb[3].mxu0  ;;  %v12415_v32 = vpop.f32.mrb[5].mxu1 }
 0x55b   : > { %v12483_v15 = vadd.f32 %v12482_v63, %v12481_v21  ;;  %v15972_v31 = vadd.f32 %v12480_v41, %v7069_v26  ;;  %v12416_v20 = vadd.f32 %v12415_v32, %v12414_v1  ;;  %v12417_v60 = vpop.f32.mrb[6].mxu1  ;;  %v13905_v21 = vld [vmem:[#allocation13 + $0x140] sm:$0xff]  }
 0x55c   : > { %v12418_v25 = vpop.f32.mrb[7].mxu1  ;;  %12806 = vmatprep.subr.bf16.mxu0 %v13905_v21 }
 0x55d   : > { %v15974_v35 = vadd.f32 %v12483_v15, %v7072_v14  ;;  %v12419_v62 = vadd.f32 %v12418_v25, %v12417_v60  ;;  %v7085_v43 = vadd.f32 %v12416_v20, %v15938_v9 }
 0x55f   : > { %v12484_v56 = vpop.f32.mrb[4].mxu0  ;;  %v7088_v29 = vadd.f32 %v12419_v62, %v15938_v9 }
 0x560   : > { %v12485_v51 = vpop.f32.mrb[5].mxu0 }
 0x561   : > { %v12486_v38 = vadd.f32 %v12485_v51, %v12484_v56  ;;  %v12487_v28 = vpop.f32.mrb[6].mxu0  ;;  %v12420_v47 = vpop.f32.mrb[8].mxu1 }
 0x562   : > { %v12488_v18 = vpop.f32.mrb[7].mxu0  ;;  %v12421_v10 = vpop.f32.mrb[9].mxu1 }
 0x563   : > { %v12489_v5 = vadd.f32 %v12488_v18, %v12487_v28  ;;  %v15978_v55 = vadd.f32 %v12486_v38, %v7077_v7  ;;  %v12422_v37 = vadd.f32 %v12421_v10, %v12420_v47  ;;  %v12423_v13 = vpop.f32.mrb[10].mxu1 }
 0x564   : > { %v12424_v42 = vpop.f32.mrb[11].mxu1 }
 0x565   : > { %v15980_v17 = vadd.f32 %v12489_v5, %v7080_v6  ;;  %v12425_v61 = vadd.f32 %v12424_v42, %v12423_v13  ;;  %v7093_v14 = vadd.f32 %v12422_v37, %v15938_v9 }
 0x567   : > { %v12490_v40 = vpop.f32.mrb[8].mxu0  ;;  %v7096_v1 = vadd.f32 %v12425_v61, %v15938_v9 }
 0x568   : > { %v12491_v2 = vpop.f32.mrb[9].mxu0 }
 0x569   : > { %v12492_v22 = vadd.f32 %v12491_v2, %v12490_v40  ;;  %v12493_v59 = vpop.f32.mrb[10].mxu0  ;;  %v12426_v4 = vpop.f32.mrb[12].mxu1 }
 0x56a   : > { %v12494_v45 = vpop.f32.mrb[11].mxu0  ;;  %v12427_v41 = vpop.f32.mrb[13].mxu1 }
 0x56b   : > { %v12495_v23 = vadd.f32 %v12494_v45, %v12493_v59  ;;  %v15984_v52 = vadd.f32 %v12492_v22, %v7085_v43  ;;  %v12428_v11 = vadd.f32 %v12427_v41, %v12426_v4  ;;  %v12429_v54 = vpop.f32.mrb[14].mxu1 }
 0x56c   : > { %v12430_v49 = vpop.f32.mrb[15].mxu1 }
 0x56d   : > { %v15986_v27 = vadd.f32 %v12495_v23, %v7088_v29  ;;  %v12431_v44 = vadd.f32 %v12430_v49, %v12429_v54  ;;  %v7101_v62 = vadd.f32 %v12428_v11, %v15938_v9  ;;  %v13913_v29 = vld [vmem:[#allocation13 + $0x1c0] sm:$0xff]  }
 0x56e   : > { %12870 = vmatprep.subr.bf16.mxu1 %v13913_v29 }
 0x56f   : > { %v12496_v26 = vpop.f32.mrb[12].mxu0  ;;  %v7104_v46 = vadd.f32 %v12431_v44, %v15938_v9 }
 0x570   : > { %v12497_v3 = vpop.f32.mrb[13].mxu0 }
 0x571   : > { %v12498_v63 = vadd.f32 %v12497_v3, %v12496_v26  ;;  %v12499_v15 = vpop.f32.mrb[14].mxu0  ;;  %v12524_v56 = vpop.f32.mrb[16].mxu1 }
 0x572   : > { %v12500_v19 = vpop.f32.mrb[15].mxu0  ;;  %v12525_v60 = vpop.f32.mrb[17].mxu1 }
 0x573   : > { %v12501_v24 = vadd.f32 %v12500_v19, %v12499_v15  ;;  %v15990_v32 = vadd.f32 %v12498_v63, %v7093_v14  ;;  %v12526_v51 = vadd.f32 %v12525_v60, %v12524_v56  ;;  %v12527_v25 = vpop.f32.mrb[18].mxu1 }
 0x574   : > { %v12528_v38 = vpop.f32.mrb[19].mxu1 }
 0x575   : > { %v15992_v20 = vadd.f32 %v12501_v24, %v7096_v1  ;;  %v7255_v39 = vadd.f32 %v12526_v51, %v15942_v53  ;;  %v12529_v18 = vadd.f32 %v12528_v38, %v12527_v25 }
 0x577   : > { %v12502_v16 = vpop.f32.mrb[16].mxu0  ;;  %v7258_v47 = vadd.f32 %v12529_v18, %v15944_v12 }
 0x578   : > { %v12503_v33 = vpop.f32.mrb[17].mxu0 }
 0x579   : > { %v12504_v28 = vadd.f32 %v12503_v33, %v12502_v16  ;;  %v12505_v7 = vpop.f32.mrb[18].mxu0  ;;  %v12530_v40 = vpop.f32.mrb[20].mxu1 }
 0x57a   : > { %v12506_v5 = vpop.f32.mrb[19].mxu0  ;;  %v12531_v13 = vpop.f32.mrb[21].mxu1 }
 0x57b   : > { %v12507_v6 = vadd.f32 %v12506_v5, %v12505_v7  ;;  %v15998_v10 = vadd.f32 %v12504_v28, %v7101_v62  ;;  %v12532_v42 = vadd.f32 %v12531_v13, %v12530_v40  ;;  %v12533_v22 = vpop.f32.mrb[22].mxu1 }
 0x57c   : > { %v12534_v43 = vpop.f32.mrb[23].mxu1 }
 0x57d   : > { %v16000_v37 = vadd.f32 %v12507_v6, %v7104_v46  ;;  %v7263_v45 = vadd.f32 %v12532_v42, %v15948_v48  ;;  %v12535_v23 = vadd.f32 %v12534_v43, %v12533_v22 }
 0x57f   : > { %v12600_v2 = vpop.f32.mrb[20].mxu0  ;;  %v7266_v12 = vadd.f32 %v12535_v23, %v15950_v58 }
 0x580   : > { %v12601_v59 = vpop.f32.mrb[21].mxu0 }
 0x581   : > { %v12602_v61 = vadd.f32 %v12601_v59, %v12600_v2  ;;  %v12603_v53 = vpop.f32.mrb[22].mxu0  ;;  %v12536_v21 = vpop.f32.mrb[24].mxu1 }
 0x582   : > { %v12604_v9 = vpop.f32.mrb[23].mxu0  ;;  %v12537_v11 = vpop.f32.mrb[25].mxu1 }
 0x583   : > { %v12605_v4 = vadd.f32 %v12604_v9, %v12603_v53  ;;  %v16004_v41 = vadd.f32 %v12602_v61, %v7255_v39  ;;  %v12538_v3 = vadd.f32 %v12537_v11, %v12536_v21  ;;  %v12539_v49 = vpop.f32.mrb[26].mxu1 }
 0x584   : > { %v12540_v15 = vpop.f32.mrb[27].mxu1 }
 0x585   : > { %v16006_v26 = vadd.f32 %v12605_v4, %v7258_v47  ;;  %v7271_v44 = vadd.f32 %v12538_v3, %v15954_v0  ;;  %v12541_v19 = vadd.f32 %v12540_v15, %v12539_v49 }
 0x587   : > { %v12606_v54 = vpop.f32.mrb[24].mxu0  ;;  %v7274_v58 = vadd.f32 %v12541_v19, %v15956_v34 }
 0x588   : > { %v12607_v63 = vpop.f32.mrb[25].mxu0 }
 0x589   : > { %v12608_v14 = vadd.f32 %v12607_v63, %v12606_v54  ;;  %v12609_v48 = vpop.f32.mrb[26].mxu0  ;;  %v12542_v60 = vpop.f32.mrb[28].mxu1 }
 0x58a   : > { %v12610_v24 = vpop.f32.mrb[27].mxu0  ;;  %v12543_v51 = vpop.f32.mrb[29].mxu1 }
 0x58b   : > { %v12611_v1 = vadd.f32 %v12610_v24, %v12609_v48  ;;  %v16010_v56 = vadd.f32 %v12608_v14, %v7263_v45  ;;  %v12544_v33 = vadd.f32 %v12543_v51, %v12542_v60  ;;  %v12545_v38 = vpop.f32.mrb[30].mxu1 }
 0x58c   : > { %v12546_v7 = vpop.f32.mrb[31].mxu1 }
 0x58d   : > { %v16012_v16 = vadd.f32 %v12611_v1, %v7266_v12  ;;  %v7279_v0 = vadd.f32 %v12544_v33, %v15960_v50  ;;  %v12547_v18 = vadd.f32 %v12546_v7, %v12545_v38 }
 0x58f   : > { %v12612_v25 = vpop.f32.mrb[28].mxu0  ;;  %v7282_v34 = vadd.f32 %v12547_v18, %v15962_v8 }
 0x590   : > { %v12613_v28 = vpop.f32.mrb[29].mxu0 }
 0x591   : > { %v12614_v62 = vadd.f32 %v12613_v28, %v12612_v25  ;;  %v12615_v39 = vpop.f32.mrb[30].mxu0  ;;  %v12548_v47 = vpop.f32.mrb[32].mxu1 }
 0x592   : > { %v12616_v5 = vpop.f32.mrb[31].mxu0  ;;  %v12549_v13 = vpop.f32.mrb[33].mxu1 }
 0x593   : > { %v12617_v6 = vadd.f32 %v12616_v5, %v12615_v39  ;;  %v16016_v46 = vadd.f32 %v12614_v62, %v7271_v44  ;;  %v12550_v42 = vadd.f32 %v12549_v13, %v12548_v47  ;;  %v12551_v22 = vpop.f32.mrb[34].mxu1 }
 0x594   : > { %v12552_v43 = vpop.f32.mrb[35].mxu1 }
 0x595   : > { %v16018_v40 = vadd.f32 %v12617_v6, %v7274_v58  ;;  %v7287_v50 = vadd.f32 %v12550_v42, %v15966_v57  ;;  %v12553_v45 = vadd.f32 %v12552_v43, %v12551_v22 }
 0x597   : > { %v12618_v2 = vpop.f32.mrb[32].mxu0  ;;  %v7290_v8 = vadd.f32 %v12553_v45, %v15968_v30 }
 0x598   : > { %v12619_v59 = vpop.f32.mrb[33].mxu0 }
 0x599   : > { %v12620_v61 = vadd.f32 %v12619_v59, %v12618_v2  ;;  %v12621_v53 = vpop.f32.mrb[34].mxu0  ;;  %v12554_v4 = vpop.f32.mrb[36].mxu1 }
 0x59a   : > { %v12622_v23 = vpop.f32.mrb[35].mxu0  ;;  %v12555_v21 = vpop.f32.mrb[37].mxu1 }
 0x59b   : > { %v12623_v29 = vadd.f32 %v12622_v23, %v12621_v53  ;;  %v16022_v9 = vadd.f32 %v12620_v61, %v7279_v0  ;;  %v12556_v54 = vadd.f32 %v12555_v21, %v12554_v4  ;;  %v12557_v3 = vpop.f32.mrb[38].mxu1 }
 0x59c   : > { %v12558_v63 = vpop.f32.mrb[39].mxu1 }
 0x59d   : > { %v16024_v12 = vadd.f32 %v12623_v29, %v7282_v34  ;;  %v7295_v57 = vadd.f32 %v12556_v54, %v15972_v31  ;;  %v12559_v48 = vadd.f32 %v12558_v63, %v12557_v3 }
 0x59f   : > { %v12624_v11 = vpop.f32.mrb[36].mxu0  ;;  %v7298_v30 = vadd.f32 %v12559_v48, %v15974_v35 }
 0x5a0   : > { %v12625_v49 = vpop.f32.mrb[37].mxu0 }
 0x5a1   : > { %v12626_v15 = vadd.f32 %v12625_v49, %v12624_v11  ;;  %v12627_v14 = vpop.f32.mrb[38].mxu0  ;;  %v12560_v1 = vpop.f32.mrb[40].mxu1 }
 0x5a2   : > { %v12628_v44 = vpop.f32.mrb[39].mxu0  ;;  %v12561_v60 = vpop.f32.mrb[41].mxu1 }
 0x5a3   : > { %v12629_v19 = vadd.f32 %v12628_v44, %v12627_v14  ;;  %v16028_v24 = vadd.f32 %v12626_v15, %v7287_v50  ;;  %v12562_v25 = vadd.f32 %v12561_v60, %v12560_v1  ;;  %v12563_v33 = vpop.f32.mrb[42].mxu1 }
 0x5a4   : > { %v12564_v28 = vpop.f32.mrb[43].mxu1 }
 0x5a5   : > { %v16030_v58 = vadd.f32 %v12629_v19, %v7290_v8  ;;  %v7303_v31 = vadd.f32 %v12562_v25, %v15978_v55  ;;  %v12565_v39 = vadd.f32 %v12564_v28, %v12563_v33 }
 0x5a7   : > { %v12630_v51 = vpop.f32.mrb[40].mxu0  ;;  %v7306_v35 = vadd.f32 %v12565_v39, %v15980_v17 }
 0x5a8   : > { %v12631_v38 = vpop.f32.mrb[41].mxu0 }
 0x5a9   : > { %v12632_v7 = vadd.f32 %v12631_v38, %v12630_v51  ;;  %v12633_v62 = vpop.f32.mrb[42].mxu0  ;;  %v12566_v6 = vpop.f32.mrb[44].mxu1 }
 0x5aa   : > { %v12634_v0 = vpop.f32.mrb[43].mxu0  ;;  %v12567_v47 = vpop.f32.mrb[45].mxu1 }
 0x5ab   : > { %v12635_v18 = vadd.f32 %v12634_v0, %v12633_v62  ;;  %v16034_v5 = vadd.f32 %v12632_v7, %v7295_v57  ;;  %v12568_v2 = vadd.f32 %v12567_v47, %v12566_v6  ;;  %v12569_v42 = vpop.f32.mrb[46].mxu1 }
 0x5ac   : > { %v12570_v59 = vpop.f32.mrb[47].mxu1 }
 0x5ad   : > { %v16036_v34 = vadd.f32 %v12635_v18, %v7298_v30  ;;  %v7311_v55 = vadd.f32 %v12568_v2, %v15984_v52  ;;  %v12571_v53 = vadd.f32 %v12570_v59, %v12569_v42 }
 0x5af   : > { %v12636_v13 = vpop.f32.mrb[44].mxu0  ;;  %v7314_v17 = vadd.f32 %v12571_v53, %v15986_v27 }
 0x5b0   : > { %v12637_v22 = vpop.f32.mrb[45].mxu0 }
 0x5b1   : > { %v12638_v43 = vadd.f32 %v12637_v22, %v12636_v13  ;;  %v12639_v61 = vpop.f32.mrb[46].mxu0  ;;  %v12572_v29 = vpop.f32.mrb[48].mxu1 }
 0x5b2   : > { %v12640_v50 = vpop.f32.mrb[47].mxu0  ;;  %v12573_v4 = vpop.f32.mrb[49].mxu1 }
 0x5b3   : > { %v12641_v45 = vadd.f32 %v12640_v50, %v12639_v61  ;;  %v16040_v23 = vadd.f32 %v12638_v43, %v7303_v31  ;;  %v12574_v11 = vadd.f32 %v12573_v4, %v12572_v29  ;;  %v12575_v54 = vpop.f32.mrb[50].mxu1 }
 0x5b4   : > { %v12576_v49 = vpop.f32.mrb[51].mxu1 }
 0x5b5   : > { %v16042_v8 = vadd.f32 %v12641_v45, %v7306_v35  ;;  %v7319_v52 = vadd.f32 %v12574_v11, %v15990_v32  ;;  %v12577_v14 = vadd.f32 %v12576_v49, %v12575_v54 }
 0x5b7   : > { %v12642_v21 = vpop.f32.mrb[48].mxu0  ;;  %v7322_v27 = vadd.f32 %v12577_v14, %v15992_v20 }
 0x5b8   : > { %v12643_v3 = vpop.f32.mrb[49].mxu0 }
 0x5b9   : > { %v12644_v63 = vadd.f32 %v12643_v3, %v12642_v21  ;;  %v12645_v15 = vpop.f32.mrb[50].mxu0  ;;  %v12578_v19 = vpop.f32.mrb[52].mxu1 }
 0x5ba   : > { %v12646_v57 = vpop.f32.mrb[51].mxu0  ;;  %v12579_v1 = vpop.f32.mrb[53].mxu1 }
 0x5bb   : > { %v12647_v48 = vadd.f32 %v12646_v57, %v12645_v15  ;;  %v16046_v44 = vadd.f32 %v12644_v63, %v7311_v55  ;;  %v12580_v51 = vadd.f32 %v12579_v1, %v12578_v19  ;;  %v12581_v25 = vpop.f32.mrb[54].mxu1 }
 0x5bc   : > { %v12582_v38 = vpop.f32.mrb[55].mxu1 }
 0x5bd   : > { %v16048_v30 = vadd.f32 %v12647_v48, %v7314_v17  ;;  %v7327_v32 = vadd.f32 %v12580_v51, %v15998_v10  ;;  %v12583_v62 = vadd.f32 %v12582_v38, %v12581_v25  ;;  %v7690_v38 = vld [vmem:[#allocation2 + $0x50] sm:$0xff] }
 0x5bf   : > { %v12648_v60 = vpop.f32.mrb[52].mxu0  ;;  %v7330_v20 = vadd.f32 %v12583_v62, %v16000_v37 }
 0x5c0   : > { %v12649_v33 = vpop.f32.mrb[53].mxu0 }
 0x5c1   : > { %v12650_v28 = vadd.f32 %v12649_v33, %v12648_v60  ;;  %v12651_v7 = vpop.f32.mrb[54].mxu0  ;;  %v13291_v18 = vpop.f32.mrb[56].mxu1 }
 0x5c2   : > { %v12652_v31 = vpop.f32.mrb[55].mxu0  ;;  %v7489_v6 = vadd.f32 %v13291_v18, %v16010_v56  ;;  %v7480_v47 = vpop.f32.mrb[57].mxu1  ;;  %v13907_v18 = vld [vmem:[#allocation13 + $0x148] sm:$0xff]  }
 0x5c3   : > { %v12653_v39 = vadd.f32 %v12652_v31, %v12651_v7  ;;  %v16052_v0 = vadd.f32 %v12650_v28, %v7319_v52  ;;  %v7481_v2 = vadd.f32 %v7480_v47, %v16004_v41  ;;  %v13292_v42 = vpop.f32.mrb[58].mxu1  ;;  %v7687_v7 = vld [vmem:[#allocation2 + $0x8] sm:$0xff] }
 0x5c4   : > { %v7492_v10 = vadd.f32 %v13292_v42, %v16012_v16  ;;  %v7483_v59 = vpop.f32.mrb[59].mxu1  ;;  %v7561_v53 = vmax.f32 %v7489_v6, 0.0 }
 0x5c5   : > { %v16054_v35 = vadd.f32 %v12653_v39, %v7322_v27  ;;  %v7484_v37 = vadd.f32 %v7483_v59, %v16006_v26  ;;  %v7559_v17 = vmax.f32 %v7481_v2, 0.0 }
 0x5c6   : > { %v7562_v50 = vmax.f32 %v7492_v10, 0.0 }
 0x5c7   : > { %v12654_v13 = vpop.f32.mrb[56].mxu0  ;;  %v7560_v29 = vmax.f32 %v7484_v37, 0.0 }
 0x5c8   : > { %v12655_v22 = vpop.f32.mrb[57].mxu0  ;;  %v16062_v4 = vpack.c.bf16 %v7562_v50, %v7561_v53 }
 0x5c9   : > { %v12656_v43 = vadd.f32 %v12655_v22, %v12654_v13  ;;  %v12657_v61 = vpop.f32.mrb[58].mxu0  ;;  %v7579_v41 = vpack.c.bf16 %v7560_v29, %v7559_v17  ;;  %v13295_v21 = vpop.f32.mrb[60].mxu1 }
 0x5ca   : > { %v12658_v55 = vpop.f32.mrb[59].mxu0  ;;  %7590 = vst [vmem:[#allocation3 + $0x8] sm:$0xff] %v16062_v4  ;;  %v7505_v16 = vadd.f32 %v13295_v21, %v16022_v9  ;;  %v7496_v54 = vpop.f32.mrb[61].mxu1  ;;  %8839 = vmatprep.mubr.bf16.mxu1 %v16062_v4  ;;  %v7633_v26 = vshll.u32 %v16062_v4, 16  ;;  %v7631_v14 = vshrl.u32 %v16062_v4, 16 }
 0x5cb   : > { %v12659_v45 = vadd.f32 %v12658_v55, %v12657_v61  ;;  %v16060_v56 = vadd.f32 %v12656_v43, %v7327_v32  ;;  %7589 = vst [vmem:[#allocation3] sm:$0xff] %v7579_v41  ;;  %v7497_v3 = vadd.f32 %v7496_v54, %v16016_v46  ;;  %v13296_v49 = vpop.f32.mrb[62].mxu1  ;;  %v7626_v63 = vshll.u32 %v7579_v41, 16  ;;  %v7839_v46 = vld [vmem:[#allocation2 + $0x20] sm:$0xff] }
 0x5cc   : > { %v7508_v15 = vadd.f32 %v13296_v49, %v16024_v12  ;;  %v7499_v52 = vpop.f32.mrb[63].mxu1  ;;  %v7635_v57 = vrot.slane %v7633_v26, 1  ;;  %v7624_v27 = vshrl.u32 %v7579_v41, 16  ;;  %v7565_v19 = vmax.f32 %v7505_v16, 0.0  ;;  %v13906_v32 = vld [vmem:[#allocation13 + $0x100] sm:$0xff]  }
 0x5cd   : > { %v16064_v11 = vadd.f32 %v12659_v45, %v7330_v20  ;;  %v7500_v48 = vadd.f32 %v7499_v52, %v16018_v40  ;;  %v7628_v9 = vrot.slane %v7626_v63, 1  ;;  %v7563_v51 = vmax.f32 %v7497_v3, 0.0  ;;  %v7696_v54 = vld [vmem:[#allocation2 + $0xe0] sm:$0xff]  ;;  %v7693_v63 = vld [vmem:[#allocation2 + $0x98] sm:$0xff] }
 0x5ce   : > { %v7566_v1 = vmax.f32 %v7508_v15, 0.0  ;;  %v7636_v60 = vor.u32 %v7635_v57, %v7631_v14  ;;  %v7991_v15 = vld [vmem:[#allocation2 + $0x38] sm:$0xff]  ;;  %v7994_v52 = vld [vmem:[#allocation2 + $0x80] sm:$0xff]  ;;  %v13910_v57 = vld [vmem:[#allocation13 + $0x110] sm:$0xff]  }
 0x5cf   : > { %v7564_v25 = vmax.f32 %v7500_v48, 0.0  ;;  %v7629_v33 = vor.u32 %v7628_v9, %v7624_v27  ;;  %v13911_v48 = vld [vmem:[#allocation13 + $0x158] sm:$0xff]   ;;  %v7842_v9 = vld [vmem:[#allocation2 + $0x68] sm:$0xff] }
 0x5d0   : > { %v16074_v28 = vpack.c.bf16 %v7566_v1, %v7565_v19  ;;  %v7691_v12 = vsel %vm14626_vm2, %v7636_v60, %v7690_v38  ;;  %v16080_v40 = vsel %vm14626_vm2, %v7636_v60, %v7839_v46 }
 0x5d1   : > { %v16082_v62 = vpack.c.bf16 %v7564_v25, %v7563_v51  ;;  %v13299_v31 = vpop.f32.mrb[64].mxu1  ;;  %v7688_v39 = vsel %vm14626_vm2, %v7629_v33, %v7687_v7  ;;  %7692 = vst [vmem:[#allocation2 + $0x50] sm:$0xff] %v7691_v12  ;;  %v7712_v20 = vld [vmem:[#allocation3 + $0x8] sm:$0xfe]  ;;  %7841 = vst [vmem:[#allocation2 + $0x20] sm:$0xff] %v16080_v40  ;;  %v13914_v25 = vld [vmem:[#allocation13 + $0x180] sm:$0xff]  }
 0x5d2   : > { %v7863_v6 = vld [vmem:[#allocation3 + $0x8] sm:$0xfe]  ;;  %v7711_v47 = vld [vmem:[#allocation3] sm:$0xfe]  ;;  %7592 = vst [vmem:[#allocation3 + $0x18] sm:$0xff] %v16074_v28  ;;  %v7521_v13 = vadd.f32 %v13299_v31, %v16034_v5  ;;  %v7512_v2 = vpop.f32.mrb[65].mxu1  ;;  %8742 = vmatprep.mubr.bf16.mxu0 %v7688_v39 }
 0x5d3   : > { %7689 = vst [vmem:[#allocation2 + $0x8] sm:$0xff] %v7688_v39  ;;  %v7728_v42 = vrot.slane %v7712_v20, 1  ;;  %v7647_v22 = vshll.u32 %v16074_v28, 16  ;;  %v7727_v10 = vrot.slane %v7711_v47, 1  ;;  %7591 = vst [vmem:[#allocation3 + $0x10] sm:$0xff] %v16082_v62  ;;  %v7513_v59 = vadd.f32 %v7512_v2, %v16028_v24  ;;  %v13300_v43 = vpop.f32.mrb[66].mxu1  ;;  %8743 = vmatmul.mubr.bf16.vlgmr.msra.gmra.mrb[60].mxu0 %v7579_v41 }
 0x5d4   : > { %v7640_v61 = vshll.u32 %v16082_v62, 16  ;;  %v7524_v37 = vadd.f32 %v13300_v43, %v16036_v34  ;;  %v7515_v55 = vpop.f32.mrb[67].mxu1  ;;  %8750 = vmatprep.mubr.bf16.mxu0 %v7691_v12  ;;  %12807 = vmatpush3.bf16.msra.mxu0 %v13906_v32  ;;  %v13908_v5 = vld [vmem:[#allocation13 + $0x108] sm:$0xff]   ;;  %v7645_v53 = vshrl.u32 %v16074_v28, 16  ;;  %v7879_v45 = vrot.slane %v7863_v6, 1  ;;  %v13909_v41 = vld [vmem:[#allocation13 + $0x150] sm:$0xff]  }
 0x5d5   : > { %7744 = vst [vmem:[#allocation2 + $0x58] sm:$0x7f] %v7728_v42  ;;  %v7649_v50 = vrot.slane %v7647_v22, 1  ;;  %7743 = vst [vmem:[#allocation2 + $0x10] sm:$0x7f] %v7727_v10  ;;  %v7516_v17 = vadd.f32 %v7515_v55, %v16030_v58  ;;  %12808 = vmatprep.subr.bf16.mxu0 %v13907_v18  ;;  %v7638_v24 = vshrl.u32 %v16082_v62, 16 }
 0x5d6   : > { %v7642_v29 = vrot.slane %v7640_v61, 1  ;;  %v7569_v21 = vmax.f32 %v7521_v13, 0.0  ;;  %v7570_v16 = vmax.f32 %v7524_v37, 0.0  ;;  %7895 = vst [vmem:[#allocation2 + $0x28] sm:$0x7f] %v7879_v45  ;;  %v7567_v26 = vmax.f32 %v7513_v59, 0.0 }
 0x5d7   : > { %v7650_v34 = vor.u32 %v7649_v50, %v7645_v53  ;;  %v7568_v3 = vmax.f32 %v7516_v17, 0.0  ;;  %v13912_v39 = vld [vmem:[#allocation13 + $0x118] sm:$0xff]   ;;  %v13915_v42 = vld [vmem:[#allocation13 + $0x1c8] sm:$0xff]   ;;  %v13917_v53 = vld [vmem:[#allocation13 + $0x160] sm:$0xff]  }
 0x5d8   : > { %v7643_v49 = vor.u32 %v7642_v29, %v7638_v24  ;;  %v16097_v14 = vpack.c.bf16 %v7570_v16, %v7569_v21  ;;  %12809 = vmatpush3.bf16.msra.mxu0 %v13908_v5  ;;  %v7702_v50 = vld [vmem:[#allocation2 + $0x170] sm:$0xff] }
 0x5d9   : > { %v16101_v58 = vsel %vm14626_vm2, %v7650_v34, %v7696_v54  ;;  %v16105_v27 = vsel %vm14626_vm2, %v7650_v34, %v7994_v52  ;;  %v16107_v19 = vpack.c.bf16 %v7568_v3, %v7567_v26  ;;  %v13303_v1 = vpop.f32.mrb[68].mxu1  ;;  %12810 = vmatprep.subr.bf16.mxu0 %v13909_v41  ;;  %v7714_v51 = vld [vmem:[#allocation3 + $0x18] sm:$0xfe]  ;;  %v13919_v26 = vld [vmem:[#allocation13 + $0x1d0] sm:$0xff]  }
 0x5da   : > { %v7694_v60 = vsel %vm14626_vm2, %v7643_v49, %v7693_v63  ;;  %7698 = vst [vmem:[#allocation2 + $0xe0] sm:$0xff] %v16101_v58  ;;  %v16114_v33 = vsel %vm14626_vm2, %v7643_v49, %v7991_v15  ;;  %7996 = vst [vmem:[#allocation2 + $0x80] sm:$0xff] %v16105_v27  ;;  %v16119_v38 = vsel %vm14626_vm2, %v7643_v49, %v7842_v9  ;;  %v16121_v46 = vld [vmem:[#allocation3 + $0x18] sm:$0xfe]  ;;  %v7528_v12 = vpop.f32.mrb[69].mxu1  ;;  %v7730_v31 = vrot.slane %v7714_v51, 1 }
 0x5db   : > { %7594 = vst [vmem:[#allocation3 + $0x28] sm:$0xff] %v16097_v14  ;;  %v7537_v7 = vadd.f32 %v13303_v1, %v16046_v44  ;;  %7695 = vst [vmem:[#allocation2 + $0x98] sm:$0xff] %v7694_v60  ;;  %v7713_v32 = vld [vmem:[#allocation3 + $0x10] sm:$0xfe]  ;;  %v7659_v20 = vshrl.u32 %v16097_v14, 16  ;;  %v7661_v18 = vshll.u32 %v16097_v14, 16  ;;  %v7529_v6 = vadd.f32 %v7528_v12, %v16040_v23  ;;  %8751 = vmatmul.mubr.bf16.gmra.mrb[64].mxu0 %v16062_v4 }
 0x5dc   : > { %7993 = vst [vmem:[#allocation2 + $0x38] sm:$0xff] %v16114_v33  ;;  %7844 = vst [vmem:[#allocation2 + $0x68] sm:$0xff] %v16119_v38  ;;  %v13304_v47 = vpop.f32.mrb[70].mxu1  ;;  %v7729_v44 = vrot.slane %v7713_v32, 1  ;;  %v7652_v13 = vshrl.u32 %v16107_v19, 16  ;;  %v7654_v2 = vshll.u32 %v16107_v19, 16  ;;  %8758 = vmatprep.mubr.bf16.mxu0 %v7694_v60  ;;  %12811 = vmatpush3.bf16.msra.mxu0 %v13910_v57 }
 0x5dd   : > { %7593 = vst [vmem:[#allocation3 + $0x20] sm:$0xff] %v16107_v19  ;;  %v16134_v22 = vld [vmem:[#allocation3 + $0x18] sm:$0xff]  ;;  %v7573_v10 = vmax.f32 %v7537_v7, 0.0  ;;  %v7540_v59 = vadd.f32 %v13304_v47, %v16048_v30  ;;  %v7531_v43 = vpop.f32.mrb[71].mxu1  ;;  %v8057_v61 = vld [vmem:[#allocation2 + $0x10] sm:$0xff]  ;;  %v7663_v23 = vrot.slane %v7661_v18, 1  ;;  %12812 = vmatprep.subr.bf16.mxu0 %v13911_v48 }
 0x5de   : > { %7746 = vst [vmem:[#allocation2 + $0xe8] sm:$0x7f] %v7730_v31  ;;  %v7864_v37 = vld [vmem:[#allocation3 + $0x10] sm:$0xfe]  ;;  %v7571_v55 = vmax.f32 %v7529_v6, 0.0  ;;  %v7532_v4 = vadd.f32 %v7531_v43, %v16042_v8  ;;  %8840 = vmatmul.mubr.bf16.vlgmr.msra.gmra.mrb[76].mxu1 %v8057_v61  ;;  %v7656_v5 = vrot.slane %v7654_v2, 1 }
 0x5df   : > { %7745 = vst [vmem:[#allocation2 + $0xa0] sm:$0x7f] %v7729_v44  ;;  %v7880_v45 = vrot.slane %v7864_v37, 1  ;;  %v8015_v17 = vld [vmem:[#allocation3 + $0x10] sm:$0xfe]  ;;  %v7574_v24 = vmax.f32 %v7540_v59, 0.0  ;;  %8847 = vmatprep.mubr.bf16.mxu1 %v16082_v62  ;;  %12871 = vmatpush3.bf16.msra.mxu1 %v13914_v25  ;;  %v7664_v29 = vor.u32 %v7663_v23, %v7659_v20 }
 0x5e0   : > { %v13916_v30 = vld [vmem:[#allocation13 + $0x188] sm:$0xff]   ;;  %v7881_v41 = vrot.slane %v16121_v46, 1  ;;  %v7790_v21 = vshrl.u32 %v16134_v22, 16  ;;  %v7572_v8 = vmax.f32 %v7532_v4, 0.0  ;;  %v16141_v34 = vor.u32 %v7656_v5, %v7652_v13  ;;  %12872 = vmatprep.subr.bf16.mxu1 %v13915_v42  ;;  %v8000_v3 = vld [vmem:[#allocation2 + $0x110] sm:$0xff]  ;;  %12813 = vmatpush3.bf16.msra.mxu0 %v13912_v39  ;;  %v13918_v57 = vld [vmem:[#allocation13 + $0x120] sm:$0xff]  }
 0x5e1   : > { %v8016_v16 = vld [vmem:[#allocation3 + $0x18] sm:$0xfe]  ;;  %7896 = vst [vmem:[#allocation2 + $0x70] sm:$0x7f] %v7880_v45  ;;  %v7792_v49 = vshll.u32 %v16134_v22, 16  ;;  %v8031_v63 = vrot.slane %v8015_v17, 1  ;;  %v16144_v15 = vpack.c.bf16 %v7574_v24, %v7573_v10  ;;  %v16148_v52 = vsel %vm14626_vm2, %v7664_v29, %v7702_v50  ;;  %12814 = vmatprep.subr.bf16.mxu0 %v13917_v53 }
 0x5e2   : > { %v7699_v54 = vld [vmem:[#allocation2 + $0x128] sm:$0xff]  ;;  %v13920_v48 = vld [vmem:[#allocation13 + $0x190] sm:$0xff]   ;;  %7897 = vst [vmem:[#allocation2 + $0xb8] sm:$0x7f] %v7881_v41  ;;  %v16152_v1 = vsel %vm14626_vm2, %v7664_v29, %v8000_v3  ;;  %v8032_v60 = vrot.slane %v8016_v16, 1  ;;  %v16154_v51 = vpack.c.bf16 %v7572_v8, %v7571_v55  ;;  %v13307_v25 = vpop.f32.mrb[72].mxu1 }
 0x5e3   : > { %v7997_v9 = vld [vmem:[#allocation2 + $0xc8] sm:$0xff]  ;;  %v16159_v46 = vsel %vm14626_vm2, %v16141_v34, %v7699_v54  ;;  %7704 = vst [vmem:[#allocation2 + $0x170] sm:$0xff] %v16148_v52  ;;  %v7716_v7 = vld [vmem:[#allocation3 + $0x28] sm:$0xfe]  ;;  %8002 = vst [vmem:[#allocation2 + $0x110] sm:$0xff] %v16152_v1  ;;  %v7794_v39 = vrot.slane %v7792_v49, 1  ;;  %v16170_v20 = vadd.f32 %v13307_v25, %v16060_v56  ;;  %12873 = vmatpush3.bf16.msra.mxu1 %v13916_v30  ;;  %8759 = vmatmul.mubr.bf16.gmra.mrb[68].mxu0 %v16082_v62 }
 0x5e4   : > { %v13921_v12 = vld [vmem:[#allocation13 + $0x1d8] sm:$0xff]   ;;  %v13923_v32 = vld [vmem:[#allocation13 + $0x168] sm:$0xff]   ;;  %v16165_v31 = vsel %vm14626_vm2, %v16141_v34, %v7997_v9  ;;  %8047 = vst [vmem:[#allocation2 + $0x40] sm:$0x7f] %v8031_v63  ;;  %7596 = vst [vmem:[#allocation3 + $0x38] sm:$0xff] %v16144_v15  ;;  %v7544_v18 = vpop.f32.mrb[73].mxu1  ;;  %12874 = vmatprep.subr.bf16.mxu1 %v13919_v26  ;;  %8766 = vmatprep.mubr.bf16.mxu0 %v16101_v58 }
 0x5e5   : > { %v8066_v6 = vld [vmem:[#allocation2 + $0x58] sm:$0xff]  ;;  %7701 = vst [vmem:[#allocation2 + $0x128] sm:$0xff] %v16159_v46  ;;  %v7715_v47 = vld [vmem:[#allocation3 + $0x20] sm:$0xfe]  ;;  %v7732_v44 = vrot.slane %v7716_v7, 1  ;;  %v13924_v13 = vld [vmem:[#allocation13 + $0x128] sm:$0xff]   ;;  %v7545_v56 = vadd.f32 %v7544_v18, %v16052_v0  ;;  %12815 = vmatpush3.bf16.msra.mxu0 %v13918_v57  ;;  %v7795_v4 = vor.u32 %v7794_v39, %v7790_v21 }
 0x5e6   : > { %v7673_v2 = vshrl.u32 %v16144_v15, 16  ;;  %v7675_v42 = vshll.u32 %v16144_v15, 16  ;;  %7999 = vst [vmem:[#allocation2 + $0xc8] sm:$0xff] %v16165_v31  ;;  %8048 = vst [vmem:[#allocation2 + $0x88] sm:$0x7f] %v8032_v60  ;;  %v13308_v22 = vpop.f32.mrb[74].mxu1  ;;  %8848 = vmatmul.mubr.bf16.gmra.mrb[80].mxu1 %v8066_v6  ;;  %12816 = vmatprep.subr.bf16.mxu0 %v13923_v32 }
 0x5e7   : > { %7595 = vst [vmem:[#allocation3 + $0x30] sm:$0xff] %v16154_v51  ;;  %v7731_v10 = vrot.slane %v7715_v47, 1  ;;  %v7666_v59 = vshrl.u32 %v16154_v51, 16  ;;  %v7668_v43 = vshll.u32 %v16154_v51, 16  ;;  %v7867_v61 = vld [vmem:[#allocation3 + $0x28] sm:$0xfe]  ;;  %v7556_v37 = vadd.f32 %v13308_v22, %v16064_v11  ;;  %8855 = vmatprep.mubr.bf16.mxu1 %v16074_v28  ;;  %12875 = vmatpush3.bf16.msra.mxu1 %v13920_v48 }
 0x5e8   : > { %v7577_v23 = vmax.f32 %v16170_v20, 0.0  ;;  %v7547_v55 = vpop.f32.mrb[75].mxu1  ;;  %7748 = vst [vmem:[#allocation2 + $0x178] sm:$0x7f] %v7732_v44  ;;  %v7677_v0 = vrot.slane %v7675_v42, 1  ;;  %v16184_v53 = vld [vmem:[#allocation3 + $0x28] sm:$0xff]  ;;  %12876 = vmatprep.subr.bf16.mxu1 %v13921_v12 }
 0x5e9   : > { %v7866_v5 = vld [vmem:[#allocation3 + $0x20] sm:$0xfe]  ;;  %v7575_v50 = vmax.f32 %v7545_v56, 0.0  ;;  %v7548_v45 = vadd.f32 %v7547_v55, %v16054_v35  ;;  %7747 = vst [vmem:[#allocation2 + $0x130] sm:$0x7f] %v7731_v10  ;;  %v7670_v17 = vrot.slane %v7668_v43, 1  ;;  %12817 = vmatpush3.bf16.msra.mxu0 %v13924_v13 }
 0x5ea   : > { %v13929_v24 = vld [vmem:[#allocation13 + $0x170] sm:$0xff]   ;;  %v7882_v11 = vrot.slane %v7866_v5, 1  ;;  %v7848_v29 = vld [vmem:[#allocation2 + $0xf8] sm:$0xff]  ;;  %v7578_v41 = vmax.f32 %v7556_v37, 0.0  ;;  %v7678_v16 = vor.u32 %v7677_v0, %v7673_v2  ;;  %v7708_v8 = vld [vmem:[#allocation2 + $0x200] sm:$0xff]  ;;  %v7883_v48 = vrot.slane %v7867_v61, 1 }
 0x5eb   : > { %v7845_v30 = vld [vmem:[#allocation2 + $0xb0] sm:$0xff]  ;;  %v13922_v58 = vld [vmem:[#allocation13 + $0x198] sm:$0xff]   ;;  %v16195_v35 = vsel %vm14626_vm2, %v16141_v34, %v7848_v29  ;;  %v7576_v3 = vmax.f32 %v7548_v45, 0.0  ;;  %v7671_v49 = vor.u32 %v7670_v17, %v7666_v59  ;;  %v13925_v63 = vld [vmem:[#allocation13 + $0x1e0] sm:$0xff]   ;;  %v7804_v60 = vshrl.u32 %v16184_v53, 16  ;;  %12818 = vmatprep.subr.bf16.mxu0 %v13929_v24  ;;  %8767 = vmatmul.mubr.bf16.gmra.mrb[72].mxu0 %v16074_v28 }
 0x5ec   : > { %v7705_v21 = vld [vmem:[#allocation2 + $0x1b8] sm:$0xff]  ;;  %v16190_v54 = vsel %vm14626_vm2, %v7795_v4, %v7845_v30  ;;  %v8017_v26 = vld [vmem:[#allocation3 + $0x20] sm:$0xfe]  ;;  %7898 = vst [vmem:[#allocation2 + $0x100] sm:$0x7f] %v7882_v11  ;;  %7850 = vst [vmem:[#allocation2 + $0xf8] sm:$0xff] %v16195_v35  ;;  %v7588_v25 = vpack.c.bf16 %v7578_v41, %v7577_v23  ;;  %v16202_v34 = vsel %vm14626_vm2, %v7678_v16, %v7708_v8  ;;  %12877 = vmatpush3.bf16.msra.mxu1 %v13922_v58 }
 0x5ed   : > { %7847 = vst [vmem:[#allocation2 + $0xb0] sm:$0xff] %v16190_v54  ;;  %v8003_v57 = vld [vmem:[#allocation2 + $0x158] sm:$0xff]  ;;  %v8006_v9 = vld [vmem:[#allocation2 + $0x1a0] sm:$0xff]  ;;  %v13930_v12 = vld [vmem:[#allocation13 + $0x130] sm:$0xff]   ;;  %v7806_v20 = vshll.u32 %v16184_v53, 16  ;;  %v16211_v6 = vpack.c.bf16 %v7576_v3, %v7575_v50  ;;  %v16215_v47 = vsel %vm14626_vm2, %v7671_v49, %v7705_v21  ;;  %v8033_v56 = vrot.slane %v8017_v26, 1  ;;  %12878 = vmatprep.subr.bf16.mxu1 %v13925_v63  ;;  %8774 = vmatprep.mubr.bf16.mxu0 %v16159_v46 }
 0x5ee   : > { %v13926_v7 = vld [vmem:[#allocation13 + $0x1a0] sm:$0xff]   ;;  %v13935_v32 = vld [vmem:[#allocation13 + $0x178] sm:$0xff]   ;;  %v16206_v39 = vsel %vm14626_vm2, %v7678_v16, %v8006_v9  ;;  %7710 = vst [vmem:[#allocation2 + $0x200] sm:$0xff] %v16202_v34  ;;  %v7718_v44 = vld [vmem:[#allocation3 + $0x38] sm:$0xfe]  ;;  %v16220_v13 = vsel %vm14626_vm2, %v7671_v49, %v8003_v57  ;;  %12819 = vmatpush3.bf16.msra.mxu0 %v13930_v12 }
 0x5ef   : > { %v16209_v18 = vld [vmem:[#allocation3 + $0x28] sm:$0xfe]  ;;  %7899 = vst [vmem:[#allocation2 + $0x148] sm:$0x7f] %v7883_v48  ;;  %8008 = vst [vmem:[#allocation2 + $0x1a0] sm:$0xff] %v16206_v39  ;;  %v16223_v2 = vld [vmem:[#allocation3 + $0x38] sm:$0xff]  ;;  %12820 = vmatprep.subr.bf16.mxu0 %v13935_v32 }
 0x5f0   : > { %v7869_v42 = vld [vmem:[#allocation3 + $0x38] sm:$0xfe]  ;;  %7598 = vst [vmem:[#allocation3 + $0x48] sm:$0xff] %v7588_v25  ;;  %7707 = vst [vmem:[#allocation2 + $0x1b8] sm:$0xff] %v16215_v47  ;;  %v7717_v22 = vld [vmem:[#allocation3 + $0x30] sm:$0xfe]  ;;  %12879 = vmatpush3.bf16.msra.mxu1 %v13926_v7 }
 0x5f1   : > { %v7734_v10 = vrot.slane %v7718_v44, 1  ;;  %8005 = vst [vmem:[#allocation2 + $0x158] sm:$0xff] %v16220_v13  ;;  %v7808_v59 = vrot.slane %v7806_v20, 1  ;;  %v7868_v43 = vld [vmem:[#allocation3 + $0x30] sm:$0xfe]  ;;  %7597 = vst [vmem:[#allocation3 + $0x40] sm:$0xff] %v16211_v6 }
 0x5f2   : > { %v7733_v61 = vrot.slane %v7717_v22, 1  ;;  %v13927_v23 = vld [vmem:[#allocation13 + $0x1e8] sm:$0xff]   ;;  %v7851_v37 = vld [vmem:[#allocation2 + $0x140] sm:$0xff]  ;;  %v7884_v55 = vrot.slane %v7868_v43, 1  ;;  %v7972_v0 = vshll.u32 %v16211_v6, 16  ;;  %v13936_v53 = vld [vmem:[#allocation13 + $0x138] sm:$0xff]  }
 0x5f3   : > { %v7772_v4 = vld [vmem:[#allocation3 + $0x30] sm:$0xff]  ;;  %8049 = vst [vmem:[#allocation2 + $0xd0] sm:$0x7f] %v8033_v56  ;;  %7750 = vst [vmem:[#allocation2 + $0x208] sm:$0x7f] %v7734_v10  ;;  %v7809_v45 = vor.u32 %v7808_v59, %v7804_v60  ;;  %v7885_v24 = vrot.slane %v7869_v42, 1  ;;  %12880 = vmatprep.subr.bf16.mxu1 %v13927_v23  ;;  %12821 = vmatpush3.bf16.msra.mxu0 %v13936_v53 }
 0x5f4   : > { %v8075_v5 = vld [vmem:[#allocation2 + $0xa0] sm:$0xff]  ;;  %v7813_v17 = vshll.u32 %v7772_v4, 16  ;;  %7749 = vst [vmem:[#allocation2 + $0x1c0] sm:$0x7f] %v7733_v61  ;;  %7900 = vst [vmem:[#allocation2 + $0x190] sm:$0x7f] %v7884_v55  ;;  %8775 = vmatmul.mubr.bf16.gmra.mrb[76].mxu0 %v16107_v19 }
 0x5f5   : > { %v16231_v50 = vld [vmem:[#allocation13 + $0x200] sm:$0xff]   ;;  %8856 = vmatmul.mubr.bf16.gmra.mrb[84].mxu1 %v8075_v5  ;;  %v7970_v30 = vshrl.u32 %v16211_v6, 16  ;;  %v7974_v11 = vrot.slane %v7972_v0, 1  ;;  %v7820_v29 = vshll.u32 %v16223_v2, 16  ;;  %v8034_v41 = vrot.slane %v16209_v18, 1  ;;  %v13928_v58 = vld [vmem:[#allocation13 + $0x1a8] sm:$0xff]   ;;  %8782 = vmatprep.mubr.bf16.mxu0 %v16148_v52 }
 0x5f6   : > { %v8019_v46 = vld [vmem:[#allocation3 + $0x30] sm:$0xfe]  ;;  %8863 = vmatprep.mubr.bf16.mxu1 %v16107_v19  ;;  %v16239_v21 = vsel %vm14626_vm2, %v7809_v45, %v7851_v37  ;;  %v7811_v16 = vshrl.u32 %v7772_v4, 16  ;;  %v7815_v8 = vrot.slane %v7813_v17, 1  ;;  %7901 = vst [vmem:[#allocation2 + $0x1d8] sm:$0x7f] %v7885_v24  ;;  %13309 = vmatprep.subr.bf16.mxu0 %v16231_v50 }
 0x5f7   : > { %v8035_v26 = vrot.slane %v8019_v46, 1  ;;  %v8020_v3 = vld [vmem:[#allocation3 + $0x38] sm:$0xfe]  ;;  %v13931_v49 = vld [vmem:[#allocation13 + $0x1f0] sm:$0xff]   ;;  %7853 = vst [vmem:[#allocation2 + $0x140] sm:$0xff] %v16239_v21  ;;  %v7975_v63 = vor.u32 %v7974_v11, %v7970_v30  ;;  %v7818_v57 = vshrl.u32 %v16223_v2, 16  ;;  %12881 = vmatpush3.bf16.msra.mxu1 %v13928_v58 }
 0x5f8   : > { %v7822_v48 = vrot.slane %v7820_v29, 1  ;;  %8050 = vst [vmem:[#allocation2 + $0x118] sm:$0x7f] %v8034_v41  ;;  %v8036_v9 = vrot.slane %v8020_v3, 1  ;;  %v8009_v60 = vld [vmem:[#allocation2 + $0x1e8] sm:$0xff]  ;;  %v7816_v25 = vor.u32 %v7815_v8, %v7811_v16  ;;  %v16248_v32 = vld [vmem:[#allocation3 + $0x48] sm:$0xff]  ;;  %12882 = vmatprep.subr.bf16.mxu1 %v13931_v49 }
 0x5f9   : > { %v7854_v7 = vld [vmem:[#allocation2 + $0x188] sm:$0xff]  ;;  %8051 = vst [vmem:[#allocation2 + $0x160] sm:$0x7f] %v8035_v26  ;;  %v16246_v12 = vsel %vm14626_vm2, %v7975_v63, %v8009_v60  ;;  %v7857_v18 = vld [vmem:[#allocation2 + $0x1d0] sm:$0xff]  ;;  %v8022_v44 = vld [vmem:[#allocation3 + $0x48] sm:$0xfe] }
 0x5fa   : > { %v7823_v20 = vor.u32 %v7822_v48, %v7818_v57  ;;  %8052 = vst [vmem:[#allocation2 + $0x1a8] sm:$0x7f] %v8036_v9  ;;  %v13932_v42 = vld [vmem:[#allocation13 + $0x1b0] sm:$0xff]   ;;  %8011 = vst [vmem:[#allocation2 + $0x1e8] sm:$0xff] %v16246_v12  ;;  %v16253_v56 = vsel %vm14626_vm2, %v7816_v25, %v7854_v7  ;;  %v7979_v22 = vshll.u32 %v16248_v32, 16  ;;  %v13933_v43 = vld [vmem:[#allocation13 + $0x1f8] sm:$0xff]  }
 0x5fb   : > { %v7870_v10 = vld [vmem:[#allocation3 + $0x40] sm:$0xfe]  ;;  %7856 = vst [vmem:[#allocation2 + $0x188] sm:$0xff] %v16253_v56  ;;  %v8084_v0 = vld [vmem:[#allocation2 + $0xe8] sm:$0xff]  ;;  %v7977_v4 = vshrl.u32 %v16248_v32, 16  ;;  %v8038_v45 = vrot.slane %v8022_v44, 1  ;;  %12883 = vmatpush3.bf16.msra.mxu1 %v13932_v42 }
 0x5fc   : > { %v7774_v59 = vld [vmem:[#allocation3 + $0x40] sm:$0xff]  ;;  %v16260_v61 = vsel %vm14626_vm2, %v7823_v20, %v7857_v18  ;;  %v7886_v23 = vrot.slane %v7870_v10, 1  ;;  %v7981_v5 = vrot.slane %v7979_v22, 1  ;;  %v13934_v30 = vld [vmem:[#allocation13 + $0x1b8] sm:$0xff]   ;;  %12884 = vmatprep.subr.bf16.mxu1 %v13933_v43  ;;  %8783 = vmatmul.mubr.bf16.gmra.mrb[80].mxu0 %v16097_v14  ;;  %v8060_v26 = vld [vmem:[#allocation2 + $0x28] sm:$0xff] }
 0x5fd   : > { %v7827_v37 = vshll.u32 %v7774_v59, 16  ;;  %v8021_v55 = vld [vmem:[#allocation3 + $0x40] sm:$0xfe]  ;;  %7859 = vst [vmem:[#allocation2 + $0x1d0] sm:$0xff] %v16260_v61  ;;  %8864 = vmatmul.mubr.bf16.gmra.mrb[88].mxu1 %v8084_v0  ;;  %v7825_v17 = vshrl.u32 %v7774_v59, 16  ;;  %v7860_v46 = vld [vmem:[#allocation2 + $0x218] sm:$0xff]  ;;  %8790 = vmatprep.mubr.bf16.mxu0 %v16215_v47 }
 0x5fe   : > { %v8037_v53 = vrot.slane %v8021_v55, 1  ;;  %7902 = vst [vmem:[#allocation2 + $0x220] sm:$0x7f] %v7886_v23  ;;  %8871 = vmatprep.mubr.bf16.mxu1 %v16097_v14  ;;  %v7982_v11 = vor.u32 %v7981_v5, %v7977_v4  ;;  %8054 = vst [vmem:[#allocation2 + $0x238] sm:$0x7f] %v8038_v45  ;;  %v8012_v52 = vld [vmem:[#allocation2 + $0x230] sm:$0xff] }
 0x5ff   : > { %v7829_v24 = vrot.slane %v7827_v37, 1  ;;  %12885 = vmatpush3.bf16.msra.mxu1 %v13934_v30  ;;  %v8093_v16 = vld [vmem:[#allocation2 + $0x130] sm:$0xff]  ;;  %v8102_v8 = vld [vmem:[#allocation2 + $0x178] sm:$0xff]  ;;  %v8111_v3 = vld [vmem:[#allocation2 + $0x1c0] sm:$0xff] }
 0x600   : > { %8053 = vst [vmem:[#allocation2 + $0x1f0] sm:$0x7f] %v8037_v53  ;;  %v16268_v41 = vsel %vm14626_vm2, %v7982_v11, %v8012_v52  ;;  %v13938_v47 = vld [vmem:[#allocation13 + $0x208] sm:$0xff]   ;;  %v8069_v49 = vld [vmem:[#allocation2 + $0x70] sm:$0xff]  ;;  %v8078_v57 = vld [vmem:[#allocation2 + $0xb8] sm:$0xff] }
 0x601   : > { %v7830_v29 = vor.u32 %v7829_v24, %v7825_v17  ;;  %8014 = vst [vmem:[#allocation2 + $0x230] sm:$0xff] %v16268_v41  ;;  %v8120_v63 = vld [vmem:[#allocation2 + $0x208] sm:$0xff]  ;;  %v13957_v20 = vld [vmem:[#allocation14 + $0x50] sm:$0xff]   ;;  %v13945_v42 = vld [vmem:[#allocation14 + $0xc0] sm:$0xff]  }
 0x602   : > { %v13953_v48 = vld [vmem:[#allocation14 + $0x48] sm:$0xff]   ;;  %v13958_v44 = vld [vmem:[#allocation14 + $0x10] sm:$0xff]   ;;  %13002 = vmatprep.subr.bf16.mxu1 %v13945_v42  ;;  %v13961_v10 = vld [vmem:[#allocation14 + $0x58] sm:$0xff]  }
 0x603   : > { %v16273_v58 = vsel %vm14626_vm2, %v7830_v29, %v7860_v46  ;;  %v13954_v60 = vld [vmem:[#allocation14 + $0x8] sm:$0xff]   ;;  %v16312_v23 = vld [vmem:[%s16793_s20] ss:$0 sm:$0xff]  ;;  %s14194_s20 = sshll.u32 %s14282_s14, 4  ;;  %s14195_s20 = int_to_ptr.vmem [resolvable:$false] %s14194_s20 }
 0x604   : > { %7862 = vst [vmem:[#allocation2 + $0x218] sm:$0xff] %v16273_v58  ;;  %8791 = vmatmul.mubr.bf16.gmra.mrb[84].mxu0 %v16154_v51  ;;  %v13947_v22 = vld [vmem:[#allocation14 + $0xc8] sm:$0xff]   ;;  %v13965_v45 = vld [vmem:[#allocation14 + $0x60] sm:$0xff]   ;;  %s14196_s24 = scalar_lea.vmem %s14195_s20, 32  ;;  %p14197_p13 = scmp.lt.s32.totalorder %s16706_s11, %s14195_s20 }
 0x605   : > { %8872 = vmatmul.mubr.bf16.gmra.mrb[92].mxu1 %v8093_v16  ;;  %8798 = vmatprep.mubr.bf16.mxu0 %v16202_v34  ;;  %v13939_v34 = vld [vmem:[#allocation13 + $0x210] sm:$0xff]   ;;  %v13948_v43 = vld [vmem:[#allocation14 + $0x88] sm:$0xff]   ;;  %v13966_v52 = vld [vmem:[#allocation14 + $0x20] sm:$0xff]   ;;  %p14198_p0 = scmp.lt.s32.totalorder %s14196_s24, %s14190_s22 }
 0x606   : > { %8879 = vmatprep.mubr.bf16.mxu1 %v16154_v51 }
 0x607   : > { %p14199_p2 = por %p14198_p0, %p14197_p13 }
 0x609   : > { %p14200_p8 = pnand %p14199_p2, %p14193_p1 }
 0x60c   : > { %8799 = vmatmul.mubr.bf16.gmra.mrb[88].mxu0 %v16144_v15 }
 0x60d   : > { %8880 = vmatmul.mubr.bf16.gmra.mrb[96].mxu1 %v8102_v8  ;;  %8936 = vmatprep.mubr.bf16.mxu0 %v8060_v26  ;;  %v13952_v8 = vld [vmem:[#allocation14 + $0x90] sm:$0xff]   ;;  %v13969_v26 = vld [vmem:[#allocation14 + $0x68] sm:$0xff]  }
 0x60e   : > { %8887 = vmatprep.mubr.bf16.mxu1 %v16144_v15  ;;  %v13940_v15 = vld [vmem:[#allocation13 + $0x218] sm:$0xff]  }
 0x614   : > { %8937 = vmatmul.mubr.bf16.vlgmr.msra.gmra.mrb[92].mxu0 %v16080_v40  ;;  %v13941_v40 = vld [vmem:[#allocation13 + $0x220] sm:$0xff]  }
 0x615   : > { %8888 = vmatmul.mubr.bf16.gmra.mrb[100].mxu1 %v8111_v3  ;;  %8944 = vmatprep.mubr.bf16.mxu0 %v8069_v49  ;;  %v13970_v49 = vld [vmem:[#allocation14 + $0x28] sm:$0xff]  }
 0x616   : > { %8895 = vmatprep.mubr.bf16.mxu1 %v16211_v6  ;;  %13310 = vmatpush3.bf16.msra.mxu0 %v16231_v50  ;;  %v13942_v50 = vld [vmem:[#allocation13 + $0x228] sm:$0xff]  }
 0x617   : > { %13311 = vmatprep.subr.bf16.mxu0 %v13938_v47 }
 0x61a   : > { %13312 = vmatpush3.bf16.msra.mxu0 %v13938_v47 }
 0x61b   : > { %13313 = vmatprep.subr.bf16.mxu0 %v13939_v34 }
 0x61c   : > { %8945 = vmatmul.mubr.bf16.gmra.mrb[96].mxu0 %v16119_v38  ;;  %v13943_v38 = vld [vmem:[#allocation13 + $0x230] sm:$0xff]  }
 0x61d   : > { %8896 = vmatmul.mubr.bf16.gmra.mrb[104].mxu1 %v8120_v63  ;;  %8952 = vmatprep.mubr.bf16.mxu0 %v8078_v57 }
 0x61e   : > { %9033 = vmatprep.mubr.bf16.mxu1 %v16114_v33  ;;  %13314 = vmatpush3.bf16.msra.mxu0 %v13939_v34  ;;  %v8087_v33 = vld [vmem:[#allocation2 + $0x100] sm:$0xff]  ;;  %v13955_v34 = vld [vmem:[#allocation14 + $0xd8] sm:$0xff]  }
 0x61f   : > { %13315 = vmatprep.subr.bf16.mxu0 %v13940_v15 }
 0x622   : > { %13316 = vmatpush3.bf16.msra.mxu0 %v13940_v15 }
 0x623   : > { %13317 = vmatprep.subr.bf16.mxu0 %v13941_v40 }
 0x624   : > { %8953 = vmatmul.mubr.bf16.gmra.mrb[100].mxu0 %v16190_v54  ;;  %v8090_v54 = vld [vmem:[#allocation2 + $0x118] sm:$0xff] }
 0x625   : > { %9034 = vmatmul.mubr.bf16.vlgmr.msra.gmra.mrb[108].mxu1 %v16082_v62  ;;  %8960 = vmatprep.mubr.bf16.mxu0 %v8087_v33  ;;  %v13944_v62 = vld [vmem:[#allocation13 + $0x238] sm:$0xff]  }
 0x626   : > { %9041 = vmatprep.mubr.bf16.mxu1 %v16105_v27  ;;  %13318 = vmatpush3.bf16.msra.mxu0 %v13941_v40  ;;  %v8096_v27 = vld [vmem:[#allocation2 + $0x148] sm:$0xff] }
 0x627   : > { %13319 = vmatprep.subr.bf16.mxu0 %v13942_v50 }
 0x62a   : > { %13320 = vmatpush3.bf16.msra.mxu0 %v13942_v50  ;;  %v13956_v50 = vld [vmem:[#allocation14 + $0x98] sm:$0xff]  }
 0x62b   : > { %13321 = vmatprep.subr.bf16.mxu0 %v13943_v38 }
 0x62c   : > { %8961 = vmatmul.mubr.bf16.gmra.mrb[104].mxu0 %v16195_v35  ;;  %v8099_v35 = vld [vmem:[#allocation2 + $0x160] sm:$0xff] }
 0x62d   : > { %9042 = vmatmul.mubr.bf16.gmra.mrb[112].mxu1 %v16074_v28  ;;  %8968 = vmatprep.mubr.bf16.mxu0 %v8096_v27  ;;  %v8105_v28 = vld [vmem:[#allocation2 + $0x190] sm:$0xff] }
 0x62e   : > { %9049 = vmatprep.mubr.bf16.mxu1 %v16165_v31  ;;  %13322 = vmatpush3.bf16.msra.mxu0 %v13943_v38  ;;  %v8114_v31 = vld [vmem:[#allocation2 + $0x1d8] sm:$0xff] }
 0x62f   : > { %13323 = vmatprep.subr.bf16.mxu0 %v13944_v62 }
 0x632   : > { %13324 = vmatpush3.bf16.msra.mxu0 %v13944_v62  ;;  %v13973_v62 = vld [vmem:[#allocation14 + $0x70] sm:$0xff]  }
 0x634   : > { %8969 = vmatmul.mubr.bf16.gmra.mrb[108].mxu0 %v16239_v21  ;;  %v13949_v21 = vld [vmem:[#allocation14 + $0x40] sm:$0xff]  }
 0x635   : > { %9050 = vmatmul.mubr.bf16.gmra.mrb[116].mxu1 %v16107_v19  ;;  %8976 = vmatprep.mubr.bf16.mxu0 %v8105_v28  ;;  %v8123_v19 = vld [vmem:[#allocation2 + $0x220] sm:$0xff] }
 0x636   : > { %9057 = vmatprep.mubr.bf16.mxu1 %v16152_v1  ;;  %v8072_v1 = vld [vmem:[#allocation2 + $0x88] sm:$0xff]  ;;  %12950 = vmatprep.subr.bf16.mxu0 %v13949_v21  ;;  %v13975_v21 = vld [vmem:[#allocation14 + $0x78] sm:$0xff]  }
 0x63c   : > { %8977 = vmatmul.mubr.bf16.gmra.mrb[112].mxu0 %v16253_v56  ;;  %v13946_v56 = vld [vmem:[#allocation14 + $0x80] sm:$0xff]  }
 0x63d   : > { %9058 = vmatmul.mubr.bf16.gmra.mrb[120].mxu1 %v16097_v14  ;;  %8984 = vmatprep.mubr.bf16.mxu0 %v8114_v31  ;;  %v8063_v14 = vld [vmem:[#allocation2 + $0x40] sm:$0xff] }
 0x63e   : > { %9065 = vmatprep.mubr.bf16.mxu1 %v16220_v13  ;;  %v8117_v13 = vld [vmem:[#allocation2 + $0x1f0] sm:$0xff]  ;;  %13003 = vmatpush3.bf16.msra.mxu1 %v13946_v56 }
 0x63f   : > { %13004 = vmatprep.subr.bf16.mxu1 %v13947_v22 }
 0x642   : > { %13005 = vmatpush3.bf16.msra.mxu1 %v13948_v43 }
 0x644   : > { %8985 = vmatmul.mubr.bf16.gmra.mrb[116].mxu0 %v16260_v61  ;;  %v13962_v61 = vld [vmem:[#allocation14 + $0x18] sm:$0xff]  }
 0x645   : > { %9066 = vmatmul.mubr.bf16.gmra.mrb[124].mxu1 %v16154_v51  ;;  %8992 = vmatprep.mubr.bf16.mxu0 %v8123_v19  ;;  %v8081_v51 = vld [vmem:[#allocation2 + $0xd0] sm:$0xff] }
 0x646   : > { %9073 = vmatprep.mubr.bf16.mxu1 %v16206_v39  ;;  %v8108_v39 = vld [vmem:[#allocation2 + $0x1a8] sm:$0xff] }
 0x64c   : > { %8993 = vmatmul.mubr.bf16.gmra.mrb[120].mxu0 %v16273_v58 }
 0x64d   : > { %9074 = vmatmul.mubr.bf16.gmra.mrb[128].mxu1 %v16223_v2  ;;  %13325 = vmatprep.mubr.bf16.mxu0 %v8063_v14  ;;  %v8126_v2 = vld [vmem:[#allocation2 + $0x238] sm:$0xff]  ;;  %v13959_v14 = vld [vmem:[#allocation14 + $0xe0] sm:$0xff]  }
 0x64e   : > { %9081 = vmatprep.mubr.bf16.mxu1 %v16246_v12 }
 0x654   : > { %13326 = vmatmul.mubr.bf16.vlgmr.msra.gmra.mrb[124].mxu0 %v8072_v1  ;;  %v13960_v1 = vld [vmem:[#allocation14 + $0xa0] sm:$0xff]  }
 0x655   : > { %9082 = vmatmul.mubr.bf16.gmra.mrb[132].mxu1 %v16211_v6  ;;  %13329 = vmatprep.mubr.bf16.mxu0 %v8081_v51  ;;  %v13950_v6 = vld [vmem:[#allocation14] sm:$0xff]  }
 0x656   : > { %9089 = vmatprep.mubr.bf16.mxu1 %v16268_v41  ;;  %12951 = vmatpush3.bf16.msra.mxu0 %v13950_v6  ;;  %v13951_v41 = vld [vmem:[#allocation14 + $0xd0] sm:$0xff]  }
 0x657   : > { %12952 = vmatprep.subr.bf16.mxu0 %v13953_v48  ;;  %13006 = vmatprep.subr.bf16.mxu1 %v13951_v41 }
 0x658   : > { %13007 = vmatpush3.bf16.msra.mxu1 %v13952_v8 }
 0x659   : > { %13008 = vmatprep.subr.bf16.mxu1 %v13955_v34 }
 0x65a   : > { %12953 = vmatpush3.bf16.msra.mxu0 %v13954_v60  ;;  %v13976_v60 = vld [vmem:[#allocation14 + $0x38] sm:$0xff]  }
 0x65b   : > { %12954 = vmatprep.subr.bf16.mxu0 %v13957_v20  ;;  %v13967_v20 = vld [vmem:[#allocation14 + $0xf0] sm:$0xff]  }
 0x65c   : > { %13330 = vmatmul.mubr.bf16.gmra.mrb[128].mxu0 %v8090_v54  ;;  %13009 = vmatpush3.bf16.msra.mxu1 %v13956_v50  ;;  %v13963_v54 = vld [vmem:[#allocation14 + $0xe8] sm:$0xff]  }
 0x65d   : > { %9090 = vmatmul.mubr.bf16.gmra.mrb[136].mxu1 %v16248_v32  ;;  %13333 = vmatprep.mubr.bf16.mxu0 %v8099_v35  ;;  %v13974_v35 = vld [vmem:[#allocation14 + $0x30] sm:$0xff]  }
 0x65e   : > { %12955 = vmatpush3.bf16.msra.mxu0 %v13958_v44  ;;  %13010 = vmatprep.subr.bf16.mxu1 %v13959_v14  ;;  %v13981_v14 = vld [vmem:[#allocation14 + $0x1c0] sm:$0xff]  }
 0x65f   : > { %12956 = vmatprep.subr.bf16.mxu0 %v13961_v10 }
 0x660   : > { %13011 = vmatpush3.bf16.msra.mxu1 %v13960_v1 }
 0x661   : > { %13012 = vmatprep.subr.bf16.mxu1 %v13963_v54 }
 0x662   : > { %12957 = vmatpush3.bf16.msra.mxu0 %v13962_v61  ;;  %v13971_v61 = vld [vmem:[#allocation14 + $0xf8] sm:$0xff]  }
 0x663   : > { %12958 = vmatprep.subr.bf16.mxu0 %v13965_v45 }
 0x664   : > { %13334 = vmatmul.mubr.bf16.gmra.mrb[132].mxu0 %v8108_v39 }
 0x665   : > { %13337 = vmatprep.mubr.bf16.mxu0 %v8117_v13 }
 0x666   : > { %12959 = vmatpush3.bf16.msra.mxu0 %v13966_v52 }
 0x667   : > { %12960 = vmatprep.subr.bf16.mxu0 %v13969_v26 }
 0x66a   : > { %12961 = vmatpush3.bf16.msra.mxu0 %v13970_v49 }
 0x66b   : > { %12962 = vmatprep.subr.bf16.mxu0 %v13973_v62 }
 0x66c   : > { %13338 = vmatmul.mubr.bf16.gmra.mrb[136].mxu0 %v8126_v2 }
 0x66e   : > { %12963 = vmatpush3.bf16.msra.mxu0 %v13974_v35 }
 0x66f   : > { %12964 = vmatprep.subr.bf16.mxu0 %v13975_v21 }
 0x672   : > { %12965 = vmatpush3.bf16.msra.mxu0 %v13976_v60 }
 0x6a6   : > { %v12694_v9 = vpop.f32.mrb[60].mxu0 }
 0x6a7   : > { %v12695_v25 = vpop.f32.mrb[61].mxu0 }
 0x6a8   : > { %v12696_v7 = vadd.f32 %v12695_v25, %v12694_v9  ;;  %v12697_v12 = vpop.f32.mrb[62].mxu0  ;;  %v13964_v9 = vld [vmem:[#allocation14 + $0xa8] sm:$0xff]  }
 0x6a9   : > { %v12698_v32 = vpop.f32.mrb[63].mxu0  ;;  %13013 = vmatpush3.bf16.msra.mxu1 %v13964_v9 }
 0x6aa   : > { %v12699_v18 = vadd.f32 %v12698_v32, %v12697_v12  ;;  %v8745_v30 = vadd.f32 %v12696_v7, %v16312_v23  ;;  %13014 = vmatprep.subr.bf16.mxu1 %v13967_v20 }
 0x6ac   : > { %v8748_v58 = vadd.f32 %v12699_v18, %v16312_v23 }
 0x6ae   : > { %v12700_v59 = vpop.f32.mrb[64].mxu0 }
 0x6af   : > { %v12701_v37 = vpop.f32.mrb[65].mxu0 }
 0x6b0   : > { %v12702_v0 = vadd.f32 %v12701_v37, %v12700_v59  ;;  %v12703_v4 = vpop.f32.mrb[66].mxu0  ;;  %v13968_v59 = vld [vmem:[#allocation14 + $0xb0] sm:$0xff]  }
 0x6b1   : > { %v12758_v55 = vpop.f32.mrb[76].mxu1  ;;  %v12704_v53 = vpop.f32.mrb[67].mxu0  ;;  %13015 = vmatpush3.bf16.msra.mxu1 %v13968_v59 }
 0x6b2   : > { %v12759_v5 = vpop.f32.mrb[77].mxu1  ;;  %v12705_v11 = vadd.f32 %v12704_v53, %v12703_v4  ;;  %v8753_v31 = vadd.f32 %v12702_v0, %v16312_v23  ;;  %v13972_v53 = vld [vmem:[#allocation14 + $0xb8] sm:$0xff]   ;;  %13016 = vmatprep.subr.bf16.mxu1 %v13971_v61 }
 0x6b3   : > { %v12760_v17 = vadd.f32 %v12759_v5, %v12758_v55  ;;  %v12761_v24 = vpop.f32.mrb[78].mxu1 }
 0x6b4   : > { %v12762_v29 = vpop.f32.mrb[79].mxu1  ;;  %v8756_v13 = vadd.f32 %v12705_v11, %v16312_v23  ;;  %v13977_v11 = vld [vmem:[#allocation14 + $0x140] sm:$0xff]  }
 0x6b5   : > { %v12763_v46 = vadd.f32 %v12762_v29, %v12761_v24  ;;  %v16316_v16 = vadd.f32 %v12760_v17, %v8745_v30  ;;  %13017 = vmatpush3.bf16.msra.mxu1 %v13972_v53  ;;  %13054 = vmatprep.subr.bf16.mxu0 %v13977_v11 }
 0x6b6   : > { %v12706_v3 = vpop.f32.mrb[68].mxu0  ;;  %13106 = vmatprep.subr.bf16.mxu1 %v13981_v14 }
 0x6b7   : > { %v16318_v47 = vadd.f32 %v12763_v46, %v8748_v58  ;;  %v12707_v63 = vpop.f32.mrb[69].mxu0 }
 0x6b8   : > { %v12708_v57 = vadd.f32 %v12707_v63, %v12706_v3  ;;  %v12709_v40 = vpop.f32.mrb[70].mxu0 }
 0x6b9   : > { %v12764_v15 = vpop.f32.mrb[80].mxu1  ;;  %v12710_v38 = vpop.f32.mrb[71].mxu0 }
 0x6ba   : > { %v12765_v33 = vpop.f32.mrb[81].mxu1  ;;  %v12711_v19 = vadd.f32 %v12710_v38, %v12709_v40  ;;  %v8761_v22 = vadd.f32 %v12708_v57, %v16312_v23 }
 0x6bb   : > { %v12766_v27 = vadd.f32 %v12765_v33, %v12764_v15  ;;  %v12767_v28 = vpop.f32.mrb[82].mxu1 }
 0x6bc   : > { %v12768_v51 = vpop.f32.mrb[83].mxu1  ;;  %v8764_v55 = vadd.f32 %v12711_v19, %v16312_v23 }
 0x6bd   : > { %v12769_v39 = vadd.f32 %v12768_v51, %v12767_v28  ;;  %v16322_v2 = vadd.f32 %v12766_v27, %v8753_v31 }
 0x6be   : > { %v12712_v6 = vpop.f32.mrb[72].mxu0 }
 0x6bf   : > { %v16324_v48 = vadd.f32 %v12769_v39, %v8756_v13  ;;  %v12713_v25 = vpop.f32.mrb[73].mxu0 }
 0x6c0   : > { %v12714_v12 = vadd.f32 %v12713_v25, %v12712_v6  ;;  %v12715_v32 = vpop.f32.mrb[74].mxu0 }
 0x6c1   : > { %v12716_v44 = vpop.f32.mrb[75].mxu0 }
 0x6c2   : > { %v12717_v10 = vadd.f32 %v12716_v44, %v12715_v32  ;;  %v8769_v58 = vadd.f32 %v12714_v12, %v16312_v23 }
 0x6c4   : > { %v8772_v49 = vadd.f32 %v12717_v10, %v16312_v23 }
 0x6c7   : > { %v12718_v4 = vpop.f32.mrb[76].mxu0 }
 0x6c8   : > { %v12770_v7 = vpop.f32.mrb[84].mxu1  ;;  %v12719_v45 = vpop.f32.mrb[77].mxu0 }
 0x6c9   : > { %v12771_v18 = vpop.f32.mrb[85].mxu1  ;;  %v12720_v24 = vadd.f32 %v12719_v45, %v12718_v4  ;;  %v12721_v30 = vpop.f32.mrb[78].mxu0 }
 0x6ca   : > { %v12772_v42 = vadd.f32 %v12771_v18, %v12770_v7  ;;  %v12773_v56 = vpop.f32.mrb[86].mxu1  ;;  %v12722_v29 = vpop.f32.mrb[79].mxu0 }
 0x6cb   : > { %v12774_v43 = vpop.f32.mrb[87].mxu1  ;;  %v12723_v8 = vadd.f32 %v12722_v29, %v12721_v30  ;;  %v8777_v31 = vadd.f32 %v12720_v24, %v16312_v23 }
 0x6cc   : > { %v12775_v37 = vadd.f32 %v12774_v43, %v12773_v56  ;;  %v16328_v0 = vadd.f32 %v12772_v42, %v8761_v22 }
 0x6cd   : > { %v8780_v54 = vadd.f32 %v12723_v8, %v16312_v23 }
 0x6ce   : > { %v16330_v5 = vadd.f32 %v12775_v37, %v8764_v55 }
 0x6cf   : > { %v12724_v34 = vpop.f32.mrb[80].mxu0 }
 0x6d0   : > { %v12776_v17 = vpop.f32.mrb[88].mxu1  ;;  %v12725_v57 = vpop.f32.mrb[81].mxu0 }
 0x6d1   : > { %v12777_v52 = vpop.f32.mrb[89].mxu1  ;;  %v12726_v50 = vadd.f32 %v12725_v57, %v12724_v34  ;;  %v12727_v33 = vpop.f32.mrb[82].mxu0 }
 0x6d2   : > { %v12778_v41 = vadd.f32 %v12777_v52, %v12776_v17  ;;  %v12779_v46 = vpop.f32.mrb[90].mxu1  ;;  %v12728_v62 = vpop.f32.mrb[83].mxu0 }
 0x6d3   : > { %v12780_v26 = vpop.f32.mrb[91].mxu1  ;;  %v12729_v19 = vadd.f32 %v12728_v62, %v12727_v33  ;;  %v8785_v20 = vadd.f32 %v12726_v50, %v16312_v23 }
 0x6d4   : > { %v12781_v3 = vadd.f32 %v12780_v26, %v12779_v46  ;;  %v16334_v63 = vadd.f32 %v12778_v41, %v8769_v58 }
 0x6d5   : > { %v8788_v56 = vadd.f32 %v12729_v19, %v16312_v23 }
 0x6d6   : > { %v16336_v15 = vadd.f32 %v12781_v3, %v8772_v49 }
 0x6d7   : > { %v12730_v39 = vpop.f32.mrb[84].mxu0 }
 0x6d8   : > { %v12782_v40 = vpop.f32.mrb[92].mxu1  ;;  %v12731_v21 = vpop.f32.mrb[85].mxu0 }
 0x6d9   : > { %v12783_v38 = vpop.f32.mrb[93].mxu1  ;;  %v12732_v9 = vadd.f32 %v12731_v21, %v12730_v39  ;;  %v12733_v60 = vpop.f32.mrb[86].mxu0 }
 0x6da   : > { %v12784_v27 = vadd.f32 %v12783_v38, %v12782_v40  ;;  %v12785_v28 = vpop.f32.mrb[94].mxu1  ;;  %v12734_v7 = vpop.f32.mrb[87].mxu0 }
 0x6db   : > { %v12786_v1 = vpop.f32.mrb[95].mxu1  ;;  %v12735_v18 = vadd.f32 %v12734_v7, %v12733_v60  ;;  %v8793_v24 = vadd.f32 %v12732_v9, %v16312_v23 }
 0x6dc   : > { %v12787_v51 = vadd.f32 %v12786_v1, %v12785_v28  ;;  %v16340_v35 = vadd.f32 %v12784_v27, %v8777_v31 }
 0x6dd   : > { %v8796_v29 = vadd.f32 %v12735_v18, %v16312_v23 }
 0x6de   : > { %v16342_v13 = vadd.f32 %v12787_v51, %v8780_v54 }
 0x6df   : > { %v12736_v10 = vpop.f32.mrb[88].mxu0 }
 0x6e0   : > { %v12788_v6 = vpop.f32.mrb[96].mxu1  ;;  %v12737_v43 = vpop.f32.mrb[89].mxu0 }
 0x6e1   : > { %v12789_v25 = vpop.f32.mrb[97].mxu1  ;;  %v12738_v37 = vadd.f32 %v12737_v43, %v12736_v10  ;;  %v12739_v55 = vpop.f32.mrb[90].mxu0 }
 0x6e2   : > { %v12790_v12 = vadd.f32 %v12789_v25, %v12788_v6  ;;  %v12791_v32 = vpop.f32.mrb[98].mxu1  ;;  %v12740_v53 = vpop.f32.mrb[91].mxu0 }
 0x6e3   : > { %v12792_v44 = vpop.f32.mrb[99].mxu1  ;;  %v12741_v30 = vadd.f32 %v12740_v53, %v12739_v55  ;;  %v8801_v33 = vadd.f32 %v12738_v37, %v16312_v23 }
 0x6e4   : > { %v12793_v42 = vadd.f32 %v12792_v44, %v12791_v32  ;;  %v16346_v22 = vadd.f32 %v12790_v12, %v8785_v20 }
 0x6e5   : > { %v8804_v31 = vadd.f32 %v12741_v30, %v16312_v23 }
 0x6e6   : > { %v16348_v59 = vadd.f32 %v12793_v42, %v8788_v56 }
 0x6e7   : > { %v12822_v46 = vpop.f32.mrb[92].mxu0 }
 0x6e8   : > { %v12794_v61 = vpop.f32.mrb[100].mxu1  ;;  %v12823_v8 = vpop.f32.mrb[93].mxu0 }
 0x6e9   : > { %v12795_v4 = vpop.f32.mrb[101].mxu1  ;;  %v12824_v3 = vadd.f32 %v12823_v8, %v12822_v46  ;;  %v12825_v49 = vpop.f32.mrb[94].mxu0 }
 0x6ea   : > { %v12796_v45 = vadd.f32 %v12795_v4, %v12794_v61  ;;  %v12797_v17 = vpop.f32.mrb[102].mxu1  ;;  %v12826_v57 = vpop.f32.mrb[95].mxu0 }
 0x6eb   : > { %v12798_v11 = vpop.f32.mrb[103].mxu1  ;;  %v8939_v38 = vadd.f32 %v12824_v3, %v16316_v16  ;;  %v12827_v62 = vadd.f32 %v12826_v57, %v12825_v49 }
 0x6ec   : > { %v12799_v52 = vadd.f32 %v12798_v11, %v12797_v17  ;;  %v16352_v41 = vadd.f32 %v12796_v45, %v8793_v24 }
 0x6ed   : > { %v8942_v19 = vadd.f32 %v12827_v62, %v16318_v47 }
 0x6ee   : > { %v16354_v58 = vadd.f32 %v12799_v52, %v8796_v29 }
 0x6ef   : > { %v12828_v1 = vpop.f32.mrb[96].mxu0 }
 0x6f0   : > { %v12800_v26 = vpop.f32.mrb[104].mxu1  ;;  %v12829_v54 = vpop.f32.mrb[97].mxu0 }
 0x6f1   : > { %v12801_v34 = vpop.f32.mrb[105].mxu1  ;;  %v12830_v21 = vadd.f32 %v12829_v54, %v12828_v1  ;;  %v12831_v6 = vpop.f32.mrb[98].mxu0 }
 0x6f2   : > { %v12802_v40 = vadd.f32 %v12801_v34, %v12800_v26  ;;  %v12803_v50 = vpop.f32.mrb[106].mxu1  ;;  %v12832_v60 = vpop.f32.mrb[99].mxu0 }
 0x6f3   : > { %v12804_v27 = vpop.f32.mrb[107].mxu1  ;;  %v8947_v7 = vadd.f32 %v12830_v21, %v16322_v2  ;;  %v12833_v12 = vadd.f32 %v12832_v60, %v12831_v6 }
 0x6f4   : > { %v12805_v28 = vadd.f32 %v12804_v27, %v12803_v50  ;;  %v16360_v14 = vadd.f32 %v12802_v40, %v8801_v33 }
 0x6f5   : > { %v8950_v47 = vadd.f32 %v12833_v12, %v16324_v48 }
 0x6f6   : > { %v16362_v51 = vadd.f32 %v12805_v28, %v8804_v31 }
 0x6f7   : > { %v12834_v18 = vpop.f32.mrb[100].mxu0 }
 0x6f8   : > { %v12886_v39 = vpop.f32.mrb[108].mxu1  ;;  %v12835_v42 = vpop.f32.mrb[101].mxu0 }
 0x6f9   : > { %v12887_v9 = vpop.f32.mrb[109].mxu1  ;;  %v12836_v10 = vadd.f32 %v12835_v42, %v12834_v18  ;;  %v12837_v43 = vpop.f32.mrb[102].mxu0 }
 0x6fa   : > { %v12888_v25 = vadd.f32 %v12887_v9, %v12886_v39  ;;  %v12889_v16 = vpop.f32.mrb[110].mxu1  ;;  %v12838_v37 = vpop.f32.mrb[103].mxu0 }
 0x6fb   : > { %v12890_v32 = vpop.f32.mrb[111].mxu1  ;;  %v8955_v2 = vadd.f32 %v12836_v10, %v16328_v0  ;;  %v12839_v53 = vadd.f32 %v12838_v37, %v12837_v43 }
 0x6fc   : > { %v12891_v23 = vadd.f32 %v12890_v32, %v12889_v16  ;;  %v16366_v20 = vadd.f32 %v12888_v25, %v8939_v38 }
 0x6fd   : > { %v8958_v48 = vadd.f32 %v12839_v53, %v16330_v5 }
 0x6fe   : > { %v16368_v44 = vadd.f32 %v12891_v23, %v8942_v19 }
 0x6ff   : > { %v12840_v30 = vpop.f32.mrb[104].mxu0 }
 0x700   : > { %v12892_v56 = vpop.f32.mrb[112].mxu1  ;;  %v12841_v52 = vpop.f32.mrb[105].mxu0 }
 0x701   : > { %v12893_v61 = vpop.f32.mrb[113].mxu1  ;;  %v12842_v46 = vadd.f32 %v12841_v52, %v12840_v30  ;;  %v12843_v8 = vpop.f32.mrb[106].mxu0 }
 0x702   : > { %v12894_v55 = vadd.f32 %v12893_v61, %v12892_v56  ;;  %v12895_v4 = vpop.f32.mrb[114].mxu1  ;;  %v12844_v3 = vpop.f32.mrb[107].mxu0 }
 0x703   : > { %v12896_v45 = vpop.f32.mrb[115].mxu1  ;;  %v8963_v0 = vadd.f32 %v12842_v46, %v16334_v63  ;;  %v12845_v57 = vadd.f32 %v12844_v3, %v12843_v8 }
 0x704   : > { %v12897_v17 = vadd.f32 %v12896_v45, %v12895_v4  ;;  %v16372_v24 = vadd.f32 %v12894_v55, %v8947_v7 }
 0x705   : > { %v8966_v5 = vadd.f32 %v12845_v57, %v16336_v15 }
 0x706   : > { %v16374_v11 = vadd.f32 %v12897_v17, %v8950_v47 }
 0x707   : > { %v12846_v38 = vpop.f32.mrb[108].mxu0 }
 0x708   : > { %v12898_v29 = vpop.f32.mrb[116].mxu1  ;;  %v12847_v27 = vpop.f32.mrb[109].mxu0 }
 0x709   : > { %v12899_v26 = vpop.f32.mrb[117].mxu1  ;;  %v12848_v31 = vadd.f32 %v12847_v27, %v12846_v38  ;;  %v12849_v19 = vpop.f32.mrb[110].mxu0 }
 0x70a   : > { %v12900_v49 = vadd.f32 %v12899_v26, %v12898_v29  ;;  %v12901_v34 = vpop.f32.mrb[118].mxu1  ;;  %v12850_v54 = vpop.f32.mrb[111].mxu0 }
 0x70b   : > { %v12902_v40 = vpop.f32.mrb[119].mxu1  ;;  %v8971_v63 = vadd.f32 %v12848_v31, %v16340_v35  ;;  %v12851_v6 = vadd.f32 %v12850_v54, %v12849_v19 }
 0x70c   : > { %v12903_v50 = vadd.f32 %v12902_v40, %v12901_v34  ;;  %v16378_v33 = vadd.f32 %v12900_v49, %v8955_v2 }
 0x70d   : > { %v8974_v15 = vadd.f32 %v12851_v6, %v16342_v13 }
 0x70e   : > { %v16380_v62 = vadd.f32 %v12903_v50, %v8958_v48 }
 0x70f   : > { %v12852_v16 = vpop.f32.mrb[112].mxu0 }
 0x710   : > { %v12904_v28 = vpop.f32.mrb[120].mxu1  ;;  %v12853_v12 = vpop.f32.mrb[113].mxu0 }
 0x711   : > { %v12905_v1 = vpop.f32.mrb[121].mxu1  ;;  %v12854_v23 = vadd.f32 %v12853_v12, %v12852_v16  ;;  %v12855_v47 = vpop.f32.mrb[114].mxu0 }
 0x712   : > { %v12906_v39 = vadd.f32 %v12905_v1, %v12904_v28  ;;  %v12907_v21 = vpop.f32.mrb[122].mxu1  ;;  %v12856_v42 = vpop.f32.mrb[115].mxu0 }
 0x713   : > { %v12908_v9 = vpop.f32.mrb[123].mxu1  ;;  %v8979_v35 = vadd.f32 %v12854_v23, %v16346_v22  ;;  %v12857_v43 = vadd.f32 %v12856_v42, %v12855_v47 }
 0x714   : > { %v12909_v60 = vadd.f32 %v12908_v9, %v12907_v21  ;;  %v16384_v25 = vadd.f32 %v12906_v39, %v8963_v0 }
 0x715   : > { %v8982_v13 = vadd.f32 %v12857_v43, %v16348_v59 }
 0x716   : > { %v16386_v7 = vadd.f32 %v12909_v60, %v8966_v5 }
 0x717   : > { %v12858_v4 = vpop.f32.mrb[116].mxu0 }
 0x718   : > { %v12910_v32 = vpop.f32.mrb[124].mxu1  ;;  %v12859_v53 = vpop.f32.mrb[117].mxu0 }
 0x719   : > { %v12911_v18 = vpop.f32.mrb[125].mxu1  ;;  %v12860_v17 = vadd.f32 %v12859_v53, %v12858_v4  ;;  %v12861_v48 = vpop.f32.mrb[118].mxu0 }
 0x71a   : > { %v12912_v56 = vadd.f32 %v12911_v18, %v12910_v32  ;;  %v12913_v10 = vpop.f32.mrb[126].mxu1  ;;  %v12862_v52 = vpop.f32.mrb[119].mxu0 }
 0x71b   : > { %v12914_v61 = vpop.f32.mrb[127].mxu1  ;;  %v8987_v22 = vadd.f32 %v12860_v17, %v16352_v41  ;;  %v12863_v8 = vadd.f32 %v12862_v52, %v12861_v48 }
 0x71c   : > { %v12915_v37 = vadd.f32 %v12914_v61, %v12913_v10  ;;  %v16390_v55 = vadd.f32 %v12912_v56, %v8971_v63 }
 0x71d   : > { %v8990_v59 = vadd.f32 %v12863_v8, %v16354_v58 }
 0x71e   : > { %v16392_v2 = vadd.f32 %v12915_v37, %v8974_v15 }
 0x71f   : > { %v12864_v34 = vpop.f32.mrb[120].mxu0 }
 0x720   : > { %v12916_v45 = vpop.f32.mrb[128].mxu1  ;;  %v12865_v57 = vpop.f32.mrb[121].mxu0 }
 0x721   : > { %v12917_v30 = vpop.f32.mrb[129].mxu1  ;;  %v12866_v50 = vadd.f32 %v12865_v57, %v12864_v34  ;;  %v12867_v5 = vpop.f32.mrb[122].mxu0 }
 0x722   : > { %v12918_v29 = vadd.f32 %v12917_v30, %v12916_v45  ;;  %v12919_v46 = vpop.f32.mrb[130].mxu1  ;;  %v12868_v27 = vpop.f32.mrb[123].mxu0 }
 0x723   : > { %v12920_v26 = vpop.f32.mrb[131].mxu1  ;;  %v8995_v41 = vadd.f32 %v12866_v50, %v16360_v14  ;;  %v12869_v19 = vadd.f32 %v12868_v27, %v12867_v5  ;;  %v9293_v5 = vld [vmem:[#allocation2 + $0x8] sm:$0xff] }
 0x724   : > { %v12921_v3 = vadd.f32 %v12920_v26, %v12919_v46  ;;  %v16396_v49 = vadd.f32 %v12918_v29, %v8979_v35 }
 0x725   : > { %v8998_v58 = vadd.f32 %v12869_v19, %v16362_v51  ;;  %v13979_v19 = vld [vmem:[#allocation14 + $0x148] sm:$0xff]  }
 0x726   : > { %v16398_v0 = vadd.f32 %v12921_v3, %v8982_v13 }
 0x727   : > { %v13327_v21 = vpop.f32.mrb[124].mxu0 }
 0x728   : > { %v12922_v40 = vpop.f32.mrb[132].mxu1  ;;  %v9141_v6 = vadd.f32 %v13327_v21, %v16372_v24  ;;  %v9132_v9 = vpop.f32.mrb[125].mxu0 }
 0x729   : > { %v12923_v38 = vpop.f32.mrb[133].mxu1  ;;  %v9133_v15 = vadd.f32 %v9132_v9, %v16366_v20  ;;  %v13328_v16 = vpop.f32.mrb[126].mxu0 }
 0x72a   : > { %v12924_v28 = vadd.f32 %v12923_v38, %v12922_v40  ;;  %v12925_v31 = vpop.f32.mrb[134].mxu1  ;;  %v9144_v14 = vadd.f32 %v13328_v16, %v16374_v11  ;;  %v9135_v32 = vpop.f32.mrb[127].mxu0  ;;  %v9197_v42 = vmax.f32 %v9141_v6, 0.0  ;;  %v9296_v40 = vld [vmem:[#allocation2 + $0x50] sm:$0xff]  ;;  %v13978_v38 = vld [vmem:[#allocation14 + $0x100] sm:$0xff]  }
 0x72b   : > { %v12926_v1 = vpop.f32.mrb[135].mxu1  ;;  %v9136_v51 = vadd.f32 %v9135_v32, %v16368_v44  ;;  %v9195_v35 = vmax.f32 %v9133_v15, 0.0  ;;  %v13980_v32 = vld [vmem:[#allocation14 + $0x108] sm:$0xff]  }
 0x72c   : > { %v12927_v54 = vadd.f32 %v12926_v1, %v12925_v31  ;;  %v16402_v39 = vadd.f32 %v12924_v28, %v8987_v22  ;;  %v9198_v56 = vmax.f32 %v9144_v14, 0.0 }
 0x72d   : > { %v9196_v43 = vmax.f32 %v9136_v51, 0.0 }
 0x72e   : > { %v16404_v63 = vadd.f32 %v12927_v54, %v8990_v59  ;;  %v16412_v61 = vpack.c.bf16 %v9198_v56, %v9197_v42  ;;  %v13983_v56 = vld [vmem:[#allocation14 + $0x150] sm:$0xff]  }
 0x72f   : > { %v9211_v20 = vpack.c.bf16 %v9196_v43, %v9195_v35  ;;  %v13331_v37 = vpop.f32.mrb[128].mxu0  ;;  %v9302_v43 = vld [vmem:[#allocation2 + $0xe0] sm:$0xff] }
 0x730   : > { %v12928_v60 = vpop.f32.mrb[136].mxu1  ;;  %9220 = vst [vmem:[#allocation4 + $0x8] sm:$0xff] %v16412_v61  ;;  %v9157_v11 = vadd.f32 %v13331_v37, %v16384_v25  ;;  %v9148_v4 = vpop.f32.mrb[129].mxu0  ;;  %10319 = vmatprep.mubr.bf16.mxu1 %v16412_v61  ;;  %v9255_v44 = vshll.u32 %v16412_v61, 16  ;;  %9234 = vst [vmem:[#allocation2 + $0x48] sm:$0xff] %v16412_v61  ;;  %v9253_v52 = vshrl.u32 %v16412_v61, 16 }
 0x731   : > { %v12929_v12 = vpop.f32.mrb[137].mxu1  ;;  %9219 = vst [vmem:[#allocation4] sm:$0xff] %v9211_v20  ;;  %v9149_v53 = vadd.f32 %v9148_v4, %v16378_v33  ;;  %v13332_v45 = vpop.f32.mrb[130].mxu0  ;;  %v9248_v17 = vshll.u32 %v9211_v20, 16  ;;  %v9246_v46 = vshrl.u32 %v9211_v20, 16  ;;  %v9407_v33 = vld [vmem:[#allocation2 + $0x20] sm:$0xff] }
 0x732   : > { %v12930_v23 = vadd.f32 %v12929_v12, %v12928_v60  ;;  %v12931_v47 = vpop.f32.mrb[138].mxu1  ;;  %v9160_v48 = vadd.f32 %v13332_v45, %v16386_v7  ;;  %v9151_v30 = vpop.f32.mrb[131].mxu0  ;;  %v9257_v29 = vrot.slane %v9255_v44, 1  ;;  %v9201_v8 = vmax.f32 %v9157_v11, 0.0  ;;  %v9299_v44 = vld [vmem:[#allocation2 + $0x98] sm:$0xff]  ;;  %v9413_v45 = vld [vmem:[#allocation2 + $0xb0] sm:$0xff] }
 0x733   : > { %v12932_v18 = vpop.f32.mrb[139].mxu1  ;;  %v9152_v25 = vadd.f32 %v9151_v30, %v16380_v62  ;;  %v9250_v22 = vrot.slane %v9248_v17, 1  ;;  %v9199_v59 = vmax.f32 %v9149_v53, 0.0  ;;  %v9521_v53 = vld [vmem:[#allocation2 + $0x38] sm:$0xff] }
 0x734   : > { %v12933_v10 = vadd.f32 %v12932_v18, %v12931_v47  ;;  %v16410_v24 = vadd.f32 %v12930_v23, %v8995_v41  ;;  %v9202_v26 = vmax.f32 %v9160_v48, 0.0  ;;  %v9258_v3 = vor.u32 %v9257_v29, %v9253_v52  ;;  %v13984_v48 = vld [vmem:[#allocation14 + $0x110] sm:$0xff]   ;;  %v9410_v29 = vld [vmem:[#allocation2 + $0x68] sm:$0xff] }
 0x735   : > { %v9200_v34 = vmax.f32 %v9152_v25, 0.0  ;;  %v9251_v57 = vor.u32 %v9250_v22, %v9246_v46 }
 0x736   : > { %v16414_v13 = vadd.f32 %v12933_v10, %v8998_v58  ;;  %v16425_v50 = vpack.c.bf16 %v9202_v26, %v9201_v8  ;;  %v9297_v7 = vsel %vm14626_vm2, %v9258_v3, %v9296_v40  ;;  %v16431_v62 = vsel %vm14626_vm2, %v9258_v3, %v9407_v33  ;;  %v13985_v26 = vld [vmem:[#allocation14 + $0x1c8] sm:$0xff]  }
 0x737   : > { %v16433_v27 = vpack.c.bf16 %v9200_v34, %v9199_v59  ;;  %v13335_v28 = vpop.f32.mrb[132].mxu0  ;;  %v9294_v31 = vsel %vm14626_vm2, %v9251_v57, %v9293_v5  ;;  %9298 = vst [vmem:[#allocation2 + $0x50] sm:$0xff] %v9297_v7  ;;  %v9312_v41 = vld [vmem:[#allocation4 + $0x8] sm:$0xfe]  ;;  %9409 = vst [vmem:[#allocation2 + $0x20] sm:$0xff] %v16431_v62  ;;  %v13987_v59 = vld [vmem:[#allocation14 + $0x158] sm:$0xff]  }
 0x738   : > { %v9425_v1 = vld [vmem:[#allocation4 + $0x8] sm:$0xfe]  ;;  %v9311_v54 = vld [vmem:[#allocation4] sm:$0xfe]  ;;  %9222 = vst [vmem:[#allocation4 + $0x18] sm:$0xff] %v16425_v50  ;;  %v9173_v58 = vadd.f32 %v13335_v28, %v16396_v49  ;;  %v9164_v21 = vpop.f32.mrb[133].mxu0  ;;  %10238 = vmatprep.mubr.bf16.mxu0 %v9294_v31 }
 0x739   : > { %9295 = vst [vmem:[#allocation2 + $0x8] sm:$0xff] %v9294_v31  ;;  %v9324_v6 = vrot.slane %v9312_v41, 1  ;;  %v9269_v9 = vshll.u32 %v16425_v50, 16  ;;  %9462 = vst [vmem:[#allocation2 + $0x78] sm:$0xff] %v16425_v50  ;;  %v9323_v60 = vrot.slane %v9311_v54, 1  ;;  %v9165_v15 = vadd.f32 %v9164_v21, %v16390_v55  ;;  %v13336_v16 = vpop.f32.mrb[134].mxu0  ;;  %10239 = vmatmul.mubr.bf16.vlgmr.msra.gmra.mrb[140].mxu0 %v9211_v20 }
 0x73a   : > { %9221 = vst [vmem:[#allocation4 + $0x10] sm:$0xff] %v16433_v27  ;;  %v9262_v12 = vshll.u32 %v16433_v27, 16  ;;  %9461 = vst [vmem:[#allocation2 + $0x30] sm:$0xff] %v16433_v27  ;;  %v9176_v49 = vadd.f32 %v13336_v16, %v16398_v0  ;;  %v9167_v14 = vpop.f32.mrb[135].mxu0  ;;  %10246 = vmatprep.mubr.bf16.mxu0 %v9297_v7  ;;  %13055 = vmatpush3.bf16.msra.mxu0 %v13978_v38  ;;  %v9267_v23 = vshrl.u32 %v16425_v50, 16  ;;  %v9437_v51 = vrot.slane %v9425_v1, 1 }
 0x73b   : > { %9336 = vst [vmem:[#allocation2 + $0x58] sm:$0x7f] %v9324_v6  ;;  %v9271_v47 = vrot.slane %v9269_v9, 1  ;;  %9335 = vst [vmem:[#allocation2 + $0x10] sm:$0x7f] %v9323_v60  ;;  %v9168_v55 = vadd.f32 %v9167_v14, %v16392_v2  ;;  %13056 = vmatprep.subr.bf16.mxu0 %v13979_v19  ;;  %v9260_v18 = vshrl.u32 %v16433_v27, 16 }
 0x73c   : > { %v9264_v42 = vrot.slane %v9262_v12, 1  ;;  %v9205_v10 = vmax.f32 %v9173_v58, 0.0  ;;  %v9206_v35 = vmax.f32 %v9176_v49, 0.0  ;;  %9449 = vst [vmem:[#allocation2 + $0x28] sm:$0x7f] %v9437_v51  ;;  %v9524_v20 = vld [vmem:[#allocation2 + $0x80] sm:$0xff] }
 0x73d   : > { %v9272_v0 = vor.u32 %v9271_v47, %v9267_v23  ;;  %v9203_v37 = vmax.f32 %v9165_v15, 0.0  ;;  %v9204_v11 = vmax.f32 %v9168_v55, 0.0  ;;  %v13982_v2 = vld [vmem:[#allocation14 + $0x180] sm:$0xff]   ;;  %v13989_v38 = vld [vmem:[#allocation14 + $0x118] sm:$0xff]   ;;  %v9308_v49 = vld [vmem:[#allocation2 + $0x170] sm:$0xff] }
 0x73e   : > { %v9265_v4 = vor.u32 %v9264_v42, %v9260_v18  ;;  %v16450_v17 = vpack.c.bf16 %v9206_v35, %v9205_v10  ;;  %13057 = vmatpush3.bf16.msra.mxu0 %v13980_v32  ;;  %v13993_v16 = vld [vmem:[#allocation14 + $0x160] sm:$0xff]   ;;  %v13986_v47 = vld [vmem:[#allocation14 + $0x188] sm:$0xff]  }
 0x73f   : > { %v16454_v30 = vsel %vm14626_vm2, %v9272_v0, %v9302_v43  ;;  %v16458_v52 = vsel %vm14626_vm2, %v9272_v0, %v9524_v20  ;;  %v16462_v25 = vsel %vm14626_vm2, %v9272_v0, %v9413_v45  ;;  %v16464_v46 = vpack.c.bf16 %v9204_v11, %v9203_v37  ;;  %v13339_v22 = vpop.f32.mrb[136].mxu0  ;;  %13058 = vmatprep.subr.bf16.mxu0 %v13983_v56  ;;  %v9314_v3 = vld [vmem:[#allocation4 + $0x18] sm:$0xfe]  ;;  %v9305_v51 = vld [vmem:[#allocation2 + $0x128] sm:$0xff]  ;;  %v13988_v0 = vld [vmem:[#allocation14 + $0x1d0] sm:$0xff]  }
 0x740   : > { %v9300_v8 = vsel %vm14626_vm2, %v9265_v4, %v9299_v44  ;;  %9304 = vst [vmem:[#allocation2 + $0xe0] sm:$0xff] %v16454_v30  ;;  %v16471_v34 = vsel %vm14626_vm2, %v9265_v4, %v9521_v53  ;;  %9526 = vst [vmem:[#allocation2 + $0x80] sm:$0xff] %v16458_v52  ;;  %v16476_v57 = vsel %vm14626_vm2, %v9265_v4, %v9410_v29  ;;  %v9180_v33 = vpop.f32.mrb[137].mxu0  ;;  %v9326_v7 = vrot.slane %v9314_v3, 1  ;;  %v9427_v54 = vld [vmem:[#allocation4 + $0x18] sm:$0xfe] }
 0x741   : > { %9415 = vst [vmem:[#allocation2 + $0xb0] sm:$0xff] %v16462_v25  ;;  %9224 = vst [vmem:[#allocation4 + $0x28] sm:$0xff] %v16450_v17  ;;  %v9189_v40 = vadd.f32 %v13339_v22, %v16410_v24  ;;  %v9313_v5 = vld [vmem:[#allocation4 + $0x10] sm:$0xfe]  ;;  %v9283_v28 = vshll.u32 %v16450_v17, 16  ;;  %v9181_v31 = vadd.f32 %v9180_v33, %v16402_v39  ;;  %v13340_v41 = vpop.f32.mrb[138].mxu0  ;;  %10247 = vmatmul.mubr.bf16.gmra.mrb[144].mxu0 %v16412_v61 }
 0x742   : > { %9301 = vst [vmem:[#allocation2 + $0x98] sm:$0xff] %v9300_v8  ;;  %9523 = vst [vmem:[#allocation2 + $0x38] sm:$0xff] %v16471_v34  ;;  %v9325_v24 = vrot.slane %v9313_v5, 1  ;;  %v9276_v19 = vshll.u32 %v16464_v46, 16  ;;  %v9281_v1 = vshrl.u32 %v16450_v17, 16  ;;  %v9192_v58 = vadd.f32 %v13340_v41, %v16414_v13  ;;  %v9183_v21 = vpop.f32.mrb[139].mxu0  ;;  %10254 = vmatprep.mubr.bf16.mxu0 %v9300_v8  ;;  %13059 = vmatpush3.bf16.msra.mxu0 %v13984_v48 }
 0x743   : > { %9412 = vst [vmem:[#allocation2 + $0x68] sm:$0xff] %v16476_v57  ;;  %9464 = vst [vmem:[#allocation2 + $0x108] sm:$0xff] %v16450_v17  ;;  %v9571_v6 = vld [vmem:[#allocation2 + $0x10] sm:$0xff]  ;;  %v9274_v39 = vshrl.u32 %v16464_v46, 16  ;;  %v9285_v9 = vrot.slane %v9283_v28, 1  ;;  %v9209_v61 = vmax.f32 %v9189_v40, 0.0  ;;  %v9184_v15 = vadd.f32 %v9183_v21, %v16404_v63  ;;  %13060 = vmatprep.subr.bf16.mxu0 %v13987_v59 }
 0x744   : > { %9223 = vst [vmem:[#allocation4 + $0x20] sm:$0xff] %v16464_v46  ;;  %9463 = vst [vmem:[#allocation2 + $0xc0] sm:$0xff] %v16464_v46  ;;  %v9426_v60 = vld [vmem:[#allocation4 + $0x10] sm:$0xfe]  ;;  %10320 = vmatmul.mubr.bf16.vlgmr.msra.gmra.mrb[140].mxu1 %v9571_v6  ;;  %v9278_v12 = vrot.slane %v9276_v19, 1  ;;  %v9210_v23 = vmax.f32 %v9192_v58, 0.0 }
 0x745   : > { %9338 = vst [vmem:[#allocation2 + $0xe8] sm:$0x7f] %v9326_v7  ;;  %9337 = vst [vmem:[#allocation2 + $0xa0] sm:$0x7f] %v9325_v24  ;;  %v9438_v14 = vrot.slane %v9426_v60, 1  ;;  %v9530_v13 = vld [vmem:[#allocation2 + $0x110] sm:$0xff]  ;;  %10327 = vmatprep.mubr.bf16.mxu1 %v16433_v27  ;;  %13107 = vmatpush3.bf16.msra.mxu1 %v13982_v2  ;;  %v9286_v55 = vor.u32 %v9285_v9, %v9281_v1 }
 0x746   : > { %v9539_v32 = vld [vmem:[#allocation4 + $0x10] sm:$0xfe]  ;;  %v9527_v18 = vld [vmem:[#allocation2 + $0xc8] sm:$0xff]  ;;  %v9439_v42 = vrot.slane %v9427_v54, 1  ;;  %v9540_v63 = vld [vmem:[#allocation4 + $0x18] sm:$0xfe]  ;;  %13108 = vmatprep.subr.bf16.mxu1 %v13985_v26  ;;  %v9279_v43 = vor.u32 %v9278_v12, %v9274_v39  ;;  %v16495_v4 = vpack.c.bf16 %v9210_v23, %v9209_v61  ;;  %13061 = vmatpush3.bf16.msra.mxu0 %v13989_v38 }
 0x747   : > { %v9551_v56 = vrot.slane %v9539_v32, 1  ;;  %v9207_v10 = vmax.f32 %v9181_v31, 0.0  ;;  %v9208_v35 = vmax.f32 %v9184_v15, 0.0  ;;  %9450 = vst [vmem:[#allocation2 + $0x70] sm:$0x7f] %v9438_v14  ;;  %v9416_v20 = vld [vmem:[#allocation2 + $0xf8] sm:$0xff]  ;;  %v16499_v2 = vsel %vm14626_vm2, %v9286_v55, %v9308_v49  ;;  %13062 = vmatprep.subr.bf16.mxu0 %v13993_v16 }
 0x748   : > { %v9419_v37 = vld [vmem:[#allocation2 + $0x140] sm:$0xff]  ;;  %v9552_v11 = vrot.slane %v9540_v63, 1  ;;  %v13990_v44 = vld [vmem:[#allocation14 + $0x190] sm:$0xff]   ;;  %v13997_v45 = vld [vmem:[#allocation14 + $0x168] sm:$0xff]   ;;  %9451 = vst [vmem:[#allocation2 + $0xb8] sm:$0x7f] %v9439_v42  ;;  %v16503_v48 = vsel %vm14626_vm2, %v9286_v55, %v9530_v13  ;;  %v16513_v8 = vsel %vm14626_vm2, %v9279_v43, %v9305_v51  ;;  %v16518_v3 = vsel %vm14626_vm2, %v9279_v43, %v9527_v18 }
 0x749   : > { %v13994_v53 = vld [vmem:[#allocation14 + $0x120] sm:$0xff]   ;;  %v16507_v29 = vsel %vm14626_vm2, %v9286_v55, %v9419_v37  ;;  %9563 = vst [vmem:[#allocation2 + $0x40] sm:$0x7f] %v9551_v56  ;;  %v16509_v22 = vpack.c.bf16 %v9208_v35, %v9207_v10  ;;  %9310 = vst [vmem:[#allocation2 + $0x170] sm:$0xff] %v16499_v2  ;;  %v9316_v26 = vld [vmem:[#allocation4 + $0x28] sm:$0xfe]  ;;  %v16523_v59 = vsel %vm14626_vm2, %v9279_v43, %v9416_v20  ;;  %13109 = vmatpush3.bf16.msra.mxu1 %v13986_v47 }
 0x74a   : > { %9532 = vst [vmem:[#allocation2 + $0x110] sm:$0xff] %v16503_v48  ;;  %v9429_v40 = vld [vmem:[#allocation4 + $0x28] sm:$0xfe]  ;;  %9421 = vst [vmem:[#allocation2 + $0x140] sm:$0xff] %v16507_v29  ;;  %v9328_v7 = vrot.slane %v9316_v26, 1  ;;  %10255 = vmatmul.mubr.bf16.gmra.mrb[148].mxu0 %v16433_v27  ;;  %13110 = vmatprep.subr.bf16.mxu1 %v13988_v0  ;;  %v13991_v31 = vld [vmem:[#allocation14 + $0x1d8] sm:$0xff]  }
 0x74b   : > { %9564 = vst [vmem:[#allocation2 + $0x88] sm:$0x7f] %v9552_v11  ;;  %v9542_v33 = vld [vmem:[#allocation4 + $0x28] sm:$0xfe]  ;;  %9226 = vst [vmem:[#allocation4 + $0x38] sm:$0xff] %v16495_v4  ;;  %v9441_v28 = vrot.slane %v9429_v40, 1  ;;  %10262 = vmatprep.mubr.bf16.mxu0 %v16454_v30  ;;  %13063 = vmatpush3.bf16.msra.mxu0 %v13994_v53 }
 0x74c   : > { %9307 = vst [vmem:[#allocation2 + $0x128] sm:$0xff] %v16513_v8  ;;  %v9315_v5 = vld [vmem:[#allocation4 + $0x20] sm:$0xfe]  ;;  %9529 = vst [vmem:[#allocation2 + $0xc8] sm:$0xff] %v16518_v3  ;;  %v9504_v19 = vshll.u32 %v16509_v22, 16  ;;  %v9580_v1 = vld [vmem:[#allocation2 + $0x58] sm:$0xff]  ;;  %13064 = vmatprep.subr.bf16.mxu0 %v13997_v45 }
 0x74d   : > { %v9428_v38 = vld [vmem:[#allocation4 + $0x20] sm:$0xfe]  ;;  %9418 = vst [vmem:[#allocation2 + $0xf8] sm:$0xff] %v16523_v59  ;;  %9466 = vst [vmem:[#allocation2 + $0x198] sm:$0xff] %v16495_v4  ;;  %v9327_v41 = vrot.slane %v9315_v5, 1  ;;  %v13999_v54 = vld [vmem:[#allocation14 + $0x128] sm:$0xff]   ;;  %10328 = vmatmul.mubr.bf16.gmra.mrb[144].mxu1 %v9580_v1 }
 0x74e   : > { %9225 = vst [vmem:[#allocation4 + $0x30] sm:$0xff] %v16509_v22  ;;  %v9440_v24 = vrot.slane %v9428_v38, 1  ;;  %9340 = vst [vmem:[#allocation2 + $0x178] sm:$0x7f] %v9328_v7  ;;  %v9511_v58 = vshll.u32 %v16495_v4, 16  ;;  %v9554_v6 = vrot.slane %v9542_v33, 1  ;;  %10335 = vmatprep.mubr.bf16.mxu1 %v16425_v50  ;;  %13111 = vmatpush3.bf16.msra.mxu1 %v13990_v44 }
 0x74f   : > { %9453 = vst [vmem:[#allocation2 + $0x148] sm:$0x7f] %v9441_v28  ;;  %v9541_v21 = vld [vmem:[#allocation4 + $0x20] sm:$0xfe]  ;;  %9339 = vst [vmem:[#allocation2 + $0x130] sm:$0x7f] %v9327_v41  ;;  %13112 = vmatprep.subr.bf16.mxu1 %v13991_v31  ;;  %13065 = vmatpush3.bf16.msra.mxu0 %v13999_v54 }
 0x750   : > { %v14003_v39 = vld [vmem:[#allocation14 + $0x170] sm:$0xff]   ;;  %9452 = vst [vmem:[#allocation2 + $0x100] sm:$0x7f] %v9440_v24  ;;  %v9502_v9 = vshrl.u32 %v16509_v22, 16  ;;  %v9506_v60 = vrot.slane %v9504_v19, 1  ;;  %v9553_v61 = vrot.slane %v9541_v21, 1 }
 0x751   : > { %v13992_v30 = vld [vmem:[#allocation14 + $0x198] sm:$0xff]   ;;  %v9509_v15 = vshrl.u32 %v16495_v4, 16  ;;  %v9513_v16 = vrot.slane %v9511_v58, 1  ;;  %9566 = vst [vmem:[#allocation2 + $0x118] sm:$0x7f] %v9554_v6  ;;  %v13995_v12 = vld [vmem:[#allocation14 + $0x1e0] sm:$0xff]   ;;  %13066 = vmatprep.subr.bf16.mxu0 %v14003_v39 }
 0x752   : > { %v9507_v49 = vor.u32 %v9506_v60, %v9502_v9  ;;  %9565 = vst [vmem:[#allocation2 + $0xd0] sm:$0x7f] %v9553_v61  ;;  %v14004_v14 = vld [vmem:[#allocation14 + $0x130] sm:$0xff]   ;;  %v9533_v13 = vld [vmem:[#allocation2 + $0x158] sm:$0xff]  ;;  %v9422_v23 = vld [vmem:[#allocation2 + $0x188] sm:$0xff]  ;;  %13113 = vmatpush3.bf16.msra.mxu1 %v13992_v30  ;;  %10263 = vmatmul.mubr.bf16.gmra.mrb[152].mxu0 %v16425_v50  ;;  %v14279_v1 = vmov 0.0|0.0  }
 0x753   : > { %v9514_v32 = vor.u32 %v9513_v16, %v9509_v15  ;;  %v14007_v47 = vld [vmem:[#allocation14 + $0x178] sm:$0xff]   ;;  %v9536_v55 = vld [vmem:[#allocation2 + $0x1a0] sm:$0xff]  ;;  %13114 = vmatprep.subr.bf16.mxu1 %v13995_v12  ;;  %v13998_v43 = vld [vmem:[#allocation14 + $0x1e8] sm:$0xff]   ;;  %10270 = vmatprep.mubr.bf16.mxu0 %v16513_v8  ;;  %v14281_v30 = vmov 0.0  }
 0x754   : > { %v16541_v51 = vsel %vm14626_vm2, %v9507_v49, %v9533_v13  ;;  %v16545_v18 = vsel %vm14626_vm2, %v9507_v49, %v9422_v23  ;;  %v9544_v42 = vld [vmem:[#allocation4 + $0x38] sm:$0xfe]  ;;  %v13996_v56 = vld [vmem:[#allocation14 + $0x1a0] sm:$0xff]   ;;  %13067 = vmatpush3.bf16.msra.mxu0 %v14004_v14  ;;  %v14000_v53 = vld [vmem:[#allocation14 + $0x1a8] sm:$0xff]  }
 0x755   : > { %9535 = vst [vmem:[#allocation2 + $0x158] sm:$0xff] %v16541_v51  ;;  %v16550_v63 = vsel %vm14626_vm2, %v9514_v32, %v9536_v55  ;;  %v9430_v10 = vld [vmem:[#allocation4 + $0x30] sm:$0xfe]  ;;  %9424 = vst [vmem:[#allocation2 + $0x188] sm:$0xff] %v16545_v18  ;;  %v9556_v0 = vrot.slane %v9544_v42, 1  ;;  %v9589_v11 = vld [vmem:[#allocation2 + $0xa0] sm:$0xff]  ;;  %13068 = vmatprep.subr.bf16.mxu0 %v14007_v47 }
 0x756   : > { %v9543_v35 = vld [vmem:[#allocation4 + $0x30] sm:$0xfe]  ;;  %9538 = vst [vmem:[#allocation2 + $0x1a0] sm:$0xff] %v16550_v63  ;;  %v9442_v20 = vrot.slane %v9430_v10, 1  ;;  %10336 = vmatmul.mubr.bf16.gmra.mrb[148].mxu1 %v9589_v11  ;;  %v14009_v44 = vld [vmem:[#allocation14 + $0x200] sm:$0xff]   ;;  %v14005_v8 = vld [vmem:[#allocation14 + $0x1f8] sm:$0xff]  }
 0x757   : > { %v9555_v37 = vrot.slane %v9543_v35, 1  ;;  %9568 = vst [vmem:[#allocation2 + $0x1a8] sm:$0x7f] %v9556_v0  ;;  %10343 = vmatprep.mubr.bf16.mxu1 %v16464_v46  ;;  %13115 = vmatpush3.bf16.msra.mxu1 %v13996_v56  ;;  %v14001_v45 = vld [vmem:[#allocation14 + $0x1f0] sm:$0xff]   ;;  %v9598_v40 = vld [vmem:[#allocation2 + $0xe8] sm:$0xff]  ;;  %v14006_v33 = vld [vmem:[#allocation14 + $0x1b8] sm:$0xff]  }
 0x758   : > { %9454 = vst [vmem:[#allocation2 + $0x190] sm:$0x7f] %v9442_v20  ;;  %13116 = vmatprep.subr.bf16.mxu1 %v13998_v43  ;;  %13069 = vmatpush3.bf16.msra.mxu0 %v14008_v36  ;;  %v14002_v26 = vld [vmem:[#allocation14 + $0x1b0] sm:$0xff]   ;;  %v9574_v5 = vld [vmem:[#allocation2 + $0x28] sm:$0xff]  ;;  %v14012_v41 = vld [vmem:[#allocation14 + $0x218] sm:$0xff]  }
 0x759   : > { %9567 = vst [vmem:[#allocation2 + $0x160] sm:$0x7f] %v9555_v37  ;;  %13341 = vmatprep.subr.bf16.mxu0 %v14009_v44  ;;  %v9607_v7 = vld [vmem:[#allocation2 + $0x130] sm:$0xff]  ;;  %v14010_v38 = vld [vmem:[#allocation14 + $0x208] sm:$0xff]   ;;  %v9592_v24 = vld [vmem:[#allocation2 + $0xb8] sm:$0xff] }
 0x75a   : > { %10271 = vmatmul.mubr.bf16.gmra.mrb[156].mxu0 %v16464_v46  ;;  %v9583_v28 = vld [vmem:[#allocation2 + $0x70] sm:$0xff]  ;;  %v14014_v19 = vld [vmem:[#allocation14 + $0x228] sm:$0xff]   ;;  %v10668_v58 = vld [vmem:[%s16794_s15 + $0x18] sm:$0xff] }
 0x75b   : > { %13117 = vmatpush3.bf16.msra.mxu1 %v14000_v53  ;;  %10278 = vmatprep.mubr.bf16.mxu0 %v16499_v2  ;;  %v9616_v2 = vld [vmem:[#allocation2 + $0x178] sm:$0xff]  ;;  %v14011_v31 = vld [vmem:[#allocation14 + $0x210] sm:$0xff]   ;;  %v10669_v6 = vld [vmem:[%s16794_s15 + $0x20] sm:$0xff] }
 0x75c   : > { %13118 = vmatprep.subr.bf16.mxu1 %v14001_v45  ;;  %v10670_v39 = vld [vmem:[%s16794_s15 + $0x28] sm:$0xff]  ;;  %v10671_v60 = vld [vmem:[%s16794_s15 + $0x30] sm:$0xff]  ;;  %v10672_v61 = vld [vmem:[%s16794_s15 + $0x38] sm:$0xff] }
 0x75d   : > { %v13411_v9 = vpack.c.bf16 %v10670_v39, %v10669_v6  ;;  %v13414_v15 = vpack.c.bf16 %v10672_v61, %v10671_v60  ;;  %v10673_v16 = vld [vmem:[%s16794_s15 + $0x40] sm:$0xff]  ;;  %v10674_v12 = vld [vmem:[%s16794_s15 + $0x48] sm:$0xff]  ;;  %v10675_v32 = vld [vmem:[%s16794_s15 + $0x50] sm:$0xff] }
 0x75e   : > { %10344 = vmatmul.mubr.bf16.gmra.mrb[152].mxu1 %v9598_v40  ;;  %v13417_v14 = vpack.c.bf16 %v10674_v12, %v10673_v16  ;;  %v10676_v23 = vld [vmem:[%s16794_s15 + $0x58] sm:$0xff]  ;;  %v10677_v56 = vld [vmem:[%s16794_s15 + $0x60] sm:$0xff]  ;;  %v10679_v20 = vld [vmem:[%s16794_s15 + $0x70] sm:$0xff] }
 0x75f   : > { %10351 = vmatprep.mubr.bf16.mxu1 %v16450_v17  ;;  %13119 = vmatpush3.bf16.msra.mxu1 %v14002_v26  ;;  %v13420_v42 = vpack.c.bf16 %v10676_v23, %v10675_v32  ;;  %v16625_v0 = vld [vmem:[%s16795_s18] ss:$0 sm:$0xff]  ;;  %v10680_v37 = vld [vmem:[%s16794_s15 + $0x78] sm:$0xff] }
 0x760   : > { %13120 = vmatprep.subr.bf16.mxu1 %v14005_v8 }
 0x762   : > { %10279 = vmatmul.mubr.bf16.gmra.mrb[160].mxu0 %v16450_v17 }
 0x763   : > { %13121 = vmatpush3.bf16.msra.mxu1 %v14006_v33  ;;  %10400 = vmatprep.mubr.bf16.mxu0 %v9574_v5  ;;  %v13426_v5 = vpack.c.bf16 %v10680_v37, %v10679_v20 }
 0x764   : > { %13404 = vmatprep.subr.bf16.mxu1 %v14279_v1 }
 0x766   : > { %10352 = vmatmul.mubr.bf16.gmra.mrb[156].mxu1 %v9607_v7 }
 0x767   : > { %10359 = vmatprep.mubr.bf16.mxu1 %v16509_v22 }
 0x76a   : > { %10401 = vmatmul.mubr.bf16.vlgmr.msra.gmra.mrb[164].mxu0 %v16431_v62  ;;  %v14013_v62 = vld [vmem:[#allocation14 + $0x220] sm:$0xff]  }
 0x76b   : > { %10408 = vmatprep.mubr.bf16.mxu0 %v9583_v28  ;;  %13342 = vmatpush3.bf16.msra.mxu0 %v14009_v44 }
 0x76c   : > { %13343 = vmatprep.subr.bf16.mxu0 %v14010_v38 }
 0x76e   : > { %10360 = vmatmul.mubr.bf16.gmra.mrb[160].mxu1 %v9616_v2 }
 0x76f   : > { %10481 = vmatprep.mubr.bf16.mxu1 %v16471_v34  ;;  %13344 = vmatpush3.bf16.msra.mxu0 %v14010_v38  ;;  %v9601_v34 = vld [vmem:[#allocation2 + $0x100] sm:$0xff] }
 0x770   : > { %13345 = vmatprep.subr.bf16.mxu0 %v14011_v31 }
 0x772   : > { %10409 = vmatmul.mubr.bf16.gmra.mrb[168].mxu0 %v16476_v57  ;;  %v14015_v57 = vld [vmem:[#allocation14 + $0x230] sm:$0xff]  }
 0x773   : > { %10416 = vmatprep.mubr.bf16.mxu0 %v9592_v24  ;;  %13346 = vmatpush3.bf16.msra.mxu0 %v14011_v31 }
 0x774   : > { %13347 = vmatprep.subr.bf16.mxu0 %v14012_v41 }
 0x776   : > { %10482 = vmatmul.mubr.bf16.vlgmr.msra.gmra.mrb[164].mxu1 %v16433_v27  ;;  %v14016_v27 = vld [vmem:[#allocation14 + $0x238] sm:$0xff]  }
 0x777   : > { %10489 = vmatprep.mubr.bf16.mxu1 %v16458_v52  ;;  %13348 = vmatpush3.bf16.msra.mxu0 %v14012_v41  ;;  %v9610_v52 = vld [vmem:[#allocation2 + $0x148] sm:$0xff] }
 0x778   : > { %13349 = vmatprep.subr.bf16.mxu0 %v14013_v62 }
 0x77a   : > { %10417 = vmatmul.mubr.bf16.gmra.mrb[172].mxu0 %v16462_v25  ;;  %v9577_v25 = vld [vmem:[#allocation2 + $0x40] sm:$0xff] }
 0x77b   : > { %10424 = vmatprep.mubr.bf16.mxu0 %v9601_v34  ;;  %13350 = vmatpush3.bf16.msra.mxu0 %v14013_v62 }
 0x77c   : > { %13351 = vmatprep.subr.bf16.mxu0 %v14014_v19 }
 0x77e   : > { %10490 = vmatmul.mubr.bf16.gmra.mrb[168].mxu1 %v16425_v50  ;;  %v9619_v50 = vld [vmem:[#allocation2 + $0x190] sm:$0xff] }
 0x77f   : > { %10497 = vmatprep.mubr.bf16.mxu1 %v16518_v3  ;;  %13352 = vmatpush3.bf16.msra.mxu0 %v14014_v19  ;;  %v9613_v3 = vld [vmem:[#allocation2 + $0x160] sm:$0xff] }
 0x780   : > { %13353 = vmatprep.subr.bf16.mxu0 %v14015_v57 }
 0x782   : > { %10425 = vmatmul.mubr.bf16.gmra.mrb[176].mxu0 %v16523_v59  ;;  %v10665_v59 = vld [vmem:[%s16794_s15] sm:$0xff] }
 0x783   : > { %10432 = vmatprep.mubr.bf16.mxu0 %v9610_v52  ;;  %13354 = vmatpush3.bf16.msra.mxu0 %v14015_v57 }
 0x784   : > { %13355 = vmatprep.subr.bf16.mxu0 %v14016_v27 }
 0x786   : > { %10498 = vmatmul.mubr.bf16.gmra.mrb[172].mxu1 %v16464_v46  ;;  %v9586_v46 = vld [vmem:[#allocation2 + $0x88] sm:$0xff] }
 0x787   : > { %10505 = vmatprep.mubr.bf16.mxu1 %v16503_v48  ;;  %13356 = vmatpush3.bf16.msra.mxu0 %v14016_v27  ;;  %v9595_v48 = vld [vmem:[#allocation2 + $0xd0] sm:$0xff] }
 0x78a   : > { %10433 = vmatmul.mubr.bf16.gmra.mrb[180].mxu0 %v16507_v29  ;;  %v9604_v29 = vld [vmem:[#allocation2 + $0x118] sm:$0xff] }
 0x78b   : > { %10440 = vmatprep.mubr.bf16.mxu0 %v9619_v50 }
 0x78e   : > { %10506 = vmatmul.mubr.bf16.gmra.mrb[176].mxu1 %v16450_v17  ;;  %v9622_v17 = vld [vmem:[#allocation2 + $0x1a8] sm:$0xff] }
 0x78f   : > { %10513 = vmatprep.mubr.bf16.mxu1 %v16541_v51 }
 0x792   : > { %10441 = vmatmul.mubr.bf16.gmra.mrb[184].mxu0 %v16545_v18 }
 0x793   : > { %13357 = vmatprep.mubr.bf16.mxu0 %v9577_v25 }
 0x796   : > { %10514 = vmatmul.mubr.bf16.gmra.mrb[180].mxu1 %v16509_v22  ;;  %v10666_v22 = vld [vmem:[%s16794_s15 + $0x8] sm:$0xff] }
 0x797   : > { %10521 = vmatprep.mubr.bf16.mxu1 %v16550_v63  ;;  %v13405_v54 = vpack.c.bf16 %v10666_v22, %v10665_v59  ;;  %v10678_v63 = vld [vmem:[%s16794_s15 + $0x68] sm:$0xff] }
 0x798   : > { %v13423_v35 = vpack.c.bf16 %v10678_v63, %v10677_v56 }
 0x799   : > { %13406 = vmatpush3.bf16.msra.mxu1 %v13405_v54 }
 0x79a   : > { %13358 = vmatmul.mubr.bf16.vlgmr.msra.gmra.mrb[188].mxu0 %v9586_v46  ;;  %13407 = vmatprep.subr.bf16.mxu1 %v14279_v1 }
 0x79b   : > { %13361 = vmatprep.mubr.bf16.mxu0 %v9595_v48 }
 0x79e   : > { %10522 = vmatmul.mubr.bf16.gmra.mrb[184].mxu1 %v16495_v4  ;;  %v10667_v4 = vld [vmem:[%s16794_s15 + $0x10] sm:$0xff] }
 0x79f   : > { %v13408_v21 = vpack.c.bf16 %v10668_v58, %v10667_v4  ;;  %13401 = vmatprep.mubr.msk.f32.mxu1 %vm14280_vm3, %v14281_v30 }
 0x7a1   : > { %13409 = vmatpush3.bf16.msra.mxu1 %v13408_v21 }
 0x7a2   : > { %13362 = vmatmul.mubr.bf16.gmra.mrb[192].mxu0 %v9604_v29  ;;  %13410 = vmatprep.subr.bf16.mxu1 %v14279_v1 }
 0x7a3   : > { %13365 = vmatprep.mubr.bf16.mxu0 %v9613_v3 }
 0x7a5   : > { %13412 = vmatpush3.bf16.msra.mxu1 %v13411_v9 }
 0x7a6   : > { %13413 = vmatprep.subr.bf16.mxu1 %v14279_v1 }
 0x7a9   : > { %13415 = vmatpush3.bf16.msra.mxu1 %v13414_v15 }
 0x7aa   : > { %13366 = vmatmul.mubr.bf16.gmra.mrb[196].mxu0 %v9622_v17  ;;  %13416 = vmatprep.subr.bf16.mxu1 %v14279_v1 }
 0x7ad   : > { %13418 = vmatpush3.bf16.msra.mxu1 %v13417_v14 }
 0x7ae   : > { %13419 = vmatprep.subr.bf16.mxu1 %v14279_v1 }
 0x7b1   : > { %13421 = vmatpush3.bf16.msra.mxu1 %v13420_v42 }
 0x7b2   : > { %13422 = vmatprep.subr.bf16.mxu1 %v14279_v1 }
 0x7b5   : > { %13424 = vmatpush3.bf16.msra.mxu1 %v13423_v35 }
 0x7b6   : > { %13425 = vmatprep.subr.bf16.mxu1 %v14279_v1 }
 0x7b9   : > { %13427 = vmatpush3.bf16.msra.mxu1 %v13426_v5 }
 0x80c   : > { %v12966_v49 = vpop.f32.mrb[140].mxu0 }
 0x80d   : > { %v12967_v13 = vpop.f32.mrb[141].mxu0 }
 0x80e   : > { %v12968_v47 = vadd.f32 %v12967_v13, %v12966_v49  ;;  %v12969_v51 = vpop.f32.mrb[142].mxu0 }
 0x80f   : > { %v12970_v55 = vpop.f32.mrb[143].mxu0 }
 0x810   : > { %v12971_v18 = vadd.f32 %v12970_v55, %v12969_v51  ;;  %v10241_v40 = vadd.f32 %v12968_v47, %v16625_v0 }
 0x812   : > { %v10244_v28 = vadd.f32 %v12971_v18, %v16625_v0 }
 0x814   : > { %v12972_v10 = vpop.f32.mrb[144].mxu0 }
 0x815   : > { %v12973_v43 = vpop.f32.mrb[145].mxu0 }
 0x816   : > { %v12974_v36 = vadd.f32 %v12973_v43, %v12972_v10  ;;  %v12975_v44 = vpop.f32.mrb[146].mxu0 }
 0x817   : > { %v13018_v11 = vpop.f32.mrb[140].mxu1  ;;  %v12976_v45 = vpop.f32.mrb[147].mxu0 }
 0x818   : > { %v13019_v53 = vpop.f32.mrb[141].mxu1  ;;  %v12977_v33 = vadd.f32 %v12976_v45, %v12975_v44  ;;  %v10249_v25 = vadd.f32 %v12974_v36, %v16625_v0 }
 0x819   : > { %v13020_v26 = vadd.f32 %v13019_v53, %v13018_v11  ;;  %v13021_v8 = vpop.f32.mrb[142].mxu1 }
 0x81a   : > { %v13022_v7 = vpop.f32.mrb[143].mxu1  ;;  %v10252_v3 = vadd.f32 %v12977_v33, %v16625_v0 }
 0x81b   : > { %v13023_v38 = vadd.f32 %v13022_v7, %v13021_v8  ;;  %v16635_v2 = vadd.f32 %v13020_v26, %v10241_v40 }
 0x81d   : > { %v12978_v31 = vpop.f32.mrb[148].mxu0  ;;  %v16637_v41 = vadd.f32 %v13023_v38, %v10244_v28 }
 0x81e   : > { %v12979_v24 = vpop.f32.mrb[149].mxu0 }
 0x81f   : > { %v12980_v19 = vadd.f32 %v12979_v24, %v12978_v31  ;;  %v12981_v34 = vpop.f32.mrb[150].mxu0 }
 0x820   : > { %v13024_v62 = vpop.f32.mrb[144].mxu1  ;;  %v12982_v27 = vpop.f32.mrb[151].mxu0 }
 0x821   : > { %v13025_v57 = vpop.f32.mrb[145].mxu1  ;;  %v12983_v46 = vadd.f32 %v12982_v27, %v12981_v34  ;;  %v10257_v60 = vadd.f32 %v12980_v19, %v16625_v0 }
 0x822   : > { %v13026_v52 = vadd.f32 %v13025_v57, %v13024_v62  ;;  %v13027_v50 = vpop.f32.mrb[146].mxu1 }
 0x823   : > { %v13028_v48 = vpop.f32.mrb[147].mxu1  ;;  %v10260_v16 = vadd.f32 %v12983_v46, %v16625_v0 }
 0x824   : > { %v13029_v29 = vadd.f32 %v13028_v48, %v13027_v50  ;;  %v16641_v17 = vadd.f32 %v13026_v52, %v10249_v25 }
 0x825   : > { %v12984_v59 = vpop.f32.mrb[152].mxu0 }
 0x826   : > { %v16643_v22 = vadd.f32 %v13029_v29, %v10252_v3  ;;  %v12985_v1 = vpop.f32.mrb[153].mxu0 }
 0x827   : > { %v12986_v4 = vadd.f32 %v12985_v1, %v12984_v59  ;;  %v12987_v58 = vpop.f32.mrb[154].mxu0 }
 0x828   : > { %v12988_v6 = vpop.f32.mrb[155].mxu0 }
 0x829   : > { %v13030_v54 = vpop.f32.mrb[148].mxu1  ;;  %v12989_v61 = vadd.f32 %v12988_v6, %v12987_v58  ;;  %v10265_v56 = vadd.f32 %v12986_v4, %v16625_v0 }
 0x82a   : > { %v13031_v21 = vpop.f32.mrb[149].mxu1 }
 0x82b   : > { %v13032_v39 = vadd.f32 %v13031_v21, %v13030_v54  ;;  %v13033_v9 = vpop.f32.mrb[150].mxu1  ;;  %v10268_v43 = vadd.f32 %v12989_v61, %v16625_v0 }
 0x82c   : > { %v13034_v30 = vpop.f32.mrb[151].mxu1 }
 0x82d   : > { %v13035_v15 = vadd.f32 %v13034_v30, %v13033_v9  ;;  %v16647_v12 = vadd.f32 %v13032_v39, %v10257_v60  ;;  %v12990_v49 = vpop.f32.mrb[156].mxu0 }
 0x82e   : > { %v12991_v13 = vpop.f32.mrb[157].mxu0 }
 0x82f   : > { %v16649_v14 = vadd.f32 %v13035_v15, %v10260_v16  ;;  %v12992_v23 = vadd.f32 %v12991_v13, %v12990_v49  ;;  %v12993_v47 = vpop.f32.mrb[158].mxu0 }
 0x830   : > { %v12994_v55 = vpop.f32.mrb[159].mxu0 }
 0x831   : > { %v13036_v32 = vpop.f32.mrb[152].mxu1  ;;  %v12995_v63 = vadd.f32 %v12994_v55, %v12993_v47  ;;  %v10273_v5 = vadd.f32 %v12992_v23, %v16625_v0 }
 0x832   : > { %v13037_v51 = vpop.f32.mrb[153].mxu1 }
 0x833   : > { %v13038_v18 = vadd.f32 %v13037_v51, %v13036_v32  ;;  %v13039_v42 = vpop.f32.mrb[154].mxu1  ;;  %v10276_v31 = vadd.f32 %v12995_v63, %v16625_v0 }
 0x834   : > { %v13040_v10 = vpop.f32.mrb[155].mxu1 }
 0x835   : > { %v13041_v35 = vadd.f32 %v13040_v10, %v13039_v42  ;;  %v16653_v20 = vadd.f32 %v13038_v18, %v10265_v56  ;;  %v12996_v37 = vpop.f32.mrb[160].mxu0 }
 0x836   : > { %v12997_v36 = vpop.f32.mrb[161].mxu0 }
 0x837   : > { %v16655_v11 = vadd.f32 %v13041_v35, %v10268_v43  ;;  %v12998_v53 = vadd.f32 %v12997_v36, %v12996_v37  ;;  %v12999_v45 = vpop.f32.mrb[162].mxu0 }
 0x838   : > { %v13000_v8 = vpop.f32.mrb[163].mxu0 }
 0x839   : > { %v13042_v44 = vpop.f32.mrb[156].mxu1  ;;  %v13001_v7 = vadd.f32 %v13000_v8, %v12999_v45  ;;  %v10281_v29 = vadd.f32 %v12998_v53, %v16625_v0 }
 0x83a   : > { %v13043_v26 = vpop.f32.mrb[157].mxu1 }
 0x83b   : > { %v13044_v40 = vadd.f32 %v13043_v26, %v13042_v44  ;;  %v13045_v33 = vpop.f32.mrb[158].mxu1  ;;  %v10284_v4 = vadd.f32 %v13001_v7, %v16625_v0 }
 0x83c   : > { %v13046_v38 = vpop.f32.mrb[159].mxu1 }
 0x83d   : > { %v13047_v28 = vadd.f32 %v13046_v38, %v13045_v33  ;;  %v16659_v24 = vadd.f32 %v13044_v40, %v10273_v5  ;;  %v13070_v62 = vpop.f32.mrb[164].mxu0 }
 0x83e   : > { %v13071_v34 = vpop.f32.mrb[165].mxu0 }
 0x83f   : > { %v16661_v19 = vadd.f32 %v13047_v28, %v10276_v31  ;;  %v13072_v27 = vadd.f32 %v13071_v34, %v13070_v62  ;;  %v13073_v52 = vpop.f32.mrb[166].mxu0 }
 0x840   : > { %v13074_v25 = vpop.f32.mrb[167].mxu0 }
 0x841   : > { %v13048_v57 = vpop.f32.mrb[160].mxu1  ;;  %v10403_v3 = vadd.f32 %v13072_v27, %v16635_v2  ;;  %v13075_v59 = vadd.f32 %v13074_v25, %v13073_v52 }
 0x842   : > { %v13049_v50 = vpop.f32.mrb[161].mxu1 }
 0x843   : > { %v13050_v46 = vadd.f32 %v13049_v50, %v13048_v57  ;;  %v13051_v48 = vpop.f32.mrb[162].mxu1  ;;  %v10406_v58 = vadd.f32 %v13075_v59, %v16637_v41 }
 0x844   : > { %v13052_v1 = vpop.f32.mrb[163].mxu1 }
 0x845   : > { %v13053_v54 = vadd.f32 %v13052_v1, %v13051_v48  ;;  %v16667_v21 = vadd.f32 %v13050_v46, %v10281_v29  ;;  %v13076_v6 = vpop.f32.mrb[168].mxu0 }
 0x846   : > { %v13077_v9 = vpop.f32.mrb[169].mxu0 }
 0x847   : > { %v16669_v39 = vadd.f32 %v13053_v54, %v10284_v4  ;;  %v13078_v61 = vadd.f32 %v13077_v9, %v13076_v6  ;;  %v13079_v30 = vpop.f32.mrb[170].mxu0 }
 0x848   : > { %v13080_v16 = vpop.f32.mrb[171].mxu0 }
 0x849   : > { %v13122_v60 = vpop.f32.mrb[164].mxu1  ;;  %v10411_v13 = vadd.f32 %v13078_v61, %v16641_v17  ;;  %v13081_v32 = vadd.f32 %v13080_v16, %v13079_v30 }
 0x84a   : > { %v13123_v15 = vpop.f32.mrb[165].mxu1 }
 0x84b   : > { %v13124_v49 = vadd.f32 %v13123_v15, %v13122_v60  ;;  %v13125_v2 = vpop.f32.mrb[166].mxu1  ;;  %v10414_v41 = vadd.f32 %v13081_v32, %v16643_v22 }
 0x84c   : > { %v13126_v23 = vpop.f32.mrb[167].mxu1 }
 0x84d   : > { %v13127_v0 = vadd.f32 %v13126_v23, %v13125_v2  ;;  %v16673_v47 = vadd.f32 %v13124_v49, %v10403_v3  ;;  %v13082_v51 = vpop.f32.mrb[172].mxu0 }
 0x84e   : > { %v13083_v18 = vpop.f32.mrb[173].mxu0 }
 0x84f   : > { %v16675_v55 = vadd.f32 %v13127_v0, %v10406_v58  ;;  %v13084_v56 = vadd.f32 %v13083_v18, %v13082_v51  ;;  %v13085_v63 = vpop.f32.mrb[174].mxu0 }
 0x850   : > { %v13086_v35 = vpop.f32.mrb[175].mxu0 }
 0x851   : > { %v13128_v42 = vpop.f32.mrb[168].mxu1  ;;  %v10419_v17 = vadd.f32 %v13084_v56, %v16647_v12  ;;  %v13087_v36 = vadd.f32 %v13086_v35, %v13085_v63 }
 0x852   : > { %v13129_v10 = vpop.f32.mrb[169].mxu1 }
 0x853   : > { %v13130_v43 = vadd.f32 %v13129_v10, %v13128_v42  ;;  %v13131_v37 = vpop.f32.mrb[170].mxu1  ;;  %v10422_v22 = vadd.f32 %v13087_v36, %v16649_v14 }
 0x854   : > { %v13132_v44 = vpop.f32.mrb[171].mxu1 }
 0x855   : > { %v13133_v53 = vadd.f32 %v13132_v44, %v13131_v37  ;;  %v10492_v45 = vadd.f32 %v13130_v43, %v10411_v13  ;;  %v13088_v26 = vpop.f32.mrb[176].mxu0 }
 0x856   : > { %v13089_v40 = vpop.f32.mrb[177].mxu0 }
 0x857   : > { %v10495_v8 = vadd.f32 %v13133_v53, %v10414_v41  ;;  %v13090_v5 = vadd.f32 %v13089_v40, %v13088_v26  ;;  %v13091_v7 = vpop.f32.mrb[178].mxu0 }
 0x858   : > { %v13092_v28 = vpop.f32.mrb[179].mxu0 }
 0x859   : > { %v13134_v33 = vpop.f32.mrb[172].mxu1  ;;  %v10427_v34 = vadd.f32 %v13090_v5, %v16653_v20  ;;  %v13093_v57 = vadd.f32 %v13092_v28, %v13091_v7 }
 0x85a   : > { %v13135_v38 = vpop.f32.mrb[173].mxu1 }
 0x85b   : > { %v13136_v31 = vadd.f32 %v13135_v38, %v13134_v33  ;;  %v13137_v62 = vpop.f32.mrb[174].mxu1  ;;  %v10430_v52 = vadd.f32 %v13093_v57, %v16655_v11 }
 0x85c   : > { %v13138_v12 = vpop.f32.mrb[175].mxu1 }
 0x85d   : > { %v13139_v27 = vadd.f32 %v13138_v12, %v13137_v62  ;;  %v10500_v50 = vadd.f32 %v13136_v31, %v10419_v17  ;;  %v13094_v14 = vpop.f32.mrb[180].mxu0 }
 0x85e   : > { %v13095_v46 = vpop.f32.mrb[181].mxu0 }
 0x85f   : > { %v16681_v25 = vadd.f32 %v13139_v27, %v10422_v22  ;;  %v13096_v29 = vadd.f32 %v13095_v46, %v13094_v14  ;;  %v13097_v3 = vpop.f32.mrb[182].mxu0 }
 0x860   : > { %v13098_v1 = vpop.f32.mrb[183].mxu0 }
 0x861   : > { %v13140_v48 = vpop.f32.mrb[176].mxu1  ;;  %v10435_v58 = vadd.f32 %v13096_v29, %v16659_v24  ;;  %v13099_v20 = vadd.f32 %v13098_v1, %v13097_v3 }
 0x862   : > { %v13141_v59 = vpop.f32.mrb[177].mxu1 }
 0x863   : > { %v13142_v54 = vadd.f32 %v13141_v59, %v13140_v48  ;;  %v13143_v4 = vpop.f32.mrb[178].mxu1  ;;  %v10438_v60 = vadd.f32 %v13099_v20, %v16661_v19 }
 0x864   : > { %v13144_v6 = vpop.f32.mrb[179].mxu1 }
 0x865   : > { %v13145_v9 = vadd.f32 %v13144_v6, %v13143_v4  ;;  %v10508_v11 = vadd.f32 %v13142_v54, %v10427_v34  ;;  %v13100_v61 = vpop.f32.mrb[184].mxu0 }
 0x866   : > { %v13101_v15 = vpop.f32.mrb[185].mxu0 }
 0x867   : > { %v10511_v30 = vadd.f32 %v13145_v9, %v10430_v52  ;;  %v13102_v49 = vadd.f32 %v13101_v15, %v13100_v61  ;;  %v13103_v2 = vpop.f32.mrb[186].mxu0 }
 0x868   : > { %v13104_v32 = vpop.f32.mrb[187].mxu0 }
 0x869   : > { %v13146_v16 = vpop.f32.mrb[180].mxu1  ;;  %v10443_v41 = vadd.f32 %v13102_v49, %v16667_v21  ;;  %v13105_v51 = vadd.f32 %v13104_v32, %v13103_v2 }
 0x86a   : > { %v13147_v13 = vpop.f32.mrb[181].mxu1 }
 0x86b   : > { %v13148_v23 = vadd.f32 %v13147_v13, %v13146_v16  ;;  %v13149_v0 = vpop.f32.mrb[182].mxu1  ;;  %v10446_v42 = vadd.f32 %v13105_v51, %v16669_v39 }
 0x86c   : > { %v13150_v24 = vpop.f32.mrb[183].mxu1 }
 0x86d   : > { %v13151_v18 = vadd.f32 %v13150_v24, %v13149_v0  ;;  %v10516_v56 = vadd.f32 %v13148_v23, %v10435_v58  ;;  %v13359_v19 = vpop.f32.mrb[188].mxu0 }
 0x86e   : > { %v10573_v10 = vadd.f32 %v13359_v19, %v10492_v45  ;;  %v10564_v35 = vpop.f32.mrb[189].mxu0 }
 0x86f   : > { %v10519_v63 = vadd.f32 %v13151_v18, %v10438_v60  ;;  %v10565_v37 = vadd.f32 %v10564_v35, %v16673_v47  ;;  %v13360_v17 = vpop.f32.mrb[190].mxu0 }
 0x870   : > { %v10576_v44 = vadd.f32 %v13360_v17, %v10495_v8  ;;  %v10567_v53 = vpop.f32.mrb[191].mxu0  ;;  %v10613_v33 = vmax.f32 %v10573_v10, 0.0 }
 0x871   : > { %v13152_v43 = vpop.f32.mrb[184].mxu1  ;;  %v10568_v21 = vadd.f32 %v10567_v53, %v16675_v55  ;;  %v10611_v7 = vmax.f32 %v10565_v37, 0.0 }
 0x872   : > { %v13153_v36 = vpop.f32.mrb[185].mxu1  ;;  %v10614_v5 = vmax.f32 %v10576_v44, 0.0 }
 0x873   : > { %v13154_v22 = vadd.f32 %v13153_v36, %v13152_v43  ;;  %v13155_v26 = vpop.f32.mrb[186].mxu1  ;;  %v10612_v38 = vmax.f32 %v10568_v21, 0.0 }
 0x874   : > { %v13156_v40 = vpop.f32.mrb[187].mxu1  ;;  %v10624_v45 = vpack.c.bf16 %v10614_v5, %v10613_v33 }
 0x875   : > { %v13157_v39 = vadd.f32 %v13156_v40, %v13155_v26  ;;  %v10524_v28 = vadd.f32 %v13154_v22, %v10443_v41  ;;  %v10623_v31 = vpack.c.bf16 %v10612_v38, %v10611_v7  ;;  %v13363_v62 = vpop.f32.mrb[192].mxu0 }
 0x876   : > { %10630 = vst [vmem:[#allocation3 + $0x8] sm:$0xff] %v10624_v45  ;;  %v10589_v47 = vadd.f32 %v13363_v62, %v10508_v11  ;;  %v10580_v57 = vpop.f32.mrb[193].mxu0 }
 0x877   : > { %v10527_v34 = vadd.f32 %v13157_v39, %v10446_v42  ;;  %10629 = vst [vmem:[#allocation3] sm:$0xff] %v10623_v31  ;;  %v10581_v8 = vadd.f32 %v10580_v57, %v10500_v50  ;;  %v13364_v12 = vpop.f32.mrb[194].mxu0  ;;  %v10681_v39 = vld [vmem:[%s16796_s19] sm:$0x1] }
 0x878   : > { %v10592_v27 = vadd.f32 %v13364_v12, %v10511_v30  ;;  %v10583_v52 = vpop.f32.mrb[195].mxu0  ;;  %v10617_v14 = vmax.f32 %v10589_v47, 0.0 }
 0x879   : > { %v10584_v55 = vadd.f32 %v10583_v52, %v16681_v25  ;;  %v10615_v48 = vmax.f32 %v10581_v8, 0.0 }
 0x87a   : > { %v10618_v46 = vmax.f32 %v10592_v27, 0.0 }
 0x87b   : > { %v10616_v29 = vmax.f32 %v10584_v55, 0.0 }
 0x87c   : > { %v10626_v3 = vpack.c.bf16 %v10618_v46, %v10617_v14 }
 0x87d   : > { %v10625_v59 = vpack.c.bf16 %v10616_v29, %v10615_v48  ;;  %v13367_v1 = vpop.f32.mrb[196].mxu0  ;;  %v10636_v60 = vld [vmem:[#allocation3 + $0x8] sm:$0x7] }
 0x87e   : > { %10632 = vst [vmem:[#allocation3 + $0x18] sm:$0xff] %v10626_v3  ;;  %v10605_v54 = vadd.f32 %v13367_v1, %v10524_v28  ;;  %v10596_v4 = vpop.f32.mrb[197].mxu0  ;;  %v10635_v9 = vld [vmem:[#allocation3] sm:$0x7]  ;;  %v10642_v49 = vunpack.c.l.bf16 %v10636_v60 }
 0x87f   : > { %10631 = vst [vmem:[#allocation3 + $0x10] sm:$0xff] %v10625_v59  ;;  %v10597_v58 = vadd.f32 %v10596_v4, %v10516_v56  ;;  %v13368_v20 = vpop.f32.mrb[198].mxu0  ;;  %v10641_v16 = vunpack.c.l.bf16 %v10635_v9 }
 0x880   : > { %v10608_v6 = vadd.f32 %v13368_v20, %v10527_v34  ;;  %v10599_v50 = vpop.f32.mrb[199].mxu0  ;;  %v10621_v61 = vmax.f32 %v10605_v54, 0.0  ;;  %v10649_v41 = vsel %vm10647_vm4, %v10642_v49, 0.0 }
 0x881   : > { %v10600_v11 = vadd.f32 %v10599_v50, %v10519_v63  ;;  %v10619_v30 = vmax.f32 %v10597_v58, 0.0  ;;  %v10648_v0 = vsel %vm10647_vm4, %v10641_v16, 0.0 }
 0x882   : > { %v10622_v25 = vmax.f32 %v10608_v6, 0.0  ;;  %v10650_v18 = vadd.f32 %v10649_v41, %v10648_v0 }
 0x883   : > { %v10620_v15 = vmax.f32 %v10600_v11, 0.0 }
 0x884   : > { %v10628_v2 = vpack.c.bf16 %v10622_v25, %v10621_v61 }
 0x885   : > { %v10627_v13 = vpack.c.bf16 %v10620_v15, %v10619_v30  ;;  %v10638_v51 = vld [vmem:[#allocation3 + $0x18] sm:$0x7] }
 0x886   : > { %10634 = vst [vmem:[#allocation3 + $0x28] sm:$0xff] %v10628_v2  ;;  %v10637_v32 = vld [vmem:[#allocation3 + $0x10] sm:$0x7]  ;;  %v10644_v42 = vunpack.c.l.bf16 %v10638_v51 }
 0x887   : > { %10633 = vst [vmem:[#allocation3 + $0x20] sm:$0xff] %v10627_v13  ;;  %v10643_v23 = vunpack.c.l.bf16 %v10637_v32 }
 0x888   : > { %v10653_v43 = vsel %vm10647_vm4, %v10644_v42, 0.0 }
 0x889   : > { %v10651_v24 = vsel %vm10647_vm4, %v10643_v23, 0.0 }
 0x88a   : > { %v10652_v56 = vadd.f32 %v10651_v24, %v10650_v18 }
 0x88c   : > { %v10654_v37 = vadd.f32 %v10653_v43, %v10652_v56 }
 0x88d   : > { %v10640_v19 = vld [vmem:[#allocation3 + $0x28] sm:$0x7] }
 0x88e   : > { %v10639_v63 = vld [vmem:[#allocation3 + $0x20] sm:$0x7]  ;;  %v10646_v35 = vunpack.c.l.bf16 %v10640_v19 }
 0x88f   : > { %v10645_v10 = vunpack.c.l.bf16 %v10639_v63 }
 0x890   : > { %v10657_v44 = vsel %vm10647_vm4, %v10646_v35, 0.0 }
 0x891   : > { %v10655_v17 = vsel %vm10647_vm4, %v10645_v10, 0.0 }
 0x892   : > { %v10656_v36 = vadd.f32 %v10655_v17, %v10654_v37 }
 0x894   : > { %v10658_v53 = vadd.f32 %v10657_v44, %v10656_v36 }
 0x896   : > { %v10659_v22 = vrot.slane %v10658_v53, 4 }
 0x898   : > { %v10660_v26 = vadd.f32 %v10659_v22, %v10658_v53 }
 0x89a   : > { %v10661_v21 = vrot.slane %v10660_v26, 2 }
 0x89c   : > { %v10662_v40 = vadd.f32 %v10661_v21, %v10660_v26 }
 0x89e   : > { %v10663_v33 = vrot.slane %v10662_v40, 1 }
 0x8a0   : > { %v10664_v5 = vadd.f32 %v10663_v33, %v10662_v40 }
 0x8a2   : > { %13402 = vmatmul.mubr.f32.vlgmr.msra.gmra.mrb[188].mxu1 %v10664_v5 }
 0x975   : > { %v10748_v7 = vpop.f32.mrb[188].mxu1 }
 0x976   : > { %v10749_v38 = vadd.f32 %v10748_v7, %v10681_v39  ;;  %v13403_v28 = vpop.f32.mrb[189].mxu1 }
 0x978   : > { %10753 = vst.msk [vmem:[%s530_s12] sm:$0x1] %vm10752_vm5, %v10749_v38 }
 0x979   : > { %14203 = shalt.err (!%p14200_p8)
}
 0x97a   : > { %s14204_s17 = scalar_lea.hbm %s16704_s21, 16  ;;  %s14208_s12 = scalar_lea.hbm %s16797_s9, 32 }
 0x97b   : > { %p14205_p6 = scmp.ne.s32.totalorder %s16704_s21, %s14204_s17  ;;  %p14209_p3 = scmp.lt.u32.totalorder %s16704_s21, %s16797_s9 }
 0x97c   : > { %p14210_p5 = scmp.lt.u32.totalorder %s14208_s12, %s14204_s17  ;;  %p14212_p7 = scmp.lt.u32.totalorder %s14204_s17, %s16704_s21 }
 0x97d   : > { %p14206_p10 = pnand %p14205_p6, %p16798_p4 }
 0x97e   : > { %p14211_p9 = por %p14210_p5, %p14209_p3 }
 0x97f   : > { %p14207_p11 = pneg %p14206_p10 }
 0x980   : > { %p14213_p12 = por %p14212_p7, %p14211_p9 }
 0x982   : > { %p14214_p1 = pnand %p14213_p12, %p14207_p11 }
 0x984   : > { %14217 = shalt.err (!%p14214_p1)
}
 0x985   : > { %13450 = dma.vmem_to_hbm [thread:$0]  (%p16798_p4), %s16706_s11, 16, %s16704_s21, %s10755_s30  }
 0x986 PF: > { %s10779_s22 = sand.u32 1, %s14256_s25   ;;  %p16799_p13 = scmp.ne.s32.totalorder %s16781_s29, 0 }
 0x987   : > { %p16800_p0 = scmp.ge.s32.totalorder %s14268_s28, 2  ;;  %s10780_s14 = scalar_lea.sflag [#allocation7], %s10779_s22 }
 0x989   : > { %p13473_p2 = pnand %p16800_p0, %p16799_p13 }
 0x98b   : > { %14251 = dma.done.wait (!%p13473_p2), %s10780_s14, 16  }
 0x98c   : > { %14253 = vsyncadd (!%p13473_p2), %s10780_s14, 4294967280  ;;  %p29_p8 = scmp.ge.s32.totalorder %s14526_s16, 4   ;;  %s16801_s25 = smov %s14260_s26 }
 0x98d   : > { %s16802_s26 = smov %s14264_s27  ;;  %s16803_s27 = smov %s14538_s10 }
 0x98e   : > { %s16804_s28 = smov %s14526_s16  ;;  %31 = sbr.rel (!%p29_p8) target bundleno = 15 (0xf), region = 143 }
 0x995   :  { %10784 = vsyncpa [#allocation6], 1 }
 0x996   :  { %10786 = vsyncpa [#allocation6 + $0x1], 1 }
 0x997   :  { %10787 = vsyncpa [#allocation9], 1 }
 0x998   :  { %10788 = vsyncpa [#allocation12], 1 }
 0x999   :  { %10789 = vsyncpa [#allocation15], 1 }
 0x99a   :  { %10790 = vsyncpa [#allocation7], 1 }
 0x99b   :  { %10792 = vsyncpa [#allocation7 + $0x1], 1 }

</bundles_post_ra>
